<compile_context>
chip_gen: v5e
topology: v5e:2x2
jax: 0.10.0
libtpu: 0.0.40
codegen_flags: <defaults>
</compile_context>

<pallas_src>
import jax
import jax.numpy as jnp
from jax.experimental import pallas as pl
from jax.experimental.pallas import tpu as pltpu

# EfficientFormer 'S2' widths (last stage width feeds the head)
EfficientFormer_width = {"S2": [32, 64, 144, 288]}
NUM_FEATURES = EfficientFormer_width["S2"][-1]   # 288
GROUPS = [4, 6, 10, 5, 9, 6]
N_HEADS = len(GROUPS)
H1, H2 = 1024, 512
G_PAD = 16                                       # pad ragged group widths to 16

HEADS_PER_STEP = 3                               # 3 heads fused per grid step
N_STEPS = N_HEADS // HEADS_PER_STEP              # 2 -> 1 step per TC on v7x
OUT_W = HEADS_PER_STEP * G_PAD                   # 48-lane output block


def _fused_head_kernel(x_ref, w1_ref, b1_ref, w2_ref, b2_ref, w3_ref, b3_ref,
                       o_ref):
    """3 heads per grid step: ((x@W1+b1).relu() @ W2+b2).relu() @ W3+b3."""
    x = x_ref[...]                                            # (B, F) bf16
    outs = []
    for h in range(HEADS_PER_STEP):                           # static unroll
        h1 = jnp.dot(x, w1_ref[h],
                     preferred_element_type=jnp.float32) + b1_ref[h]
        h1 = jnp.maximum(h1, 0.0).astype(x.dtype)
        h2 = jnp.dot(h1, w2_ref[h],
                     preferred_element_type=jnp.float32) + b2_ref[h]
        h2 = jnp.maximum(h2, 0.0).astype(x.dtype)
        o = jnp.dot(h2, w3_ref[h],
                    preferred_element_type=jnp.float32) + b3_ref[h]
        outs.append(o)
    # One lane-dense (B, 48) store per step instead of 3 masked 16-wide stores.
    o_ref[...] = jnp.concatenate(outs, axis=-1).astype(o_ref.dtype)


def head_forward(x, params):
    """Full Head.forward: single fused Pallas kernel, 3 heads per grid step."""
    B = x.shape[0]
    compute_dtype = params["w1"].dtype
    xb = x.astype(compute_dtype)

    args = (xb, params["w1"], params["b1"], params["w2"], params["b2"],
            params["w3"], params["b3"])

    flops = 2 * B * (NUM_FEATURES * H1 + H1 * H2 + H2 * G_PAD) * N_HEADS
    bytes_accessed = sum(int(a.size) * a.dtype.itemsize for a in args)
    bytes_accessed += N_STEPS * B * OUT_W * 4                 # output slab

    stacked = pl.pallas_call(
        _fused_head_kernel,
        out_shape=jax.ShapeDtypeStruct((N_STEPS, B, OUT_W), jnp.float32),
        grid=(N_STEPS,),
        in_specs=[
            # x: constant block index -> stays VMEM-resident across steps.
            pl.BlockSpec((B, NUM_FEATURES), lambda s: (0, 0)),
            # Stacked per-head weights/biases, 3 heads per block.
            pl.BlockSpec((HEADS_PER_STEP, NUM_FEATURES, H1),
                         lambda s: (s, 0, 0)),
            pl.BlockSpec((HEADS_PER_STEP, 1, H1), lambda s: (s, 0, 0)),
            pl.BlockSpec((HEADS_PER_STEP, H1, H2), lambda s: (s, 0, 0)),
            pl.BlockSpec((HEADS_PER_STEP, 1, H2), lambda s: (s, 0, 0)),
            pl.BlockSpec((HEADS_PER_STEP, H2, G_PAD), lambda s: (s, 0, 0)),
            pl.BlockSpec((HEADS_PER_STEP, 1, G_PAD), lambda s: (s, 0, 0)),
        ],
        out_specs=pl.BlockSpec((None, B, OUT_W), lambda s: (s, 0, 0)),
        compiler_params=pltpu.CompilerParams(
            # grid=(2,): 1 step/TC on v7x (balanced); no-op on v5e/v6e.
            dimension_semantics=("parallel",),
            # ~9.5 MiB double-buffered weights; keep clear of v5e's 16 MiB
            # scoped default, safe on v7x's 64 MiB physical VMEM.
            vmem_limit_bytes=32 * 1024 * 1024,
        ),
        cost_estimate=pl.CostEstimate(
            flops=flops, transcendentals=0, bytes_accessed=bytes_accessed),
    )(*args)

    # Glue: slice each head's valid columns from the padded slab and concat.
    outs = []
    for i, g in enumerate(GROUPS):
        step, within = divmod(i, HEADS_PER_STEP)
        outs.append(stacked[step, :, within * G_PAD: within * G_PAD + g])
    return jnp.concatenate(outs, axis=1)


def init_linear(key, fan_in, fan_out):
    """Mimics PyTorch nn.Linear default init (uniform +-1/sqrt(fan_in))."""
    kw, kb = jax.random.split(key)
    bound = 1.0 / (fan_in ** 0.5)
    w = jax.random.uniform(kw, (fan_in, fan_out), jnp.float32, -bound, bound)
    b = jax.random.uniform(kb, (1, fan_out), jnp.float32, -bound, bound)
    return w, b


def init_head_params(key, param_dtype=jnp.bfloat16):
    """Stacked per-layer parameters; W3/b3 zero-padded to width G_PAD."""
    w1s, b1s, w2s, b2s, w3s, b3s = [], [], [], [], [], []
    for g in GROUPS:
        key, k1, k2, k3 = jax.random.split(key, 4)
        w1, b1 = init_linear(k1, NUM_FEATURES, H1)
        w2, b2 = init_linear(k2, H1, H2)
        w3, b3 = init_linear(k3, H2, g)
        w3 = jnp.pad(w3, ((0, 0), (0, G_PAD - g)))
        b3 = jnp.pad(b3, ((0, 0), (0, G_PAD - g)))
        w1s.append(w1); b1s.append(b1)
        w2s.append(w2); b2s.append(b2)
        w3s.append(w3); b3s.append(b3)
    return {
        "w1": jnp.stack(w1s).astype(param_dtype),   # (6, 288, 1024) bf16
        "b1": jnp.stack(b1s),                       # (6, 1, 1024)   f32
        "w2": jnp.stack(w2s).astype(param_dtype),   # (6, 1024, 512) bf16
        "b2": jnp.stack(b2s),                       # (6, 1, 512)    f32
        "w3": jnp.stack(w3s).astype(param_dtype),   # (6, 512, 16)   bf16
        "b3": jnp.stack(b3s),                       # (6, 1, 16)     f32
    }


def head_forward_ref(x, params):
    """Plain-JAX reference with the identical mixed-precision policy."""
    cdt = params["w1"].dtype
    xb = x.astype(cdt)
    outs = []
    for i, g in enumerate(GROUPS):
        h1 = jnp.dot(xb, params["w1"][i],
                     preferred_element_type=jnp.float32) + params["b1"][i]
        h1 = jnp.maximum(h1, 0.0).astype(cdt)
        h2 = jnp.dot(h1, params["w2"][i],
                     preferred_element_type=jnp.float32) + params["b2"][i]
        h2 = jnp.maximum(h2, 0.0).astype(cdt)
        o = jnp.dot(h2, params["w3"][i],
                    preferred_element_type=jnp.float32) + params["b3"][i]
        outs.append(o[:, :g])
    return jnp.concatenate(outs, axis=1)


if __name__ == "__main__":
    key = jax.random.PRNGKey(0)
    kx, kp = jax.random.split(key)

    B = 2
    x = jax.random.normal(kx, (B, NUM_FEATURES), jnp.float32)
    params = init_head_params(kp)

    fwd = jax.jit(head_forward)
    out = jax.block_until_ready(fwd(x, params))

    assert out.shape == (B, sum(GROUPS)), out.shape

    ref = head_forward_ref(x, params)
    assert jnp.allclose(out, ref, rtol=2e-3, atol=2e-3), (
        float(jnp.max(jnp.abs(out - ref)))
    )

    print("KERNEL_OK")
</pallas_src>

<mosaic_0001>
module attributes {stable_mosaic.version = 11 : i64} {
  func.func @_fused_head_kernel(%arg0: i32, %arg1: memref<2x288xbf16, #tpu.memory_space<vmem>>, %arg2: memref<3x288x1024xbf16, #tpu.memory_space<vmem>>, %arg3: memref<3x1x1024xf32, #tpu.memory_space<vmem>>, %arg4: memref<3x1024x512xbf16, #tpu.memory_space<vmem>>, %arg5: memref<3x1x512xf32, #tpu.memory_space<vmem>>, %arg6: memref<3x512x16xbf16, #tpu.memory_space<vmem>>, %arg7: memref<3x1x16xf32, #tpu.memory_space<vmem>>, %arg8: memref<1x2x48xf32, #tpu.memory_space<vmem>>) attributes {dimension_semantics = [#tpu.dimension_semantics<parallel>], iteration_bounds = array<i64: 2>, scalar_prefetch = 0 : i64, scratch_operands = 0 : i64, tpu.core_type = #tpu.core_type<tc>, window_params = [{pipeline_mode = #tpu.pipeline_mode<synchronous>, transform_indices = @transform_0, window_bounds = array<i64: 2, 288>}, {transform_indices = @transform_1, window_bounds = array<i64: 3, 288, 1024>}, {transform_indices = @transform_2, window_bounds = array<i64: 3, 1, 1024>}, {transform_indices = @transform_3, window_bounds = array<i64: 3, 1024, 512>}, {transform_indices = @transform_4, window_bounds = array<i64: 3, 1, 512>}, {transform_indices = @transform_5, window_bounds = array<i64: 3, 512, 16>}, {transform_indices = @transform_6, window_bounds = array<i64: 3, 1, 16>}, {transform_indices = @transform_7, window_bounds = array<i64: 1, 2, 48>}]} {
    %c0 = arith.constant 0 : index
    %c0_0 = arith.constant 0 : index
    %0 = vector.load %arg1[%c0, %c0_0] : memref<2x288xbf16, #tpu.memory_space<vmem>>, vector<2x288xbf16>
    %c0_1 = arith.constant 0 : index
    %c0_2 = arith.constant 0 : index
    %c0_3 = arith.constant 0 : index
    %1 = vector.load %arg2[%c0_1, %c0_2, %c0_3] : memref<3x288x1024xbf16, #tpu.memory_space<vmem>>, vector<1x288x1024xbf16>
    %2 = vector.shape_cast %1 : vector<1x288x1024xbf16> to vector<288x1024xbf16>
    %cst = arith.constant dense<0.000000e+00> : vector<2x1024xf32>
    %3 = tpu.matmul %0, %2, %cst {dimension_numbers = #tpu.dot_dimension_numbers<[1], [0], [0], [1], [0, 0, 1, 1], [], []>} : vector<2x288xbf16>, vector<288x1024xbf16>, vector<2x1024xf32> -> vector<2x1024xf32>
    %c0_4 = arith.constant 0 : index
    %c0_5 = arith.constant 0 : index
    %c0_6 = arith.constant 0 : index
    %4 = vector.load %arg3[%c0_4, %c0_5, %c0_6] : memref<3x1x1024xf32, #tpu.memory_space<vmem>>, vector<1x1x1024xf32>
    %5 = vector.shape_cast %4 : vector<1x1x1024xf32> to vector<1x1024xf32>
    %6 = vector.broadcast %5 : vector<1x1024xf32> to vector<2x1024xf32>
    %7 = arith.addf %3, %6 : vector<2x1024xf32>
    %cst_7 = arith.constant 0.000000e+00 : f32
    %8 = vector.broadcast %cst_7 : f32 to vector<2x1024xf32>
    %9 = arith.maximumf %7, %8 : vector<2x1024xf32>
    %10 = arith.truncf %9 : vector<2x1024xf32> to vector<2x1024xbf16>
    %c0_8 = arith.constant 0 : index
    %c0_9 = arith.constant 0 : index
    %c0_10 = arith.constant 0 : index
    %11 = vector.load %arg4[%c0_8, %c0_9, %c0_10] : memref<3x1024x512xbf16, #tpu.memory_space<vmem>>, vector<1x1024x512xbf16>
    %12 = vector.shape_cast %11 : vector<1x1024x512xbf16> to vector<1024x512xbf16>
    %cst_11 = arith.constant dense<0.000000e+00> : vector<2x512xf32>
    %13 = tpu.matmul %10, %12, %cst_11 {dimension_numbers = #tpu.dot_dimension_numbers<[1], [0], [0], [1], [0, 0, 1, 1], [], []>} : vector<2x1024xbf16>, vector<1024x512xbf16>, vector<2x512xf32> -> vector<2x512xf32>
    %c0_12 = arith.constant 0 : index
    %c0_13 = arith.constant 0 : index
    %c0_14 = arith.constant 0 : index
    %14 = vector.load %arg5[%c0_12, %c0_13, %c0_14] : memref<3x1x512xf32, #tpu.memory_space<vmem>>, vector<1x1x512xf32>
    %15 = vector.shape_cast %14 : vector<1x1x512xf32> to vector<1x512xf32>
    %16 = vector.broadcast %15 : vector<1x512xf32> to vector<2x512xf32>
    %17 = arith.addf %13, %16 : vector<2x512xf32>
    %cst_15 = arith.constant 0.000000e+00 : f32
    %18 = vector.broadcast %cst_15 : f32 to vector<2x512xf32>
    %19 = arith.maximumf %17, %18 : vector<2x512xf32>
    %20 = arith.truncf %19 : vector<2x512xf32> to vector<2x512xbf16>
    %c0_16 = arith.constant 0 : index
    %c0_17 = arith.constant 0 : index
    %c0_18 = arith.constant 0 : index
    %21 = vector.load %arg6[%c0_16, %c0_17, %c0_18] : memref<3x512x16xbf16, #tpu.memory_space<vmem>>, vector<1x512x16xbf16>
    %22 = vector.shape_cast %21 : vector<1x512x16xbf16> to vector<512x16xbf16>
    %cst_19 = arith.constant dense<0.000000e+00> : vector<2x16xf32>
    %23 = tpu.matmul %20, %22, %cst_19 {dimension_numbers = #tpu.dot_dimension_numbers<[1], [0], [0], [1], [0, 0, 1, 1], [], []>} : vector<2x512xbf16>, vector<512x16xbf16>, vector<2x16xf32> -> vector<2x16xf32>
    %c0_20 = arith.constant 0 : index
    %c0_21 = arith.constant 0 : index
    %c0_22 = arith.constant 0 : index
    %24 = vector.load %arg7[%c0_20, %c0_21, %c0_22] : memref<3x1x16xf32, #tpu.memory_space<vmem>>, vector<1x1x16xf32>
    %25 = vector.shape_cast %24 : vector<1x1x16xf32> to vector<1x16xf32>
    %26 = vector.broadcast %25 : vector<1x16xf32> to vector<2x16xf32>
    %27 = arith.addf %23, %26 : vector<2x16xf32>
    %c1 = arith.constant 1 : index
    %c0_23 = arith.constant 0 : index
    %c0_24 = arith.constant 0 : index
    %28 = vector.load %arg2[%c1, %c0_23, %c0_24] : memref<3x288x1024xbf16, #tpu.memory_space<vmem>>, vector<1x288x1024xbf16>
    %29 = vector.shape_cast %28 : vector<1x288x1024xbf16> to vector<288x1024xbf16>
    %cst_25 = arith.constant dense<0.000000e+00> : vector<2x1024xf32>
    %30 = tpu.matmul %0, %29, %cst_25 {dimension_numbers = #tpu.dot_dimension_numbers<[1], [0], [0], [1], [0, 0, 1, 1], [], []>} : vector<2x288xbf16>, vector<288x1024xbf16>, vector<2x1024xf32> -> vector<2x1024xf32>
    %c1_26 = arith.constant 1 : index
    %c0_27 = arith.constant 0 : index
    %c0_28 = arith.constant 0 : index
    %31 = vector.load %arg3[%c1_26, %c0_27, %c0_28] : memref<3x1x1024xf32, #tpu.memory_space<vmem>>, vector<1x1x1024xf32>
    %32 = vector.shape_cast %31 : vector<1x1x1024xf32> to vector<1x1024xf32>
    %33 = vector.broadcast %32 : vector<1x1024xf32> to vector<2x1024xf32>
    %34 = arith.addf %30, %33 : vector<2x1024xf32>
    %cst_29 = arith.constant 0.000000e+00 : f32
    %35 = vector.broadcast %cst_29 : f32 to vector<2x1024xf32>
    %36 = arith.maximumf %34, %35 : vector<2x1024xf32>
    %37 = arith.truncf %36 : vector<2x1024xf32> to vector<2x1024xbf16>
    %c1_30 = arith.constant 1 : index
    %c0_31 = arith.constant 0 : index
    %c0_32 = arith.constant 0 : index
    %38 = vector.load %arg4[%c1_30, %c0_31, %c0_32] : memref<3x1024x512xbf16, #tpu.memory_space<vmem>>, vector<1x1024x512xbf16>
    %39 = vector.shape_cast %38 : vector<1x1024x512xbf16> to vector<1024x512xbf16>
    %cst_33 = arith.constant dense<0.000000e+00> : vector<2x512xf32>
    %40 = tpu.matmul %37, %39, %cst_33 {dimension_numbers = #tpu.dot_dimension_numbers<[1], [0], [0], [1], [0, 0, 1, 1], [], []>} : vector<2x1024xbf16>, vector<1024x512xbf16>, vector<2x512xf32> -> vector<2x512xf32>
    %c1_34 = arith.constant 1 : index
    %c0_35 = arith.constant 0 : index
    %c0_36 = arith.constant 0 : index
    %41 = vector.load %arg5[%c1_34, %c0_35, %c0_36] : memref<3x1x512xf32, #tpu.memory_space<vmem>>, vector<1x1x512xf32>
    %42 = vector.shape_cast %41 : vector<1x1x512xf32> to vector<1x512xf32>
    %43 = vector.broadcast %42 : vector<1x512xf32> to vector<2x512xf32>
    %44 = arith.addf %40, %43 : vector<2x512xf32>
    %cst_37 = arith.constant 0.000000e+00 : f32
    %45 = vector.broadcast %cst_37 : f32 to vector<2x512xf32>
    %46 = arith.maximumf %44, %45 : vector<2x512xf32>
    %47 = arith.truncf %46 : vector<2x512xf32> to vector<2x512xbf16>
    %c1_38 = arith.constant 1 : index
    %c0_39 = arith.constant 0 : index
    %c0_40 = arith.constant 0 : index
    %48 = vector.load %arg6[%c1_38, %c0_39, %c0_40] : memref<3x512x16xbf16, #tpu.memory_space<vmem>>, vector<1x512x16xbf16>
    %49 = vector.shape_cast %48 : vector<1x512x16xbf16> to vector<512x16xbf16>
    %cst_41 = arith.constant dense<0.000000e+00> : vector<2x16xf32>
    %50 = tpu.matmul %47, %49, %cst_41 {dimension_numbers = #tpu.dot_dimension_numbers<[1], [0], [0], [1], [0, 0, 1, 1], [], []>} : vector<2x512xbf16>, vector<512x16xbf16>, vector<2x16xf32> -> vector<2x16xf32>
    %c1_42 = arith.constant 1 : index
    %c0_43 = arith.constant 0 : index
    %c0_44 = arith.constant 0 : index
    %51 = vector.load %arg7[%c1_42, %c0_43, %c0_44] : memref<3x1x16xf32, #tpu.memory_space<vmem>>, vector<1x1x16xf32>
    %52 = vector.shape_cast %51 : vector<1x1x16xf32> to vector<1x16xf32>
    %53 = vector.broadcast %52 : vector<1x16xf32> to vector<2x16xf32>
    %54 = arith.addf %50, %53 : vector<2x16xf32>
    %c2 = arith.constant 2 : index
    %c0_45 = arith.constant 0 : index
    %c0_46 = arith.constant 0 : index
    %55 = vector.load %arg2[%c2, %c0_45, %c0_46] : memref<3x288x1024xbf16, #tpu.memory_space<vmem>>, vector<1x288x1024xbf16>
    %56 = vector.shape_cast %55 : vector<1x288x1024xbf16> to vector<288x1024xbf16>
    %cst_47 = arith.constant dense<0.000000e+00> : vector<2x1024xf32>
    %57 = tpu.matmul %0, %56, %cst_47 {dimension_numbers = #tpu.dot_dimension_numbers<[1], [0], [0], [1], [0, 0, 1, 1], [], []>} : vector<2x288xbf16>, vector<288x1024xbf16>, vector<2x1024xf32> -> vector<2x1024xf32>
    %c2_48 = arith.constant 2 : index
    %c0_49 = arith.constant 0 : index
    %c0_50 = arith.constant 0 : index
    %58 = vector.load %arg3[%c2_48, %c0_49, %c0_50] : memref<3x1x1024xf32, #tpu.memory_space<vmem>>, vector<1x1x1024xf32>
    %59 = vector.shape_cast %58 : vector<1x1x1024xf32> to vector<1x1024xf32>
    %60 = vector.broadcast %59 : vector<1x1024xf32> to vector<2x1024xf32>
    %61 = arith.addf %57, %60 : vector<2x1024xf32>
    %cst_51 = arith.constant 0.000000e+00 : f32
    %62 = vector.broadcast %cst_51 : f32 to vector<2x1024xf32>
    %63 = arith.maximumf %61, %62 : vector<2x1024xf32>
    %64 = arith.truncf %63 : vector<2x1024xf32> to vector<2x1024xbf16>
    %c2_52 = arith.constant 2 : index
    %c0_53 = arith.constant 0 : index
    %c0_54 = arith.constant 0 : index
    %65 = vector.load %arg4[%c2_52, %c0_53, %c0_54] : memref<3x1024x512xbf16, #tpu.memory_space<vmem>>, vector<1x1024x512xbf16>
    %66 = vector.shape_cast %65 : vector<1x1024x512xbf16> to vector<1024x512xbf16>
    %cst_55 = arith.constant dense<0.000000e+00> : vector<2x512xf32>
    %67 = tpu.matmul %64, %66, %cst_55 {dimension_numbers = #tpu.dot_dimension_numbers<[1], [0], [0], [1], [0, 0, 1, 1], [], []>} : vector<2x1024xbf16>, vector<1024x512xbf16>, vector<2x512xf32> -> vector<2x512xf32>
    %c2_56 = arith.constant 2 : index
    %c0_57 = arith.constant 0 : index
    %c0_58 = arith.constant 0 : index
    %68 = vector.load %arg5[%c2_56, %c0_57, %c0_58] : memref<3x1x512xf32, #tpu.memory_space<vmem>>, vector<1x1x512xf32>
    %69 = vector.shape_cast %68 : vector<1x1x512xf32> to vector<1x512xf32>
    %70 = vector.broadcast %69 : vector<1x512xf32> to vector<2x512xf32>
    %71 = arith.addf %67, %70 : vector<2x512xf32>
    %cst_59 = arith.constant 0.000000e+00 : f32
    %72 = vector.broadcast %cst_59 : f32 to vector<2x512xf32>
    %73 = arith.maximumf %71, %72 : vector<2x512xf32>
    %74 = arith.truncf %73 : vector<2x512xf32> to vector<2x512xbf16>
    %c2_60 = arith.constant 2 : index
    %c0_61 = arith.constant 0 : index
    %c0_62 = arith.constant 0 : index
    %75 = vector.load %arg6[%c2_60, %c0_61, %c0_62] : memref<3x512x16xbf16, #tpu.memory_space<vmem>>, vector<1x512x16xbf16>
    %76 = vector.shape_cast %75 : vector<1x512x16xbf16> to vector<512x16xbf16>
    %cst_63 = arith.constant dense<0.000000e+00> : vector<2x16xf32>
    %77 = tpu.matmul %74, %76, %cst_63 {dimension_numbers = #tpu.dot_dimension_numbers<[1], [0], [0], [1], [0, 0, 1, 1], [], []>} : vector<2x512xbf16>, vector<512x16xbf16>, vector<2x16xf32> -> vector<2x16xf32>
    %c2_64 = arith.constant 2 : index
    %c0_65 = arith.constant 0 : index
    %c0_66 = arith.constant 0 : index
    %78 = vector.load %arg7[%c2_64, %c0_65, %c0_66] : memref<3x1x16xf32, #tpu.memory_space<vmem>>, vector<1x1x16xf32>
    %79 = vector.shape_cast %78 : vector<1x1x16xf32> to vector<1x16xf32>
    %80 = vector.broadcast %79 : vector<1x16xf32> to vector<2x16xf32>
    %81 = arith.addf %77, %80 : vector<2x16xf32>
    %82 = tpu.concatenate %27, %54, %81 in 1 : vector<2x16xf32>, vector<2x16xf32>, vector<2x16xf32> -> vector<2x48xf32>
    %c0_67 = arith.constant 0 : index
    %c0_68 = arith.constant 0 : index
    %c0_69 = arith.constant 0 : index
    %83 = vector.load %arg8[%c0_67, %c0_68, %c0_69] : memref<1x2x48xf32, #tpu.memory_space<vmem>>, vector<1x2x48xf32>
    %84 = vector.shape_cast %83 : vector<1x2x48xf32> to vector<2x48xf32>
    %85 = vector.shape_cast %82 : vector<2x48xf32> to vector<1x2x48xf32>
    tpu.vector_store %arg8[%c0_67, %c0_68, %c0_69], %85 {strides = array<i32>} : memref<1x2x48xf32, #tpu.memory_space<vmem>>, vector<1x2x48xf32>,
    return
  }
  func.func @transform_0(%arg0: i32) -> (i32, i32) {
    %c0_i32 = arith.constant 0 : i32
    %c0_i32_0 = arith.constant 0 : i32
    %c0_i32_1 = arith.constant 0 : i32
    return %c0_i32, %c0_i32_0 : i32, i32
  }
  func.func @transform_1(%arg0: i32) -> (i32, i32, i32) {
    %c0_i32 = arith.constant 0 : i32
    %c0_i32_0 = arith.constant 0 : i32
    %c0_i32_1 = arith.constant 0 : i32
    return %arg0, %c0_i32, %c0_i32_0 : i32, i32, i32
  }
  func.func @transform_2(%arg0: i32) -> (i32, i32, i32) {
    %c0_i32 = arith.constant 0 : i32
    %c0_i32_0 = arith.constant 0 : i32
    %c0_i32_1 = arith.constant 0 : i32
    return %arg0, %c0_i32, %c0_i32_0 : i32, i32, i32
  }
  func.func @transform_3(%arg0: i32) -> (i32, i32, i32) {
    %c0_i32 = arith.constant 0 : i32
    %c0_i32_0 = arith.constant 0 : i32
    %c0_i32_1 = arith.constant 0 : i32
    return %arg0, %c0_i32, %c0_i32_0 : i32, i32, i32
  }
  func.func @transform_4(%arg0: i32) -> (i32, i32, i32) {
    %c0_i32 = arith.constant 0 : i32
    %c0_i32_0 = arith.constant 0 : i32
    %c0_i32_1 = arith.constant 0 : i32
    return %arg0, %c0_i32, %c0_i32_0 : i32, i32, i32
  }
  func.func @transform_5(%arg0: i32) -> (i32, i32, i32) {
    %c0_i32 = arith.constant 0 : i32
    %c0_i32_0 = arith.constant 0 : i32
    %c0_i32_1 = arith.constant 0 : i32
    return %arg0, %c0_i32, %c0_i32_0 : i32, i32, i32
  }
  func.func @transform_6(%arg0: i32) -> (i32, i32, i32) {
    %c0_i32 = arith.constant 0 : i32
    %c0_i32_0 = arith.constant 0 : i32
    %c0_i32_1 = arith.constant 0 : i32
    return %arg0, %c0_i32, %c0_i32_0 : i32, i32, i32
  }
  func.func @transform_7(%arg0: i32) -> (i32, i32, i32) {
    %c0_i32 = arith.constant 0 : i32
    %c0_i32_0 = arith.constant 0 : i32
    %c0_i32_1 = arith.constant 0 : i32
    return %arg0, %c0_i32, %c0_i32_0 : i32, i32, i32
  }
}

</mosaic_0001>

<bundles_post_ra>
// kernel: head_forward.1
= control target key start
LH: loop header
LB: loop body
LE: loop exit
PB: predicated region body
PF: predicated region fallthrough
CT: control target
= control target key end

     0   :  { %s22298_s0 = inlined_call_operand.vmem [shape: bf16[2,288], index: 0, kind: input, shape index: {}]   ;;  %s22299_s1 = inlined_call_operand.hbm [shape: bf16[6,288,1024], index: 1, kind: input, shape index: {}]   ;;  %s22300_s2 = inlined_call_operand.hbm [shape: f32[6,1,1024], index: 2, kind: input, shape index: {}]   ;;  %s22301_s3 = inlined_call_operand.hbm [shape: bf16[6,1024,512], index: 3, kind: input, shape index: {}]   ;;  %s22302_s4 = inlined_call_operand.hbm [shape: f32[6,1,512], index: 4, kind: input, shape index: {}]   ;;  %s22303_s5 = inlined_call_operand.vmem [shape: bf16[6,512,16], index: 5, kind: input, shape index: {}]   ;;  %s22304_s6 = inlined_call_operand.hbm [shape: f32[6,1,16], index: 6, kind: input, shape index: {}]   ;;  %s22305_s7 = inlined_call_operand.vmem [shape: f32[2,2,48], index: 7, kind: output, shape index: {}]  }
   0x1   :  { %22310 = sst [smem:[#allocation16_spill]] %s22299_s1 }
   0x2   :  { %22311 = sst [smem:[#allocation17_spill]] %s22300_s2 }
   0x3   :  { %22312 = sst [smem:[#allocation18_spill]] %s22302_s4 }
   0x4   :  { %22313 = sst [smem:[#allocation19_spill]] %s22305_s7 }
   0x5   :  { %12 = vsyncpa [#allocation3], 0 }
   0x6   :  { %14 = vsyncpa [#allocation3 + $0x1], 0 }
   0x7   :  { %15 = vsyncpa [#allocation5], 0 }
   0x8   :  { %17 = vsyncpa [#allocation5 + $0x1], 0 }
   0x9   :  { %18 = vsyncpa [#allocation8], 0 }
   0xa   :  { %20 = vsyncpa [#allocation8 + $0x1], 0  ;;  %s18980_s24 = smov 0   ;;  %s18982_s25 = smov 0  }
   0xb   :  { %s18984_s26 = smov 0   ;;  %s18986_s27 = smov 0  }
   0xc LB: > { %22314 = sst [smem:[#allocation13_spill]] %s18923_s26  ;;  %s18999_s28 = sadd.s32 4294967295, %s18927_s27   ;;  %s18927_s27 = sphi %s18986_s27, %s22327_s27   ;;  %s18923_s26 = sphi %s18984_s26, %s22329_s26   ;;  %s18919_s25 = sphi %s18982_s25, %s22331_s25   ;;  %s18915_s24 = sphi %s18980_s24, %s22330_s24  }
   0xd   : > { %s19002_s29 = sadd.s32 1, %s18927_s27   ;;  %s54_s8 = sadd.s32 1, %s18923_s26 }
   0xe   : > { %22315 = sst [smem:[#allocation14_spill]] %s19002_s29  ;;  %s51_s30 = ssub.s32 %s18927_s27, %s19002_s29 }
   0xf   : > { %p52_p0 = scmp.eq.s32.totalorder %s51_s30, 0  ;;  %p61_p1 = scmp.ne.s32.totalorder %s18923_s26, %s18919_s25 }
  0x10   : > { %p62_p2 = scmp.eq.s32.totalorder %s18927_s27, 0  ;;  %p67_p3 = scmp.ne.s32.totalorder %s18919_s25, %s18915_s24 }
  0x11   : > { %s19012_s9 = scalar_select %p52_p0, %s18923_s26, %s54_s8  }
  0x12   : > { %p63_p4 = por %p62_p2, %p61_p1  ;;  %p68_p5 = scmp.eq.s32.totalorder %s18999_s28, 0 }
  0x13   : > { %22316 = sst [smem:[#allocation15_spill]] %s19012_s9  ;;  %p18679_p6 = scmp.lt.s32.totalorder %s18927_s27, 2 }
  0x14   : > { %p19016_p7 = por %p68_p5, %p67_p3  ;;  %s19021_s11 = sand.u32 1, %s18923_s26  }
  0x15   : > { %p19023_p8 = pnand %p18679_p6, %p63_p4  ;;  %s22306_s13 = sand.u32 1, %s18927_s27  }
  0x16   : > { %s18644_s14 = smul.u32 24, %s19021_s11  ;;  %s22319_s2 = sld [smem:[#allocation17_spill]] }
  0x17   : > { %s17340_s15 = smul.u32 24, %s18927_s27  ;;  %s19035_s22 = scalar_lea.sflag [#allocation5], %s22306_s13 }
  0x18   : > { %s277_s19 = scalar_lea.vmem [#allocation4], %s18644_s14  ;;  %p19039_p10 = pneg %p19023_p8 }
  0x19   : > { %s285_s20 = sshll.u32 %s277_s19, 4  ;;  %s286_s20 = int_to_ptr.vmem [resolvable:$true] %s285_s20 }
  0x1c   : > { %s282_s18 = scalar_lea.hbm %s22319_s2, %s17340_s15  ;;  %s18742_s15 = scalar_lea.hbm %s22319_s2, 48 }
  0x1d   : > { %s283_s21 = sshll.u32 %s282_s18, 4  ;;  %s284_s21 = int_to_ptr.hbm [resolvable:$true] %s283_s21 }
  0x1e   : > { %s18735_s23 = sshra.s32 %s284_s21, 4  ;;  %s18736_s23 = int_to_ptr.hbm [resolvable:$true] %s18735_s23 }
  0x1f   : > { %s18737_s24 = scalar_lea.hbm %s18736_s23, 24  ;;  %p18743_p13 = scmp.lt.s32.totalorder %s18736_s23, %s22319_s2 }
  0x20   : > { %p18738_p9 = scmp.ne.s32.totalorder %s18736_s23, %s18737_s24  ;;  %p18744_p0 = scmp.lt.s32.totalorder %s18742_s15, %s18737_s24 }
  0x22   : > { %p18740_p11 = pnand %p19039_p10, %p18738_p9  ;;  %p18745_p1 = por %p18744_p0, %p18743_p13 }
  0x24   : > { %p18741_p12 = pneg %p18740_p11 }
  0x26   : > { %p18746_p2 = pnand %p18745_p1, %p18741_p12 }
  0x28   : > { %18749 = shalt.err (!%p18746_p2)
}
  0x29   : > { %s18929_s18 = smov 128   ;;  %s18930_s19 = smov 8  }
  0x2a   : > { %18669 = dma.hbm_to_vmem [thread:$0]  (!%p19023_p8), %s284_s21, 384, %s286_s20, %s19035_s22, %s18929_s18, %s18929_s18, %s18930_s19  }
  0x2b   : > { %p11192_p3 = scmp.ge.s32.totalorder %s18927_s27, 1  ;;  %p369_p4 = scmp.lt.s32.totalorder %s18927_s27, 3 }
  0x2c   : > { %s18646_s8 = smul.u32 12, %s19021_s11  ;;  %s22322_s4 = sld [smem:[#allocation18_spill]] }
  0x2d   : > { %p19057_p5 = pnand %p11192_p3, %p369_p4  ;;  %s17343_s24 = smul.u32 12, %s18927_s27 }
  0x2e   : > { %s322_s17 = scalar_lea.vmem [#allocation7], %s18646_s8  ;;  %s22323_s9 = sand.u32 1, %s18927_s27  }
  0x2f   : > { %s330_s13 = sshll.u32 %s322_s17, 4  ;;  %s19067_s20 = scalar_lea.sflag [#allocation8], %s22323_s9  ;;  %s331_s13 = int_to_ptr.vmem [resolvable:$true] %s330_s13 }
  0x32   : > { %s327_s16 = scalar_lea.hbm %s22322_s4, %s17343_s24  ;;  %s18772_s14 = scalar_lea.hbm %s22322_s4, 24 }
  0x33   : > { %s328_s2 = sshll.u32 %s327_s16, 4  ;;  %s329_s2 = int_to_ptr.hbm [resolvable:$true] %s328_s2 }
  0x34   : > { %s18765_s21 = sshra.s32 %s329_s2, 4  ;;  %s18766_s21 = int_to_ptr.hbm [resolvable:$true] %s18765_s21 }
  0x35   : > { %s18767_s18 = scalar_lea.hbm %s18766_s21, 12  ;;  %p18773_p12 = scmp.lt.s32.totalorder %s18766_s21, %s22322_s4 }
  0x36   : > { %p18768_p6 = scmp.ne.s32.totalorder %s18766_s21, %s18767_s18  ;;  %p18774_p13 = scmp.lt.s32.totalorder %s18772_s14, %s18767_s18 }
  0x38   : > { %p18770_p9 = pnand %p18768_p6, %p19039_p10  ;;  %p18775_p0 = por %p18774_p13, %p18773_p12 }
  0x3a   : > { %p18771_p11 = pneg %p18770_p9 }
  0x3c   : > { %p18776_p1 = pnand %p18775_p0, %p18771_p11 }
  0x3e   : > { %18779 = shalt.err (!%p18776_p1)
}
  0x3f   : > { %s18931_s9 = smov 64   ;;  %s18932_s15 = smov 4  }
  0x40   : > { %18675 = dma.hbm_to_vmem [thread:$0]  (!%p19023_p8), %s329_s2, 192, %s331_s13, %s19067_s20, %s18931_s9, %s18931_s9, %s18932_s15  }
  0x41   : > { %s18642_s26 = smul.u32 3456, %s19021_s11  ;;  %s22324_s1 = sld [smem:[#allocation16_spill]] }
  0x42   : > { %s18680_s16 = smul.u32 3456, %s18927_s27  ;;  %s251_s4 = scalar_lea.sflag [#allocation3], %s19021_s11 }
  0x43   : > { %s254_s18 = scalar_lea.vmem [#allocation2], %s18642_s26  ;;  %s18645_s8 = smul.u32 6144, %s19021_s11 }
  0x44   : > { %s263_s14 = sshll.u32 %s254_s18, 4  ;;  %s264_s14 = int_to_ptr.vmem [resolvable:$true] %s263_s14 }
  0x47   : > { %s260_s21 = scalar_lea.hbm %s22324_s1, %s18680_s16  ;;  %s18802_s9 = scalar_lea.hbm %s22324_s1, 6912 }
  0x48   : > { %s261_s24 = sshll.u32 %s260_s21, 4  ;;  %s262_s24 = int_to_ptr.hbm [resolvable:$true] %s261_s24 }
  0x49   : > { %s18795_s29 = sshra.s32 %s262_s24, 4  ;;  %s18796_s29 = int_to_ptr.hbm [resolvable:$true] %s18795_s29 }
  0x4a   : > { %s18797_s7 = scalar_lea.hbm %s18796_s29, 3456  ;;  %p18803_p6 = scmp.lt.s32.totalorder %s18796_s29, %s22324_s1 }
  0x4b   : > { %p18798_p2 = scmp.ne.s32.totalorder %s18796_s29, %s18797_s7  ;;  %p18804_p9 = scmp.lt.s32.totalorder %s18802_s9, %s18797_s7 }
  0x4d   : > { %p18800_p3 = pnand %p18798_p2, %p19039_p10  ;;  %p18805_p11 = por %p18804_p9, %p18803_p6 }
  0x4f   : > { %p18801_p4 = pneg %p18800_p3 }
  0x51   : > { %p18806_p12 = pnand %p18805_p11, %p18801_p4 }
  0x53   : > { %18809 = shalt.err (!%p18806_p12)
}
  0x54   : > { %s18933_s26 = smov 512   ;;  %s18934_s17 = smov 32  }
  0x55   : > { %18666 = dma.hbm_to_vmem [thread:$0]  (!%p19023_p8), %s262_s24, 55296, %s264_s14, %s251_s4, %s18933_s26, %s18933_s26, %s18934_s17  }
  0x56   : > { %s18641_s19 = smul.u32 6144, %s18927_s27  ;;  %s299_s21 = scalar_lea.vmem [#allocation6], %s18645_s8 }
  0x57   : > { %s308_s18 = sshll.u32 %s299_s21, 4  ;;  %s255_s29 = smul.u32 3, %s18927_s27  ;;  %s309_s18 = int_to_ptr.vmem [resolvable:$true] %s308_s18 }
  0x58   : > { %s305_s15 = scalar_lea.hbm %s22301_s3, %s18641_s19  ;;  %s18832_s14 = scalar_lea.hbm %s22301_s3, 12288 }
  0x59   : > { %s306_s7 = sshll.u32 %s305_s15, 4  ;;  %s307_s7 = int_to_ptr.hbm [resolvable:$true] %s306_s7 }
  0x5a   : > { %s18825_s9 = sshra.s32 %s307_s7, 4  ;;  %s18826_s9 = int_to_ptr.hbm [resolvable:$true] %s18825_s9 }
  0x5b   : > { %s18827_s16 = scalar_lea.hbm %s18826_s9, 6144  ;;  %p18833_p2 = scmp.lt.s32.totalorder %s18826_s9, %s22301_s3 }
  0x5c   : > { %p18828_p13 = scmp.ne.s32.totalorder %s18826_s9, %s18827_s16  ;;  %p18834_p3 = scmp.lt.s32.totalorder %s18832_s14, %s18827_s16 }
  0x5e   : > { %p18830_p0 = pnand %p18828_p13, %p19039_p10  ;;  %p18835_p4 = por %p18834_p3, %p18833_p2 }
  0x60   : > { %p18831_p1 = pneg %p18830_p0 }
  0x62   : > { %p18836_p6 = pnand %p18835_p4, %p18831_p1 }
  0x64   : > { %18839 = shalt.err (!%p18836_p6)
}
  0x65   : > { %s18935_s27 = smov 256   ;;  %s18936_s26 = smov 16  }
  0x66   : > { %18672 = dma.hbm_to_vmem [thread:$0]  (!%p19023_p8), %s307_s7, 98304, %s309_s18, %s19035_s22, %s18935_s27, %s18935_s27, %s18936_s26  }
  0x67   : > { %s18647_s17 = smul.u32 3, %s19021_s11  ;;  %s358_s21 = scalar_lea.hbm %s22304_s6, %s255_s29 }
  0x68   : > { %s359_s2 = sshll.u32 %s358_s21, 4  ;;  %s18862_s11 = scalar_lea.hbm %s22304_s6, 6  ;;  %s360_s2 = int_to_ptr.hbm [resolvable:$true] %s359_s2 }
  0x69   : > { %s354_s13 = scalar_lea.vmem [#allocation9], %s18647_s17  ;;  %s18855_s9 = sshra.s32 %s360_s2, 4  ;;  %s18856_s9 = int_to_ptr.hbm [resolvable:$true] %s18855_s9 }
  0x6a   : > { %s361_s15 = sshll.u32 %s354_s13, 4  ;;  %s18857_s16 = scalar_lea.hbm %s18856_s9, 3  ;;  %s362_s15 = int_to_ptr.vmem [resolvable:$true] %s361_s15 }
  0x6b   : > { %p18858_p9 = scmp.ne.s32.totalorder %s18856_s9, %s18857_s16  ;;  %p18863_p13 = scmp.lt.s32.totalorder %s18856_s9, %s22304_s6 }
  0x6c   : > { %p18864_p0 = scmp.lt.s32.totalorder %s18862_s11, %s18857_s16 }
  0x6d   : > { %p18860_p11 = pnand %p18858_p9, %p19039_p10 }
  0x6e   : > { %p18865_p1 = por %p18864_p0, %p18863_p13 }
  0x6f   : > { %p18861_p12 = pneg %p18860_p11 }
  0x71   : > { %p18866_p2 = pnand %p18865_p1, %p18861_p12 }
  0x73   : > { %18869 = shalt.err (!%p18866_p2)
}
  0x74   : > { %s18937_s7 = smov 1   ;;  %373 = sbr.rel (%p19057_p5) target bundleno = 2089 (0x829), region = 48 }
  0x75   : > { %18678 = dma.hbm_to_vmem [thread:$0]  (!%p19023_p8), %s360_s2, 48, %s362_s15, %s19067_s20, %s18936_s26, %s18936_s26, %s18937_s7  }
  0x76   : > { %s19131_s30 = sand.u32 (!%p19057_p5), 1, %s18919_s25  }
  0x77   : > { %s18648_s29 = smul.u32 (!%p19057_p5), 3456, %s19131_s30  ;;  %s376_s24 = scalar_lea.sflag (!%p19057_p5), [#allocation3], %s19131_s30 }
  0x79   : > { %s19135_s8 = scalar_lea.vmem [#allocation2], %s18648_s29 }
  0x7a   : > { %18902 = dma.done.wait (%p19016_p7), %s376_s24, 55296  }
  0x7b   : > { %18904 = vsyncadd (%p19016_p7), %s376_s24, 4294912000  ;;  %s385_s12 = sand.u32 1, %s18999_s28   ;;  %s18649_s23 = smul.u32 24, %s19131_s30 }
  0x7c   : > { %s386_s20 = scalar_lea.sflag [#allocation5], %s385_s12 }
  0x7d   : > { %s19143_s27 = scalar_lea.vmem [#allocation4], %s18649_s23 }
  0x7e   : > { %18906 = dma.done.wait (%p19016_p7), %s386_s20, 98688  }
  0x7f   : > { %18908 = vsyncadd (%p19016_p7), %s386_s20, 4294868608  ;;  %s18650_s26 = smul.u32 6144, %s19131_s30  ;;  %s406_s1 = scalar_lea.sflag [#allocation8], %s385_s12 }
  0x80   : > { %s18651_s17 = smul.u32 12, %s19131_s30 }
  0x81   : > { %s19151_s19 = scalar_lea.vmem [#allocation6], %s18650_s26 }
  0x82   : > { %s19153_s21 = scalar_lea.vmem [#allocation7], %s18651_s17 }
  0x83   : > { %18910 = dma.done.wait (%p19016_p7), %s406_s1, 240  }
  0x84   : > { %18912 = vsyncadd (%p19016_p7), %s406_s1, 4294967056  ;;  %v11422_v0 = vld [vmem:[%s19135_s8 + $0x1c0] sm:$0xf]  ;;  %v17465_v9 = vld [vmem:[%s19135_s8 + $0x3c4] sm:$0xf]  ;;  %vm1383_vm0 = vcmask 261120  }
  0x85   : > { %v17405_v1 = vld [vmem:[%s19135_s8 + $0x1dc] sm:$0xf0]  ;;  %v11680_v10 = vld [vmem:[%s19135_s8 + $0x3e0] sm:$0xf0]  ;;  %v19204_v60 = vld [vmem:[%s22298_s0] sm:$0x7] }
  0x86   : > { %v11678_v2 = vld [vmem:[%s19135_s8 + $0x3c0] sm:$0xf]  ;;  %v11423_v3 = vor.u32 %v17405_v1, %v11422_v0  ;;  %v11683_v12 = vor.u32 %v17465_v9, %v11680_v10  ;;  %v17457_v20 = vld [vmem:[%s19135_s8 + $0x384] sm:$0xf]  ;;  %657 = vst [vmem:[#allocation1] ss:$9 sm:$0xff] %v19204_v60 }
  0x87   : > { %v17469_v4 = vld [vmem:[%s19135_s8 + $0x3dc] sm:$0xf0]  ;;  %v11648_v22 = vld [vmem:[%s19135_s8 + $0x3a0] sm:$0xf0]  ;;  %s480_s13 = smul.u32 3, %s18999_s28  ;;  %s18938_s18 = smov 16  }
  0x88   : > { %v11742_v5 = vld [vmem:[%s19135_s8 + $0x440] sm:$0xf]  ;;  %v11679_v7 = vor.u32 %v17469_v4, %v11678_v2  ;;  %1386 = vmatpush.bf16.msra.mxu0 %v11423_v3  ;;  %1438 = vmatpush.bf16.msra.mxu2 %v11683_v12  ;;  %v17401_v23 = vld [vmem:[%s19135_s8 + $0x1c4] sm:$0xf]  ;;  %v11651_v25 = vor.u32 %v17457_v20, %v11648_v22  ;;  %s18652_s11 = smul.u32 3, %s19131_s30  ;;  %s18939_s7 = smov 32  }
  0x89   : > { %v17485_v6 = vld [vmem:[%s19135_s8 + $0x45c] sm:$0xf0]  ;;  %v11424_v24 = vld [vmem:[%s19135_s8 + $0x1e0] sm:$0xf0]  ;;  %p19995_p7 = scmp.lt.s32.totalorder %s480_s13, 5  ;;  %p488_p8 = scmp.lt.s32.totalorder %s18999_s28, 1 }
  0x8a   : > { %v11743_v8 = vor.u32 %v17485_v6, %v11742_v5  ;;  %v11390_v11 = vld [vmem:[%s19135_s8 + $0x180] sm:$0xf]  ;;  %1399 = vmatpush.bf16.msra.mxu1 %v11679_v7  ;;  %v11427_v26 = vor.u32 %v17401_v23, %v11424_v24  ;;  %v17449_v32 = vld [vmem:[%s19135_s8 + $0x344] sm:$0xf]  ;;  %s20127_s22 = scalar_lea.vmem [#allocation9], %s18652_s11  ;;  %vm11016_vm1 = vcmask 130048  }
  0x8b   : > { %v17397_v13 = vld [vmem:[%s19135_s8 + $0x19c] sm:$0xf0]  ;;  %v11616_v33 = vld [vmem:[%s19135_s8 + $0x360] sm:$0xf0]  ;;  %s22333_s13 = smov (!%p19995_p7, %s480_s13), 5  ;;  %s22335_s28 = smov (!%p488_p8, %s18999_s28), 1 }
  0x8c   : > { %v11646_v14 = vld [vmem:[%s19135_s8 + $0x380] sm:$0xf]  ;;  %1418 = vmatpush.bf16.msra.mxu3 %v11743_v8  ;;  %v11391_v16 = vor.u32 %v17397_v13, %v11390_v11  ;;  %v17393_v35 = vld [vmem:[%s19135_s8 + $0x184] sm:$0xf]  ;;  %1439 = vmatpush.bf16.msra.mxu2 %v11651_v25  ;;  %v11619_v38 = vor.u32 %v17449_v32, %v11616_v33  ;;  %s17344_s9 = sshll.u32 %s22333_s13, 8  ;;  %s11195_s30 = sshll.u32 %s22335_s28, 1 }
  0x8d   : > { %v17461_v15 = vld [vmem:[%s19135_s8 + $0x39c] sm:$0xf0]  ;;  %v11392_v36 = vld [vmem:[%s19135_s8 + $0x1a0] sm:$0xf0]  ;;  %v19225_v22 = vld [vmem:[#allocation1 + $0x12] sm:$0xff]  ;;  %s20042_s14 = scalar_lea.vmem %s22303_s5, %s17344_s9  ;;  %vm11019_vm2 = vcmask 386048  }
  0x8e   : > { %v11647_v17 = vor.u32 %v17461_v15, %v11646_v14  ;;  %v11710_v18 = vld [vmem:[%s19135_s8 + $0x400] sm:$0xf]  ;;  %1387 = vmatpush.bf16.msra.mxu0 %v11391_v16  ;;  %v11395_v39 = vor.u32 %v17393_v35, %v11392_v36  ;;  %v17441_v43 = vld [vmem:[%s19135_s8 + $0x304] sm:$0xf] }
  0x8f   : > { %v17477_v19 = vld [vmem:[%s19135_s8 + $0x41c] sm:$0xf0]  ;;  %v11584_v44 = vld [vmem:[%s19135_s8 + $0x320] sm:$0xf0] }
  0x90   : > { %v11711_v21 = vor.u32 %v17477_v19, %v11710_v18  ;;  %v11358_v27 = vld [vmem:[%s19135_s8 + $0x140] sm:$0xf]  ;;  %1400 = vmatpush.bf16.msra.mxu1 %v11647_v17  ;;  %v17385_v45 = vld [vmem:[%s19135_s8 + $0x144] sm:$0xf]  ;;  %1440 = vmatpush.bf16.msra.mxu2 %v11619_v38  ;;  %v11587_v51 = vor.u32 %v17441_v43, %v11584_v44 }
  0x91   : > { %v17389_v28 = vld [vmem:[%s19135_s8 + $0x15c] sm:$0xf0]  ;;  %v11360_v47 = vld [vmem:[%s19135_s8 + $0x160] sm:$0xf0] }
  0x92   : > { %v11614_v29 = vld [vmem:[%s19135_s8 + $0x340] sm:$0xf]  ;;  %v11359_v30 = vor.u32 %v17389_v28, %v11358_v27  ;;  %1419 = vmatpush.bf16.msra.mxu3 %v11711_v21  ;;  %v11363_v52 = vor.u32 %v17385_v45, %v11360_v47  ;;  %v17433_v55 = vld [vmem:[%s19135_s8 + $0x2c4] sm:$0xf] }
  0x93   : > { %v17453_v31 = vld [vmem:[%s19135_s8 + $0x35c] sm:$0xf0]  ;;  %v11552_v56 = vld [vmem:[%s19135_s8 + $0x2e0] sm:$0xf0] }
  0x94   : > { %v11615_v34 = vor.u32 %v17453_v31, %v11614_v29  ;;  %v11326_v37 = vld [vmem:[%s19135_s8 + $0x100] sm:$0xf]  ;;  %1388 = vmatpush.bf16.msra.mxu0 %v11359_v30  ;;  %v17377_v57 = vld [vmem:[%s19135_s8 + $0x104] sm:$0xf]  ;;  %1441 = vmatpush.bf16.msra.mxu2 %v11587_v51  ;;  %v11555_v0 = vor.u32 %v17433_v55, %v11552_v56  ;;  %v11432_v55 = vld [vmem:[%s19135_s8 + $0x1e8] sm:$0xf0] }
  0x95   : > { %v17381_v40 = vld [vmem:[%s19135_s8 + $0x11c] sm:$0xf0]  ;;  %v11328_v58 = vld [vmem:[%s19135_s8 + $0x120] sm:$0xf0]  ;;  %11772 = vmatmul.msk.bf16.vlgmr.msra.gmra.mxu3 %vm1383_vm0, %v19225_v22  ;;  %v11718_v56 = vld [vmem:[%s19135_s8 + $0x408] sm:$0xf] }
  0x96   : > { %1425 = vmatpush.bf16.msrb.mxu3 %v11427_v26  ;;  %v11582_v41 = vld [vmem:[%s19135_s8 + $0x300] sm:$0xf]  ;;  %v11327_v46 = vor.u32 %v17381_v40, %v11326_v37  ;;  %1401 = vmatpush.bf16.msra.mxu1 %v11615_v34  ;;  %v11331_v1 = vor.u32 %v17377_v57, %v11328_v58  ;;  %v17425_v4 = vld [vmem:[%s19135_s8 + $0x284] sm:$0xf]  ;;  %v19236_v34 = vld [vmem:[#allocation1] sm:$0xff] }
  0x97   : > { %v17445_v42 = vld [vmem:[%s19135_s8 + $0x31c] sm:$0xf0]  ;;  %v11520_v5 = vld [vmem:[%s19135_s8 + $0x2a0] sm:$0xf0]  ;;  %v11430_v37 = vld [vmem:[%s19135_s8 + $0x1c8] sm:$0xf] }
  0x98   : > { %v11583_v48 = vor.u32 %v17445_v42, %v11582_v41  ;;  %v11294_v49 = vld [vmem:[%s19135_s8 + $0xc0] sm:$0xf]  ;;  %1389 = vmatpush.bf16.msra.mxu0 %v11327_v46  ;;  %v17369_v6 = vld [vmem:[%s19135_s8 + $0xc4] sm:$0xf]  ;;  %1442 = vmatpush.bf16.msra.mxu2 %v11555_v0  ;;  %v11523_v14 = vor.u32 %v17425_v4, %v11520_v5  ;;  %v11750_v40 = vld [vmem:[%s19135_s8 + $0x448] sm:$0xf] }
  0x99   : > { %v17373_v50 = vld [vmem:[%s19135_s8 + $0xdc] sm:$0xf0]  ;;  %v11296_v7 = vld [vmem:[%s19135_s8 + $0xe0] sm:$0xf0]  ;;  %v17486_v41 = vld [vmem:[%s19135_s8 + $0x464] sm:$0xf0] }
  0x9a   : > { %1426 = vmatpush.bf16.msrb.mxu3 %v11395_v39  ;;  %v11550_v53 = vld [vmem:[%s19135_s8 + $0x2c0] sm:$0xf]  ;;  %v11295_v59 = vor.u32 %v17373_v50, %v11294_v49  ;;  %1402 = vmatpush.bf16.msra.mxu1 %v11583_v48  ;;  %v11299_v15 = vor.u32 %v17369_v6, %v11296_v7  ;;  %v17417_v16 = vld [vmem:[%s19135_s8 + $0x244] sm:$0xf]  ;;  %v17406_v39 = vld [vmem:[%s19135_s8 + $0x1e4] sm:$0xf0] }
  0x9b   : > { %v17437_v54 = vld [vmem:[%s19135_s8 + $0x2dc] sm:$0xf0]  ;;  %v11488_v17 = vld [vmem:[%s19135_s8 + $0x260] sm:$0xf0]  ;;  %v11398_v50 = vld [vmem:[%s19135_s8 + $0x188] sm:$0xf]  ;;  %v11431_v51 = vor.u32 %v17406_v39, %v11430_v37 }
  0x9c   : > { %v11551_v61 = vor.u32 %v17437_v54, %v11550_v53  ;;  %v11262_v62 = vld [vmem:[%s19135_s8 + $0x80] sm:$0xf]  ;;  %1390 = vmatpush.bf16.msra.mxu0 %v11295_v59  ;;  %v17361_v18 = vld [vmem:[%s19135_s8 + $0x84] sm:$0xf]  ;;  %1443 = vmatpush.bf16.msra.mxu2 %v11523_v14  ;;  %v11491_v31 = vor.u32 %v17417_v16, %v11488_v17  ;;  %v17398_v53 = vld [vmem:[%s19135_s8 + $0x1a4] sm:$0xf0] }
  0x9d   : > { %v17365_v63 = vld [vmem:[%s19135_s8 + $0x9c] sm:$0xf0]  ;;  %v11264_v19 = vld [vmem:[%s19135_s8 + $0xa0] sm:$0xf0]  ;;  %v17402_v54 = vld [vmem:[%s19135_s8 + $0x1cc] sm:$0xf] }
  0x9e   : > { %1427 = vmatpush.bf16.msrb.mxu3 %v11363_v52  ;;  %v11518_v2 = vld [vmem:[%s19135_s8 + $0x280] sm:$0xf]  ;;  %v11263_v8 = vor.u32 %v17365_v63, %v11262_v62  ;;  %1403 = vmatpush.bf16.msra.mxu1 %v11551_v61  ;;  %v17409_v27 = vld [vmem:[%s19135_s8 + $0x204] sm:$0xf]  ;;  %v11267_v32 = vor.u32 %v17361_v18, %v11264_v19  ;;  %v11751_v52 = vor.u32 %v17486_v41, %v11750_v40  ;;  %v17478_v57 = vld [vmem:[%s19135_s8 + $0x424] sm:$0xf0] }
  0x9f   : > { %v17429_v3 = vld [vmem:[%s19135_s8 + $0x29c] sm:$0xf0]  ;;  %v11456_v28 = vld [vmem:[%s19135_s8 + $0x220] sm:$0xf0]  ;;  %v11686_v58 = vld [vmem:[%s19135_s8 + $0x3c8] sm:$0xf] }
  0xa0   : > { %v11230_v9 = vld [vmem:[%s19135_s8 + $0x40] sm:$0xf]  ;;  %v11519_v10 = vor.u32 %v17429_v3, %v11518_v2  ;;  %1391 = vmatpush.bf16.msra.mxu0 %v11263_v8  ;;  %v17353_v29 = vld [vmem:[%s19135_s8 + $0x44] sm:$0xf]  ;;  %1444 = vmatpush.bf16.msra.mxu2 %v11491_v31  ;;  %v11459_v46 = vor.u32 %v17409_v27, %v11456_v28  ;;  %v17470_v61 = vld [vmem:[%s19135_s8 + $0x3e4] sm:$0xf0]  ;;  %v11399_v2 = vor.u32 %v17398_v53, %v11398_v50 }
  0xa1   : > { %v17357_v11 = vld [vmem:[%s19135_s8 + $0x5c] sm:$0xf0]  ;;  %v17481_v30 = vld [vmem:[%s19135_s8 + $0x444] sm:$0xf]  ;;  %v17466_v62 = vld [vmem:[%s19135_s8 + $0x3cc] sm:$0xf]  ;;  %v11719_v3 = vor.u32 %v17478_v57, %v11718_v56  ;;  %v11687_v6 = vor.u32 %v17470_v61, %v11686_v58 }
  0xa2   : > { %v11486_v12 = vld [vmem:[%s19135_s8 + $0x240] sm:$0xf]  ;;  %1428 = vmatpush.bf16.msrb.mxu3 %v11331_v1  ;;  %v11231_v23 = vor.u32 %v17357_v11, %v11230_v9  ;;  %1404 = vmatpush.bf16.msra.mxu1 %v11519_v10  ;;  %v11744_v33 = vld [vmem:[%s19135_s8 + $0x460] sm:$0xf0]  ;;  %v11688_v63 = vld [vmem:[%s19135_s8 + $0x3e8] sm:$0xf0]  ;;  %v11435_v1 = vor.u32 %v17402_v54, %v11432_v55 }
  0xa3   : > { %v17421_v13 = vld [vmem:[%s19135_s8 + $0x25c] sm:$0xf0]  ;;  %v11232_v36 = vld [vmem:[%s19135_s8 + $0x60] sm:$0xf0]  ;;  %v11747_v43 = vor.u32 %v17481_v30, %v11744_v33  ;;  %v17394_v4 = vld [vmem:[%s19135_s8 + $0x18c] sm:$0xf]  ;;  %v11691_v7 = vor.u32 %v17466_v62, %v11688_v63 }
  0xa4   : > { %v11198_v20 = vld [vmem:[%s19135_s8] sm:$0xf]  ;;  %v11487_v26 = vor.u32 %v17421_v13, %v11486_v12  ;;  %1392 = vmatpush.bf16.msra.mxu0 %v11231_v23  ;;  %v17345_v44 = vld [vmem:[%s19135_s8 + $0x4] sm:$0xf]  ;;  %v11235_v47 = vor.u32 %v17353_v29, %v11232_v36  ;;  %1445 = vmatpush.bf16.msra.mxu2 %v11459_v46  ;;  %v11400_v5 = vld [vmem:[%s19135_s8 + $0x1a8] sm:$0xf0] }
  0xa5   : > { %v17349_v21 = vld [vmem:[%s19135_s8 + $0x1c] sm:$0xf0]  ;;  %v11200_v45 = vld [vmem:[%s19135_s8 + $0x20] sm:$0xf0]  ;;  %v11366_v8 = vld [vmem:[%s19135_s8 + $0x148] sm:$0xf]  ;;  %v11403_v14 = vor.u32 %v17394_v4, %v11400_v5 }
  0xa6   : > { %v11454_v24 = vld [vmem:[%s19135_s8 + $0x200] sm:$0xf]  ;;  %1429 = vmatpush.bf16.msrb.mxu3 %v11299_v15  ;;  %v11199_v38 = vor.u32 %v17349_v21, %v11198_v20  ;;  %1405 = vmatpush.bf16.msra.mxu1 %v11487_v26  ;;  %v17473_v48 = vld [vmem:[%s19135_s8 + $0x404] sm:$0xf]  ;;  %v11203_v0 = vor.u32 %v17345_v44, %v11200_v45  ;;  %v17390_v9 = vld [vmem:[%s19135_s8 + $0x164] sm:$0xf0] }
  0xa7   : > { %v17413_v25 = vld [vmem:[%s19135_s8 + $0x21c] sm:$0xf0]  ;;  %v11712_v49 = vld [vmem:[%s19135_s8 + $0x420] sm:$0xf0]  ;;  %v11654_v10 = vld [vmem:[%s19135_s8 + $0x388] sm:$0xf]  ;;  %v11367_v15 = vor.u32 %v17390_v9, %v11366_v8 }
  0xa8   : > { %v19238_v35 = vld [vmem:[#allocation1 + $0x9] sm:$0xff]  ;;  %v11455_v42 = vor.u32 %v17413_v25, %v11454_v24  ;;  %1393 = vmatpush.bf16.msra.mxu0 %v11199_v38  ;;  %v11715_v59 = vor.u32 %v17473_v48, %v11712_v49  ;;  %1496 = vmatpush.bf16.msrb.mxu2 %v11751_v52  ;;  %v17458_v12 = vld [vmem:[%s19135_s8 + $0x38c] sm:$0xf] }
  0xa9   : > { %4160 = vst [vmem:[#allocation1] ss:$9 sm:$0xff] %v19204_v60  ;;  %1446 = vmatmul.bf16.vlgmr.msra.gmra.mxu2 %v19238_v35  ;;  %v17462_v11 = vld [vmem:[%s19135_s8 + $0x3a4] sm:$0xf0]  ;;  %v11656_v13 = vld [vmem:[%s19135_s8 + $0x3a8] sm:$0xf0] }
  0xaa   : > { %1430 = vmatpush.bf16.msrb.mxu3 %v11267_v32  ;;  %1406 = vmatpush.bf16.msra.mxu1 %v11455_v42  ;;  %v17386_v16 = vld [vmem:[%s19135_s8 + $0x14c] sm:$0xf]  ;;  %v11655_v18 = vor.u32 %v17462_v11, %v11654_v10  ;;  %v11659_v19 = vor.u32 %v17458_v12, %v11656_v13  ;;  %v11334_v20 = vld [vmem:[%s19135_s8 + $0x108] sm:$0xf] }
  0xab   : > { %1394 = vmatmul.bf16.vlgmr.msra.gmra.mxu0 %v19236_v34  ;;  %v11368_v17 = vld [vmem:[%s19135_s8 + $0x168] sm:$0xf0]  ;;  %v17382_v21 = vld [vmem:[%s19135_s8 + $0x124] sm:$0xf0] }
  0xac   : > { %1457 = vmatpush.bf16.msrb.mxu0 %v11747_v43  ;;  %1497 = vmatpush.bf16.msrb.mxu2 %v11719_v3  ;;  %v11622_v23 = vld [vmem:[%s19135_s8 + $0x348] sm:$0xf]  ;;  %v17450_v25 = vld [vmem:[%s19135_s8 + $0x34c] sm:$0xf]  ;;  %v11371_v27 = vor.u32 %v17386_v16, %v11368_v17  ;;  %v11335_v28 = vor.u32 %v17382_v21, %v11334_v20 }
  0xad   : > { %1407 = vmatmul.bf16.vlgmr.msra.gmra.mxu1 %v19238_v35  ;;  %v17454_v24 = vld [vmem:[%s19135_s8 + $0x364] sm:$0xf0]  ;;  %v11624_v26 = vld [vmem:[%s19135_s8 + $0x368] sm:$0xf0] }
  0xae   : > { %1431 = vmatpush.bf16.msrb.mxu3 %v11235_v47  ;;  %1464 = vmatpush.bf16.msrb.mxu1 %v11431_v51  ;;  %v17378_v29 = vld [vmem:[%s19135_s8 + $0x10c] sm:$0xf]  ;;  %v11623_v31 = vor.u32 %v17454_v24, %v11622_v23  ;;  %v11627_v32 = vor.u32 %v17450_v25, %v11624_v26  ;;  %v11302_v33 = vld [vmem:[%s19135_s8 + $0xc8] sm:$0xf]  ;;  %v11694_v25 = vld [vmem:[%s19135_s8 + $0x3d0] sm:$0xf] }
  0xaf   : > { %v11336_v30 = vld [vmem:[%s19135_s8 + $0x128] sm:$0xf0]  ;;  %v17374_v36 = vld [vmem:[%s19135_s8 + $0xe4] sm:$0xf0]  ;;  %v17471_v26 = vld [vmem:[%s19135_s8 + $0x3ec] sm:$0xf0] }
  0xb0   : > { %1458 = vmatpush.bf16.msrb.mxu0 %v11715_v59  ;;  %1516 = vmatpush.bf16.msra.mxu2 %v11691_v7  ;;  %v11590_v37 = vld [vmem:[%s19135_s8 + $0x308] sm:$0xf]  ;;  %v17442_v39 = vld [vmem:[%s19135_s8 + $0x30c] sm:$0xf]  ;;  %v11339_v41 = vor.u32 %v17378_v29, %v11336_v30  ;;  %v11303_v42 = vor.u32 %v17374_v36, %v11302_v33  ;;  %v11438_v29 = vld [vmem:[%s19135_s8 + $0x1d0] sm:$0xf] }
  0xb1   : > { %v17446_v38 = vld [vmem:[%s19135_s8 + $0x324] sm:$0xf0]  ;;  %v11592_v40 = vld [vmem:[%s19135_s8 + $0x328] sm:$0xf0]  ;;  %v17403_v33 = vld [vmem:[%s19135_s8 + $0x1d4] sm:$0xf] }
  0xb2   : > { %1432 = vmatpush.bf16.msrb.mxu3 %v11203_v0  ;;  %1465 = vmatpush.bf16.msrb.mxu1 %v11399_v2  ;;  %v17370_v43 = vld [vmem:[%s19135_s8 + $0xcc] sm:$0xf]  ;;  %v11591_v45 = vor.u32 %v17446_v38, %v11590_v37  ;;  %v11595_v46 = vor.u32 %v17442_v39, %v11592_v40  ;;  %v11270_v47 = vld [vmem:[%s19135_s8 + $0x88] sm:$0xf]  ;;  %v11440_v36 = vld [vmem:[%s19135_s8 + $0x1f0] sm:$0xf0]  ;;  %v11695_v37 = vor.u32 %v17471_v26, %v11694_v25 }
  0xb3   : > { %v11304_v44 = vld [vmem:[%s19135_s8 + $0xe8] sm:$0xf0]  ;;  %v17366_v48 = vld [vmem:[%s19135_s8 + $0xa4] sm:$0xf0]  ;;  %v17459_v26 = vld [vmem:[%s19135_s8 + $0x394] sm:$0xf] }
  0xb4   : > { %1503 = vmatpush.bf16.msra.mxu0 %v11435_v1  ;;  %1517 = vmatpush.bf16.msra.mxu2 %v11659_v19  ;;  %v11558_v49 = vld [vmem:[%s19135_s8 + $0x2c8] sm:$0xf]  ;;  %v17434_v51 = vld [vmem:[%s19135_s8 + $0x2cc] sm:$0xf]  ;;  %v11307_v53 = vor.u32 %v17370_v43, %v11304_v44  ;;  %v11271_v54 = vor.u32 %v17366_v48, %v11270_v47  ;;  %v17463_v43 = vld [vmem:[%s19135_s8 + $0x3ac] sm:$0xf0] }
  0xb5   : > { %1433 = vmatmul.bf16.vlgmr.msrb.gmra.mxu3 %v19236_v34  ;;  %v17438_v50 = vld [vmem:[%s19135_s8 + $0x2e4] sm:$0xf0]  ;;  %v11560_v52 = vld [vmem:[%s19135_s8 + $0x2e8] sm:$0xf0]  ;;  %v11758_v47 = vld [vmem:[%s19135_s8 + $0x450] sm:$0xf] }
  0xb6   : > { %1477 = vmatpush.bf16.msra.mxu3 %v11687_v6  ;;  %1466 = vmatpush.bf16.msrb.mxu1 %v11367_v15  ;;  %v17362_v55 = vld [vmem:[%s19135_s8 + $0x8c] sm:$0xf]  ;;  %v11559_v57 = vor.u32 %v17438_v50, %v11558_v49  ;;  %v11563_v58 = vor.u32 %v17434_v51, %v11560_v52  ;;  %v11238_v59 = vld [vmem:[%s19135_s8 + $0x48] sm:$0xf]  ;;  %v17487_v48 = vld [vmem:[%s19135_s8 + $0x46c] sm:$0xf0] }
  0xb7   : > { %v11272_v56 = vld [vmem:[%s19135_s8 + $0xa8] sm:$0xf0]  ;;  %v17358_v61 = vld [vmem:[%s19135_s8 + $0x64] sm:$0xf0]  ;;  %v17399_v49 = vld [vmem:[%s19135_s8 + $0x1ac] sm:$0xf0] }
  0xb8   : > { %1504 = vmatpush.bf16.msra.mxu0 %v11403_v14  ;;  %1518 = vmatpush.bf16.msra.mxu2 %v11627_v32  ;;  %v11526_v62 = vld [vmem:[%s19135_s8 + $0x288] sm:$0xf]  ;;  %v17426_v0 = vld [vmem:[%s19135_s8 + $0x28c] sm:$0xf]  ;;  %v11275_v2 = vor.u32 %v17362_v55, %v11272_v56  ;;  %v11239_v3 = vor.u32 %v17358_v61, %v11238_v59  ;;  %v17407_v32 = vld [vmem:[%s19135_s8 + $0x1ec] sm:$0xf0]  ;;  %v11759_v56 = vor.u32 %v17487_v48, %v11758_v47 }
  0xb9   : > { %11774 = vmatmul.msk.bf16.vlgmr.msrb.gmra.mxu2 %vm1383_vm0, %v19225_v22  ;;  %v17430_v63 = vld [vmem:[%s19135_s8 + $0x2a4] sm:$0xf0]  ;;  %v11528_v1 = vld [vmem:[%s19135_s8 + $0x2a8] sm:$0xf0]  ;;  %v11439_v44 = vor.u32 %v17407_v32, %v11438_v29  ;;  %v17395_v50 = vld [vmem:[%s19135_s8 + $0x194] sm:$0xf] }
  0xba   : > { %1478 = vmatpush.bf16.msra.mxu3 %v11655_v18  ;;  %1467 = vmatpush.bf16.msrb.mxu1 %v11335_v28  ;;  %v17354_v4 = vld [vmem:[%s19135_s8 + $0x4c] sm:$0xf]  ;;  %v11527_v6 = vor.u32 %v17430_v63, %v11526_v62  ;;  %v11531_v7 = vor.u32 %v17426_v0, %v11528_v1  ;;  %v11206_v8 = vld [vmem:[%s19135_s8 + $0x8] sm:$0xf]  ;;  %v11408_v51 = vld [vmem:[%s19135_s8 + $0x1b0] sm:$0xf0] }
  0xbb   : > { %11773 = vmatmul.msk.bf16.vlgmr.msrb.gmra.mxu0 %vm1383_vm0, %v19225_v22  ;;  %v11240_v5 = vld [vmem:[%s19135_s8 + $0x68] sm:$0xf0]  ;;  %v17350_v9 = vld [vmem:[%s19135_s8 + $0x24] sm:$0xf0]  ;;  %v17455_v55 = vld [vmem:[%s19135_s8 + $0x36c] sm:$0xf0] }
  0xbc   : > { %1505 = vmatpush.bf16.msra.mxu0 %v11371_v27  ;;  %1519 = vmatpush.bf16.msra.mxu2 %v11595_v46  ;;  %v11494_v10 = vld [vmem:[%s19135_s8 + $0x248] sm:$0xf]  ;;  %v17418_v12 = vld [vmem:[%s19135_s8 + $0x24c] sm:$0xf]  ;;  %v11243_v14 = vor.u32 %v17354_v4, %v11240_v5  ;;  %v11207_v17 = vor.u32 %v17350_v9, %v11206_v8  ;;  %v11406_v46 = vld [vmem:[%s19135_s8 + $0x190] sm:$0xf] }
  0xbd   : > { %v17422_v11 = vld [vmem:[%s19135_s8 + $0x264] sm:$0xf0]  ;;  %v11496_v13 = vld [vmem:[%s19135_s8 + $0x268] sm:$0xf0]  ;;  %v11374_v59 = vld [vmem:[%s19135_s8 + $0x150] sm:$0xf] }
  0xbe   : > { %1479 = vmatpush.bf16.msra.mxu3 %v11623_v31  ;;  %1468 = vmatpush.bf16.msrb.mxu1 %v11303_v42  ;;  %v17482_v15 = vld [vmem:[%s19135_s8 + $0x44c] sm:$0xf]  ;;  %v11462_v18 = vld [vmem:[%s19135_s8 + $0x208] sm:$0xf]  ;;  %v11495_v21 = vor.u32 %v17422_v11, %v11494_v10  ;;  %v11499_v23 = vor.u32 %v17418_v12, %v11496_v13  ;;  %v11662_v42 = vld [vmem:[%s19135_s8 + $0x390] sm:$0xf] }
  0xbf   : > { %v11752_v16 = vld [vmem:[%s19135_s8 + $0x468] sm:$0xf0]  ;;  %v17414_v24 = vld [vmem:[%s19135_s8 + $0x224] sm:$0xf0]  ;;  %v11726_v61 = vld [vmem:[%s19135_s8 + $0x410] sm:$0xf] }
  0xc0   : > { %1506 = vmatpush.bf16.msra.mxu0 %v11339_v41  ;;  %1520 = vmatpush.bf16.msra.mxu2 %v11563_v58  ;;  %v17346_v19 = vld [vmem:[%s19135_s8 + $0xc] sm:$0xf]  ;;  %v11755_v30 = vor.u32 %v17482_v15, %v11752_v16  ;;  %v11463_v40 = vor.u32 %v17414_v24, %v11462_v18  ;;  %v11411_v58 = vor.u32 %v17395_v50, %v11408_v51  ;;  %v17479_v62 = vld [vmem:[%s19135_s8 + $0x42c] sm:$0xf0]  ;;  %v17387_v0 = vld [vmem:[%s19135_s8 + $0x154] sm:$0xf] }
  0xc1   : > { %v11208_v20 = vld [vmem:[%s19135_s8 + $0x28] sm:$0xf0]  ;;  %v17391_v63 = vld [vmem:[%s19135_s8 + $0x16c] sm:$0xf0]  ;;  %v11376_v1 = vld [vmem:[%s19135_s8 + $0x170] sm:$0xf0]  ;;  %v11727_v5 = vor.u32 %v17479_v62, %v11726_v61 }
  0xc2   : > { %1480 = vmatpush.bf16.msra.mxu3 %v11591_v45  ;;  %1469 = vmatpush.bf16.msrb.mxu1 %v11271_v54  ;;  %v17410_v27 = vld [vmem:[%s19135_s8 + $0x20c] sm:$0xf]  ;;  %v11211_v31 = vor.u32 %v17346_v19, %v11208_v20  ;;  %v11443_v45 = vor.u32 %v17403_v33, %v11440_v36  ;;  %v11630_v54 = vld [vmem:[%s19135_s8 + $0x350] sm:$0xf]  ;;  %v17379_v10 = vld [vmem:[%s19135_s8 + $0x114] sm:$0xf] }
  0xc3   : > { %v11464_v28 = vld [vmem:[%s19135_s8 + $0x228] sm:$0xf0]  ;;  %v17447_v4 = vld [vmem:[%s19135_s8 + $0x32c] sm:$0xf0]  ;;  %v11344_v11 = vld [vmem:[%s19135_s8 + $0x130] sm:$0xf0] }
  0xc4   : > { %1507 = vmatpush.bf16.msra.mxu0 %v11307_v53  ;;  %1521 = vmatpush.bf16.msra.mxu2 %v11531_v7  ;;  %v17474_v38 = vld [vmem:[%s19135_s8 + $0x40c] sm:$0xf]  ;;  %v11467_v41 = vor.u32 %v17410_v27, %v11464_v28  ;;  %v11663_v53 = vor.u32 %v17463_v43, %v11662_v42  ;;  %v11379_v7 = vor.u32 %v17387_v0, %v11376_v1  ;;  %v11342_v8 = vld [vmem:[%s19135_s8 + $0x110] sm:$0xf]  ;;  %v17467_v13 = vld [vmem:[%s19135_s8 + $0x3d4] sm:$0xf] }
  0xc5   : > { %v11720_v39 = vld [vmem:[%s19135_s8 + $0x428] sm:$0xf0]  ;;  %v17383_v9 = vld [vmem:[%s19135_s8 + $0x12c] sm:$0xf0]  ;;  %v11347_v18 = vor.u32 %v17379_v10, %v11344_v11  ;;  %v11664_v27 = vld [vmem:[%s19135_s8 + $0x3b0] sm:$0xf0] }
  0xc6   : > { %1481 = vmatpush.bf16.msra.mxu3 %v11559_v57  ;;  %1470 = vmatpush.bf16.msrb.mxu1 %v11239_v3  ;;  %v11723_v52 = vor.u32 %v17474_v38, %v11720_v39  ;;  %v11407_v57 = vor.u32 %v17399_v49, %v11406_v46  ;;  %v11598_v3 = vld [vmem:[%s19135_s8 + $0x310] sm:$0xf]  ;;  %v17363_v36 = vld [vmem:[%s19135_s8 + $0x94] sm:$0xf]  ;;  %v11667_v38 = vor.u32 %v17459_v26, %v11664_v27  ;;  %v17408_v61 = vld [vmem:[%s19135_s8 + $0x1f4] sm:$0xf0] }
  0xc7   : > { %v11599_v12 = vor.u32 %v17447_v4, %v11598_v3  ;;  %v11566_v15 = vld [vmem:[%s19135_s8 + $0x2d0] sm:$0xf]  ;;  %v17355_v48 = vld [vmem:[%s19135_s8 + $0x54] sm:$0xf]  ;;  %v17472_v26 = vld [vmem:[%s19135_s8 + $0x3f4] sm:$0xf0] }
  0xc8   : > { %1508 = vmatpush.bf16.msra.mxu0 %v11275_v2  ;;  %1522 = vmatpush.bf16.msra.mxu2 %v11499_v23  ;;  %v11631_v2 = vor.u32 %v17455_v55, %v11630_v54  ;;  %v17439_v16 = vld [vmem:[%s19135_s8 + $0x2ec] sm:$0xf0]  ;;  %v11312_v23 = vld [vmem:[%s19135_s8 + $0xf0] sm:$0xf0]  ;;  %v17468_v27 = vld [vmem:[%s19135_s8 + $0x3dc] sm:$0xf] }
  0xc9   : > { %v11310_v19 = vld [vmem:[%s19135_s8 + $0xd0] sm:$0xf]  ;;  %v11567_v25 = vor.u32 %v17439_v16, %v11566_v15  ;;  %v11248_v49 = vld [vmem:[%s19135_s8 + $0x70] sm:$0xf0]  ;;  %v17400_v15 = vld [vmem:[%s19135_s8 + $0x1b4] sm:$0xf0] }
  0xca   : > { %1482 = vmatpush.bf16.msra.mxu3 %v11527_v6  ;;  %1471 = vmatpush.bf16.msrb.mxu1 %v11207_v17  ;;  %v11375_v6 = vor.u32 %v17391_v63, %v11374_v59  ;;  %v11343_v17 = vor.u32 %v17383_v9, %v11342_v8  ;;  %v17375_v20 = vld [vmem:[%s19135_s8 + $0xec] sm:$0xf0]  ;;  %v11446_v59 = vld [vmem:[%s19135_s8 + $0x1d8] sm:$0xf]  ;;  %v17347_v63 = vld [vmem:[%s19135_s8 + $0x14] sm:$0xf] }
  0xcb   : > { %v11534_v28 = vld [vmem:[%s19135_s8 + $0x290] sm:$0xf]  ;;  %v11216_v0 = vld [vmem:[%s19135_s8 + $0x30] sm:$0xf0]  ;;  %v11766_v8 = vld [vmem:[%s19135_s8 + $0x458] sm:$0xf] }
  0xcc   : > { %1509 = vmatpush.bf16.msra.mxu0 %v11243_v14  ;;  %1523 = vmatpush.bf16.msra.mxu2 %v11467_v41  ;;  %v11696_v14 = vld [vmem:[%s19135_s8 + $0x3f0] sm:$0xf0]  ;;  %v17431_v29 = vld [vmem:[%s19135_s8 + $0x2ac] sm:$0xf0]  ;;  %v17488_v9 = vld [vmem:[%s19135_s8 + $0x474] sm:$0xf0]  ;;  %v11219_v11 = vor.u32 %v17347_v63, %v11216_v0 }
  0xcd   : > { %1472 = vmatmul.bf16.vlgmr.msrb.gmra.mxu1 %v19236_v34  ;;  %v11699_v24 = vor.u32 %v17467_v13, %v11696_v14  ;;  %v11278_v32 = vld [vmem:[%s19135_s8 + $0x90] sm:$0xf]  ;;  %v11535_v39 = vor.u32 %v17431_v29, %v11534_v28  ;;  %v11632_v41 = vld [vmem:[%s19135_s8 + $0x370] sm:$0xf0]  ;;  %v11414_v14 = vld [vmem:[%s19135_s8 + $0x198] sm:$0xf] }
  0xce   : > { %1483 = vmatpush.bf16.msra.mxu3 %v11495_v21  ;;  %1535 = vmatpush.bf16.msra.mxu1 %v11755_v30  ;;  %v17371_v21 = vld [vmem:[%s19135_s8 + $0xd4] sm:$0xf]  ;;  %v11311_v30 = vor.u32 %v17375_v20, %v11310_v19  ;;  %v17367_v33 = vld [vmem:[%s19135_s8 + $0xac] sm:$0xf0]  ;;  %v11704_v28 = vld [vmem:[%s19135_s8 + $0x3f8] sm:$0xf0] }
  0xcf   : > { %1524 = vmatmul.bf16.vlgmr.msra.gmra.mxu2 %v19238_v35  ;;  %v11502_v42 = vld [vmem:[%s19135_s8 + $0x250] sm:$0xf]  ;;  %v17435_v3 = vld [vmem:[%s19135_s8 + $0x2d4] sm:$0xf] }
  0xd0   : > { %1510 = vmatpush.bf16.msra.mxu0 %v11211_v31  ;;  %1581 = vmatpush.bf16.msrb.mxu2 %v11443_v45  ;;  %v11315_v31 = vor.u32 %v17371_v21, %v11312_v23  ;;  %v17423_v43 = vld [vmem:[%s19135_s8 + $0x26c] sm:$0xf0]  ;;  %v17483_v4 = vld [vmem:[%s19135_s8 + $0x454] sm:$0xf]  ;;  %v11734_v21 = vld [vmem:[%s19135_s8 + $0x418] sm:$0xf] }
  0xd1   : > { %v11246_v46 = vld [vmem:[%s19135_s8 + $0x50] sm:$0xf]  ;;  %v11503_v51 = vor.u32 %v17423_v43, %v11502_v42  ;;  %v17427_v13 = vld [vmem:[%s19135_s8 + $0x294] sm:$0xf]  ;;  %v17480_v23 = vld [vmem:[%s19135_s8 + $0x434] sm:$0xf0] }
  0xd2   : > { %1484 = vmatpush.bf16.msra.mxu3 %v11463_v40  ;;  %1536 = vmatpush.bf16.msra.mxu1 %v11723_v52  ;;  %v17451_v40 = vld [vmem:[%s19135_s8 + $0x354] sm:$0xf]  ;;  %v17359_v47 = vld [vmem:[%s19135_s8 + $0x6c] sm:$0xf0]  ;;  %v17464_v42 = vld [vmem:[%s19135_s8 + $0x3b4] sm:$0xf0] }
  0xd3   : > { %1511 = vmatmul.bf16.vlgmr.msra.gmra.mxu0 %v19236_v34  ;;  %v11635_v50 = vor.u32 %v17451_v40, %v11632_v41  ;;  %v17443_v52 = vld [vmem:[%s19135_s8 + $0x314] sm:$0xf]  ;;  %v11470_v54 = vld [vmem:[%s19135_s8 + $0x210] sm:$0xf]  ;;  %v11670_v40 = vld [vmem:[%s19135_s8 + $0x398] sm:$0xf] }
  0xd4   : > { %1555 = vmatpush.bf16.msrb.mxu0 %v11695_v37  ;;  %1582 = vmatpush.bf16.msrb.mxu2 %v11411_v58  ;;  %v11280_v37 = vld [vmem:[%s19135_s8 + $0xb0] sm:$0xf0]  ;;  %v17415_v55 = vld [vmem:[%s19135_s8 + $0x22c] sm:$0xf0]  ;;  %v17460_v43 = vld [vmem:[%s19135_s8 + $0x39c] sm:$0xf] }
  0xd5   : > { %1485 = vmatmul.bf16.vlgmr.msra.gmra.mxu3 %v19238_v35  ;;  %v11283_v45 = vor.u32 %v17363_v36, %v11280_v37  ;;  %v11214_v58 = vld [vmem:[%s19135_s8 + $0x10] sm:$0xf]  ;;  %v17475_v19 = vld [vmem:[%s19135_s8 + $0x414] sm:$0xf]  ;;  %v11707_v37 = vor.u32 %v17468_v27, %v11704_v28  ;;  %v17432_v28 = vld [vmem:[%s19135_s8 + $0x2b4] sm:$0xf0] }
  0xd6   : > { %1542 = vmatpush.bf16.msrb.mxu3 %v11439_v44  ;;  %1574 = vmatpush.bf16.msrb.mxu1 %v11759_v56  ;;  %v11279_v44 = vor.u32 %v17367_v33, %v11278_v32  ;;  %v11247_v56 = vor.u32 %v17359_v47, %v11246_v46  ;;  %v17351_v62 = vld [vmem:[%s19135_s8 + $0x2c] sm:$0xf0]  ;;  %v11728_v20 = vld [vmem:[%s19135_s8 + $0x430] sm:$0xf0]  ;;  %v11735_v33 = vor.u32 %v17480_v23, %v11734_v21  ;;  %v17384_v46 = vld [vmem:[%s19135_s8 + $0x134] sm:$0xf0] }
  0xd7   : > { %v11215_v10 = vor.u32 %v17351_v62, %v11214_v58  ;;  %v11731_v29 = vor.u32 %v17475_v19, %v11728_v20  ;;  %v11640_v58 = vld [vmem:[%s19135_s8 + $0x378] sm:$0xf0]  ;;  %v11254_v21 = vld [vmem:[%s19135_s8 + $0x58] sm:$0xf] }
  0xd8   : > { %1556 = vmatpush.bf16.msrb.mxu0 %v11663_v53  ;;  %1583 = vmatpush.bf16.msrb.mxu2 %v11379_v7  ;;  %v11600_v53 = vld [vmem:[%s19135_s8 + $0x330] sm:$0xf0]  ;;  %v11447_v7 = vor.u32 %v17408_v61, %v11446_v59  ;;  %v11318_v59 = vld [vmem:[%s19135_s8 + $0xd8] sm:$0xf]  ;;  %v17436_v19 = vld [vmem:[%s19135_s8 + $0x2dc] sm:$0xf] }
  0xd9   : > { %v11603_v1 = vor.u32 %v17443_v52, %v11600_v53  ;;  %v11638_v52 = vld [vmem:[%s19135_s8 + $0x358] sm:$0xf]  ;;  %v11576_v20 = vld [vmem:[%s19135_s8 + $0x2f8] sm:$0xf0] }
  0xda   : > { %1543 = vmatpush.bf16.msrb.mxu3 %v11407_v57  ;;  %1575 = vmatpush.bf16.msrb.mxu1 %v11727_v5  ;;  %v11251_v57 = vor.u32 %v17355_v48, %v11248_v49  ;;  %v11760_v5 = vld [vmem:[%s19135_s8 + $0x470] sm:$0xf0]  ;;  %v11671_v49 = vor.u32 %v17464_v42, %v11670_v40  ;;  %v17456_v53 = vld [vmem:[%s19135_s8 + $0x374] sm:$0xf0]  ;;  %v11579_v27 = vor.u32 %v17436_v19, %v11576_v20  ;;  %v11768_v42 = vld [vmem:[%s19135_s8 + $0x478] sm:$0xf0] }
  0xdb   : > { %v17411_v48 = vld [vmem:[%s19135_s8 + $0x214] sm:$0xf]  ;;  %v17376_v61 = vld [vmem:[%s19135_s8 + $0xf4] sm:$0xf0]  ;;  %v11639_v63 = vor.u32 %v17456_v53, %v11638_v52  ;;  %v11862_v19 = vld [vmem:[%s19151_s19 + $0xa0] sm:$0xf] }
  0xdc   : > { %1557 = vmatpush.bf16.msrb.mxu0 %v11631_v2  ;;  %1584 = vmatpush.bf16.msrb.mxu2 %v11347_v18  ;;  %v11471_v2 = vor.u32 %v17415_v55, %v11470_v54  ;;  %v11536_v18 = vld [vmem:[%s19135_s8 + $0x2b0] sm:$0xf0]  ;;  %v17404_v55 = vld [vmem:[%s19135_s8 + $0x1dc] sm:$0xf]  ;;  %v17360_v23 = vld [vmem:[%s19135_s8 + $0x74] sm:$0xf0] }
  0xdd   : > { %11775 = vmatmul.msk.bf16.vlgmr.msra.gmra.mxu1 %vm1383_vm0, %v19225_v22  ;;  %v11539_v32 = vor.u32 %v17427_v13, %v11536_v18  ;;  %v11574_v13 = vld [vmem:[%s19135_s8 + $0x2d8] sm:$0xf]  ;;  %v17511_v20 = vld [vmem:[%s19151_s19 + $0xac] sm:$0xf0] }
  0xde   : > { %1544 = vmatpush.bf16.msrb.mxu3 %v11375_v6  ;;  %1594 = vmatpush.bf16.msra.mxu1 %v11699_v24  ;;  %v11568_v6 = vld [vmem:[%s19135_s8 + $0x2f0] sm:$0xf0]  ;;  %v11702_v24 = vld [vmem:[%s19135_s8 + $0x3d8] sm:$0xf] }
  0xdf   : > { %v11571_v16 = vor.u32 %v17435_v3, %v11568_v6  ;;  %v11703_v36 = vor.u32 %v17472_v26, %v11702_v24  ;;  %v11319_v3 = vor.u32 %v17376_v61, %v11318_v59  ;;  %v11416_v6 = vld [vmem:[%s19135_s8 + $0x1b8] sm:$0xf0]  ;;  %v11542_v26 = vld [vmem:[%s19135_s8 + $0x298] sm:$0xf] }
  0xe0   : > { %1558 = vmatpush.bf16.msrb.mxu0 %v11599_v12  ;;  %1585 = vmatpush.bf16.msrb.mxu2 %v11315_v31  ;;  %v11763_v12 = vor.u32 %v17483_v4, %v11760_v5  ;;  %v17392_v31 = vld [vmem:[%s19135_s8 + $0x174] sm:$0xf0]  ;;  %v17396_v5 = vld [vmem:[%s19135_s8 + $0x19c] sm:$0xf] }
  0xe1   : > { %v17448_v4 = vld [vmem:[%s19135_s8 + $0x334] sm:$0xf0]  ;;  %v11288_v59 = vld [vmem:[%s19135_s8 + $0xb8] sm:$0xf0] }
  0xe2   : > { %1545 = vmatpush.bf16.msrb.mxu3 %v11343_v17  ;;  %1595 = vmatpush.bf16.msra.mxu1 %v11667_v38  ;;  %v11767_v17 = vor.u32 %v17488_v9, %v11766_v8  ;;  %v17419_v38 = vld [vmem:[%s19135_s8 + $0x254] sm:$0xf]  ;;  %v11608_v8 = vld [vmem:[%s19135_s8 + $0x338] sm:$0xf0]  ;;  %v11286_v9 = vld [vmem:[%s19135_s8 + $0x98] sm:$0xf] }
  0xe3   : > { %v11510_v40 = vld [vmem:[%s19135_s8 + $0x258] sm:$0xf]  ;;  %v17412_v61 = vld [vmem:[%s19135_s8 + $0x21c] sm:$0xf] }
  0xe4   : > { %1559 = vmatpush.bf16.msrb.mxu0 %v11567_v25  ;;  %1586 = vmatpush.bf16.msrb.mxu2 %v11283_v45  ;;  %v11415_v25 = vor.u32 %v17400_v15, %v11414_v14  ;;  %v11350_v45 = vld [vmem:[%s19135_s8 + $0x118] sm:$0xf] }
  0xe5   : > { %v11351_v54 = vor.u32 %v17384_v46, %v11350_v45  ;;  %v17440_v15 = vld [vmem:[%s19135_s8 + $0x2f4] sm:$0xf0]  ;;  %v17372_v45 = vld [vmem:[%s19135_s8 + $0xdc] sm:$0xf] }
  0xe6   : > { %1546 = vmatpush.bf16.msrb.mxu3 %v11311_v30  ;;  %1596 = vmatpush.bf16.msra.mxu1 %v11635_v50  ;;  %v11382_v30 = vld [vmem:[%s19135_s8 + $0x158] sm:$0xf]  ;;  %v11575_v24 = vor.u32 %v17440_v15, %v11574_v13  ;;  %v11320_v46 = vld [vmem:[%s19135_s8 + $0xf8] sm:$0xf0]  ;;  %v12006_v13 = vld [vmem:[%s19151_s19 + $0x1c0] sm:$0xf] }
  0xe7   : > { %v11383_v41 = vor.u32 %v17392_v31, %v11382_v30  ;;  %v11352_v30 = vld [vmem:[%s19135_s8 + $0x138] sm:$0xf0]  ;;  %v11255_v31 = vor.u32 %v17360_v23, %v11254_v21  ;;  %v11323_v53 = vor.u32 %v17372_v45, %v11320_v46  ;;  %v11990_v23 = vld [vmem:[%s19151_s19 + $0x1a0] sm:$0xf]  ;;  %v17583_v45 = vld [vmem:[%s19151_s19 + $0x2ec] sm:$0xf0] }
  0xe8   : > { %1560 = vmatpush.bf16.msrb.mxu0 %v11535_v39  ;;  %1587 = vmatpush.bf16.msrb.mxu2 %v11251_v57  ;;  %v11504_v39 = vld [vmem:[%s19135_s8 + $0x270] sm:$0xf0]  ;;  %v17452_v57 = vld [vmem:[%s19135_s8 + $0x35c] sm:$0xf] }
  0xe9   : > { %v11507_v47 = vor.u32 %v17419_v38, %v11504_v39  ;;  %v11543_v38 = vor.u32 %v17432_v28, %v11542_v26  ;;  %v11863_v26 = vor.u32 %v17511_v20, %v11862_v19  ;;  %v17507_v28 = vld [vmem:[%s19151_s19 + $0x8c] sm:$0xf0]  ;;  %v12102_v20 = vld [vmem:[%s19151_s19 + $0x280] sm:$0xf] }
  0xea   : > { %1547 = vmatpush.bf16.msrb.mxu3 %v11279_v44  ;;  %1597 = vmatpush.bf16.msra.mxu1 %v11603_v1  ;;  %v11672_v44 = vld [vmem:[%s19135_s8 + $0x3b8] sm:$0xf0]  ;;  %v11606_v1 = vld [vmem:[%s19135_s8 + $0x318] sm:$0xf] }
  0xeb   : > { %v11675_v50 = vor.u32 %v17460_v43, %v11672_v44  ;;  %v17424_v44 = vld [vmem:[%s19135_s8 + $0x274] sm:$0xf0] }
  0xec   : > { %1561 = vmatpush.bf16.msrb.mxu0 %v11503_v51  ;;  %1588 = vmatpush.bf16.msrb.mxu2 %v11219_v11  ;;  %v11472_v51 = vld [vmem:[%s19135_s8 + $0x230] sm:$0xf0]  ;;  %v11607_v11 = vor.u32 %v17448_v4, %v11606_v1  ;;  %v11511_v52 = vor.u32 %v17424_v44, %v11510_v40  ;;  %v11814_v40 = vld [vmem:[%s19151_s19 + $0x40] sm:$0xf]  ;;  %v17531_v44 = vld [vmem:[%s19151_s19 + $0x14c] sm:$0xf0] }
  0xed   : > { %11776 = vmatmul.msk.bf16.vlgmr.msrb.gmra.mxu1 %vm1383_vm0, %v19225_v22  ;;  %v11475_v62 = vor.u32 %v17411_v48, %v11472_v51  ;;  %v17420_v48 = vld [vmem:[%s19135_s8 + $0x25c] sm:$0xf] }
  0xee   : > { %1548 = vmatpush.bf16.msrb.mxu3 %v11247_v56  ;;  %1598 = vmatpush.bf16.msra.mxu1 %v11571_v16  ;;  %v11448_v56 = vld [vmem:[%s19135_s8 + $0x1f8] sm:$0xf0] }
  0xef   : > { %1589 = vmatmul.bf16.vlgmr.msrb.gmra.mxu2 %v19236_v34  ;;  %v11451_v0 = vor.u32 %v17404_v55, %v11448_v56  ;;  %v17388_v16 = vld [vmem:[%s19135_s8 + $0x15c] sm:$0xf] }
  0xf0   : > { %1562 = vmatpush.bf16.msrb.mxu0 %v11471_v2  ;;  %1652 = vmatpush.bf16.msra.mxu2 %v11767_v17  ;;  %v11643_v2 = vor.u32 %v17452_v57, %v11640_v58  ;;  %v11384_v17 = vld [vmem:[%s19135_s8 + $0x178] sm:$0xf0] }
  0xf1   : > { %v17476_v55 = vld [vmem:[%s19135_s8 + $0x41c] sm:$0xf] }
  0xf2   : > { %1549 = vmatpush.bf16.msrb.mxu3 %v11215_v10  ;;  %1599 = vmatpush.bf16.msra.mxu1 %v11539_v32  ;;  %v17368_v10 = vld [vmem:[%s19135_s8 + $0xb4] sm:$0xf0]  ;;  %v17428_v32 = vld [vmem:[%s19135_s8 + $0x29c] sm:$0xf] }
  0xf3   : > { %1563 = vmatmul.bf16.vlgmr.msrb.gmra.mxu0 %v19238_v35  ;;  %v11287_v18 = vor.u32 %v17368_v10, %v11286_v9  ;;  %v11736_v56 = vld [vmem:[%s19135_s8 + $0x438] sm:$0xf0]  ;;  %v11878_v10 = vld [vmem:[%s19151_s19 + $0xc0] sm:$0xf] }
  0xf4   : > { %1620 = vmatpush.bf16.msra.mxu0 %v11447_v7  ;;  %1653 = vmatpush.bf16.msra.mxu2 %v11735_v33  ;;  %v17444_v7 = vld [vmem:[%s19135_s8 + $0x31c] sm:$0xf]  ;;  %v11739_v1 = vor.u32 %v17476_v55, %v11736_v56  ;;  %v12134_v55 = vld [vmem:[%s19151_s19 + $0x2c0] sm:$0xf]  ;;  %v17579_v56 = vld [vmem:[%s19151_s19 + $0x2cc] sm:$0xf0] }
  0xf5   : > { %1550 = vmatmul.bf16.vlgmr.msrb.gmra.mxu3 %v19236_v34  ;;  %v11611_v14 = vor.u32 %v17444_v7, %v11608_v8  ;;  %v11544_v33 = vld [vmem:[%s19135_s8 + $0x2b8] sm:$0xf0] }
  0xf6   : > { %1613 = vmatpush.bf16.msra.mxu3 %v11763_v12  ;;  %1600 = vmatpush.bf16.msra.mxu1 %v11507_v47  ;;  %v11419_v12 = vor.u32 %v17396_v5, %v11416_v6  ;;  %v11547_v43 = vor.u32 %v17428_v32, %v11544_v33  ;;  %v17364_v58 = vld [vmem:[%s19135_s8 + $0x9c] sm:$0xf]  ;;  %v17503_v33 = vld [vmem:[%s19151_s19 + $0x6c] sm:$0xf0] }
  0xf7   : > { %v11291_v5 = vor.u32 %v17364_v58, %v11288_v59  ;;  %v17356_v7 = vld [vmem:[%s19135_s8 + $0x5c] sm:$0xf]  ;;  %v11782_v58 = vld [vmem:[%s19151_s19] sm:$0xf]  ;;  %v12135_v59 = vor.u32 %v17579_v56, %v12134_v55  ;;  %v17675_v56 = vld [vmem:[%s19151_s19 + $0x5cc] sm:$0xf0] }
  0xf8   : > { %1621 = vmatpush.bf16.msra.mxu0 %v11415_v25  ;;  %1672 = vmatpush.bf16.msrb.mxu2 %v11707_v37  ;;  %v11387_v25 = vor.u32 %v17388_v16, %v11384_v17  ;;  %v17352_v37 = vld [vmem:[%s19135_s8 + $0x34] sm:$0xf0]  ;;  %v11256_v8 = vld [vmem:[%s19135_s8 + $0x78] sm:$0xf0] }
  0xf9   : > { %v11259_v15 = vor.u32 %v17356_v7, %v11256_v8  ;;  %v17348_v16 = vld [vmem:[%s19135_s8 + $0x1c] sm:$0xf]  ;;  %v12406_v7 = vld [vmem:[%s19151_s19 + $0x4e0] sm:$0xf]  ;;  %v17647_v8 = vld [vmem:[%s19151_s19 + $0x4ec] sm:$0xf0] }
  0xfa   : > { %1614 = vmatpush.bf16.msra.mxu3 %v11731_v29  ;;  %1601 = vmatpush.bf16.msra.mxu1 %v11475_v62  ;;  %v17380_v29 = vld [vmem:[%s19135_s8 + $0x11c] sm:$0xf] }
  0xfb   : > { %v11355_v39 = vor.u32 %v17380_v29, %v11352_v30  ;;  %v11480_v62 = vld [vmem:[%s19135_s8 + $0x238] sm:$0xf0]  ;;  %v11974_v30 = vld [vmem:[%s19151_s19 + $0x180] sm:$0xf] }
  0xfc   : > { %1622 = vmatpush.bf16.msra.mxu0 %v11383_v41  ;;  %1673 = vmatpush.bf16.msrb.mxu2 %v11675_v50  ;;  %v17484_v41 = vld [vmem:[%s19135_s8 + $0x45c] sm:$0xf]  ;;  %v11478_v50 = vld [vmem:[%s19135_s8 + $0x218] sm:$0xf]  ;;  %v11483_v6 = vor.u32 %v17412_v61, %v11480_v62  ;;  %v12262_v62 = vld [vmem:[%s19151_s19 + $0x3c0] sm:$0xf] }
  0xfd   : > { %1602 = vmatmul.bf16.vlgmr.msra.gmra.mxu1 %v19238_v35  ;;  %v11771_v51 = vor.u32 %v17484_v41, %v11768_v42  ;;  %v11224_v17 = vld [vmem:[%s19135_s8 + $0x38] sm:$0xf0]  ;;  %v17499_v41 = vld [vmem:[%s19151_s19 + $0x4c] sm:$0xf0] }
  0xfe   : > { %1633 = vmatpush.bf16.msrb.mxu3 %v11703_v36  ;;  %1659 = vmatpush.bf16.msrb.mxu1 %v11451_v0  ;;  %v11222_v36 = vld [vmem:[%s19135_s8 + $0x18] sm:$0xf]  ;;  %v17519_v0 = vld [vmem:[%s19151_s19 + $0xec] sm:$0xf0] }
  0xff   : > { %11778 = vmatmul.msk.bf16.vlgmr.msra.gmra.mxu2 %vm1383_vm0, %v19225_v22  ;;  %v11223_v47 = vor.u32 %v17352_v37, %v11222_v36  ;;  %v11958_v37 = vld [vmem:[%s19151_s19 + $0x160] sm:$0xf] }
 0x100   : > { %1623 = vmatpush.bf16.msra.mxu0 %v11351_v54  ;;  %1674 = vmatpush.bf16.msrb.mxu2 %v11643_v2  ;;  %v17416_v54 = vld [vmem:[%s19135_s8 + $0x234] sm:$0xf0]  ;;  %v12022_v2 = vld [vmem:[%s19151_s19 + $0x1e0] sm:$0xf] }
 0x101   : > { %v11479_v4 = vor.u32 %v17416_v54, %v11478_v50  ;;  %v11926_v50 = vld [vmem:[%s19151_s19 + $0x120] sm:$0xf] }
 0x102   : > { %1634 = vmatpush.bf16.msrb.mxu3 %v11671_v49  ;;  %1660 = vmatpush.bf16.msrb.mxu1 %v11419_v12  ;;  %v11512_v49 = vld [vmem:[%s19135_s8 + $0x278] sm:$0xf0] }
 0x103   : > { %v11515_v57 = vor.u32 %v17420_v48, %v11512_v49  ;;  %v17495_v48 = vld [vmem:[%s19151_s19 + $0x2c] sm:$0xf0] }
 0x104   : > { %1624 = vmatpush.bf16.msra.mxu0 %v11319_v3  ;;  %1675 = vmatpush.bf16.msrb.mxu2 %v11611_v14  ;;  %v17551_v3 = vld [vmem:[%s19151_s19 + $0x1ec] sm:$0xf0] }
 0x105   : > { %11777 = vmatmul.msk.bf16.vlgmr.msra.gmra.mxu3 %vm1383_vm0, %v19225_v22  ;;  %v12023_v12 = vor.u32 %v17551_v3, %v12022_v2  ;;  %v17547_v14 = vld [vmem:[%s19151_s19 + $0x1cc] sm:$0xf0]  ;;  %v11910_v3 = vld [vmem:[%s19151_s19 + $0x100] sm:$0xf] }
 0x106   : > { %1635 = vmatpush.bf16.msrb.mxu3 %v11639_v63  ;;  %1661 = vmatpush.bf16.msrb.mxu1 %v11387_v25  ;;  %v11894_v63 = vld [vmem:[%s19151_s19 + $0xe0] sm:$0xf]  ;;  %v12007_v21 = vor.u32 %v17547_v14, %v12006_v13  ;;  %v11227_v25 = vor.u32 %v17348_v16, %v11224_v17  ;;  %v12407_v14 = vor.u32 %v17647_v8, %v12406_v7  ;;  %v17607_v17 = vld [vmem:[%s19151_s19 + $0x3ac] sm:$0xf0] }
 0x107   : > { %v11895_v9 = vor.u32 %v17519_v0, %v11894_v63  ;;  %v17611_v63 = vld [vmem:[%s19151_s19 + $0x3cc] sm:$0xf0]  ;;  %v12118_v0 = vld [vmem:[%s19151_s19 + $0x2a0] sm:$0xf] }
 0x108   : > { %1625 = vmatpush.bf16.msra.mxu0 %v11287_v18  ;;  %1676 = vmatpush.bf16.msrb.mxu2 %v11579_v27  ;;  %v11846_v27 = vld [vmem:[%s19151_s19 + $0x80] sm:$0xf] }
 0x109   : > { %v11847_v32 = vor.u32 %v17507_v28, %v11846_v27  ;;  %v12246_v16 = vld [vmem:[%s19151_s19 + $0x3a0] sm:$0xf] }
 0x10a   : > { %1636 = vmatpush.bf16.msrb.mxu3 %v11607_v11  ;;  %1662 = vmatpush.bf16.msrb.mxu1 %v11355_v39  ;;  %v17515_v11 = vld [vmem:[%s19151_s19 + $0xcc] sm:$0xf0]  ;;  %v12247_v19 = vor.u32 %v17607_v17, %v12246_v16  ;;  %v12502_v7 = vld [vmem:[%s19151_s19 + $0x5a0] sm:$0xf] }
 0x10b   : > { %v11879_v18 = vor.u32 %v17515_v11, %v11878_v10  ;;  %v17627_v16 = vld [vmem:[%s19151_s19 + $0x44c] sm:$0xf0] }
 0x10c   : > { %1626 = vmatpush.bf16.msra.mxu0 %v11255_v31  ;;  %1677 = vmatpush.bf16.msrb.mxu2 %v11547_v43  ;;  %v17539_v31 = vld [vmem:[%s19151_s19 + $0x18c] sm:$0xf0]  ;;  %v11942_v43 = vld [vmem:[%s19151_s19 + $0x140] sm:$0xf] }
 0x10d   : > { %v11975_v36 = vor.u32 %v17539_v31, %v11974_v30  ;;  %v11943_v49 = vor.u32 %v17531_v44, %v11942_v43  ;;  %v17567_v30 = vld [vmem:[%s19151_s19 + $0x26c] sm:$0xf0]  ;;  %v12358_v44 = vld [vmem:[%s19151_s19 + $0x480] sm:$0xf] }
 0x10e   : > { %1637 = vmatpush.bf16.msrb.mxu3 %v11575_v24  ;;  %1663 = vmatpush.bf16.msrb.mxu1 %v11323_v53  ;;  %v17543_v24 = vld [vmem:[%s19151_s19 + $0x1ac] sm:$0xf0] }
 0x10f   : > { %v11991_v29 = vor.u32 %v17543_v24, %v11990_v23  ;;  %v17527_v53 = vld [vmem:[%s19151_s19 + $0x12c] sm:$0xf0]  ;;  %v12230_v24 = vld [vmem:[%s19151_s19 + $0x380] sm:$0xf] }
 0x110   : > { %1627 = vmatpush.bf16.msra.mxu0 %v11223_v47  ;;  %1678 = vmatpush.bf16.msrb.mxu2 %v11515_v57  ;;  %v11798_v47 = vld [vmem:[%s19151_s19 + $0x20] sm:$0xf]  ;;  %v19527_v57 = vld [vmem:[%s19143_s27] sm:$0xff]  ;;  %v11927_v2 = vor.u32 %v17527_v53, %v11926_v50 }
 0x111   : > { %v11799_v61 = vor.u32 %v17495_v48, %v11798_v47  ;;  %v640_v11 = vperm.slane %v19527_v57, 0  ;;  %v12070_v47 = vld [vmem:[%s19151_s19 + $0x240] sm:$0xf]  ;;  %v17563_v48 = vld [vmem:[%s19151_s19 + $0x24c] sm:$0xf0] }
 0x112   : > { %1638 = vmatpush.bf16.msrb.mxu3 %v11543_v38  ;;  %1664 = vmatpush.bf16.msrb.mxu1 %v11291_v5  ;;  %v17535_v38 = vld [vmem:[%s19151_s19 + $0x16c] sm:$0xf0] }
 0x113   : > { %1628 = vmatmul.bf16.vlgmr.msra.gmra.mxu0 %v19236_v34  ;;  %v11959_v42 = vor.u32 %v17535_v38, %v11958_v37  ;;  %v17575_v5 = vld [vmem:[%s19151_s19 + $0x2ac] sm:$0xf0] }
 0x114   : > { %1691 = vmatpush.bf16.msrb.mxu0 %v11771_v51  ;;  %1679 = vmatpush.bf16.msrb.mxu2 %v11483_v6  ;;  %v12278_v51 = vld [vmem:[%s19151_s19 + $0x3e0] sm:$0xf]  ;;  %v17523_v6 = vld [vmem:[%s19151_s19 + $0x10c] sm:$0xf0] }
 0x115   : > { %v11911_v13 = vor.u32 %v17523_v6, %v11910_v3  ;;  %v17639_v37 = vld [vmem:[%s19151_s19 + $0x4ac] sm:$0xf0]  ;;  %v12054_v3 = vld [vmem:[%s19151_s19 + $0x220] sm:$0xf] }
 0x116   : > { %1639 = vmatpush.bf16.msrb.mxu3 %v11511_v52  ;;  %1665 = vmatpush.bf16.msrb.mxu1 %v11259_v15  ;;  %v17615_v52 = vld [vmem:[%s19151_s19 + $0x3ec] sm:$0xf0]  ;;  %v12390_v15 = vld [vmem:[%s19151_s19 + $0x4c0] sm:$0xf] }
 0x117   : > { %1680 = vmatmul.bf16.vlgmr.msrb.gmra.mxu2 %v19238_v35  ;;  %v12279_v54 = vor.u32 %v17615_v52, %v12278_v51  ;;  %v12071_v51 = vor.u32 %v17563_v48, %v12070_v47  ;;  %v12518_v52 = vld [vmem:[%s19151_s19 + $0x5c0] sm:$0xf]  ;;  %v11896_v47 = vld [vmem:[%s19151_s19 + $0xf0] sm:$0xf0] }
 0x118   : > { %1692 = vmatpush.bf16.msrb.mxu0 %v11739_v1  ;;  %v17491_v1 = vld [vmem:[%s19151_s19 + $0xc] sm:$0xf0]  ;;  %v1421_v10 = vpop.f32.mrf.mxu3 }
 0x119   : > { %3299 = vmatpush.bf16.msra.mxu2 %v12279_v54  ;;  %v641_v54 = vperm.slane %v19527_v57, 1 }
 0x11a   : > { %1640 = vmatpush.bf16.msrb.mxu3 %v11479_v4  ;;  %1666 = vmatpush.bf16.msrb.mxu1 %v11227_v25  ;;  %v12263_v4 = vor.u32 %v17611_v63, %v12262_v62  ;;  %v17603_v25 = vld [vmem:[%s19151_s19 + $0x38c] sm:$0xf0]  ;;  %v12519_v62 = vor.u32 %v17675_v56, %v12518_v52  ;;  %v12198_v63 = vld [vmem:[%s19151_s19 + $0x340] sm:$0xf] }
 0x11b   : > { %v12231_v28 = vor.u32 %v17603_v25, %v12230_v24  ;;  %v17667_v24 = vld [vmem:[%s19151_s19 + $0x58c] sm:$0xf0] }
 0x11c   : > { %3273 = vmatpush.bf16.msra.mxu0 %v12023_v12  ;;  %v11783_v12 = vor.u32 %v17491_v1, %v11782_v58  ;;  %v17631_v1 = vld [vmem:[%s19151_s19 + $0x46c] sm:$0xf0] }
 0x11d   : > { %1641 = vmatmul.bf16.vlgmr.msrb.gmra.mxu3 %v19238_v35  ;;  %v11830_v35 = vld [vmem:[%s19151_s19 + $0x60] sm:$0xf]  ;;  %1667 = vmatmul.bf16.vlgmr.msrb.gmra.mxu1 %v19236_v34  ;;  %v17655_v52 = vld [vmem:[%s19151_s19 + $0x52c] sm:$0xf0] }
 0x11e   : > { %3260 = vmatpush.bf16.msra.mxu3 %v11895_v9  ;;  %v11831_v39 = vor.u32 %v17503_v33, %v11830_v35  ;;  %v12150_v34 = vld [vmem:[%s19151_s19 + $0x2e0] sm:$0xf]  ;;  %v12119_v9 = vor.u32 %v17575_v5, %v12118_v0  ;;  %3300 = vmatpush.bf16.msra.mxu2 %v12263_v4  ;;  %v17679_v33 = vld [vmem:[%s19151_s19 + $0x5ec] sm:$0xf0] }
 0x11f   : > { %v12151_v46 = vor.u32 %v17583_v45, %v12150_v34  ;;  %v12534_v35 = vld [vmem:[%s19151_s19 + $0x5e0] sm:$0xf]  ;;  %v17599_v45 = vld [vmem:[%s19151_s19 + $0x36c] sm:$0xf0] }
 0x120   : > { %3274 = vmatpush.bf16.msra.mxu0 %v12007_v21  ;;  %v17571_v21 = vld [vmem:[%s19151_s19 + $0x28c] sm:$0xf0]  ;;  %v12214_v34 = vld [vmem:[%s19151_s19 + $0x360] sm:$0xf] }
 0x121   : > { %3286 = vmatpush.bf16.msra.mxu1 %v12151_v46  ;;  %v12103_v23 = vor.u32 %v17571_v21, %v12102_v20  ;;  %v17635_v46 = vld [vmem:[%s19151_s19 + $0x48c] sm:$0xf0] }
 0x122   : > { %3261 = vmatpush.bf16.msra.mxu3 %v11879_v18  ;;  %v17643_v18 = vld [vmem:[%s19151_s19 + $0x4cc] sm:$0xf0]  ;;  %3301 = vmatpush.bf16.msra.mxu2 %v12247_v19 }
 0x123   : > { %11779 = vmatmul.msk.bf16.vlgmr.msrb.gmra.mxu0 %vm1383_vm0, %v19225_v22  ;;  %v11815_v22 = vor.u32 %v17499_v41, %v11814_v40  ;;  %v1423_v41 = vpop.f32.mrf.mxu3  ;;  %v17595_v0 = vld [vmem:[%s19151_s19 + $0x34c] sm:$0xf0] }
 0x124   : > { %3275 = vmatpush.bf16.msra.mxu0 %v11991_v29  ;;  %v12086_v29 = vld [vmem:[%s19151_s19 + $0x260] sm:$0xf]  ;;  %v17559_v4 = vld [vmem:[%s19151_s19 + $0x22c] sm:$0xf0] }
 0x125   : > { %3287 = vmatpush.bf16.msra.mxu1 %v12135_v59  ;;  %v12087_v38 = vor.u32 %v17567_v30, %v12086_v29  ;;  %v12359_v59 = vor.u32 %v17635_v46, %v12358_v44  ;;  %v12055_v6 = vor.u32 %v17559_v4, %v12054_v3  ;;  %v17555_v19 = vld [vmem:[%s19151_s19 + $0x20c] sm:$0xf0]  ;;  %v12294_v41 = vld [vmem:[%s19151_s19 + $0x400] sm:$0xf]  ;;  %v17509_v4 = vld [vmem:[%s19151_s19 + $0xa4] sm:$0xf] }
 0x126   : > { %3262 = vmatpush.bf16.msra.mxu3 %v11863_v26  ;;  %3302 = vmatpush.bf16.msra.mxu2 %v12231_v28  ;;  %v12166_v28 = vld [vmem:[%s19151_s19 + $0x300] sm:$0xf]  ;;  %v17587_v29 = vld [vmem:[%s19151_s19 + $0x30c] sm:$0xf0] }
 0x127   : > { %v12454_v44 = vld [vmem:[%s19151_s19 + $0x540] sm:$0xf]  ;;  %v17707_v56 = vld [vmem:[%s19151_s19 + $0x6cc] sm:$0xf0] }
 0x128   : > { %3276 = vmatpush.bf16.msra.mxu0 %v11975_v36  ;;  %v1395_v26 = vpop.f32.mrf.mxu0  ;;  %v12374_v36 = vld [vmem:[%s19151_s19 + $0x4a0] sm:$0xf] }
 0x129   : > { %3288 = vmatpush.bf16.msra.mxu1 %v12119_v9  ;;  %v1396_v31 = vadd.f32 %v1395_v26, %v640_v11  ;;  %v12375_v43 = vor.u32 %v17639_v37, %v12374_v36  ;;  %v17671_v9 = vld [vmem:[%s19151_s19 + $0x5ac] sm:$0xf0]  ;;  %v12326_v11 = vld [vmem:[%s19151_s19 + $0x440] sm:$0xf] }
 0x12a   : > { %3263 = vmatpush.bf16.msra.mxu3 %v11847_v32  ;;  %v1408_v27 = vpop.f32.mrf.mxu1  ;;  %v12391_v32 = vor.u32 %v17643_v18, %v12390_v15  ;;  %v12038_v18 = vld [vmem:[%s19151_s19 + $0x200] sm:$0xf]  ;;  %v17663_v37 = vld [vmem:[%s19151_s19 + $0x56c] sm:$0xf0] }
 0x12b   : > { %v1409_v40 = vadd.f32 %v1408_v27, %v1396_v31  ;;  %v12039_v21 = vor.u32 %v17555_v19, %v12038_v18  ;;  %v12327_v27 = vor.u32 %v17627_v16, %v12326_v11  ;;  %v12310_v31 = vld [vmem:[%s19151_s19 + $0x420] sm:$0xf]  ;;  %v643_v16 = vperm.slane %v19527_v57, 3  ;;  %v17549_v19 = vld [vmem:[%s19151_s19 + $0x1e4] sm:$0xf] }
 0x12c   : > { %3277 = vmatpush.bf16.msra.mxu0 %v11959_v42  ;;  %v1447_v50 = vpop.f32.mrf.mxu2 }
 0x12d   : > { %3289 = vmatpush.bf16.msra.mxu1 %v12103_v23  ;;  %v1422_v42 = vadd.f32 %v1421_v10, %v1409_v40  ;;  %v12486_v23 = vld [vmem:[%s19151_s19 + $0x580] sm:$0xf] }
 0x12e   : > { %3264 = vmatpush.bf16.msra.mxu3 %v11831_v39  ;;  %v12535_v39 = vor.u32 %v17679_v33, %v12534_v35  ;;  %v12487_v25 = vor.u32 %v17667_v24, %v12486_v23  ;;  %v12167_v35 = vor.u32 %v17587_v29, %v12166_v28  ;;  %v12470_v33 = vld [vmem:[%s19151_s19 + $0x560] sm:$0xf]  ;;  %v17699_v23 = vld [vmem:[%s19151_s19 + $0x68c] sm:$0xf0] }
 0x12f   : > { %v12758_v29 = vld [vmem:[%s19151_s19 + $0x7a0] sm:$0xf] }
 0x130   : > { %3278 = vmatpush.bf16.msra.mxu0 %v11943_v49  ;;  %v1698_v49 = vmax.f32 %v1422_v42, 0.0  ;;  %v1397_v53 = vpop.f32.mrf.mxu0  ;;  %v17619_v42 = vld [vmem:[%s19151_s19 + $0x40c] sm:$0xf0] }
 0x131   : > { %3290 = vmatpush.bf16.msra.mxu1 %v12087_v38  ;;  %v12646_v53 = vld [vmem:[%s19151_s19 + $0x6c0] sm:$0xf] }
 0x132   : > { %3265 = vmatpush.bf16.msra.mxu3 %v11815_v22  ;;  %v12215_v22 = vor.u32 %v17599_v45, %v12214_v34  ;;  %v1410_v55 = vpop.f32.mrf.mxu1  ;;  %v19563_v58 = vpack.c.bf16 %v1698_v49, %v1698_v49  ;;  %v17659_v34 = vld [vmem:[%s19151_s19 + $0x54c] sm:$0xf0]  ;;  %v12662_v45 = vld [vmem:[%s19151_s19 + $0x6e0] sm:$0xf] }
 0x133   : > { %v12455_v48 = vor.u32 %v17659_v34, %v12454_v44  ;;  %v17711_v49 = vld [vmem:[%s19151_s19 + $0x6ec] sm:$0xf0]  ;;  %v12295_v55 = vor.u32 %v17619_v42, %v12294_v41  ;;  %v12742_v42 = vld [vmem:[%s19151_s19 + $0x780] sm:$0xf]  ;;  %v17501_v34 = vld [vmem:[%s19151_s19 + $0x64] sm:$0xf] }
 0x134   : > { %3279 = vmatpush.bf16.msra.mxu0 %v11927_v2  ;;  %3303 = vmatpush.bf16.msra.mxu2 %v12215_v22  ;;  %v12199_v2 = vor.u32 %v17595_v0, %v12198_v63  ;;  %v1449_v20 = vpop.f32.mrf.mxu2  ;;  %v17517_v22 = vld [vmem:[%s19151_s19 + $0xe4] sm:$0xf]  ;;  %v12647_v63 = vor.u32 %v17707_v56, %v12646_v53  ;;  %v17695_v41 = vld [vmem:[%s19151_s19 + $0x66c] sm:$0xf0] }
 0x135   : > { %3291 = vmatpush.bf16.msra.mxu1 %v12071_v51  ;;  %v12438_v51 = vld [vmem:[%s19151_s19 + $0x520] sm:$0xf]  ;;  %v12024_v20 = vld [vmem:[%s19151_s19 + $0x1f0] sm:$0xf0] }
 0x136   : > { %3266 = vmatpush.bf16.msra.mxu3 %v11799_v61  ;;  %v12342_v61 = vld [vmem:[%s19151_s19 + $0x460] sm:$0xf]  ;;  %v12439_v3 = vor.u32 %v17655_v52, %v12438_v51  ;;  %v11992_v51 = vld [vmem:[%s19151_s19 + $0x1b0] sm:$0xf0] }
 0x137   : > { %v12343_v10 = vor.u32 %v17631_v1, %v12342_v61  ;;  %v17743_v61 = vld [vmem:[%s19151_s19 + $0x7ec] sm:$0xf0]  ;;  %v17513_v1 = vld [vmem:[%s19151_s19 + $0xc4] sm:$0xf] }
 0x138   : > { %3280 = vmatpush.bf16.msra.mxu0 %v11911_v13  ;;  %v1434_v5 = vpop.f32.mrf.mxu3  ;;  %3304 = vmatpush.bf16.msra.mxu2 %v12199_v2  ;;  %v12182_v13 = vld [vmem:[%s19151_s19 + $0x320] sm:$0xf]  ;;  %v1460_v26 = vpop.f32.mrf.mxu0  ;;  %v11880_v2 = vld [vmem:[%s19151_s19 + $0xd0] sm:$0xf0] }
 0x139   : > { %v1435_v8 = vadd.f32 %v1434_v5, %v641_v54  ;;  %3292 = vmatpush.bf16.msra.mxu1 %v12055_v6  ;;  %v11864_v5 = vld [vmem:[%s19151_s19 + $0xb0] sm:$0xf0] }
 0x13a   : > { %3267 = vmatpush.bf16.msra.mxu3 %v11783_v12  ;;  %v12503_v12 = vor.u32 %v17671_v9, %v12502_v7  ;;  %v11883_v7 = vor.u32 %v17513_v1, %v11880_v2  ;;  %v17651_v9 = vld [vmem:[%s19151_s19 + $0x50c] sm:$0xf0]  ;;  %v17497_v1 = vld [vmem:[%s19151_s19 + $0x44] sm:$0xf]  ;;  %v11816_v2 = vld [vmem:[%s19151_s19 + $0x50] sm:$0xf0] }
 0x13b   : > { %v1448_v15 = vadd.f32 %v1447_v50, %v1435_v8  ;;  %v12663_v50 = vor.u32 %v17711_v49, %v12662_v45  ;;  %v12422_v8 = vld [vmem:[%s19151_s19 + $0x500] sm:$0xf]  ;;  %v11832_v45 = vld [vmem:[%s19151_s19 + $0x70] sm:$0xf0] }
 0x13c   : > { %3325 = vmatpush.bf16.msrb.mxu0 %v12535_v39  ;;  %v12471_v39 = vor.u32 %v17663_v37, %v12470_v33  ;;  %v19595_v46 = vpop.f32.mrf.mxu2  ;;  %v12008_v33 = vld [vmem:[%s19151_s19 + $0x1d0] sm:$0xf0] }
 0x13d   : > { %3268 = vmatmul.bf16.vlgmr.msra.gmra.mxu3 %v19563_v58  ;;  %v1461_v30 = vadd.f32 %v1460_v26, %v1448_v15  ;;  %3293 = vmatpush.bf16.msra.mxu1 %v12039_v21  ;;  %v17739_v15 = vld [vmem:[%s19151_s19 + $0x7cc] sm:$0xf0]  ;;  %v12614_v21 = vld [vmem:[%s19151_s19 + $0x680] sm:$0xf]  ;;  %v17505_v26 = vld [vmem:[%s19151_s19 + $0x84] sm:$0xf] }
 0x13e   : > { %3312 = vmatpush.bf16.msrb.mxu3 %v12407_v14  ;;  %v17591_v14 = vld [vmem:[%s19151_s19 + $0x32c] sm:$0xf0]  ;;  %v12615_v28 = vor.u32 %v17699_v23, %v12614_v21  ;;  %v17533_v23 = vld [vmem:[%s19151_s19 + $0x164] sm:$0xf] }
 0x13f   : > { %v12183_v17 = vor.u32 %v17591_v14, %v12182_v13  ;;  %v1699_v38 = vmax.f32 %v1461_v30, 0.0  ;;  %v17703_v13 = vld [vmem:[%s19151_s19 + $0x6ac] sm:$0xf0]  ;;  %v12774_v14 = vld [vmem:[%s19151_s19 + $0x7c0] sm:$0xf] }
 0x140   : > { %3326 = vmatpush.bf16.msrb.mxu0 %v12519_v62  ;;  %v1436_v36 = vpop.f32.mrf.mxu3  ;;  %v1462_v54 = vpop.f32.mrf.mxu0  ;;  %v11899_v62 = vor.u32 %v17517_v22, %v11896_v47  ;;  %v12775_v18 = vor.u32 %v17739_v15, %v12774_v14  ;;  %v17735_v30 = vld [vmem:[%s19151_s19 + $0x7ac] sm:$0xf0]  ;;  %v12566_v14 = vld [vmem:[%s19151_s19 + $0x620] sm:$0xf] }
 0x141   : > { %3305 = vmatpush.bf16.msra.mxu2 %v12183_v17  ;;  %3338 = vmatpush.bf16.msrb.mxu1 %v12663_v50  ;;  %v642_v36 = vperm.slane %v19527_v57, 2  ;;  %v17731_v47 = vld [vmem:[%s19151_s19 + $0x78c] sm:$0xf0]  ;;  %v17541_v50 = vld [vmem:[%s19151_s19 + $0x1a4] sm:$0xf] }
 0x142   : > { %3313 = vmatpush.bf16.msrb.mxu3 %v12391_v32  ;;  %v17623_v32 = vld [vmem:[%s19151_s19 + $0x42c] sm:$0xf0]  ;;  %v12743_v49 = vor.u32 %v17731_v47, %v12742_v42  ;;  %v11995_v53 = vor.u32 %v17541_v50, %v11992_v51  ;;  %v17525_v51 = vld [vmem:[%s19151_s19 + $0x124] sm:$0xf] }
 0x143   : > { %v12311_v40 = vor.u32 %v17623_v32, %v12310_v31  ;;  %v11848_v31 = vld [vmem:[%s19151_s19 + $0x90] sm:$0xf0]  ;;  %v12759_v32 = vor.u32 %v17735_v30, %v12758_v29 }
 0x144   : > { %3327 = vmatpush.bf16.msrb.mxu0 %v12503_v12  ;;  %v1501_v11 = vpop.f32.mrf.mxu2  ;;  %v12423_v12 = vor.u32 %v17651_v9, %v12422_v8  ;;  %v11976_v8 = vld [vmem:[%s19151_s19 + $0x190] sm:$0xf0]  ;;  %v17493_v9 = vld [vmem:[%s19151_s19 + $0x24] sm:$0xf] }
 0x145   : > { %3306 = vmatpush.bf16.msra.mxu2 %v12167_v35  ;;  %3339 = vmatpush.bf16.msrb.mxu1 %v12647_v63  ;;  %v17545_v35 = vld [vmem:[%s19151_s19 + $0x1c4] sm:$0xf]  ;;  %v12726_v63 = vld [vmem:[%s19151_s19 + $0x760] sm:$0xf] }
 0x146   : > { %3314 = vmatpush.bf16.msrb.mxu3 %v12375_v43  ;;  %v19590_v43 = vpack.c.bf16 %v1699_v38, %v1699_v38  ;;  %v12011_v37 = vor.u32 %v17545_v35, %v12008_v33  ;;  %v17683_v35 = vld [vmem:[%s19151_s19 + $0x60c] sm:$0xf0]  ;;  %v12694_v33 = vld [vmem:[%s19151_s19 + $0x720] sm:$0xf] }
 0x148   : > { %3328 = vmatpush.bf16.msrb.mxu0 %v12487_v25  ;;  %v11867_v25 = vor.u32 %v17509_v4, %v11864_v5  ;;  %v17727_v4 = vld [vmem:[%s19151_s19 + $0x76c] sm:$0xf0] }
 0x149   : > { %3281 = vmatmul.bf16.vlgmr.msra.gmra.mxu0 %v19590_v43 }
 0x14a   : > { %3315 = vmatpush.bf16.msrb.mxu3 %v12359_v59  ;;  %v12790_v59 = vld [vmem:[%s19151_s19 + $0x7e0] sm:$0xf]  ;;  %v1473_v6 = vpop.f32.mrf.mxu1 }
 0x14b   : > { %v12791_v0 = vor.u32 %v17743_v61, %v12790_v59  ;;  %v11835_v59 = vor.u32 %v17501_v34, %v11832_v45  ;;  %v12582_v61 = vld [vmem:[%s19151_s19 + $0x640] sm:$0xf]  ;;  %v12152_v34 = vld [vmem:[%s19151_s19 + $0x2f0] sm:$0xf0] }
 0x14c   : > { %3329 = vmatpush.bf16.msrb.mxu0 %v12471_v39  ;;  %v11851_v39 = vor.u32 %v17505_v26, %v11848_v31 }
 0x14d   : > { %3351 = vmatpush.bf16.msrb.mxu2 %v12791_v0 }
 0x14e   : > { %3316 = vmatpush.bf16.msrb.mxu3 %v12343_v10  ;;  %v12630_v10 = vld [vmem:[%s19151_s19 + $0x6a0] sm:$0xf] }
 0x14f   : > { %v12631_v17 = vor.u32 %v17703_v13, %v12630_v10  ;;  %v11819_v13 = vor.u32 %v17497_v1, %v11816_v2  ;;  %v17573_v1 = vld [vmem:[%s19151_s19 + $0x2a4] sm:$0xf] }
 0x150   : > { %3330 = vmatpush.bf16.msrb.mxu0 %v12455_v48  ;;  %v1512_v24 = vpop.f32.mrf.mxu0  ;;  %v1474_v48 = vadd.f32 %v1473_v6, %v642_v36  ;;  %v12727_v6 = vor.u32 %v17727_v4, %v12726_v63  ;;  %v17521_v63 = vld [vmem:[%s19151_s19 + $0x104] sm:$0xf] }
 0x151   : > { %3340 = vmatpush.bf16.msrb.mxu1 %v12631_v17  ;;  %3352 = vmatpush.bf16.msrb.mxu2 %v12775_v18  ;;  %v1513_v44 = vadd.f32 %v1512_v24, %v643_v16  ;;  %v11800_v16 = vld [vmem:[%s19151_s19 + $0x30] sm:$0xf0]  ;;  %v12710_v18 = vld [vmem:[%s19151_s19 + $0x740] sm:$0xf]  ;;  %v17609_v4 = vld [vmem:[%s19151_s19 + $0x3c4] sm:$0xf] }
 0x152   : > { %3317 = vmatpush.bf16.msrb.mxu3 %v12327_v27  ;;  %v12027_v27 = vor.u32 %v17549_v19, %v12024_v20  ;;  %v1475_v38 = vpop.f32.mrf.mxu1  ;;  %v17723_v19 = vld [vmem:[%s19151_s19 + $0x74c] sm:$0xf0]  ;;  %v11960_v24 = vld [vmem:[%s19151_s19 + $0x170] sm:$0xf0]  ;;  %v11803_v31 = vor.u32 %v17493_v9, %v11800_v16  ;;  %v17569_v9 = vld [vmem:[%s19151_s19 + $0x284] sm:$0xf] }
 0x153   : > { %v12711_v21 = vor.u32 %v17723_v19, %v12710_v18  ;;  %v11963_v29 = vor.u32 %v17533_v23, %v11960_v24  ;;  %v17719_v38 = vld [vmem:[%s19151_s19 + $0x72c] sm:$0xf0]  ;;  %v17565_v16 = vld [vmem:[%s19151_s19 + $0x264] sm:$0xf] }
 0x154   : > { %3331 = vmatpush.bf16.msrb.mxu0 %v12439_v3  ;;  %v17601_v18 = vld [vmem:[%s19151_s19 + $0x384] sm:$0xf] }
 0x155   : > { %3341 = vmatpush.bf16.msrb.mxu1 %v12615_v28  ;;  %3353 = vmatpush.bf16.msrb.mxu2 %v12759_v32  ;;  %v11784_v28 = vld [vmem:[%s19151_s19 + $0x10] sm:$0xf0]  ;;  %v12550_v32 = vld [vmem:[%s19151_s19 + $0x600] sm:$0xf] }
 0x156   : > { %3318 = vmatpush.bf16.msrb.mxu3 %v12311_v40  ;;  %v12598_v40 = vld [vmem:[%s19151_s19 + $0x660] sm:$0xf] }
 0x157   : > { %v12599_v22 = vor.u32 %v17695_v41, %v12598_v40  ;;  %v11944_v40 = vld [vmem:[%s19151_s19 + $0x150] sm:$0xf0]  ;;  %v12695_v41 = vor.u32 %v17719_v38, %v12694_v33  ;;  %v17645_v38 = vld [vmem:[%s19151_s19 + $0x4e4] sm:$0xf] }
 0x158   : > { %3332 = vmatpush.bf16.msrb.mxu0 %v12423_v12  ;;  %v1486_v52 = vpop.f32.mrf.mxu3  ;;  %v1514_v56 = vpop.f32.mrf.mxu0 }
 0x159   : > { %v1487_v54 = vadd.f32 %v1486_v52, %v1474_v48  ;;  %3342 = vmatpush.bf16.msrb.mxu1 %v12599_v22  ;;  %3354 = vmatpush.bf16.msrb.mxu2 %v12743_v49  ;;  %v12678_v48 = vld [vmem:[%s19151_s19 + $0x700] sm:$0xf]  ;;  %v17715_v49 = vld [vmem:[%s19151_s19 + $0x70c] sm:$0xf0]  ;;  %v11928_v52 = vld [vmem:[%s19151_s19 + $0x130] sm:$0xf0] }
 0x15a   : > { %3319 = vmatpush.bf16.msrb.mxu3 %v12295_v55  ;;  %v1525_v55 = vpop.f32.mrf.mxu2  ;;  %v1538_v12 = vpop.f32.mrf.mxu1  ;;  %v12679_v50 = vor.u32 %v17715_v49, %v12678_v48  ;;  %v17613_v56 = vld [vmem:[%s19151_s19 + $0x3e4] sm:$0xf]  ;;  %v645_v48 = vperm.slane %v19527_v57, 5 }
 0x15b   : > { %v1526_v0 = vadd.f32 %v1525_v55, %v1513_v44  ;;  %v1500_v5 = vadd.f32 %v19595_v46, %v1487_v54  ;;  %v17687_v46 = vld [vmem:[%s19151_s19 + $0x62c] sm:$0xf0]  ;;  %v17581_v44 = vld [vmem:[%s19151_s19 + $0x2e4] sm:$0xf]  ;;  %v11931_v54 = vor.u32 %v17525_v51, %v11928_v52  ;;  %v12136_v55 = vld [vmem:[%s19151_s19 + $0x2d0] sm:$0xf0] }
 0x15c   : > { %3377 = vmatpush.bf16.msra.mxu0 %v12027_v27  ;;  %v12567_v17 = vor.u32 %v17687_v46, %v12566_v14  ;;  %v17489_v27 = vld [vmem:[%s19151_s19 + $0x4] sm:$0xf]  ;;  %v12155_v45 = vor.u32 %v17581_v44, %v12152_v34  ;;  %v644_v46 = vperm.slane %v19527_v57, 4 }
 0x15d   : > { %v1700_v11 = vmax.f32 %v1500_v5, 0.0  ;;  %v1539_v15 = vadd.f32 %v1538_v12, %v1526_v0  ;;  %3355 = vmatpush.bf16.msrb.mxu2 %v12727_v6  ;;  %v11787_v47 = vor.u32 %v17489_v27, %v11784_v28  ;;  %v11912_v0 = vld [vmem:[%s19151_s19 + $0x110] sm:$0xf0]  ;;  %v17561_v28 = vld [vmem:[%s19151_s19 + $0x244] sm:$0xf] }
 0x15e   : > { %3364 = vmatpush.bf16.msra.mxu3 %v11899_v62  ;;  %v17691_v62 = vld [vmem:[%s19151_s19 + $0x64c] sm:$0xf0]  ;;  %v11915_v2 = vor.u32 %v17521_v63, %v11912_v0  ;;  %v12264_v5 = vld [vmem:[%s19151_s19 + $0x3d0] sm:$0xf0]  ;;  %v17593_v34 = vld [vmem:[%s19151_s19 + $0x344] sm:$0xf] }
 0x15f   : > { %v12583_v3 = vor.u32 %v17691_v62, %v12582_v61  ;;  %v19652_v20 = vpack.c.bf16 %v1700_v11, %v1700_v11  ;;  %v17605_v11 = vld [vmem:[%s19151_s19 + $0x3a4] sm:$0xf]  ;;  %v12184_v63 = vld [vmem:[%s19151_s19 + $0x330] sm:$0xf0] }
 0x160   : > { %3378 = vmatpush.bf16.msra.mxu0 %v12011_v37  ;;  %v1488_v26 = vpop.f32.mrf.mxu3  ;;  %v12551_v37 = vor.u32 %v17683_v35, %v12550_v32  ;;  %v12216_v32 = vld [vmem:[%s19151_s19 + $0x370] sm:$0xf0]  ;;  %v17641_v52 = vld [vmem:[%s19151_s19 + $0x4c4] sm:$0xf] }
 0x161   : > { %3343 = vmatpush.bf16.msrb.mxu1 %v12583_v3  ;;  %3356 = vmatpush.bf16.msrb.mxu2 %v12711_v21  ;;  %v12120_v3 = vld [vmem:[%s19151_s19 + $0x2b0] sm:$0xf0] }
 0x162   : > { %3365 = vmatpush.bf16.msra.mxu3 %v11883_v7  ;;  %v17537_v7 = vld [vmem:[%s19151_s19 + $0x184] sm:$0xf]  ;;  %3294 = vmatmul.bf16.vlgmr.msra.gmra.mxu1 %v19652_v20  ;;  %v1527_v30 = vpop.f32.mrf.mxu2  ;;  %v1540_v22 = vpop.f32.mrf.mxu1  ;;  %v12123_v6 = vor.u32 %v17573_v1, %v12120_v3  ;;  %v12232_v21 = vld [vmem:[%s19151_s19 + $0x390] sm:$0xf0] }
 0x163   : > { %v11979_v10 = vor.u32 %v17537_v7, %v11976_v8  ;;  %v12267_v7 = vor.u32 %v17609_v4, %v12264_v5  ;;  %v12235_v23 = vor.u32 %v17601_v18, %v12232_v21  ;;  %v17597_v30 = vld [vmem:[%s19151_s19 + $0x364] sm:$0xf]  ;;  %v12376_v4 = vld [vmem:[%s19151_s19 + $0x4b0] sm:$0xf0] }
 0x164   : > { %3379 = vmatpush.bf16.msra.mxu0 %v11995_v53  ;;  %v17577_v53 = vld [vmem:[%s19151_s19 + $0x2c4] sm:$0xf]  ;;  %v12219_v33 = vor.u32 %v17597_v30, %v12216_v32  ;;  %v12328_v32 = vld [vmem:[%s19151_s19 + $0x450] sm:$0xf0] }
 0x165   : > { %3344 = vmatpush.bf16.msrb.mxu1 %v12567_v17  ;;  %3357 = vmatpush.bf16.msrb.mxu2 %v12695_v41  ;;  %v12139_v61 = vor.u32 %v17577_v53, %v12136_v55  ;;  %v12088_v17 = vld [vmem:[%s19151_s19 + $0x270] sm:$0xf0]  ;;  %v17557_v41 = vld [vmem:[%s19151_s19 + $0x224] sm:$0xf] }
 0x166   : > { %3366 = vmatpush.bf16.msra.mxu3 %v11867_v25  ;;  %v1701_v25 = vmax.f32 %v1539_v15, 0.0  ;;  %v12091_v19 = vor.u32 %v17565_v16, %v12088_v17  ;;  %v12392_v53 = vld [vmem:[%s19151_s19 + $0x4d0] sm:$0xf0]  ;;  %v17637_v3 = vld [vmem:[%s19151_s19 + $0x4a4] sm:$0xf] }
 0x167   : > { %v17585_v5 = vld [vmem:[%s19151_s19 + $0x304] sm:$0xf]  ;;  %v12536_v16 = vld [vmem:[%s19151_s19 + $0x5f0] sm:$0xf0] }
 0x168   : > { %3380 = vmatpush.bf16.msra.mxu0 %v11979_v10  ;;  %v19662_v36 = vpack.c.bf16 %v1701_v25, %v1701_v25  ;;  %v12104_v10 = vld [vmem:[%s19151_s19 + $0x290] sm:$0xf0]  ;;  %v17629_v21 = vld [vmem:[%s19151_s19 + $0x464] sm:$0xf] }
 0x169   : > { %3345 = vmatpush.bf16.msrb.mxu1 %v12551_v37  ;;  %3358 = vmatpush.bf16.msrb.mxu2 %v12679_v50  ;;  %v12107_v12 = vor.u32 %v17569_v9, %v12104_v10  ;;  %v12379_v9 = vor.u32 %v17637_v3, %v12376_v4 }
 0x16a   : > { %3367 = vmatpush.bf16.msra.mxu3 %v11851_v39  ;;  %v17529_v39 = vld [vmem:[%s19151_s19 + $0x144] sm:$0xf]  ;;  %3307 = vmatmul.bf16.vlgmr.msra.gmra.mxu2 %v19662_v36  ;;  %v1577_v8 = vpop.f32.mrf.mxu1 }
 0x16b   : > { %v11947_v42 = vor.u32 %v17529_v39, %v11944_v40  ;;  %v12408_v40 = vld [vmem:[%s19151_s19 + $0x4f0] sm:$0xf0] }
 0x16c   : > { %3381 = vmatpush.bf16.msra.mxu0 %v11963_v29  ;;  %v12072_v29 = vld [vmem:[%s19151_s19 + $0x250] sm:$0xf0]  ;;  %v12411_v51 = vor.u32 %v17645_v38, %v12408_v40  ;;  %v17621_v40 = vld [vmem:[%s19151_s19 + $0x424] sm:$0xf] }
 0x16d   : > { %3390 = vmatpush.bf16.msra.mxu1 %v12155_v45  ;;  %v12200_v45 = vld [vmem:[%s19151_s19 + $0x350] sm:$0xf0] }
 0x16e   : > { %3368 = vmatpush.bf16.msra.mxu3 %v11835_v59  ;;  %v12280_v59 = vld [vmem:[%s19151_s19 + $0x3f0] sm:$0xf0] }
 0x16f   : > { %v12283_v62 = vor.u32 %v17613_v56, %v12280_v59  ;;  %v17553_v56 = vld [vmem:[%s19151_s19 + $0x204] sm:$0xf]  ;;  %v12040_v59 = vld [vmem:[%s19151_s19 + $0x210] sm:$0xf0] }
 0x170   : > { %3382 = vmatpush.bf16.msra.mxu0 %v11947_v42  ;;  %v1564_v15 = vpop.f32.mrf.mxu0  ;;  %v12056_v42 = vld [vmem:[%s19151_s19 + $0x230] sm:$0xf0] }
 0x171   : > { %3391 = vmatpush.bf16.msra.mxu1 %v12139_v61  ;;  %3403 = vmatpush.bf16.msra.mxu2 %v12283_v62  ;;  %v12059_v44 = vor.u32 %v17557_v41, %v12056_v42  ;;  %v17589_v61 = vld [vmem:[%s19151_s19 + $0x324] sm:$0xf]  ;;  %v12043_v62 = vor.u32 %v17553_v56, %v12040_v59  ;;  %v12312_v41 = vld [vmem:[%s19151_s19 + $0x430] sm:$0xf0]  ;;  %v646_v42 = vperm.slane %v19527_v57, 6 }
 0x172   : > { %3369 = vmatpush.bf16.msra.mxu3 %v11819_v13  ;;  %v12248_v13 = vld [vmem:[%s19151_s19 + $0x3b0] sm:$0xf0]  ;;  %v1579_v25 = vpop.f32.mrf.mxu1  ;;  %v1590_v27 = vpop.f32.mrf.mxu2  ;;  %v12187_v0 = vor.u32 %v17589_v61, %v12184_v63  ;;  %v17520_v56 = vld [vmem:[%s19151_s19 + $0xf4] sm:$0xf0] }
 0x173   : > { %v12251_v14 = vor.u32 %v17605_v11, %v12248_v13  ;;  %v1591_v1 = vadd.f32 %v1590_v27, %v645_v48  ;;  %v12360_v13 = vld [vmem:[%s19151_s19 + $0x490] sm:$0xf0]  ;;  %v17673_v25 = vld [vmem:[%s19151_s19 + $0x5c4] sm:$0xf] }
 0x174   : > { %3383 = vmatpush.bf16.msra.mxu0 %v11931_v54 }
 0x175   : > { %3392 = vmatpush.bf16.msra.mxu1 %v12123_v6  ;;  %3404 = vmatpush.bf16.msra.mxu2 %v12267_v7  ;;  %v12168_v6 = vld [vmem:[%s19151_s19 + $0x310] sm:$0xf0] }
 0x176   : > { %3370 = vmatpush.bf16.msra.mxu3 %v11803_v31  ;;  %v12075_v31 = vor.u32 %v17561_v28, %v12072_v29  ;;  %v12171_v7 = vor.u32 %v17585_v5, %v12168_v6  ;;  %v12456_v5 = vld [vmem:[%s19151_s19 + $0x550] sm:$0xf0]  ;;  %v17709_v6 = vld [vmem:[%s19151_s19 + $0x6e4] sm:$0xf] }
 0x178   : > { %3384 = vmatpush.bf16.msra.mxu0 %v11915_v2  ;;  %v1551_v24 = vpop.f32.mrf.mxu3  ;;  %v1566_v37 = vpop.f32.mrf.mxu0  ;;  %v12395_v2 = vor.u32 %v17641_v52, %v12392_v53  ;;  %v12472_v53 = vld [vmem:[%s19151_s19 + $0x570] sm:$0xf0] }
 0x179   : > { %3393 = vmatpush.bf16.msra.mxu1 %v12107_v12  ;;  %3405 = vmatpush.bf16.msra.mxu2 %v12251_v14  ;;  %v1552_v26 = vadd.f32 %v1551_v24, %v644_v46  ;;  %v17633_v12 = vld [vmem:[%s19151_s19 + $0x484] sm:$0xf]  ;;  %v12504_v37 = vld [vmem:[%s19151_s19 + $0x5b0] sm:$0xf0] }
 0x17a   : > { %3371 = vmatpush.bf16.msra.mxu3 %v11787_v47  ;;  %v12203_v47 = vor.u32 %v17593_v34, %v12200_v45  ;;  %v1603_v50 = vpop.f32.mrf.mxu1  ;;  %v1592_v55 = vpop.f32.mrf.mxu2  ;;  %v12363_v18 = vor.u32 %v17633_v12, %v12360_v13  ;;  %v12488_v34 = vld [vmem:[%s19151_s19 + $0x590] sm:$0xf0] }
 0x17b   : > { %v1565_v35 = vadd.f32 %v1564_v15, %v1552_v26  ;;  %v17677_v15 = vld [vmem:[%s19151_s19 + $0x5e4] sm:$0xf]  ;;  %v12520_v26 = vld [vmem:[%s19151_s19 + $0x5d0] sm:$0xf0]  ;;  %v11902_v55 = vld [vmem:[%s19151_s19 + $0xe8] sm:$0xf] }
 0x17c   : > { %v12523_v30 = vor.u32 %v17673_v25, %v12520_v26  ;;  %v12792_v26 = vld [vmem:[%s19151_s19 + $0x7f0] sm:$0xf0] }
 0x17d   : > { %3394 = vmatpush.bf16.msra.mxu1 %v12091_v19  ;;  %3406 = vmatpush.bf16.msra.mxu2 %v12235_v23  ;;  %v1578_v39 = vadd.f32 %v1577_v8, %v1565_v35  ;;  %v1604_v8 = vadd.f32 %v1603_v50, %v1591_v1  ;;  %v12539_v19 = vor.u32 %v17677_v15, %v12536_v16  ;;  %v12344_v23 = vld [vmem:[%s19151_s19 + $0x470] sm:$0xf0] }
 0x17e   : > { %v12347_v28 = vor.u32 %v17629_v21, %v12344_v23  ;;  %v12296_v50 = vld [vmem:[%s19151_s19 + $0x410] sm:$0xf0]  ;;  %v11903_v1 = vor.u32 %v17520_v56, %v11902_v55  ;;  %v17741_v23 = vld [vmem:[%s19151_s19 + $0x7e4] sm:$0xf] }
 0x17f   : > { %v1702_v22 = vmax.f32 %v1578_v39, 0.0  ;;  %v12440_v15 = vld [vmem:[%s19151_s19 + $0x530] sm:$0xf0]  ;;  %v17697_v55 = vld [vmem:[%s19151_s19 + $0x684] sm:$0xf] }
 0x180   : > { %v1553_v49 = vpop.f32.mrf.mxu3  ;;  %v12648_v21 = vld [vmem:[%s19151_s19 + $0x6d0] sm:$0xf0] }
 0x181   : > { %3395 = vmatpush.bf16.msra.mxu1 %v12075_v31  ;;  %3407 = vmatpush.bf16.msra.mxu2 %v12219_v33  ;;  %v19706_v54 = vpack.c.bf16 %v1702_v22, %v1702_v22  ;;  %v17625_v31 = vld [vmem:[%s19151_s19 + $0x444] sm:$0xf]  ;;  %v12315_v22 = vor.u32 %v17621_v40, %v12312_v41  ;;  %v12616_v56 = vld [vmem:[%s19151_s19 + $0x690] sm:$0xf0] }
 0x182   : > { %v1605_v10 = vpop.f32.mrf.mxu1  ;;  %v1655_v46 = vpop.f32.mrf.mxu2  ;;  %v17669_v33 = vld [vmem:[%s19151_s19 + $0x5a4] sm:$0xf]  ;;  %v12331_v38 = vor.u32 %v17625_v31, %v12328_v32 }
 0x183   : > { %3320 = vmatmul.bf16.vlgmr.msrb.gmra.mxu3 %v19706_v54  ;;  %v12507_v39 = vor.u32 %v17669_v33, %v12504_v37  ;;  %v17617_v49 = vld [vmem:[%s19151_s19 + $0x404] sm:$0xf]  ;;  %v17516_v10 = vld [vmem:[%s19151_s19 + $0xd4] sm:$0xf0]  ;;  %v12424_v37 = vld [vmem:[%s19151_s19 + $0x510] sm:$0xf0] }
 0x184   : > { %3416 = vmatpush.bf16.msrb.mxu3 %v12411_v51  ;;  %v17661_v51 = vld [vmem:[%s19151_s19 + $0x564] sm:$0xf] }
 0x185   : > { %3396 = vmatpush.bf16.msra.mxu1 %v12059_v44  ;;  %3408 = vmatpush.bf16.msra.mxu2 %v12203_v47  ;;  %v17665_v44 = vld [vmem:[%s19151_s19 + $0x584] sm:$0xf]  ;;  %v647_v47 = vperm.slane %v19527_v57, 7  ;;  %v12299_v57 = vor.u32 %v17617_v49, %v12296_v50  ;;  %v17552_v49 = vld [vmem:[%s19151_s19 + $0x1f4] sm:$0xf0] }
 0x186   : > { %v12491_v48 = vor.u32 %v17665_v44, %v12488_v34  ;;  %v17649_v33 = vld [vmem:[%s19151_s19 + $0x504] sm:$0xf] }
 0x187   : > { %v17701_v41 = vld [vmem:[%s19151_s19 + $0x6a4] sm:$0xf]  ;;  %v12427_v50 = vor.u32 %v17649_v33, %v12424_v37  ;;  %v12712_v37 = vld [vmem:[%s19151_s19 + $0x750] sm:$0xf0] }
 0x188   : > { %3417 = vmatpush.bf16.msrb.mxu3 %v12395_v2  ;;  %v1616_v11 = vpop.f32.mrf.mxu3  ;;  %v17657_v2 = vld [vmem:[%s19151_s19 + $0x544] sm:$0xf] }
 0x189   : > { %3397 = vmatpush.bf16.msra.mxu1 %v12043_v62  ;;  %3409 = vmatpush.bf16.msra.mxu2 %v12187_v0  ;;  %v1617_v14 = vadd.f32 %v1616_v11, %v1604_v8  ;;  %v12475_v0 = vor.u32 %v17661_v51, %v12472_v53  ;;  %v12459_v13 = vor.u32 %v17657_v2, %v12456_v5  ;;  %v17737_v44 = vld [vmem:[%s19151_s19 + $0x7c4] sm:$0xf] }
 0x18a   : > { %v1657_v35 = vpop.f32.mrf.mxu2  ;;  %v12619_v2 = vor.u32 %v17697_v55, %v12616_v56  ;;  %v17693_v5 = vld [vmem:[%s19151_s19 + $0x664] sm:$0xf] }
 0x18b   : > { %v1703_v17 = vmax.f32 %v1617_v14, 0.0  ;;  %v17721_v33 = vld [vmem:[%s19151_s19 + $0x744] sm:$0xf] }
 0x18c   : > { %3418 = vmatpush.bf16.msrb.mxu3 %v12379_v9  ;;  %v11886_v9 = vld [vmem:[%s19151_s19 + $0xc8] sm:$0xf] }
 0x18d   : > { %3410 = vmatpush.bf16.msra.mxu2 %v12171_v7  ;;  %v19723_v24 = vpack.c.bf16 %v1703_v17, %v1703_v17  ;;  %v12664_v7 = vld [vmem:[%s19151_s19 + $0x6f0] sm:$0xf0] }
 0x18e   : > { %v12667_v14 = vor.u32 %v17709_v6, %v12664_v7  ;;  %v12600_v6 = vld [vmem:[%s19151_s19 + $0x670] sm:$0xf0]  ;;  %v17729_v7 = vld [vmem:[%s19151_s19 + $0x784] sm:$0xf] }
 0x18f   : > { %3333 = vmatmul.bf16.vlgmr.msrb.gmra.mxu0 %v19723_v24 }
 0x190   : > { %v1629_v27 = vpop.f32.mrf.mxu0  ;;  %3419 = vmatpush.bf16.msrb.mxu3 %v12363_v18  ;;  %3429 = vmatpush.bf16.msrb.mxu0 %v12539_v19  ;;  %v1618_v29 = vpop.f32.mrf.mxu3  ;;  %v11887_v18 = vor.u32 %v17516_v10, %v11886_v9  ;;  %v17705_v19 = vld [vmem:[%s19151_s19 + $0x6c4] sm:$0xf]  ;;  %v12744_v9 = vld [vmem:[%s19151_s19 + $0x790] sm:$0xf0]  ;;  %v11822_v10 = vld [vmem:[%s19151_s19 + $0x48] sm:$0xf] }
 0x191   : > { %v1630_v52 = vadd.f32 %v1629_v27, %v646_v42  ;;  %v11870_v27 = vld [vmem:[%s19151_s19 + $0xa8] sm:$0xf]  ;;  %v12651_v35 = vor.u32 %v17705_v19, %v12648_v21  ;;  %v12632_v42 = vld [vmem:[%s19151_s19 + $0x6b0] sm:$0xf0]  ;;  %v17725_v19 = vld [vmem:[%s19151_s19 + $0x764] sm:$0xf] }
 0x192   : > { %v12635_v51 = vor.u32 %v17701_v41, %v12632_v42  ;;  %v17492_v41 = vld [vmem:[%s19151_s19 + $0x14] sm:$0xf0]  ;;  %v11966_v42 = vld [vmem:[%s19151_s19 + $0x168] sm:$0xf] }
 0x193   : > { %3372 = vmatmul.bf16.vlgmr.msra.gmra.mxu3 %v19563_v58 }
 0x194   : > { %3420 = vmatpush.bf16.msrb.mxu3 %v12347_v28  ;;  %3430 = vmatpush.bf16.msrb.mxu0 %v12523_v30  ;;  %v17512_v28 = vld [vmem:[%s19151_s19 + $0xb4] sm:$0xf0] }
 0x195   : > { %v11871_v40 = vor.u32 %v17512_v28, %v11870_v27  ;;  %v11982_v27 = vld [vmem:[%s19151_s19 + $0x188] sm:$0xf]  ;;  %v17540_v28 = vld [vmem:[%s19151_s19 + $0x194] sm:$0xf0] }
 0x198   : > { %v1631_v45 = vpop.f32.mrf.mxu0  ;;  %3421 = vmatpush.bf16.msrb.mxu3 %v12331_v38  ;;  %3431 = vmatpush.bf16.msrb.mxu0 %v12507_v39  ;;  %v12795_v39 = vor.u32 %v17741_v23, %v12792_v26  ;;  %v12728_v23 = vld [vmem:[%s19151_s19 + $0x770] sm:$0xf0]  ;;  %v17496_v26 = vld [vmem:[%s19151_s19 + $0x34] sm:$0xf0] }
 0x199   : > { %v12776_v45 = vld [vmem:[%s19151_s19 + $0x7d0] sm:$0xf0] }
 0x19a   : > { %v1681_v62 = vpop.f32.mrf.mxu2  ;;  %v1668_v63 = vpop.f32.mrf.mxu1 }
 0x19b   : > { %v1669_v4 = vadd.f32 %v1668_v63, %v647_v47  ;;  %v17508_v47 = vld [vmem:[%s19151_s19 + $0x94] sm:$0xf0] }
 0x19c   : > { %3422 = vmatpush.bf16.msrb.mxu3 %v12315_v22  ;;  %3432 = vmatpush.bf16.msrb.mxu0 %v12491_v48  ;;  %v11854_v22 = vld [vmem:[%s19151_s19 + $0x88] sm:$0xf]  ;;  %v17504_v63 = vld [vmem:[%s19151_s19 + $0x74] sm:$0xf0] }
 0x19d   : > { %v1682_v12 = vadd.f32 %v1681_v62, %v1669_v4  ;;  %v12030_v48 = vld [vmem:[%s19151_s19 + $0x1e8] sm:$0xf]  ;;  %v11855_v53 = vor.u32 %v17508_v47, %v11854_v22  ;;  %v12760_v62 = vld [vmem:[%s19151_s19 + $0x7b0] sm:$0xf0]  ;;  %v17681_v47 = vld [vmem:[%s19151_s19 + $0x604] sm:$0xf] }
 0x19f   : > { %3385 = vmatmul.bf16.vlgmr.msra.gmra.mxu0 %v19590_v43 }
 0x1a0   : > { %v1642_v59 = vpop.f32.mrf.mxu3  ;;  %v1694_v8 = vpop.f32.mrf.mxu0  ;;  %3423 = vmatpush.bf16.msrb.mxu3 %v12299_v57  ;;  %3433 = vmatpush.bf16.msrb.mxu0 %v12475_v0  ;;  %v11838_v57 = vld [vmem:[%s19151_s19 + $0x68] sm:$0xf] }
 0x1a1   : > { %v1643_v61 = vadd.f32 %v1642_v59, %v1630_v52  ;;  %v1695_v17 = vadd.f32 %v1694_v8, %v1682_v12  ;;  %v12779_v52 = vor.u32 %v17737_v44, %v12776_v45  ;;  %v17733_v59 = vld [vmem:[%s19151_s19 + $0x7a4] sm:$0xf]  ;;  %v12014_v0 = vld [vmem:[%s19151_s19 + $0x1c8] sm:$0xf]  ;;  %v11839_v4 = vor.u32 %v17504_v63, %v11838_v57  ;;  %v17536_v44 = vld [vmem:[%s19151_s19 + $0x174] sm:$0xf0] }
 0x1a2   : > { %v1683_v30 = vpop.f32.mrf.mxu2  ;;  %v1670_v31 = vpop.f32.mrf.mxu1  ;;  %v11998_v12 = vld [vmem:[%s19151_s19 + $0x1a8] sm:$0xf]  ;;  %v17648_v45 = vld [vmem:[%s19151_s19 + $0x4f4] sm:$0xf0]  ;;  %v11967_v55 = vor.u32 %v17536_v44, %v11966_v42 }
 0x1a3   : > { %v1656_v3 = vadd.f32 %v1655_v46, %v1643_v61  ;;  %v17653_v46 = vld [vmem:[%s19151_s19 + $0x524] sm:$0xf]  ;;  %3424 = vmatmul.bf16.vlgmr.msrb.gmra.mxu3 %v19706_v54  ;;  %v1705_v29 = vmax.f32 %v1695_v17, 0.0  ;;  %v12031_v61 = vor.u32 %v17552_v49, %v12030_v48  ;;  %v12731_v31 = vor.u32 %v17725_v19, %v12728_v23  ;;  %v12552_v48 = vld [vmem:[%s19151_s19 + $0x610] sm:$0xf0] }
 0x1a4   : > { %3468 = vmatpush.bf16.msra.mxu3 %v11903_v1  ;;  %3434 = vmatpush.bf16.msrb.mxu0 %v12459_v13  ;;  %v12443_v32 = vor.u32 %v17653_v46, %v12440_v15  ;;  %v17548_v1 = vld [vmem:[%s19151_s19 + $0x1d4] sm:$0xf0]  ;;  %v12747_v46 = vor.u32 %v17729_v7, %v12744_v9  ;;  %v17689_v17 = vld [vmem:[%s19151_s19 + $0x644] sm:$0xf]  ;;  %v12715_v49 = vor.u32 %v17721_v33, %v12712_v37  ;;  %v12398_v63 = vld [vmem:[%s19151_s19 + $0x4c8] sm:$0xf] }
 0x1a5   : > { %v1704_v11 = vmax.f32 %v1656_v3, 0.0  ;;  %v19766_v38 = vpack.c.bf16 %v1705_v29, %v1705_v29  ;;  %v12763_v3 = vor.u32 %v17733_v59, %v12760_v62  ;;  %v12015_v8 = vor.u32 %v17548_v1, %v12014_v0  ;;  %v17544_v13 = vld [vmem:[%s19151_s19 + $0x1b4] sm:$0xf0]  ;;  %v17685_v30 = vld [vmem:[%s19151_s19 + $0x624] sm:$0xf] }
 0x1a6   : > { %v11999_v21 = vor.u32 %v17544_v13, %v11998_v12  ;;  %v12158_v59 = vld [vmem:[%s19151_s19 + $0x2e8] sm:$0xf]  ;;  %v1970_v62 = vld [vmem:[%s19153_s21] sm:$0xf]  ;;  %v17532_v57 = vld [vmem:[%s19151_s19 + $0x154] sm:$0xf0]  ;;  %v12555_v1 = vor.u32 %v17681_v47, %v12552_v48 }
 0x1a7   : > { %v19754_v16 = vpack.c.bf16 %v1704_v11, %v1704_v11  ;;  %3359 = vmatmul.bf16.vlgmr.msrb.gmra.mxu2 %v19766_v38  ;;  %v17500_v11 = vld [vmem:[%s19151_s19 + $0x54] sm:$0xf0]  ;;  %v11934_v9 = vld [vmem:[%s19151_s19 + $0x128] sm:$0xf] }
 0x1a8   : > { %v1644_v25 = vpop.f32.mrf.mxu3  ;;  %3469 = vmatpush.bf16.msra.mxu3 %v11887_v18  ;;  %v1696_v34 = vpop.f32.mrf.mxu0  ;;  %3435 = vmatpush.bf16.msrb.mxu0 %v12443_v32  ;;  %v11823_v15 = vor.u32 %v17500_v11, %v11822_v10  ;;  %v12584_v18 = vld [vmem:[%s19151_s19 + $0x650] sm:$0xf0]  ;;  %v17644_v0 = vld [vmem:[%s19151_s19 + $0x4d4] sm:$0xf0]  ;;  %v12142_v10 = vld [vmem:[%s19151_s19 + $0x2c8] sm:$0xf] }
 0x1a9   : > { %3346 = vmatmul.bf16.vlgmr.msrb.gmra.mxu1 %v19754_v16  ;;  %3455 = vmatpush.bf16.msrb.mxu2 %v12795_v39  ;;  %v11806_v25 = vld [vmem:[%s19151_s19 + $0x28] sm:$0xf]  ;;  %v12587_v29 = vor.u32 %v17689_v17, %v12584_v18  ;;  %v11983_v39 = vor.u32 %v17540_v28, %v11982_v27  ;;  %v17580_v11 = vld [vmem:[%s19151_s19 + $0x2d4] sm:$0xf0] }
 0x1aa   : > { %3442 = vmatpush.bf16.msrb.mxu1 %v12667_v14  ;;  %v12603_v14 = vor.u32 %v17693_v5, %v12600_v6  ;;  %v11807_v32 = vor.u32 %v17496_v26, %v11806_v25  ;;  %v12414_v34 = vld [vmem:[%s19151_s19 + $0x4e8] sm:$0xf]  ;;  %v17713_v5 = vld [vmem:[%s19151_s19 + $0x704] sm:$0xf]  ;;  %v12680_v6 = vld [vmem:[%s19151_s19 + $0x710] sm:$0xf0]  ;;  %v12143_v19 = vor.u32 %v17580_v11, %v12142_v10 }
 0x1ab   : > { %v12415_v56 = vor.u32 %v17648_v45, %v12414_v34  ;;  %v17528_v13 = vld [vmem:[%s19151_s19 + $0x134] sm:$0xf0]  ;;  %v12683_v18 = vor.u32 %v17713_v5, %v12680_v6  ;;  %v12126_v27 = vld [vmem:[%s19151_s19 + $0x2a8] sm:$0xf] }
 0x1ac   : > { %3470 = vmatpush.bf16.msra.mxu3 %v11871_v40  ;;  %3436 = vmatpush.bf16.msrb.mxu0 %v12427_v50  ;;  %v11790_v40 = vld [vmem:[%s19151_s19 + $0x8] sm:$0xf]  ;;  %v17640_v17 = vld [vmem:[%s19151_s19 + $0x4b4] sm:$0xf0]  ;;  %v11935_v23 = vor.u32 %v17528_v13, %v11934_v9 }
 0x1ad   : > { %3456 = vmatpush.bf16.msrb.mxu2 %v12779_v52  ;;  %v11791_v50 = vor.u32 %v17492_v41, %v11790_v40  ;;  %v12696_v52 = vld [vmem:[%s19151_s19 + $0x730] sm:$0xf0]  ;;  %v17524_v26 = vld [vmem:[%s19151_s19 + $0x114] sm:$0xf0]  ;;  %v12542_v37 = vld [vmem:[%s19151_s19 + $0x5e8] sm:$0xf] }
 0x1ae   : > { %3443 = vmatpush.bf16.msrb.mxu1 %v12651_v35  ;;  %v12568_v35 = vld [vmem:[%s19151_s19 + $0x630] sm:$0xf0]  ;;  %v17576_v28 = vld [vmem:[%s19151_s19 + $0x2b4] sm:$0xf0]  ;;  %v12110_v34 = vld [vmem:[%s19151_s19 + $0x288] sm:$0xf] }
 0x1af   : > { %3437 = vmatmul.bf16.vlgmr.msrb.gmra.mxu0 %v19723_v24  ;;  %v12571_v22 = vor.u32 %v17685_v30, %v12568_v35  ;;  %v12366_v35 = vld [vmem:[%s19151_s19 + $0x488] sm:$0xf]  ;;  %v17636_v33 = vld [vmem:[%s19151_s19 + $0x494] sm:$0xf0]  ;;  %v12127_v40 = vor.u32 %v17576_v28, %v12126_v27 }
 0x1b0   : > { %3471 = vmatpush.bf16.msra.mxu3 %v11855_v53  ;;  %3481 = vmatpush.bf16.msra.mxu0 %v12031_v61  ;;  %v11950_v53 = vld [vmem:[%s19151_s19 + $0x148] sm:$0xf]  ;;  %v17584_v61 = vld [vmem:[%s19151_s19 + $0x2f4] sm:$0xf0]  ;;  %v12367_v48 = vor.u32 %v17636_v33, %v12366_v35 }
 0x1b1   : > { %3457 = vmatpush.bf16.msrb.mxu2 %v12763_v3  ;;  %v12159_v3 = vor.u32 %v17584_v61, %v12158_v59  ;;  %v11951_v7 = vor.u32 %v17532_v57, %v11950_v53  ;;  %v17572_v45 = vld [vmem:[%s19151_s19 + $0x294] sm:$0xf0]  ;;  %v12510_v5 = vld [vmem:[%s19151_s19 + $0x5a8] sm:$0xf] }
 0x1b2   : > { %3444 = vmatpush.bf16.msrb.mxu1 %v12635_v51  ;;  %v17717_v51 = vld [vmem:[%s19151_s19 + $0x724] sm:$0xf]  ;;  %v17632_v53 = vld [vmem:[%s19151_s19 + $0x474] sm:$0xf0]  ;;  %v12111_v59 = vor.u32 %v17572_v45, %v12110_v34  ;;  %v12078_v10 = vld [vmem:[%s19151_s19 + $0x248] sm:$0xf] }
 0x1b3   : > { %v17568_v57 = vld [vmem:[%s19151_s19 + $0x274] sm:$0xf0]  ;;  %v12478_v35 = vld [vmem:[%s19151_s19 + $0x568] sm:$0xf] }
 0x1b4   : > { %3472 = vmatpush.bf16.msra.mxu3 %v11839_v4  ;;  %3482 = vmatpush.bf16.msra.mxu0 %v12015_v8  ;;  %v1972_v4 = vperm.slane %v1970_v62, 0  ;;  %v12399_v8 = vor.u32 %v17644_v0, %v12398_v63  ;;  %v12094_v62 = vld [vmem:[%s19151_s19 + $0x268] sm:$0xf]  ;;  %v17672_v6 = vld [vmem:[%s19151_s19 + $0x5b4] sm:$0xf0] }
 0x1b5   : > { %3458 = vmatpush.bf16.msrb.mxu2 %v12747_v46  ;;  %v17616_v46 = vld [vmem:[%s19151_s19 + $0x3f4] sm:$0xf0]  ;;  %v12511_v13 = vor.u32 %v17672_v6, %v12510_v5  ;;  %v12798_v6 = vld [vmem:[%s19151_s19 + $0x7e8] sm:$0xf] }
 0x1b6   : > { %3445 = vmatpush.bf16.msrb.mxu1 %v12619_v2  ;;  %v12699_v2 = vor.u32 %v17717_v51, %v12696_v52  ;;  %v17608_v51 = vld [vmem:[%s19151_s19 + $0x3b4] sm:$0xf0]  ;;  %v12350_v52 = vld [vmem:[%s19151_s19 + $0x468] sm:$0xf] }
 0x1b7   : > { %3411 = vmatmul.bf16.vlgmr.msra.gmra.mxu2 %v19662_v36  ;;  %v12351_v63 = vor.u32 %v17632_v53, %v12350_v52  ;;  %v17564_v11 = vld [vmem:[%s19151_s19 + $0x254] sm:$0xf0]  ;;  %v12670_v52 = vld [vmem:[%s19151_s19 + $0x6e8] sm:$0xf] }
 0x1b8   : > { %3473 = vmatpush.bf16.msra.mxu3 %v11823_v15  ;;  %3483 = vmatpush.bf16.msra.mxu0 %v11999_v21  ;;  %v12382_v15 = vld [vmem:[%s19151_s19 + $0x4a8] sm:$0xf]  ;;  %v17664_v33 = vld [vmem:[%s19151_s19 + $0x574] sm:$0xf0] }
 0x1b9   : > { %3398 = vmatmul.bf16.vlgmr.msra.gmra.mxu1 %v19652_v20  ;;  %3459 = vmatpush.bf16.msrb.mxu2 %v12731_v31  ;;  %v11918_v21 = vld [vmem:[%s19151_s19 + $0x108] sm:$0xf]  ;;  %v12383_v30 = vor.u32 %v17640_v17, %v12382_v15  ;;  %v17624_v17 = vld [vmem:[%s19151_s19 + $0x434] sm:$0xf0]  ;;  %v12479_v45 = vor.u32 %v17664_v33, %v12478_v35 }
 0x1ba   : > { %3446 = vmatpush.bf16.msrb.mxu1 %v12603_v14  ;;  %v12286_v14 = vld [vmem:[%s19151_s19 + $0x3e8] sm:$0xf]  ;;  %v11919_v42 = vor.u32 %v17524_v26, %v11918_v21  ;;  %v12079_v21 = vor.u32 %v17564_v11, %v12078_v10  ;;  %v17560_v26 = vld [vmem:[%s19151_s19 + $0x234] sm:$0xf0] }
 0x1bb   : > { %v12287_v25 = vor.u32 %v17616_v46, %v12286_v14  ;;  %v12270_v31 = vld [vmem:[%s19151_s19 + $0x3c8] sm:$0xf]  ;;  %v17600_v46 = vld [vmem:[%s19151_s19 + $0x374] sm:$0xf0] }
 0x1bc   : > { %3474 = vmatpush.bf16.msra.mxu3 %v11807_v32  ;;  %3484 = vmatpush.bf16.msra.mxu0 %v11983_v39  ;;  %v17612_v32 = vld [vmem:[%s19151_s19 + $0x3d4] sm:$0xf0]  ;;  %v12222_v14 = vld [vmem:[%s19151_s19 + $0x368] sm:$0xf] }
 0x1bd   : > { %3460 = vmatpush.bf16.msrb.mxu2 %v12715_v49  ;;  %v17680_v39 = vld [vmem:[%s19151_s19 + $0x5f4] sm:$0xf0]  ;;  %v12271_v44 = vor.u32 %v17612_v32, %v12270_v31  ;;  %v12318_v15 = vld [vmem:[%s19151_s19 + $0x428] sm:$0xf] }
 0x1be   : > { %3447 = vmatpush.bf16.msrb.mxu1 %v12587_v29  ;;  %v12543_v49 = vor.u32 %v17680_v39, %v12542_v37  ;;  %v12319_v27 = vor.u32 %v17624_v17, %v12318_v15  ;;  %v12302_v31 = vld [vmem:[%s19151_s19 + $0x408] sm:$0xf]  ;;  %v17620_v32 = vld [vmem:[%s19151_s19 + $0x414] sm:$0xf0]  ;;  %v17518_v39 = vld [vmem:[%s19151_s19 + $0xec] sm:$0xf] }
 0x1bf   : > { %v12303_v34 = vor.u32 %v17620_v32, %v12302_v31  ;;  %v17712_v53 = vld [vmem:[%s19151_s19 + $0x6f4] sm:$0xf0]  ;;  %v12622_v35 = vld [vmem:[%s19151_s19 + $0x688] sm:$0xf] }
 0x1c0   : > { %3475 = vmatpush.bf16.msra.mxu3 %v11791_v50  ;;  %3485 = vmatpush.bf16.msra.mxu0 %v11967_v55  ;;  %v3269_v12 = vpop.f32.mrf.mxu3  ;;  %v12254_v50 = vld [vmem:[%s19151_s19 + $0x3a8] sm:$0xf]  ;;  %v17708_v5 = vld [vmem:[%s19151_s19 + $0x6d4] sm:$0xf0] }
 0x1c1   : > { %3461 = vmatpush.bf16.msrb.mxu2 %v12699_v2  ;;  %v3270_v29 = vadd.f32 %v3269_v12, %v1972_v4  ;;  %v12526_v55 = vld [vmem:[%s19151_s19 + $0x5c8] sm:$0xf]  ;;  %v12255_v61 = vor.u32 %v17608_v51, %v12254_v50  ;;  %v17604_v2 = vld [vmem:[%s19151_s19 + $0x394] sm:$0xf0] }
 0x1c2   : > { %3448 = vmatpush.bf16.msrb.mxu1 %v12571_v22  ;;  %v17628_v4 = vld [vmem:[%s19151_s19 + $0x454] sm:$0xf0] }
 0x1c3   : > { %3476 = vmatmul.bf16.vlgmr.msra.gmra.mxu3 %v19563_v58  ;;  %v17660_v51 = vld [vmem:[%s19151_s19 + $0x554] sm:$0xf0] }
 0x1c4   : > { %3520 = vmatpush.bf16.msrb.mxu3 %v12415_v56  ;;  %3486 = vmatpush.bf16.msra.mxu0 %v11951_v7  ;;  %v17676_v56 = vld [vmem:[%s19151_s19 + $0x5d4] sm:$0xf0]  ;;  %v12095_v7 = vor.u32 %v17568_v57, %v12094_v62  ;;  %v12174_v62 = vld [vmem:[%s19151_s19 + $0x308] sm:$0xf] }
 0x1c5   : > { %3462 = vmatpush.bf16.msrb.mxu2 %v12683_v18  ;;  %v12527_v0 = vor.u32 %v17676_v56, %v12526_v55  ;;  %v12494_v18 = vld [vmem:[%s19151_s19 + $0x588] sm:$0xf]  ;;  %v17514_v56 = vld [vmem:[%s19151_s19 + $0xcc] sm:$0xf]  ;;  %v17700_v33 = vld [vmem:[%s19151_s19 + $0x694] sm:$0xf0] }
 0x1c6   : > { %3449 = vmatpush.bf16.msrb.mxu1 %v12555_v1  ;;  %v3282_v41 = vpop.f32.mrf.mxu0  ;;  %v12238_v1 = vld [vmem:[%s19151_s19 + $0x388] sm:$0xf] }
 0x1c7   : > { %v19849_v22 = vadd.f32 %v3282_v41, %v3270_v29  ;;  %v12239_v9 = vor.u32 %v17604_v2, %v12238_v1  ;;  %v12206_v29 = vld [vmem:[%s19151_s19 + $0x348] sm:$0xf]  ;;  %v17656_v2 = vld [vmem:[%s19151_s19 + $0x534] sm:$0xf0] }
 0x1c8   : > { %3521 = vmatpush.bf16.msrb.mxu3 %v12399_v8  ;;  %3487 = vmatpush.bf16.msra.mxu0 %v11935_v23  ;;  %v3271_v47 = vpop.f32.mrf.mxu3  ;;  %v12223_v23 = vor.u32 %v17600_v46, %v12222_v14  ;;  %v12446_v1 = vld [vmem:[%s19151_s19 + $0x528] sm:$0xf]  ;;  %v17652_v14 = vld [vmem:[%s19151_s19 + $0x514] sm:$0xf0] }
 0x1c9   : > { %3450 = vmatmul.bf16.vlgmr.msrb.gmra.mxu1 %v19754_v16  ;;  %3507 = vmatpush.bf16.msra.mxu2 %v12287_v25  ;;  %v12062_v25 = vld [vmem:[%s19151_s19 + $0x228] sm:$0xf]  ;;  %v12447_v11 = vor.u32 %v17656_v2, %v12446_v1 }
 0x1ca   : > { %3494 = vmatpush.bf16.msra.mxu1 %v12159_v3  ;;  %3463 = vmatmul.bf16.vlgmr.msrb.gmra.mxu2 %v19766_v38  ;;  %v12334_v3 = vld [vmem:[%s19151_s19 + $0x448] sm:$0xf]  ;;  %v12063_v37 = vor.u32 %v17560_v26, %v12062_v25  ;;  %v17740_v25 = vld [vmem:[%s19151_s19 + $0x7d4] sm:$0xf0]  ;;  %v17506_v26 = vld [vmem:[%s19151_s19 + $0x8c] sm:$0xf] }
 0x1cb   : > { %v12335_v12 = vor.u32 %v17628_v4, %v12334_v3  ;;  %v12190_v47 = vld [vmem:[%s19151_s19 + $0x328] sm:$0xf] }
 0x1cc   : > { %3522 = vmatpush.bf16.msrb.mxu3 %v12383_v30  ;;  %3488 = vmatpush.bf16.msra.mxu0 %v11919_v42  ;;  %v17596_v30 = vld [vmem:[%s19151_s19 + $0x354] sm:$0xf0]  ;;  %v12046_v42 = vld [vmem:[%s19151_s19 + $0x208] sm:$0xf] }
 0x1cd   : > { %3508 = vmatpush.bf16.msra.mxu2 %v12271_v44  ;;  %v12207_v41 = vor.u32 %v17596_v30, %v12206_v29  ;;  %v17556_v44 = vld [vmem:[%s19151_s19 + $0x214] sm:$0xf0]  ;;  %v12654_v4 = vld [vmem:[%s19151_s19 + $0x6c8] sm:$0xf]  ;;  %v12032_v29 = vld [vmem:[%s19151_s19 + $0x1f8] sm:$0xf0] }
 0x1ce   : > { %3495 = vmatpush.bf16.msra.mxu1 %v12143_v19  ;;  %v3284_v8 = vpop.f32.mrf.mxu0  ;;  %v17668_v19 = vld [vmem:[%s19151_s19 + $0x594] sm:$0xf0]  ;;  %v12047_v55 = vor.u32 %v17556_v44, %v12046_v42  ;;  %v11840_v42 = vld [vmem:[%s19151_s19 + $0x78] sm:$0xf0]  ;;  %v17546_v44 = vld [vmem:[%s19151_s19 + $0x1cc] sm:$0xf] }
 0x1cf   : > { %3489 = vmatmul.bf16.vlgmr.msra.gmra.mxu0 %v19590_v43  ;;  %v12495_v28 = vor.u32 %v17668_v19, %v12494_v18  ;;  %v17510_v8 = vld [vmem:[%s19151_s19 + $0xac] sm:$0xf]  ;;  %v12638_v18 = vld [vmem:[%s19151_s19 + $0x6a8] sm:$0xf]  ;;  %v17704_v19 = vld [vmem:[%s19151_s19 + $0x6b4] sm:$0xf0] }
 0x1d0   : > { %3523 = vmatpush.bf16.msrb.mxu3 %v12367_v48  ;;  %3533 = vmatpush.bf16.msrb.mxu0 %v12543_v49  ;;  %v17592_v48 = vld [vmem:[%s19151_s19 + $0x334] sm:$0xf0]  ;;  %v12462_v49 = vld [vmem:[%s19151_s19 + $0x548] sm:$0xf]  ;;  %v12639_v31 = vor.u32 %v17704_v19, %v12638_v18 }
 0x1d1   : > { %3509 = vmatpush.bf16.msra.mxu2 %v12255_v61  ;;  %v12191_v61 = vor.u32 %v17592_v48, %v12190_v47  ;;  %v12463_v57 = vor.u32 %v17660_v51, %v12462_v49  ;;  %v17696_v51 = vld [vmem:[%s19151_s19 + $0x674] sm:$0xf0]  ;;  %v12590_v2 = vld [vmem:[%s19151_s19 + $0x648] sm:$0xf] }
 0x1d2   : > { %3496 = vmatpush.bf16.msra.mxu1 %v12127_v40  ;;  %v11904_v40 = vld [vmem:[%s19151_s19 + $0xf8] sm:$0xf0] }
 0x1d3   : > { %v11907_v50 = vor.u32 %v17518_v39, %v11904_v40  ;;  %v17736_v40 = vld [vmem:[%s19151_s19 + $0x7b4] sm:$0xf0] }
 0x1d4   : > { %3524 = vmatpush.bf16.msrb.mxu3 %v12351_v63  ;;  %3534 = vmatpush.bf16.msrb.mxu0 %v12527_v0  ;;  %v12671_v63 = vor.u32 %v17712_v53, %v12670_v52  ;;  %v17588_v0 = vld [vmem:[%s19151_s19 + $0x314] sm:$0xf0]  ;;  %v12750_v52 = vld [vmem:[%s19151_s19 + $0x788] sm:$0xf] }
 0x1d5   : > { %3510 = vmatpush.bf16.msra.mxu2 %v12239_v9  ;;  %v11872_v9 = vld [vmem:[%s19151_s19 + $0xb8] sm:$0xf0]  ;;  %v12175_v10 = vor.u32 %v17588_v0, %v12174_v62  ;;  %v17542_v62 = vld [vmem:[%s19151_s19 + $0x1ac] sm:$0xf] }
 0x1d6   : > { %3497 = vmatpush.bf16.msra.mxu1 %v12111_v59  ;;  %v11888_v59 = vld [vmem:[%s19151_s19 + $0xd8] sm:$0xf0]  ;;  %v11875_v17 = vor.u32 %v17510_v8, %v11872_v9  ;;  %v17538_v9 = vld [vmem:[%s19151_s19 + $0x18c] sm:$0xf] }
 0x1d7   : > { %v11891_v3 = vor.u32 %v17514_v56, %v11888_v59  ;;  %v17732_v56 = vld [vmem:[%s19151_s19 + $0x794] sm:$0xf0]  ;;  %v17498_v59 = vld [vmem:[%s19151_s19 + $0x4c] sm:$0xf]  ;;  %v11808_v8 = vld [vmem:[%s19151_s19 + $0x38] sm:$0xf0] }
 0x1d8   : > { %3525 = vmatpush.bf16.msrb.mxu3 %v12335_v12  ;;  %3535 = vmatpush.bf16.msrb.mxu0 %v12511_v13  ;;  %v12655_v12 = vor.u32 %v17708_v5, %v12654_v4  ;;  %v12430_v13 = vld [vmem:[%s19151_s19 + $0x508] sm:$0xf]  ;;  %v12751_v0 = vor.u32 %v17732_v56, %v12750_v52  ;;  %v17716_v52 = vld [vmem:[%s19151_s19 + $0x714] sm:$0xf0] }
 0x1d9   : > { %3511 = vmatpush.bf16.msra.mxu2 %v12223_v23  ;;  %v12431_v30 = vor.u32 %v17652_v14, %v12430_v13  ;;  %v12734_v4 = vld [vmem:[%s19151_s19 + $0x768] sm:$0xf] }
 0x1da   : > { %3498 = vmatpush.bf16.msra.mxu1 %v12095_v7  ;;  %v17744_v7 = vld [vmem:[%s19151_s19 + $0x7f4] sm:$0xf0] }
 0x1db   : > { %v12799_v15 = vor.u32 %v17744_v7, %v12798_v6  ;;  %v17728_v6 = vld [vmem:[%s19151_s19 + $0x774] sm:$0xf0]  ;;  %v17494_v7 = vld [vmem:[%s19151_s19 + $0x2c] sm:$0xf] }
 0x1dc   : > { %3526 = vmatpush.bf16.msrb.mxu3 %v12319_v27  ;;  %3536 = vmatpush.bf16.msrb.mxu0 %v12495_v28  ;;  %v11856_v27 = vld [vmem:[%s19151_s19 + $0x98] sm:$0xf0]  ;;  %v17550_v28 = vld [vmem:[%s19151_s19 + $0x1ec] sm:$0xf]  ;;  %v12735_v13 = vor.u32 %v17728_v6, %v12734_v4  ;;  %v11811_v14 = vor.u32 %v17494_v7, %v11808_v8 }
 0x1dd   : > { %3512 = vmatpush.bf16.msra.mxu2 %v12207_v41  ;;  %v11859_v32 = vor.u32 %v17506_v26, %v11856_v27  ;;  %v12035_v39 = vor.u32 %v17550_v28, %v12032_v29  ;;  %v17502_v41 = vld [vmem:[%s19151_s19 + $0x6c] sm:$0xf]  ;;  %v11968_v27 = vld [vmem:[%s19151_s19 + $0x178] sm:$0xf0] }
 0x1de   : > { %3499 = vmatpush.bf16.msra.mxu1 %v12079_v21  ;;  %v12782_v21 = vld [vmem:[%s19151_s19 + $0x7c8] sm:$0xf]  ;;  %v11843_v49 = vor.u32 %v17502_v41, %v11840_v42  ;;  %v17534_v26 = vld [vmem:[%s19151_s19 + $0x16c] sm:$0xf]  ;;  %v12416_v29 = vld [vmem:[%s19151_s19 + $0x4f8] sm:$0xf0] }
 0x1df   : > { %v3295_v46 = vpop.f32.mrf.mxu1  ;;  %v17646_v28 = vld [vmem:[%s19151_s19 + $0x4ec] sm:$0xf]  ;;  %v11920_v8 = vld [vmem:[%s19151_s19 + $0x118] sm:$0xf0] }
 0x1e0   : > { %3527 = vmatpush.bf16.msrb.mxu3 %v12303_v34  ;;  %3537 = vmatpush.bf16.msrb.mxu0 %v12479_v45  ;;  %v19913_v23 = vadd.f32 %v3295_v46, %v19849_v22  ;;  %v12783_v22 = vor.u32 %v17740_v25, %v12782_v21  ;;  %v12016_v34 = vld [vmem:[%s19151_s19 + $0x1d8] sm:$0xf0]  ;;  %v12623_v45 = vor.u32 %v17700_v33, %v12622_v35  ;;  %v17688_v46 = vld [vmem:[%s19151_s19 + $0x634] sm:$0xf0]  ;;  %v17490_v21 = vld [vmem:[%s19151_s19 + $0xc] sm:$0xf] }
 0x1e1   : > { %3513 = vmatpush.bf16.msra.mxu2 %v12191_v61  ;;  %v11824_v61 = vld [vmem:[%s19151_s19 + $0x58] sm:$0xf0]  ;;  %v17684_v35 = vld [vmem:[%s19151_s19 + $0x614] sm:$0xf0]  ;;  %v12702_v33 = vld [vmem:[%s19151_s19 + $0x728] sm:$0xf] }
 0x1e2   : > { %3500 = vmatpush.bf16.msra.mxu1 %v12063_v37  ;;  %v12766_v37 = vld [vmem:[%s19151_s19 + $0x7a8] sm:$0xf]  ;;  %v11827_v1 = vor.u32 %v17498_v59, %v11824_v61  ;;  %v11792_v25 = vld [vmem:[%s19151_s19 + $0x18] sm:$0xf0]  ;;  %v17530_v41 = vld [vmem:[%s19151_s19 + $0x14c] sm:$0xf] }
 0x1e3   : > { %3528 = vmatmul.bf16.vlgmr.msrb.gmra.mxu3 %v19706_v54  ;;  %v12767_v48 = vor.u32 %v17736_v40, %v12766_v37  ;;  %v17720_v37 = vld [vmem:[%s19151_s19 + $0x734] sm:$0xf0]  ;;  %v12419_v40 = vor.u32 %v17646_v28, %v12416_v29  ;;  %v17582_v42 = vld [vmem:[%s19151_s19 + $0x2ec] sm:$0xf]  ;;  %v12256_v29 = vld [vmem:[%s19151_s19 + $0x3b8] sm:$0xf0] }
 0x1e4   : > { %3572 = vmatpush.bf16.msra.mxu3 %v11907_v50  ;;  %3538 = vmatpush.bf16.msrb.mxu0 %v12463_v57  ;;  %v12606_v50 = vld [vmem:[%s19151_s19 + $0x668] sm:$0xf]  ;;  %v12000_v57 = vld [vmem:[%s19151_s19 + $0x1b8] sm:$0xf0]  ;;  %v17526_v59 = vld [vmem:[%s19151_s19 + $0x12c] sm:$0xf] }
 0x1e5   : > { %3514 = vmatpush.bf16.msra.mxu2 %v12175_v10  ;;  %v12003_v5 = vor.u32 %v17542_v62, %v12000_v57  ;;  %v11984_v10 = vld [vmem:[%s19151_s19 + $0x198] sm:$0xf0]  ;;  %v17578_v61 = vld [vmem:[%s19151_s19 + $0x2cc] sm:$0xf] }
 0x1e6   : > { %3501 = vmatpush.bf16.msra.mxu1 %v12047_v55  ;;  %v12019_v55 = vor.u32 %v17546_v44, %v12016_v34  ;;  %v11987_v19 = vor.u32 %v17538_v9, %v11984_v10  ;;  %v12160_v44 = vld [vmem:[%s19151_s19 + $0x2f8] sm:$0xf0]  ;;  %v17606_v28 = vld [vmem:[%s19151_s19 + $0x3ac] sm:$0xf] }
 0x1e7   : > { %v3297_v47 = vpop.f32.mrf.mxu1  ;;  %v11952_v34 = vld [vmem:[%s19151_s19 + $0x158] sm:$0xf0] }
 0x1e8   : > { %3573 = vmatpush.bf16.msra.mxu3 %v11891_v3  ;;  %3539 = vmatpush.bf16.msrb.mxu0 %v12447_v11  ;;  %v17692_v3 = vld [vmem:[%s19151_s19 + $0x654] sm:$0xf0]  ;;  %v12400_v47 = vld [vmem:[%s19151_s19 + $0x4d8] sm:$0xf0] }
 0x1e9   : > { %3502 = vmatmul.bf16.vlgmr.msra.gmra.mxu1 %v19652_v20  ;;  %3559 = vmatpush.bf16.msrb.mxu2 %v12799_v15  ;;  %v12591_v11 = vor.u32 %v17692_v3, %v12590_v2  ;;  %v12718_v15 = vld [vmem:[%s19151_s19 + $0x748] sm:$0xf]  ;;  %v12144_v62 = vld [vmem:[%s19151_s19 + $0x2d8] sm:$0xf0] }
 0x1ea   : > { %3546 = vmatpush.bf16.msrb.mxu1 %v12671_v63  ;;  %3515 = vmatmul.bf16.vlgmr.msra.gmra.mxu2 %v19662_v36  ;;  %v12607_v63 = vor.u32 %v17696_v51, %v12606_v50  ;;  %v12163_v50 = vor.u32 %v17582_v42, %v12160_v44  ;;  %v12686_v51 = vld [vmem:[%s19151_s19 + $0x708] sm:$0xf]  ;;  %v11936_v57 = vld [vmem:[%s19151_s19 + $0x138] sm:$0xf0]  ;;  %v12147_v4 = vor.u32 %v17578_v61, %v12144_v62  ;;  %v17602_v44 = vld [vmem:[%s19151_s19 + $0x38c] sm:$0xf] }
 0x1eb   : > { %v12384_v2 = vld [vmem:[%s19151_s19 + $0x4b8] sm:$0xf0]  ;;  %v12687_v3 = vor.u32 %v17716_v52, %v12686_v51  ;;  %v11939_v6 = vor.u32 %v17526_v59, %v11936_v57  ;;  %v17562_v52 = vld [vmem:[%s19151_s19 + $0x24c] sm:$0xf] }
 0x1ec   : > { %3574 = vmatpush.bf16.msra.mxu3 %v11875_v17  ;;  %3540 = vmatpush.bf16.msrb.mxu0 %v12431_v30  ;;  %v17724_v17 = vld [vmem:[%s19151_s19 + $0x754] sm:$0xf0]  ;;  %v12128_v9 = vld [vmem:[%s19151_s19 + $0x2b8] sm:$0xf0]  ;;  %v17598_v61 = vld [vmem:[%s19151_s19 + $0x36c] sm:$0xf] }
 0x1ed   : > { %3560 = vmatpush.bf16.msrb.mxu2 %v12783_v22  ;;  %v19932_v53 = vpop.f32.mrf.mxu2  ;;  %v12719_v22 = vor.u32 %v17724_v17, %v12718_v15  ;;  %v12544_v15 = vld [vmem:[%s19151_s19 + $0x5f8] sm:$0xf0]  ;;  %v17622_v57 = vld [vmem:[%s19151_s19 + $0x42c] sm:$0xf] }
 0x1ee   : > { %3547 = vmatpush.bf16.msrb.mxu1 %v12655_v12  ;;  %v12574_v12 = vld [vmem:[%s19151_s19 + $0x628] sm:$0xf]  ;;  %v12224_v62 = vld [vmem:[%s19151_s19 + $0x378] sm:$0xf0] }
 0x1ef   : > { %3541 = vmatmul.bf16.vlgmr.msrb.gmra.mxu0 %v19723_v24  ;;  %v12575_v30 = vor.u32 %v17688_v46, %v12574_v12  ;;  %v12272_v12 = vld [vmem:[%s19151_s19 + $0x3d8] sm:$0xf0]  ;;  %v17678_v46 = vld [vmem:[%s19151_s19 + $0x5ec] sm:$0xf] }
 0x1f0   : > { %3575 = vmatpush.bf16.msra.mxu3 %v11859_v32  ;;  %3585 = vmatpush.bf16.msra.mxu0 %v12035_v39  ;;  %v11795_v32 = vor.u32 %v17490_v21, %v11792_v25  ;;  %v11971_v39 = vor.u32 %v17534_v26, %v11968_v27  ;;  %v17570_v21 = vld [vmem:[%s19151_s19 + $0x28c] sm:$0xf]  ;;  %v12112_v25 = vld [vmem:[%s19151_s19 + $0x298] sm:$0xf0]  ;;  %v12547_v27 = vor.u32 %v17678_v46, %v12544_v15  ;;  %v17752_v15 = vld [vmem:[%s20042_s14 + $0x38] sm:$0xff] }
 0x1f1   : > { %3561 = vmatpush.bf16.msrb.mxu2 %v12767_v48 }
 0x1f2   : > { %3548 = vmatpush.bf16.msrb.mxu1 %v12639_v31  ;;  %v12558_v31 = vld [vmem:[%s19151_s19 + $0x608] sm:$0xf] }
 0x1f3   : > { %v12559_v48 = vor.u32 %v17684_v35, %v12558_v31  ;;  %v12352_v31 = vld [vmem:[%s19151_s19 + $0x478] sm:$0xf0]  ;;  %v12115_v35 = vor.u32 %v17570_v21, %v12112_v25  ;;  %v17590_v25 = vld [vmem:[%s19151_s19 + $0x32c] sm:$0xf] }
 0x1f4   : > { %3576 = vmatpush.bf16.msra.mxu3 %v11843_v49  ;;  %3586 = vmatpush.bf16.msra.mxu0 %v12019_v55  ;;  %v12703_v49 = vor.u32 %v17720_v37, %v12702_v33  ;;  %v11955_v55 = vor.u32 %v17530_v41, %v11952_v34  ;;  %v12259_v37 = vor.u32 %v17606_v28, %v12256_v29  ;;  %v12240_v34 = vld [vmem:[%s19151_s19 + $0x398] sm:$0xf0]  ;;  %v17710_v29 = vld [vmem:[%s19151_s19 + $0x6ec] sm:$0xf] }
 0x1f5   : > { %3562 = vmatpush.bf16.msrb.mxu2 %v12751_v0  ;;  %v3310_v18 = vpop.f32.mrf.mxu2  ;;  %v12288_v0 = vld [vmem:[%s19151_s19 + $0x3f8] sm:$0xf0]  ;;  %v12243_v51 = vor.u32 %v17602_v44, %v12240_v34  ;;  %v17654_v44 = vld [vmem:[%s19151_s19 + $0x52c] sm:$0xf] }
 0x1f6   : > { %3549 = vmatpush.bf16.msrb.mxu1 %v12623_v45  ;;  %v17642_v45 = vld [vmem:[%s19151_s19 + $0x4cc] sm:$0xf]  ;;  %v12464_v28 = vld [vmem:[%s19151_s19 + $0x558] sm:$0xf0] }
 0x1f7   : > { %v12403_v56 = vor.u32 %v17642_v45, %v12400_v47  ;;  %v17626_v45 = vld [vmem:[%s19151_s19 + $0x44c] sm:$0xf]  ;;  %v12336_v47 = vld [vmem:[%s19151_s19 + $0x458] sm:$0xf0] }
 0x1f8   : > { %3577 = vmatpush.bf16.msra.mxu3 %v11827_v1  ;;  %3587 = vmatpush.bf16.msra.mxu0 %v12003_v5  ;;  %v17638_v1 = vld [vmem:[%s19151_s19 + $0x4ac] sm:$0xf]  ;;  %v12448_v34 = vld [vmem:[%s19151_s19 + $0x538] sm:$0xf0] }
 0x1f9   : > { %3563 = vmatpush.bf16.msrb.mxu2 %v12735_v13  ;;  %v17522_v5 = vld [vmem:[%s19151_s19 + $0x10c] sm:$0xf]  ;;  %v12387_v10 = vor.u32 %v17638_v1, %v12384_v2 }
 0x1fa   : > { %3550 = vmatpush.bf16.msrb.mxu1 %v12607_v63  ;;  %v17614_v63 = vld [vmem:[%s19151_s19 + $0x3ec] sm:$0xf]  ;;  %v11923_v18 = vor.u32 %v17522_v5, %v11920_v8 }
 0x1fb   : > { %v12291_v7 = vor.u32 %v17614_v63, %v12288_v0  ;;  %v17634_v13 = vld [vmem:[%s19151_s19 + $0x48c] sm:$0xf]  ;;  %v12496_v0 = vld [vmem:[%s19151_s19 + $0x598] sm:$0xf0] }
 0x1fc   : > { %3578 = vmatpush.bf16.msra.mxu3 %v11811_v14  ;;  %3588 = vmatpush.bf16.msra.mxu0 %v11987_v19  ;;  %v12368_v14 = vld [vmem:[%s19151_s19 + $0x498] sm:$0xf0]  ;;  %v17666_v63 = vld [vmem:[%s19151_s19 + $0x58c] sm:$0xf] }
 0x1fd   : > { %3564 = vmatpush.bf16.msrb.mxu2 %v12719_v22  ;;  %v12371_v26 = vor.u32 %v17634_v13, %v12368_v14  ;;  %v17674_v22 = vld [vmem:[%s19151_s19 + $0x5cc] sm:$0xf]  ;;  %v12499_v8 = vor.u32 %v17666_v63, %v12496_v0  ;;  %v12480_v13 = vld [vmem:[%s19151_s19 + $0x578] sm:$0xf0] }
 0x1fe   : > { %3551 = vmatpush.bf16.msrb.mxu1 %v12591_v11  ;;  %v17610_v11 = vld [vmem:[%s19151_s19 + $0x3cc] sm:$0xf]  ;;  %v12784_v63 = vld [vmem:[%s19151_s19 + $0x7d8] sm:$0xf0] }
 0x1ff   : > { %v12275_v19 = vor.u32 %v17610_v11, %v12272_v12  ;;  %v17558_v5 = vld [vmem:[%s19151_s19 + $0x22c] sm:$0xf]  ;;  %v12304_v11 = vld [vmem:[%s19151_s19 + $0x418] sm:$0xf0] }
 0x200   : > { %3579 = vmatpush.bf16.msra.mxu3 %v11795_v32  ;;  %3589 = vmatpush.bf16.msra.mxu0 %v11971_v39  ;;  %v12528_v32 = vld [vmem:[%s19151_s19 + $0x5d8] sm:$0xf0]  ;;  %v17566_v39 = vld [vmem:[%s19151_s19 + $0x26c] sm:$0xf] }
 0x201   : > { %3565 = vmatpush.bf16.msrb.mxu2 %v12703_v49  ;;  %v12531_v42 = vor.u32 %v17674_v22, %v12528_v32  ;;  %v12512_v49 = vld [vmem:[%s19151_s19 + $0x5b8] sm:$0xf0]  ;;  %v17662_v12 = vld [vmem:[%s19151_s19 + $0x56c] sm:$0xf] }
 0x202   : > { %3552 = vmatpush.bf16.msrb.mxu1 %v12575_v30  ;;  %v17630_v30 = vld [vmem:[%s19151_s19 + $0x46c] sm:$0xf]  ;;  %v12483_v21 = vor.u32 %v17662_v12, %v12480_v13  ;;  %v17748_v12 = vld [vmem:[%s20042_s14 + $0x18] sm:$0xff] }
 0x203   : > { %3580 = vmatmul.bf16.vlgmr.msra.gmra.mxu3 %v19563_v58  ;;  %v17574_v58 = vld [vmem:[%s19151_s19 + $0x2ac] sm:$0xf]  ;;  %v12355_v41 = vor.u32 %v17630_v30, %v12352_v31  ;;  %v12672_v30 = vld [vmem:[%s19151_s19 + $0x6f8] sm:$0xf0] }
 0x204   : > { %3624 = vmatpush.bf16.msrb.mxu3 %v12419_v40  ;;  %3590 = vmatpush.bf16.msra.mxu0 %v11955_v55  ;;  %v12131_v17 = vor.u32 %v17574_v58, %v12128_v9  ;;  %v12096_v40 = vld [vmem:[%s19151_s19 + $0x278] sm:$0xf0]  ;;  %v17594_v58 = vld [vmem:[%s19151_s19 + $0x34c] sm:$0xf] }
 0x205   : > { %3566 = vmatpush.bf16.msrb.mxu2 %v12687_v3  ;;  %v12080_v55 = vld [vmem:[%s19151_s19 + $0x258] sm:$0xf0]  ;;  %v17694_v13 = vld [vmem:[%s19151_s19 + $0x66c] sm:$0xf] }
 0x206   : > { %3553 = vmatpush.bf16.msrb.mxu1 %v12559_v48  ;;  %v20006_v33 = vpop.f32.mrf.mxu3  ;;  %v17670_v48 = vld [vmem:[%s19151_s19 + $0x5ac] sm:$0xf]  ;;  %v12083_v2 = vor.u32 %v17562_v52, %v12080_v55  ;;  %v12208_v9 = vld [vmem:[%s19151_s19 + $0x358] sm:$0xf0]  ;;  %v17750_v55 = vld [vmem:[%s20042_s14 + $0x28] sm:$0xff] }
 0x207   : > { %v12515_v59 = vor.u32 %v17670_v48, %v12512_v49  ;;  %v12211_v46 = vor.u32 %v17594_v58, %v12208_v9  ;;  %v17742_v48 = vld [vmem:[%s19151_s19 + $0x7ec] sm:$0xf]  ;;  %v12800_v49 = vld [vmem:[%s19151_s19 + $0x7f8] sm:$0xf0]  ;;  %v17760_v9 = vld [vmem:[%s20042_s14 + $0x78] sm:$0xff] }
 0x208   : > { %3625 = vmatpush.bf16.msrb.mxu3 %v12403_v56  ;;  %3591 = vmatpush.bf16.msra.mxu0 %v11939_v6  ;;  %v12339_v56 = vor.u32 %v17626_v45, %v12336_v47  ;;  %v12064_v6 = vld [vmem:[%s19151_s19 + $0x238] sm:$0xf0]  ;;  %v17706_v45 = vld [vmem:[%s19151_s19 + $0x6cc] sm:$0xf] }
 0x209   : > { %3554 = vmatmul.bf16.vlgmr.msrb.gmra.mxu1 %v19754_v16  ;;  %3611 = vmatpush.bf16.msra.mxu2 %v12291_v7  ;;  %v12067_v14 = vor.u32 %v17558_v5, %v12064_v6  ;;  %v12656_v47 = vld [vmem:[%s19151_s19 + $0x6d8] sm:$0xf0]  ;;  %v17698_v5 = vld [vmem:[%s19151_s19 + $0x68c] sm:$0xf] }
 0x20a   : > { %3598 = vmatpush.bf16.msra.mxu1 %v12163_v50  ;;  %3567 = vmatmul.bf16.vlgmr.msrb.gmra.mxu2 %v19766_v38  ;;  %v12099_v50 = vor.u32 %v17566_v39, %v12096_v40  ;;  %v12675_v40 = vor.u32 %v17710_v29, %v12672_v30  ;;  %v12659_v52 = vor.u32 %v17706_v45, %v12656_v47  ;;  %v12624_v6 = vld [vmem:[%s19151_s19 + $0x698] sm:$0xf0]  ;;  %v17757_v45 = vld [vmem:[%s20042_s14 + $0x60] sm:$0xff] }
 0x20b   : > { %v12768_v58 = vld [vmem:[%s19151_s19 + $0x7b8] sm:$0xf0] }
 0x20c   : > { %3626 = vmatpush.bf16.msrb.mxu3 %v12387_v10  ;;  %3592 = vmatpush.bf16.msra.mxu0 %v11923_v18  ;;  %v20032_v1 = vpop.f32.mrf.mxu0  ;;  %v17618_v10 = vld [vmem:[%s19151_s19 + $0x40c] sm:$0xf]  ;;  %v12048_v18 = vld [vmem:[%s19151_s19 + $0x218] sm:$0xf0] }
 0x20d   : > { %3612 = vmatpush.bf16.msra.mxu2 %v12275_v19  ;;  %v12307_v19 = vor.u32 %v17618_v10, %v12304_v11  ;;  %v12627_v10 = vor.u32 %v17698_v5, %v12624_v6  ;;  %v12736_v30 = vld [vmem:[%s19151_s19 + $0x778] sm:$0xf0] }
 0x20e   : > { %3599 = vmatpush.bf16.msra.mxu1 %v12147_v4  ;;  %v3323_v3 = vpop.f32.mrf.mxu3  ;;  %v12227_v4 = vor.u32 %v17598_v61, %v12224_v62  ;;  %v12432_v61 = vld [vmem:[%s19151_s19 + $0x518] sm:$0xf0]  ;;  %v17702_v62 = vld [vmem:[%s19151_s19 + $0x6ac] sm:$0xf] }
 0x20f   : > { %3593 = vmatmul.bf16.vlgmr.msra.gmra.mxu0 %v19590_v43  ;;  %v12320_v43 = vld [vmem:[%s19151_s19 + $0x438] sm:$0xf0] }
 0x210   : > { %3627 = vmatpush.bf16.msrb.mxu3 %v12371_v26  ;;  %3637 = vmatpush.bf16.msrb.mxu0 %v12547_v27  ;;  %v12323_v7 = vor.u32 %v17622_v57, %v12320_v43  ;;  %v12192_v26 = vld [vmem:[%s19151_s19 + $0x338] sm:$0xf0]  ;;  %v17658_v27 = vld [vmem:[%s19151_s19 + $0x54c] sm:$0xf] }
 0x211   : > { %3613 = vmatpush.bf16.msra.mxu2 %v12259_v37  ;;  %v17751_v37 = vld [vmem:[%s20042_s14 + $0x30] sm:$0xff]  ;;  %v12467_v39 = vor.u32 %v17658_v27, %v12464_v28 }
 0x212   : > { %3600 = vmatpush.bf16.msra.mxu1 %v12131_v17  ;;  %v17554_v17 = vld [vmem:[%s19151_s19 + $0x20c] sm:$0xf]  ;;  %v12640_v57 = vld [vmem:[%s19151_s19 + $0x6b8] sm:$0xf0] }
 0x213   : > { %v12051_v22 = vor.u32 %v17554_v17, %v12048_v18  ;;  %v12752_v17 = vld [vmem:[%s19151_s19 + $0x798] sm:$0xf0] }
 0x214   : > { %3628 = vmatpush.bf16.msrb.mxu3 %v12355_v41  ;;  %3638 = vmatpush.bf16.msrb.mxu0 %v12531_v42  ;;  %v3336_v31 = vpop.f32.mrf.mxu0  ;;  %v17586_v41 = vld [vmem:[%s19151_s19 + $0x30c] sm:$0xf]  ;;  %v12176_v42 = vld [vmem:[%s19151_s19 + $0x318] sm:$0xf0] }
 0x215   : > { %3614 = vmatpush.bf16.msra.mxu2 %v12243_v51  ;;  %v12451_v51 = vor.u32 %v17654_v44, %v12448_v34  ;;  %v17759_v18 = vld [vmem:[%s20042_s14 + $0x70] sm:$0xff]  ;;  %v17722_v44 = vld [vmem:[%s19151_s19 + $0x74c] sm:$0xf] }
 0x216   : > { %3601 = vmatpush.bf16.msra.mxu1 %v12115_v35  ;;  %v20056_v32 = vpop.f32.mrf.mxu3  ;;  %v12195_v35 = vor.u32 %v17590_v25, %v12192_v26  ;;  %v17690_v26 = vld [vmem:[%s19151_s19 + $0x64c] sm:$0xf]  ;;  %v12592_v27 = vld [vmem:[%s19151_s19 + $0x658] sm:$0xf0] }
 0x217   : > { %v12720_v34 = vld [vmem:[%s19151_s19 + $0x758] sm:$0xf0] }
 0x218   : > { %3629 = vmatpush.bf16.msrb.mxu3 %v12339_v56  ;;  %3639 = vmatpush.bf16.msrb.mxu0 %v12515_v59  ;;  %v17650_v56 = vld [vmem:[%s19151_s19 + $0x50c] sm:$0xf]  ;;  %v12803_v59 = vor.u32 %v17742_v48, %v12800_v49  ;;  %v12723_v49 = vor.u32 %v17722_v44, %v12720_v34  ;;  %v12688_v5 = vld [vmem:[%s19151_s19 + $0x718] sm:$0xf0]  ;;  %v17764_v34 = vld [vmem:[%s20042_s14 + $0x98] sm:$0xff] }
 0x219   : > { %3615 = vmatpush.bf16.msra.mxu2 %v12227_v4  ;;  %v17749_v4 = vld [vmem:[%s20042_s14 + $0x20] sm:$0xff]  ;;  %v17755_v6 = vld [vmem:[%s20042_s14 + $0x50] sm:$0xff] }
 0x21a   : > { %3602 = vmatpush.bf16.msra.mxu1 %v12099_v50  ;;  %v12179_v50 = vor.u32 %v17586_v41, %v12176_v42 }
 0x21c   : > { %3630 = vmatpush.bf16.msrb.mxu3 %v12323_v7  ;;  %3640 = vmatpush.bf16.msrb.mxu0 %v12499_v8  ;;  %v20074_v43 = vpop.f32.mrf.mxu0  ;;  %v17734_v8 = vld [vmem:[%s19151_s19 + $0x7ac] sm:$0xf] }
 0x21d   : > { %3616 = vmatpush.bf16.msra.mxu2 %v12211_v46  ;;  %v12771_v11 = vor.u32 %v17734_v8, %v12768_v58 }
 0x21e   : > { %3603 = vmatpush.bf16.msra.mxu1 %v12083_v2  ;;  %v3375_v0 = vpop.f32.mrf.mxu3  ;;  %v12435_v2 = vor.u32 %v17650_v56, %v12432_v61  ;;  %v12704_v61 = vld [vmem:[%s19151_s19 + $0x738] sm:$0xf0] }
 0x21f   : > { %v20117_v0 = vld [vmem:[%s19153_s21] sm:$0xf] }
 0x220   : > { %3631 = vmatpush.bf16.msrb.mxu3 %v12307_v19  ;;  %3641 = vmatpush.bf16.msrb.mxu0 %v12483_v21 }
 0x221   : > { %3617 = vmatpush.bf16.msra.mxu2 %v12195_v35  ;;  %v12595_v35 = vor.u32 %v17690_v26, %v12592_v27  ;;  %v13303_v26 = vld [vmem:[%s19135_s8 + $0x640] sm:$0xf] }
 0x222   : > { %3604 = vmatpush.bf16.msra.mxu1 %v12067_v14  ;;  %v12608_v14 = vld [vmem:[%s19151_s19 + $0x678] sm:$0xf0]  ;;  %v17837_v27 = vld [vmem:[%s19135_s8 + $0x65c] sm:$0xf0] }
 0x223   : > { %3632 = vmatmul.bf16.vlgmr.msrb.gmra.mxu3 %v19706_v54  ;;  %v17738_v54 = vld [vmem:[%s19151_s19 + $0x7cc] sm:$0xf]  ;;  %v12611_v25 = vor.u32 %v17694_v13, %v12608_v14 }
 0x224   : > { %3944 = vmatpush.bf16.msra.mxu3 %v17752_v15  ;;  %3642 = vmatpush.bf16.msrb.mxu0 %v12467_v39  ;;  %v12787_v3 = vor.u32 %v17738_v54, %v12784_v63  ;;  %v3388_v46 = vpop.f32.mrf.mxu0  ;;  %v17730_v15 = vld [vmem:[%s19151_s19 + $0x78c] sm:$0xf]  ;;  %v17746_v39 = vld [vmem:[%s20042_s14 + $0x8] sm:$0xff] }
 0x225   : > { %3618 = vmatpush.bf16.msra.mxu2 %v12179_v50  ;;  %v17745_v50 = vld [vmem:[%s20042_s14] sm:$0xff] }
 0x226   : > { %3605 = vmatpush.bf16.msra.mxu1 %v12051_v22  ;;  %v3347_v7 = vpop.f32.mrf.mxu1  ;;  %v20094_v19 = vpop.f32.mrf.mxu3  ;;  %v17753_v13 = vld [vmem:[%s20042_s14 + $0x40] sm:$0xff] }
 0x228   : > { %3945 = vmatpush.bf16.msra.mxu3 %v17751_v37  ;;  %3643 = vmatpush.bf16.msrb.mxu0 %v12451_v51  ;;  %v17682_v51 = vld [vmem:[%s19151_s19 + $0x60c] sm:$0xf] }
 0x229   : > { %3606 = vmatmul.bf16.vlgmr.msra.gmra.mxu1 %v19652_v20  ;;  %v12643_v20 = vor.u32 %v17702_v62, %v12640_v57  ;;  %3663 = vmatpush.bf16.msrb.mxu2 %v12803_v59  ;;  %v17718_v59 = vld [vmem:[%s19151_s19 + $0x72c] sm:$0xf]  ;;  %v17756_v62 = vld [vmem:[%s20042_s14 + $0x58] sm:$0xff] }
 0x22a   : > { %3650 = vmatpush.bf16.msrb.mxu1 %v12675_v40  ;;  %3619 = vmatmul.bf16.vlgmr.msra.gmra.mxu2 %v19662_v36  ;;  %v3309_v36 = vadd.f32 %v19932_v53, %v19913_v23  ;;  %v12755_v23 = vor.u32 %v17730_v15, %v12752_v17  ;;  %v17747_v53 = vld [vmem:[%s20042_s14 + $0x10] sm:$0xff]  ;;  %v3360_v22 = vpop.f32.mrf.mxu2  ;;  %v17686_v40 = vld [vmem:[%s19151_s19 + $0x62c] sm:$0xf]  ;;  %v12707_v63 = vor.u32 %v17718_v59, %v12704_v61  ;;  %v17805_v59 = vld [vmem:[%s19135_s8 + $0x55c] sm:$0xf0] }
 0x22b   : > { %v13495_v61 = vld [vmem:[%s19135_s8 + $0x7c0] sm:$0xf] }
 0x22c   : > { %3946 = vmatpush.bf16.msra.mxu3 %v17750_v55  ;;  %3644 = vmatpush.bf16.msrb.mxu0 %v12435_v2  ;;  %v3322_v21 = vadd.f32 %v20006_v33, %v3309_v36  ;;  %v17758_v33 = vld [vmem:[%s20042_s14 + $0x68] sm:$0xff]  ;;  %v3438_v42 = vpop.f32.mrf.mxu0  ;;  %v1973_v2 = vperm.slane %v20117_v0, 1 }
 0x22d   : > { %3664 = vmatpush.bf16.msrb.mxu2 %v12787_v3 }
 0x22e   : > { %3651 = vmatpush.bf16.msrb.mxu1 %v12659_v52  ;;  %v3335_v28 = vadd.f32 %v20032_v1, %v3322_v21  ;;  %v3349_v29 = vpop.f32.mrf.mxu1  ;;  %v12576_v1 = vld [vmem:[%s19151_s19 + $0x638] sm:$0xf0]  ;;  %v3427_v47 = vpop.f32.mrf.mxu3  ;;  %v3374_v8 = vadd.f32 %v20056_v32, %v1973_v2  ;;  %v17768_v21 = vld [vmem:[%s20042_s14 + $0xb8] sm:$0xff] }
 0x22f   : > { %3645 = vmatmul.bf16.vlgmr.msrb.gmra.mxu0 %v19723_v24  ;;  %v17726_v24 = vld [vmem:[%s19151_s19 + $0x76c] sm:$0xf]  ;;  %v12579_v48 = vor.u32 %v17686_v40, %v12576_v1  ;;  %v12560_v52 = vld [vmem:[%s19151_s19 + $0x618] sm:$0xf0]  ;;  %v13304_v29 = vor.u32 %v17837_v27, %v13303_v26  ;;  %v13239_v40 = vld [vmem:[%s19135_s8 + $0x5c0] sm:$0xf] }
 0x230   : > { %3947 = vmatpush.bf16.msra.mxu3 %v17749_v4  ;;  %3957 = vmatpush.bf16.msra.mxu0 %v17760_v9  ;;  %v3348_v31 = vadd.f32 %v3347_v7, %v3335_v28  ;;  %v12739_v37 = vor.u32 %v17726_v24, %v12736_v30  ;;  %v12563_v54 = vor.u32 %v17682_v51, %v12560_v52  ;;  %v17714_v4 = vld [vmem:[%s19151_s19 + $0x70c] sm:$0xf]  ;;  %v17754_v9 = vld [vmem:[%s20042_s14 + $0x48] sm:$0xff] }
 0x231   : > { %3665 = vmatpush.bf16.msrb.mxu2 %v12771_v11  ;;  %v12691_v7 = vor.u32 %v17714_v4, %v12688_v5  ;;  %v17766_v24 = vld [vmem:[%s20042_s14 + $0xa8] sm:$0xff] }
 0x232   : > { %3652 = vmatpush.bf16.msrb.mxu1 %v12643_v20  ;;  %v3361_v41 = vadd.f32 %v3360_v22, %v3348_v31  ;;  %v3362_v57 = vpop.f32.mrf.mxu2  ;;  %v13271_v30 = vld [vmem:[%s19135_s8 + $0x600] sm:$0xf] }
 0x233   : > { %v17821_v1 = vld [vmem:[%s19135_s8 + $0x5dc] sm:$0xf0] }
 0x234   : > { %3948 = vmatpush.bf16.msra.mxu3 %v17748_v12  ;;  %3958 = vmatpush.bf16.msra.mxu0 %v17759_v18  ;;  %v3676_v55 = vmax.f32 %v3361_v41, 0.0  ;;  %v3440_v3 = vpop.f32.mrf.mxu0  ;;  %v13240_v44 = vor.u32 %v17821_v1, %v13239_v40  ;;  %v17813_v47 = vld [vmem:[%s19135_s8 + $0x59c] sm:$0xf0]  ;;  %v13593_v40 = vld [vmem:[%s19135_s8 + $0x8a0] sm:$0xf0]  ;;  %v1974_v1 = vperm.slane %v20117_v0, 2 }
 0x235   : > { %3666 = vmatpush.bf16.msrb.mxu2 %v12755_v23  ;;  %v17885_v57 = vld [vmem:[%s19135_s8 + $0x7dc] sm:$0xf0] }
 0x236   : > { %3653 = vmatpush.bf16.msrb.mxu1 %v12627_v10  ;;  %v3399_v56 = vpop.f32.mrf.mxu1  ;;  %v3680_v20 = vpack.c.bf16 %v3676_v55, %v3676_v55  ;;  %v3387_v10 = vadd.f32 %v20074_v43, %v3374_v8  ;;  %v17763_v55 = vld [vmem:[%s20042_s14 + $0x90] sm:$0xff]  ;;  %v13496_v2 = vor.u32 %v17885_v57, %v13495_v61  ;;  %v17797_v3 = vld [vmem:[%s19135_s8 + $0x51c] sm:$0xf0]  ;;  %v17776_v57 = vld [vmem:[%s20042_s14 + $0xf8] sm:$0xff] }
 0x237   : > { %v13463_v4 = vld [vmem:[%s19135_s8 + $0x780] sm:$0xf]  ;;  %v17894_v61 = vld [vmem:[%s19135_s8 + $0x824] sm:$0xf0] }
 0x238   : > { %3949 = vmatpush.bf16.msra.mxu3 %v17747_v53  ;;  %3959 = vmatpush.bf16.msra.mxu0 %v17758_v33  ;;  %v3400_v12 = vadd.f32 %v3399_v56, %v3387_v10  ;;  %v17767_v53 = vld [vmem:[%s20042_s14 + $0xb0] sm:$0xff]  ;;  %v17829_v33 = vld [vmem:[%s19135_s8 + $0x61c] sm:$0xf0] }
 0x239   : > { %3667 = vmatpush.bf16.msrb.mxu2 %v12739_v37  ;;  %v13272_v22 = vor.u32 %v17829_v33, %v13271_v30  ;;  %v17901_v37 = vld [vmem:[%s19135_s8 + $0x85c] sm:$0xf0] }
 0x23a   : > { %3654 = vmatpush.bf16.msrb.mxu1 %v12611_v25  ;;  %v3412_v11 = vpop.f32.mrf.mxu2  ;;  %v13175_v56 = vld [vmem:[%s19135_s8 + $0x540] sm:$0xf] }
 0x23b   : > { %v3413_v14 = vadd.f32 %v3412_v11, %v3400_v12  ;;  %v17917_v10 = vld [vmem:[%s19135_s8 + $0x8dc] sm:$0xf0] }
 0x23c   : > { %3950 = vmatpush.bf16.msra.mxu3 %v17746_v39  ;;  %3960 = vmatpush.bf16.msra.mxu0 %v17757_v45  ;;  %v13207_v45 = vld [vmem:[%s19135_s8 + $0x580] sm:$0xf] }
 0x23d   : > { %3668 = vmatpush.bf16.msrb.mxu2 %v12723_v49  ;;  %v13208_v49 = vor.u32 %v17813_v47, %v13207_v45  ;;  %v17861_v27 = vld [vmem:[%s19135_s8 + $0x71c] sm:$0xf0] }
 0x23e   : > { %3655 = vmatpush.bf16.msrb.mxu1 %v12595_v35  ;;  %v3401_v58 = vpop.f32.mrf.mxu1  ;;  %v13559_v35 = vld [vmem:[%s19135_s8 + $0x840] sm:$0xf] }
 0x23f   : > { %v13560_v41 = vor.u32 %v17901_v37, %v13559_v35  ;;  %v17761_v58 = vld [vmem:[%s20042_s14 + $0x80] sm:$0xff]  ;;  %v13367_v33 = vld [vmem:[%s19135_s8 + $0x6c0] sm:$0xf] }
 0x240   : > { %3951 = vmatpush.bf16.msra.mxu3 %v17745_v50  ;;  %3961 = vmatpush.bf16.msra.mxu0 %v17756_v62  ;;  %v17893_v50 = vld [vmem:[%s19135_s8 + $0x81c] sm:$0xf0]  ;;  %v13176_v62 = vor.u32 %v17805_v59, %v13175_v56  ;;  %v13535_v59 = vld [vmem:[%s19135_s8 + $0x808] sm:$0xf] }
 0x241   : > { %3669 = vmatpush.bf16.msrb.mxu2 %v12707_v63  ;;  %v13335_v47 = vld [vmem:[%s19135_s8 + $0x680] sm:$0xf] }
 0x242   : > { %3656 = vmatpush.bf16.msrb.mxu1 %v12579_v48  ;;  %v3414_v36 = vpop.f32.mrf.mxu2  ;;  %v13527_v48 = vld [vmem:[%s19135_s8 + $0x800] sm:$0xf] }
 0x243   : > { %3952 = vmatmul.bf16.vlgmr.msra.gmra.mxu3 %v3680_v20  ;;  %v13528_v52 = vor.u32 %v17893_v50, %v13527_v48  ;;  %v13143_v20 = vld [vmem:[%s19135_s8 + $0x500] sm:$0xf]  ;;  %v13311_v50 = vld [vmem:[%s19135_s8 + $0x648] sm:$0xf] }
 0x244   : > { %3962 = vmatpush.bf16.msra.mxu0 %v17755_v6  ;;  %4888 = vmatpush.bf16.msrb.mxu3 %v13304_v29  ;;  %v13144_v5 = vor.u32 %v17797_v3, %v13143_v20  ;;  %v17877_v6 = vld [vmem:[%s19135_s8 + $0x79c] sm:$0xf0]  ;;  %v17913_v29 = vld [vmem:[%s19135_s8 + $0x8c4] sm:$0xf]  ;;  %v17830_v20 = vld [vmem:[%s19135_s8 + $0x624] sm:$0xf0] }
 0x245   : > { %3670 = vmatpush.bf16.msrb.mxu2 %v12691_v7  ;;  %v13464_v8 = vor.u32 %v17877_v6, %v13463_v4  ;;  %v17845_v48 = vld [vmem:[%s19135_s8 + $0x69c] sm:$0xf0]  ;;  %v13503_v4 = vld [vmem:[%s19135_s8 + $0x7c8] sm:$0xf] }
 0x246   : > { %3657 = vmatpush.bf16.msrb.mxu1 %v12563_v54  ;;  %v3451_v32 = vpop.f32.mrf.mxu1  ;;  %v20133_v46 = vpop.f32.mrf.mxu3  ;;  %v17762_v54 = vld [vmem:[%s20042_s14 + $0x88] sm:$0xff] }
 0x248   : > { %3963 = vmatpush.bf16.msra.mxu0 %v17754_v9  ;;  %3671 = vmatmul.bf16.vlgmr.msrb.gmra.mxu2 %v19766_v38  ;;  %v13623_v9 = vld [vmem:[%s19135_s8 + $0x8c0] sm:$0xf] }
 0x249   : > { %3658 = vmatmul.bf16.vlgmr.msrb.gmra.mxu1 %v19754_v16  ;;  %v3426_v16 = vadd.f32 %v20094_v19, %v3413_v14  ;;  %4889 = vmatpush.bf16.msrb.mxu3 %v13272_v22  ;;  %v13624_v12 = vor.u32 %v17917_v10, %v13623_v9  ;;  %v17789_v14 = vld [vmem:[%s19135_s8 + $0x4dc] sm:$0xf0]  ;;  %v17822_v9 = vld [vmem:[%s19135_s8 + $0x5e4] sm:$0xf0] }
 0x24a   : > { %3970 = vmatpush.bf16.msra.mxu1 %v17768_v21  ;;  %v13591_v21 = vld [vmem:[%s19135_s8 + $0x880] sm:$0xf]  ;;  %3983 = vmatpush.bf16.msra.mxu2 %v17776_v57  ;;  %v13471_v10 = vld [vmem:[%s19135_s8 + $0x788] sm:$0xf]  ;;  %v17881_v57 = vld [vmem:[%s19135_s8 + $0x7c4] sm:$0xf] }
 0x24b   : > { %v3439_v43 = vadd.f32 %v3438_v42, %v3426_v16  ;;  %v17765_v42 = vld [vmem:[%s20042_s14 + $0xa0] sm:$0xff] }
 0x24c   : > { %3964 = vmatpush.bf16.msra.mxu0 %v17753_v13  ;;  %v20135_v18 = vpop.f32.mrf.mxu0  ;;  %v13111_v13 = vld [vmem:[%s19135_s8 + $0x4c0] sm:$0xf] }
 0x24d   : > { %v3452_v17 = vadd.f32 %v3451_v32, %v3439_v43  ;;  %v3464_v25 = vpop.f32.mrf.mxu2  ;;  %4890 = vmatpush.bf16.msrb.mxu3 %v13240_v44  ;;  %v13431_v32 = vld [vmem:[%s19135_s8 + $0x740] sm:$0xf]  ;;  %v13112_v36 = vor.u32 %v17789_v14, %v13111_v13  ;;  %v17902_v44 = vld [vmem:[%s19135_s8 + $0x864] sm:$0xf0] }
 0x24e   : > { %v3453_v15 = vpop.f32.mrf.mxu1  ;;  %v3479_v38 = vpop.f32.mrf.mxu3  ;;  %3971 = vmatpush.bf16.msra.mxu1 %v17767_v53  ;;  %v17869_v43 = vld [vmem:[%s19135_s8 + $0x75c] sm:$0xf0] }
 0x24f   : > { %v3465_v23 = vadd.f32 %v3464_v25, %v3452_v17  ;;  %v13432_v17 = vor.u32 %v17869_v43, %v13431_v32  ;;  %v17909_v25 = vld [vmem:[%s19135_s8 + $0x89c] sm:$0xf0]  ;;  %v17814_v43 = vld [vmem:[%s19135_s8 + $0x5a4] sm:$0xf0] }
 0x250   : > { %4901 = vmatpush.bf16.msrb.mxu0 %v13560_v41  ;;  %v13592_v38 = vor.u32 %v17909_v25, %v13591_v21  ;;  %v17781_v53 = vld [vmem:[%s19135_s8 + $0x49c] sm:$0xf0]  ;;  %v17870_v21 = vld [vmem:[%s19135_s8 + $0x764] sm:$0xf0] }
 0x251   : > { %v3677_v19 = vmax.f32 %v3465_v23, 0.0  ;;  %4891 = vmatpush.bf16.msrb.mxu3 %v13208_v49  ;;  %v13079_v23 = vld [vmem:[%s19135_s8 + $0x480] sm:$0xf]  ;;  %v13336_v49 = vor.u32 %v17845_v48, %v13335_v47  ;;  %v17889_v48 = vld [vmem:[%s19135_s8 + $0x804] sm:$0xf] }
 0x252   : > { %3972 = vmatpush.bf16.msra.mxu1 %v17766_v24  ;;  %v13080_v26 = vor.u32 %v17781_v53, %v13079_v23  ;;  %v13625_v24 = vld [vmem:[%s19135_s8 + $0x8e0] sm:$0xf0]  ;;  %v17773_v53 = vld [vmem:[%s20042_s14 + $0xe0] sm:$0xff] }
 0x253   : > { %v3681_v28 = vpack.c.bf16 %v3677_v19, %v3677_v19  ;;  %v13399_v19 = vld [vmem:[%s19135_s8 + $0x700] sm:$0xf]  ;;  %v13628_v30 = vor.u32 %v17913_v29, %v13625_v24  ;;  %v13407_v29 = vld [vmem:[%s19135_s8 + $0x708] sm:$0xf] }
 0x254   : > { %v3492_v31 = vpop.f32.mrf.mxu0  ;;  %4902 = vmatpush.bf16.msrb.mxu0 %v13528_v52  ;;  %v17838_v52 = vld [vmem:[%s19135_s8 + $0x664] sm:$0xf0]  ;;  %v17774_v32 = vld [vmem:[%s20042_s14 + $0xe8] sm:$0xff] }
 0x255   : > { %3965 = vmatmul.bf16.vlgmr.msra.gmra.mxu0 %v3681_v28  ;;  %v3466_v39 = vpop.f32.mrf.mxu2  ;;  %4892 = vmatpush.bf16.msrb.mxu3 %v13176_v62  ;;  %v13400_v28 = vor.u32 %v17861_v27, %v13399_v19  ;;  %v17853_v31 = vld [vmem:[%s19135_s8 + $0x6dc] sm:$0xf0]  ;;  %v13312_v56 = vor.u32 %v17838_v52, %v13311_v50  ;;  %v13536_v62 = vor.u32 %v17894_v61, %v13535_v59  ;;  %v13183_v19 = vld [vmem:[%s19135_s8 + $0x548] sm:$0xf] }
 0x256   : > { %3973 = vmatpush.bf16.msra.mxu1 %v17765_v42  ;;  %v13368_v35 = vor.u32 %v17853_v31, %v13367_v33  ;;  %v17905_v39 = vld [vmem:[%s19135_s8 + $0x884] sm:$0xf]  ;;  %v13567_v42 = vld [vmem:[%s19135_s8 + $0x848] sm:$0xf] }
 0x257   : > { %v13596_v41 = vor.u32 %v17905_v39, %v13593_v40  ;;  %v13568_v45 = vor.u32 %v17902_v44, %v13567_v42  ;;  %v17862_v24 = vld [vmem:[%s19135_s8 + $0x724] sm:$0xf0]  ;;  %v17897_v39 = vld [vmem:[%s19135_s8 + $0x844] sm:$0xf] }
 0x258   : > { %4903 = vmatpush.bf16.msrb.mxu0 %v13496_v2  ;;  %v13279_v2 = vld [vmem:[%s19135_s8 + $0x608] sm:$0xf]  ;;  %v13408_v31 = vor.u32 %v17862_v24, %v13407_v29  ;;  %v13561_v40 = vld [vmem:[%s19135_s8 + $0x860] sm:$0xf0]  ;;  %v17823_v29 = vld [vmem:[%s19135_s8 + $0x5ec] sm:$0xf0] }
 0x259   : > { %4893 = vmatpush.bf16.msrb.mxu3 %v13144_v5  ;;  %v13280_v3 = vor.u32 %v17830_v20, %v13279_v2  ;;  %v17886_v5 = vld [vmem:[%s19135_s8 + $0x7e4] sm:$0xf0]  ;;  %v13564_v47 = vor.u32 %v17897_v39, %v13561_v40  ;;  %v13575_v24 = vld [vmem:[%s19135_s8 + $0x850] sm:$0xf]  ;;  %v13273_v40 = vld [vmem:[%s19135_s8 + $0x620] sm:$0xf0] }
 0x25a   : > { %3974 = vmatpush.bf16.msra.mxu1 %v17764_v34  ;;  %v20194_v34 = vld [vmem:[#allocation1] sm:$0xff]  ;;  %v13504_v6 = vor.u32 %v17886_v5, %v13503_v4  ;;  %v20233_v33 = vld [vmem:[#allocation1 + $0x9] sm:$0xff]  ;;  %v13319_v5 = vld [vmem:[%s19135_s8 + $0x650] sm:$0xf] }
 0x25b   : > { %v17790_v59 = vld [vmem:[%s19135_s8 + $0x4e4] sm:$0xf0] }
 0x25c   : > { %4904 = vmatpush.bf16.msrb.mxu0 %v13464_v8  ;;  %v17775_v8 = vld [vmem:[%s20042_s14 + $0xf0] sm:$0xff] }
 0x25d   : > { %4894 = vmatpush.bf16.msrb.mxu3 %v13112_v36  ;;  %3984 = vmatpush.bf16.msra.mxu2 %v17775_v8  ;;  %v13215_v36 = vld [vmem:[%s19135_s8 + $0x588] sm:$0xf] }
 0x25e   : > { %3975 = vmatpush.bf16.msra.mxu1 %v17763_v55  ;;  %v3478_v55 = vadd.f32 %v20133_v46, %v1974_v1  ;;  %v13151_v1 = vld [vmem:[%s19135_s8 + $0x508] sm:$0xf] }
 0x25f   : > { %v17846_v2 = vld [vmem:[%s19135_s8 + $0x6a4] sm:$0xf0] }
 0x260   : > { %4905 = vmatpush.bf16.msrb.mxu0 %v13432_v17  ;;  %v13439_v17 = vld [vmem:[%s19135_s8 + $0x748] sm:$0xf] }
 0x261   : > { %4895 = vmatpush.bf16.msrb.mxu3 %v13080_v26  ;;  %3985 = vmatpush.bf16.msra.mxu2 %v17774_v32  ;;  %v13440_v25 = vor.u32 %v17870_v21, %v13439_v17  ;;  %v13087_v8 = vld [vmem:[%s19135_s8 + $0x488] sm:$0xf]  ;;  %v13465_v32 = vld [vmem:[%s19135_s8 + $0x7a0] sm:$0xf0] }
 0x262   : > { %3976 = vmatpush.bf16.msra.mxu1 %v17762_v54  ;;  %v3491_v54 = vadd.f32 %v20135_v18, %v3478_v55  ;;  %v17771_v55 = vld [vmem:[%s20042_s14 + $0xd0] sm:$0xff]  ;;  %v17833_v21 = vld [vmem:[%s19135_s8 + $0x644] sm:$0xf] }
 0x264   : > { %4906 = vmatpush.bf16.msrb.mxu0 %v13400_v28  ;;  %4896 = vmatmul.bf16.vlgmr.msrb.gmra.mxu3 %v20194_v34 }
 0x265   : > { %4959 = vmatpush.bf16.msra.mxu3 %v13628_v30  ;;  %3986 = vmatpush.bf16.msra.mxu2 %v17773_v53  ;;  %v17906_v53 = vld [vmem:[%s19135_s8 + $0x88c] sm:$0xf] }
 0x266   : > { %v20154_v51 = vpop.f32.mrf.mxu1  ;;  %v20162_v63 = vpop.f32.mrf.mxu3  ;;  %3977 = vmatpush.bf16.msra.mxu1 %v17761_v58  ;;  %v13247_v58 = vld [vmem:[%s19135_s8 + $0x5c8] sm:$0xf] }
 0x267   : > { %v3504_v46 = vadd.f32 %v20154_v51, %v3491_v54  ;;  %v13248_v51 = vor.u32 %v17822_v9, %v13247_v58  ;;  %v13343_v54 = vld [vmem:[%s19135_s8 + $0x688] sm:$0xf] }
 0x268   : > { %4907 = vmatpush.bf16.msrb.mxu0 %v13368_v35  ;;  %v20236_v35 = vld [vmem:[#allocation1 + $0x12] sm:$0xff]  ;;  %v13344_v4 = vor.u32 %v17846_v2, %v13343_v54 }
 0x269   : > { %4960 = vmatpush.bf16.msra.mxu3 %v13596_v41  ;;  %7666 = vst [vmem:[#allocation1] ss:$9 sm:$0xff] %v19204_v60  ;;  %v17798_v41 = vld [vmem:[%s19135_s8 + $0x524] sm:$0xf0]  ;;  %v13529_v60 = vld [vmem:[%s19135_s8 + $0x820] sm:$0xf0] }
 0x26a   : > { %4920 = vmatpush.bf16.msrb.mxu1 %v13624_v12  ;;  %v17878_v12 = vld [vmem:[%s19135_s8 + $0x7a4] sm:$0xf0]  ;;  %v13152_v44 = vor.u32 %v17798_v41, %v13151_v1  ;;  %v17857_v1 = vld [vmem:[%s19135_s8 + $0x704] sm:$0xf]  ;;  %v13191_v54 = vld [vmem:[%s19135_s8 + $0x550] sm:$0xf] }
 0x26b   : > { %v13472_v14 = vor.u32 %v17878_v12, %v13471_v10  ;;  %v17782_v58 = vld [vmem:[%s19135_s8 + $0x4a4] sm:$0xf0]  ;;  %v17914_v10 = vld [vmem:[%s19135_s8 + $0x8cc] sm:$0xf]  ;;  %v13401_v41 = vld [vmem:[%s19135_s8 + $0x720] sm:$0xf0] }
 0x26c   : > { %v20171_v11 = vpop.f32.mrf.mxu0  ;;  %4908 = vmatpush.bf16.msrb.mxu0 %v13336_v49  ;;  %v17854_v49 = vld [vmem:[%s19135_s8 + $0x6e4] sm:$0xf0]  ;;  %v13088_v9 = vor.u32 %v17782_v58, %v13087_v8  ;;  %v13633_v12 = vld [vmem:[%s19135_s8 + $0x8e8] sm:$0xf0]  ;;  %v17807_v2 = vld [vmem:[%s19135_s8 + $0x56c] sm:$0xf0] }
 0x26d   : > { %v20176_v16 = vpop.f32.mrf.mxu2  ;;  %4979 = vmatpush.bf16.msrb.mxu3 %v13568_v45  ;;  %v13375_v45 = vld [vmem:[%s19135_s8 + $0x6c8] sm:$0xf]  ;;  %v17841_v8 = vld [vmem:[%s19135_s8 + $0x684] sm:$0xf] }
 0x26e   : > { %v3505_v7 = vpop.f32.mrf.mxu1  ;;  %v3531_v15 = vpop.f32.mrf.mxu3  ;;  %4921 = vmatpush.bf16.msrb.mxu1 %v13592_v38  ;;  %v13376_v52 = vor.u32 %v17854_v49, %v13375_v45  ;;  %v13223_v45 = vld [vmem:[%s19135_s8 + $0x590] sm:$0xf]  ;;  %v13337_v58 = vld [vmem:[%s19135_s8 + $0x6a0] sm:$0xf0] }
 0x26f   : > { %v3517_v7 = vadd.f32 %v20176_v16, %v3504_v46  ;;  %v13216_v15 = vor.u32 %v17814_v43, %v13215_v36  ;;  %4909 = vmatmul.bf16.vlgmr.msrb.gmra.mxu0 %v20233_v33  ;;  %v13532_v46 = vor.u32 %v17889_v48, %v13529_v60  ;;  %v13287_v36 = vld [vmem:[%s19135_s8 + $0x610] sm:$0xf] }
 0x270   : > { %4966 = vmatpush.bf16.msra.mxu0 %v13312_v56  ;;  %v13119_v56 = vld [vmem:[%s19135_s8 + $0x4c8] sm:$0xf]  ;;  %v17831_v43 = vld [vmem:[%s19135_s8 + $0x62c] sm:$0xf0] }
 0x271   : > { %4980 = vmatpush.bf16.msrb.mxu3 %v13536_v62  ;;  %v3530_v16 = vadd.f32 %v20162_v63, %v3517_v7  ;;  %v17806_v63 = vld [vmem:[%s19135_s8 + $0x564] sm:$0xf0]  ;;  %v13120_v61 = vor.u32 %v17790_v59, %v13119_v56  ;;  %v17770_v7 = vld [vmem:[%s20042_s14 + $0xc8] sm:$0xff]  ;;  %v13288_v17 = vor.u32 %v17831_v43, %v13287_v36  ;;  %v13543_v48 = vld [vmem:[%s19135_s8 + $0x810] sm:$0xf] }
 0x272   : > { %v13184_v28 = vor.u32 %v17806_v63, %v13183_v19  ;;  %v13601_v19 = vld [vmem:[%s19135_s8 + $0x8a8] sm:$0xf0]  ;;  %v17895_v49 = vld [vmem:[%s19135_s8 + $0x82c] sm:$0xf0]  ;;  %v17801_v43 = vld [vmem:[%s19135_s8 + $0x544] sm:$0xf] }
 0x273   : > { %v3543_v38 = vadd.f32 %v20171_v11, %v3530_v16  ;;  %v13636_v16 = vor.u32 %v17914_v10, %v13633_v12  ;;  %v13544_v56 = vor.u32 %v17895_v49, %v13543_v48  ;;  %v13159_v10 = vld [vmem:[%s19135_s8 + $0x510] sm:$0xf] }
 0x274   : > { %v3544_v22 = vpop.f32.mrf.mxu0  ;;  %4967 = vmatpush.bf16.msra.mxu0 %v13280_v3  ;;  %13654 = vmatmul.msk.bf16.vlgmr.msra.gmra.mxu3 %vm1383_vm0, %v20236_v35  ;;  %v13497_v3 = vld [vmem:[%s19135_s8 + $0x7e0] sm:$0xf0]  ;;  %v17799_v12 = vld [vmem:[%s19135_s8 + $0x52c] sm:$0xf0] }
 0x275   : > { %v3518_v37 = vpop.f32.mrf.mxu2  ;;  %4981 = vmatpush.bf16.msrb.mxu3 %v13504_v6  ;;  %v17772_v22 = vld [vmem:[%s20042_s14 + $0xd8] sm:$0xff] }
 0x276   : > { %3987 = vmatpush.bf16.msra.mxu2 %v17772_v22  ;;  %v17839_v6 = vld [vmem:[%s19135_s8 + $0x66c] sm:$0xf0]  ;;  %v17825_v22 = vld [vmem:[%s19135_s8 + $0x604] sm:$0xf] }
 0x277   : > { %v17879_v36 = vld [vmem:[%s19135_s8 + $0x7ac] sm:$0xf0] }
 0x278   : > { %4968 = vmatpush.bf16.msra.mxu0 %v13248_v51  ;;  %v17873_v51 = vld [vmem:[%s19135_s8 + $0x784] sm:$0xf] }
 0x279   : > { %4982 = vmatpush.bf16.msrb.mxu3 %v13472_v14  ;;  %v13500_v14 = vor.u32 %v17881_v57, %v13497_v3  ;;  %v13468_v63 = vor.u32 %v17873_v51, %v13465_v32  ;;  %v13404_v57 = vor.u32 %v17857_v1, %v13401_v41  ;;  %v17887_v3 = vld [vmem:[%s19135_s8 + $0x7ec] sm:$0xf0]  ;;  %v1975_v1 = vperm.slane %v20117_v0, 3  ;;  %v13113_v0 = vld [vmem:[%s19135_s8 + $0x4e0] sm:$0xf0] }
 0x27a   : > { %3988 = vmatpush.bf16.msra.mxu2 %v17771_v55 }
 0x27c   : > { %4969 = vmatpush.bf16.msra.mxu0 %v13216_v15  ;;  %v17769_v15 = vld [vmem:[%s20042_s14 + $0xc0] sm:$0xff] }
 0x27d   : > { %4983 = vmatpush.bf16.msrb.mxu3 %v13440_v25  ;;  %v13305_v25 = vld [vmem:[%s19135_s8 + $0x660] sm:$0xf0] }
 0x27e   : > { %3989 = vmatpush.bf16.msra.mxu2 %v17770_v7 }
 0x280   : > { %4970 = vmatpush.bf16.msra.mxu0 %v13184_v28  ;;  %v13255_v28 = vld [vmem:[%s19135_s8 + $0x5d0] sm:$0xf] }
 0x281   : > { %4984 = vmatpush.bf16.msrb.mxu3 %v13408_v31  ;;  %v17903_v31 = vld [vmem:[%s19135_s8 + $0x86c] sm:$0xf0] }
 0x282   : > { %3990 = vmatpush.bf16.msra.mxu2 %v17769_v15  ;;  %v13576_v39 = vor.u32 %v17903_v31, %v13575_v24  ;;  %v13177_v15 = vld [vmem:[%s19135_s8 + $0x560] sm:$0xf0]  ;;  %v17871_v24 = vld [vmem:[%s19135_s8 + $0x76c] sm:$0xf0]  ;;  %v17826_v31 = vld [vmem:[%s19135_s8 + $0x60c] sm:$0xf] }
 0x284   : > { %4971 = vmatpush.bf16.msra.mxu0 %v13152_v44 }
 0x285   : > { %4985 = vmatpush.bf16.msrb.mxu3 %v13376_v52  ;;  %v13241_v52 = vld [vmem:[%s19135_s8 + $0x5e0] sm:$0xf0] }
 0x286   : > { %v3555_v18 = vpop.f32.mrf.mxu1  ;;  %v20217_v13 = vpop.f32.mrf.mxu3 }
 0x287   : > { %v3556_v26 = vadd.f32 %v3555_v18, %v3543_v38  ;;  %v13320_v18 = vor.u32 %v17839_v6, %v13319_v5  ;;  %v13308_v38 = vor.u32 %v17833_v21, %v13305_v25  ;;  %v13209_v5 = vld [vmem:[%s19135_s8 + $0x5a0] sm:$0xf0]  ;;  %v17834_v21 = vld [vmem:[%s19135_s8 + $0x64c] sm:$0xf] }
 0x288   : > { %4972 = vmatpush.bf16.msra.mxu0 %v13120_v61  ;;  %v17849_v61 = vld [vmem:[%s19135_s8 + $0x6c4] sm:$0xf]  ;;  %v13313_v25 = vld [vmem:[%s19135_s8 + $0x668] sm:$0xf0] }
 0x289   : > { %4986 = vmatpush.bf16.msrb.mxu3 %v13344_v4  ;;  %4927 = vmatpush.bf16.msrb.mxu2 %v13308_v38  ;;  %v17809_v4 = vld [vmem:[%s19135_s8 + $0x584] sm:$0xf] }
 0x28c   : > { %v20229_v27 = vpop.f32.mrf.mxu0  ;;  %4973 = vmatpush.bf16.msra.mxu0 %v13088_v9  ;;  %4987 = vmatmul.bf16.vlgmr.msrb.gmra.mxu3 %v20233_v33 }
 0x28d   : > { %v3568_v30 = vpop.f32.mrf.mxu2  ;;  %5044 = vmatpush.bf16.msra.mxu3 %v13320_v18  ;;  %v13212_v18 = vor.u32 %v17809_v4, %v13209_v5  ;;  %v17810_v4 = vld [vmem:[%s19135_s8 + $0x58c] sm:$0xf] }
 0x28e   : > { %v3557_v23 = vpop.f32.mrf.mxu1  ;;  %v3583_v11 = vpop.f32.mrf.mxu3  ;;  %v3569_v37 = vadd.f32 %v3568_v30, %v3556_v26  ;;  %v13604_v26 = vor.u32 %v17906_v53, %v13601_v19  ;;  %v13433_v30 = vld [vmem:[%s19135_s8 + $0x760] sm:$0xf0]  ;;  %v13340_v53 = vor.u32 %v17841_v8, %v13337_v58  ;;  %v13127_v19 = vld [vmem:[%s19135_s8 + $0x4d0] sm:$0xf]  ;;  %v13217_v5 = vld [vmem:[%s19135_s8 + $0x5a8] sm:$0xf0] }
 0x28f   : > { %v17865_v23 = vld [vmem:[%s19135_s8 + $0x744] sm:$0xf]  ;;  %v13256_v11 = vor.u32 %v17823_v29, %v13255_v28  ;;  %4974 = vmatmul.bf16.vlgmr.msra.gmra.mxu0 %v20194_v34  ;;  %v13316_v28 = vor.u32 %v17834_v21, %v13313_v25  ;;  %v13121_v21 = vld [vmem:[%s19135_s8 + $0x4e8] sm:$0xf0] }
 0x290   : > { %v3678_v42 = vmax.f32 %v3569_v37, 0.0  ;;  %5037 = vmatpush.bf16.msrb.mxu0 %v13636_v16  ;;  %v13436_v44 = vor.u32 %v17865_v23, %v13433_v30  ;;  %v13160_v16 = vor.u32 %v17799_v12, %v13159_v10  ;;  %v13180_v23 = vor.u32 %v17801_v43, %v13177_v15  ;;  %v17793_v30 = vld [vmem:[%s19135_s8 + $0x504] sm:$0xf]  ;;  %v13185_v12 = vld [vmem:[%s19135_s8 + $0x568] sm:$0xf0] }
 0x291   : > { %5045 = vmatpush.bf16.msra.mxu3 %v13288_v17  ;;  %v13153_v43 = vld [vmem:[%s19135_s8 + $0x528] sm:$0xf0] }
 0x292   : > { %v3682_v50 = vpack.c.bf16 %v3678_v42, %v3678_v42  ;;  %v13276_v42 = vor.u32 %v17825_v22, %v13273_v40  ;;  %v13281_v22 = vld [vmem:[%s19135_s8 + $0x628] sm:$0xf0] }
 0x294   : > { %v3596_v62 = vpop.f32.mrf.mxu0  ;;  %3978 = vmatmul.bf16.vlgmr.msra.gmra.mxu1 %v3682_v50  ;;  %5038 = vmatpush.bf16.msrb.mxu0 %v13604_v26  ;;  %v17817_v50 = vld [vmem:[%s19135_s8 + $0x5c4] sm:$0xf]  ;;  %v13447_v26 = vld [vmem:[%s19135_s8 + $0x750] sm:$0xf] }
 0x295   : > { %4940 = vmatpush.bf16.msra.mxu1 %v13564_v47  ;;  %v3570_v20 = vpop.f32.mrf.mxu2  ;;  %v17815_v47 = vld [vmem:[%s19135_s8 + $0x5ac] sm:$0xf0]  ;;  %5046 = vmatpush.bf16.msra.mxu3 %v13256_v11  ;;  %v13244_v59 = vor.u32 %v17817_v50, %v13241_v52  ;;  %v13369_v62 = vld [vmem:[%s19135_s8 + $0x6e0] sm:$0xf0] }
 0x296   : > { %4928 = vmatpush.bf16.msrb.mxu2 %v13276_v42  ;;  %v13224_v60 = vor.u32 %v17815_v47, %v13223_v45  ;;  %v13511_v20 = vld [vmem:[%s19135_s8 + $0x7d0] sm:$0xf]  ;;  %v13372_v51 = vor.u32 %v17849_v61, %v13369_v62  ;;  %v13145_v11 = vld [vmem:[%s19135_s8 + $0x520] sm:$0xf0]  ;;  %v17818_v42 = vld [vmem:[%s19135_s8 + $0x5cc] sm:$0xf] }
 0x297   : > { %v13512_v7 = vor.u32 %v17887_v3, %v13511_v20  ;;  %v13148_v40 = vor.u32 %v17793_v30, %v13145_v11  ;;  %v17783_v45 = vld [vmem:[%s19135_s8 + $0x4ac] sm:$0xf0]  ;;  %v17785_v52 = vld [vmem:[%s19135_s8 + $0x4c4] sm:$0xf]  ;;  %v3582_v3 = vadd.f32 %v20217_v13, %v1975_v1  ;;  %v17802_v13 = vld [vmem:[%s19135_s8 + $0x54c] sm:$0xf] }
 0x298   : > { %5057 = vmatpush.bf16.msra.mxu0 %v13576_v39  ;;  %v13448_v39 = vor.u32 %v17871_v24, %v13447_v26  ;;  %v13415_v47 = vld [vmem:[%s19135_s8 + $0x710] sm:$0xf]  ;;  %v13116_v61 = vor.u32 %v17785_v52, %v13113_v0  ;;  %v17777_v20 = vld [vmem:[%s19135_s8 + $0x484] sm:$0xf]  ;;  %v13631_v30 = vld [vmem:[%s19135_s8 + $0x8c8] sm:$0xf] }
 0x299   : > { %4941 = vmatpush.bf16.msra.mxu1 %v13532_v46  ;;  %5047 = vmatpush.bf16.msra.mxu3 %v13224_v60  ;;  %v13192_v46 = vor.u32 %v17807_v2, %v13191_v54  ;;  %v13284_v60 = vor.u32 %v17826_v31, %v13281_v22  ;;  %v17863_v50 = vld [vmem:[%s19135_s8 + $0x72c] sm:$0xf0]  ;;  %v3595_v8 = vadd.f32 %v20229_v27, %v3582_v3  ;;  %v17918_v11 = vld [vmem:[%s19135_s8 + $0x8e4] sm:$0xf0]  ;;  %v17915_v31 = vld [vmem:[%s19135_s8 + $0x8d4] sm:$0xf] }
 0x29a   : > { %4929 = vmatpush.bf16.msrb.mxu2 %v13244_v59  ;;  %v13416_v59 = vor.u32 %v17863_v50, %v13415_v47  ;;  %v13383_v62 = vld [vmem:[%s19135_s8 + $0x6d0] sm:$0xf]  ;;  %v13188_v27 = vor.u32 %v17802_v13, %v13185_v12  ;;  %v13641_v22 = vld [vmem:[%s19135_s8 + $0x8f0] sm:$0xf0]  ;;  %v13599_v47 = vld [vmem:[%s19135_s8 + $0x888] sm:$0xf] }
 0x29b   : > { %v13644_v1 = vor.u32 %v17915_v31, %v13641_v22  ;;  %v13583_v0 = vld [vmem:[%s19135_s8 + $0x858] sm:$0xf]  ;;  %v13481_v31 = vld [vmem:[%s19135_s8 + $0x7b0] sm:$0xf0] }
 0x29c   : > { %5058 = vmatpush.bf16.msra.mxu0 %v13544_v56  ;;  %v13249_v56 = vld [vmem:[%s19135_s8 + $0x5e8] sm:$0xf0]  ;;  %v13391_v22 = vld [vmem:[%s19135_s8 + $0x6d8] sm:$0xf] }
 0x29d   : > { %4942 = vmatpush.bf16.msra.mxu1 %v13500_v14  ;;  %v13479_v14 = vld [vmem:[%s19135_s8 + $0x790] sm:$0xf]  ;;  %5048 = vmatpush.bf16.msra.mxu3 %v13192_v46  ;;  %v13252_v2 = vor.u32 %v17818_v42, %v13249_v56  ;;  %v13081_v46 = vld [vmem:[%s19135_s8 + $0x4a0] sm:$0xf0]  ;;  %v17904_v56 = vld [vmem:[%s19135_s8 + $0x874] sm:$0xf0] }
 0x29e   : > { %4930 = vmatpush.bf16.msrb.mxu2 %v13212_v18  ;;  %v13480_v38 = vor.u32 %v17879_v36, %v13479_v14  ;;  %v17847_v18 = vld [vmem:[%s19135_s8 + $0x6ac] sm:$0xf0]  ;;  %v17794_v36 = vld [vmem:[%s19135_s8 + $0x50c] sm:$0xf] }
 0x29f   : > { %13656 = vmatmul.msk.bf16.vlgmr.msrb.gmra.mxu0 %vm1383_vm0, %v20236_v35  ;;  %v13607_v42 = vld [vmem:[%s19135_s8 + $0x890] sm:$0xf] }
 0x2a0   : > { %5059 = vmatpush.bf16.msra.mxu0 %v13512_v7  ;;  %v13351_v7 = vld [vmem:[%s19135_s8 + $0x690] sm:$0xf] }
 0x2a1   : > { %4943 = vmatpush.bf16.msra.mxu1 %v13468_v63  ;;  %v17791_v63 = vld [vmem:[%s19135_s8 + $0x4ec] sm:$0xf0]  ;;  %5049 = vmatpush.bf16.msra.mxu3 %v13160_v16  ;;  %v13352_v58 = vor.u32 %v17847_v18, %v13351_v7  ;;  %v17898_v18 = vld [vmem:[%s19135_s8 + $0x84c] sm:$0xf] }
 0x2a2   : > { %4931 = vmatpush.bf16.msrb.mxu2 %v13180_v23  ;;  %v13128_v29 = vor.u32 %v17791_v63, %v13127_v19  ;;  %v17778_v19 = vld [vmem:[%s19135_s8 + $0x48c] sm:$0xf] }
 0x2a3   : > { %v13089_v63 = vld [vmem:[%s19135_s8 + $0x4a8] sm:$0xf0] }
 0x2a4   : > { %13653 = vmatmul.msk.bf16.vlgmr.msrb.gmra.mxu1 %vm1383_vm0, %v20236_v35  ;;  %5060 = vmatpush.bf16.msra.mxu0 %v13480_v38 }
 0x2a5   : > { %4944 = vmatpush.bf16.msra.mxu1 %v13436_v44  ;;  %v13095_v44 = vld [vmem:[%s19135_s8 + $0x490] sm:$0xf]  ;;  %5050 = vmatpush.bf16.msra.mxu3 %v13128_v29 }
 0x2a6   : > { %v20280_v37 = vpop.f32.mrf.mxu1  ;;  %v20293_v55 = vpop.f32.mrf.mxu3  ;;  %v13096_v49 = vor.u32 %v17783_v45, %v13095_v44  ;;  %4932 = vmatpush.bf16.msrb.mxu2 %v13148_v40  ;;  %v17919_v29 = vld [vmem:[%s19135_s8 + $0x8ec] sm:$0xf0] }
 0x2a7   : > { %v3608_v10 = vadd.f32 %v20280_v37, %v3595_v8  ;;  %v17911_v44 = vld [vmem:[%s19135_s8 + $0x8ac] sm:$0xf0]  ;;  %v13569_v8 = vld [vmem:[%s19135_s8 + $0x868] sm:$0xf0] }
 0x2a8   : > { %5061 = vmatpush.bf16.msra.mxu0 %v13448_v39  ;;  %v13608_v50 = vor.u32 %v17911_v44, %v13607_v42  ;;  %v13572_v13 = vor.u32 %v17898_v18, %v13569_v8  ;;  %v13441_v42 = vld [vmem:[%s19135_s8 + $0x768] sm:$0xf0]  ;;  %v14016_v18 = vld [vmem:[%s19151_s19 + $0x8c0] sm:$0xf] }
 0x2a9   : > { %4945 = vmatpush.bf16.msra.mxu1 %v13404_v57  ;;  %v17855_v57 = vld [vmem:[%s19135_s8 + $0x6ec] sm:$0xf0]  ;;  %5051 = vmatpush.bf16.msra.mxu3 %v13096_v49  ;;  %v13609_v49 = vld [vmem:[%s19135_s8 + $0x8b0] sm:$0xf0]  ;;  %v17850_v8 = vld [vmem:[%s19135_s8 + $0x6cc] sm:$0xf] }
 0x2aa   : > { %v13384_v54 = vor.u32 %v17855_v57, %v13383_v62  ;;  %4933 = vmatpush.bf16.msrb.mxu2 %v13116_v61  ;;  %v13584_v62 = vor.u32 %v17904_v56, %v13583_v0  ;;  %v18724_v57 = vld [vmem:[%s20127_s22] ss:$0 sm:$0xff]  ;;  %v13327_v0 = vld [vmem:[%s19135_s8 + $0x658] sm:$0xf] }
 0x2ab   : > { %v17840_v56 = vld [vmem:[%s19135_s8 + $0x674] sm:$0xf0] }
 0x2ac   : > { %v20307_v9 = vpop.f32.mrf.mxu0  ;;  %5062 = vmatpush.bf16.msra.mxu0 %v13416_v59  ;;  %5052 = vmatmul.bf16.vlgmr.msra.gmra.mxu3 %v20194_v34 }
 0x2ad   : > { %v20312_v32 = vpop.f32.mrf.mxu2  ;;  %4946 = vmatpush.bf16.msra.mxu1 %v13372_v51  ;;  %v13220_v51 = vor.u32 %v17810_v4, %v13217_v5  ;;  %5115 = vmatpush.bf16.msrb.mxu3 %v13644_v1  ;;  %v13519_v5 = vld [vmem:[%s19135_s8 + $0x7d8] sm:$0xf] }
 0x2ae   : > { %v3609_v6 = vpop.f32.mrf.mxu1  ;;  %v3635_v17 = vpop.f32.mrf.mxu3  ;;  %v3621_v14 = vadd.f32 %v20312_v32, %v3608_v10  ;;  %v17786_v32 = vld [vmem:[%s19135_s8 + $0x4cc] sm:$0xf]  ;;  %v13487_v10 = vld [vmem:[%s19135_s8 + $0x798] sm:$0xf] }
 0x2af   : > { %v13084_v6 = vor.u32 %v17777_v20, %v13081_v46  ;;  %v13156_v17 = vor.u32 %v17794_v36, %v13153_v43  ;;  %v13124_v23 = vor.u32 %v17786_v32, %v13121_v21  ;;  %v17856_v1 = vld [vmem:[%s19135_s8 + $0x6f4] sm:$0xf0] }
 0x2b0   : > { %5063 = vmatpush.bf16.msra.mxu0 %v13384_v54  ;;  %v3634_v37 = vadd.f32 %v20293_v55, %v3621_v14  ;;  %v13551_v54 = vld [vmem:[%s19135_s8 + $0x818] sm:$0xf]  ;;  %v13392_v44 = vor.u32 %v17856_v1, %v13391_v22  ;;  %v13289_v22 = vld [vmem:[%s19135_s8 + $0x630] sm:$0xf0] }
 0x2b1   : > { %4947 = vmatpush.bf16.msra.mxu1 %v13340_v53  ;;  %4934 = vmatpush.bf16.msrb.mxu2 %v13084_v6  ;;  %v17888_v6 = vld [vmem:[%s19135_s8 + $0x7f4] sm:$0xf0] }
 0x2b2   : > { %v3647_v25 = vadd.f32 %v20307_v9, %v3634_v37  ;;  %v13092_v9 = vor.u32 %v17778_v19, %v13089_v63  ;;  %v13520_v7 = vor.u32 %v17888_v6, %v13519_v5  ;;  %v17880_v14 = vld [vmem:[%s19135_s8 + $0x7b4] sm:$0xf0]  ;;  %v13545_v37 = vld [vmem:[%s19135_s8 + $0x830] sm:$0xf0] }
 0x2b3   : > { %v13488_v36 = vor.u32 %v17880_v14, %v13487_v10  ;;  %v17883_v19 = vld [vmem:[%s19135_s8 + $0x7d4] sm:$0xf]  ;;  %v13295_v6 = vld [vmem:[%s19135_s8 + $0x618] sm:$0xf]  ;;  %v17947_v10 = vld [vmem:[%s19151_s19 + $0x8cc] sm:$0xf0] }
 0x2b4   : > { %v3648_v41 = vpop.f32.mrf.mxu0  ;;  %4948 = vmatmul.bf16.vlgmr.msra.gmra.mxu1 %v20233_v33  ;;  %5064 = vmatpush.bf16.msra.mxu0 %v13352_v58  ;;  %v17899_v58 = vld [vmem:[%s19135_s8 + $0x854] sm:$0xf] }
 0x2b5   : > { %5005 = vmatpush.bf16.msrb.mxu1 %v13316_v28  ;;  %v3622_v48 = vpop.f32.mrf.mxu2  ;;  %v13639_v28 = vld [vmem:[%s19135_s8 + $0x8d0] sm:$0xf]  ;;  %v13632_v41 = vor.u32 %v17918_v11, %v13631_v30  ;;  %v13513_v63 = vld [vmem:[%s19135_s8 + $0x7f0] sm:$0xf0]  ;;  %v13473_v30 = vld [vmem:[%s19135_s8 + $0x7a8] sm:$0xf0] }
 0x2b6   : > { %v13640_v40 = vor.u32 %v17919_v29, %v13639_v28  ;;  %v17910_v48 = vld [vmem:[%s19135_s8 + $0x8a4] sm:$0xf0]  ;;  %v13516_v28 = vor.u32 %v17883_v19, %v13513_v63  ;;  %v17864_v29 = vld [vmem:[%s19135_s8 + $0x734] sm:$0xf0]  ;;  %v13385_v14 = vld [vmem:[%s19135_s8 + $0x6f0] sm:$0xf0] }
 0x2b7   : > { %5065 = vmatmul.bf16.vlgmr.msra.gmra.mxu0 %v20233_v33  ;;  %v13600_v61 = vor.u32 %v17910_v48, %v13599_v47  ;;  %v17867_v47 = vld [vmem:[%s19135_s8 + $0x754] sm:$0xf] }
 0x2b8   : > { %v13449_v48 = vld [vmem:[%s19135_s8 + $0x770] sm:$0xf0] }
 0x2b9   : > { %5006 = vmatpush.bf16.msrb.mxu1 %v13284_v60  ;;  %v17907_v60 = vld [vmem:[%s19135_s8 + $0x894] sm:$0xf] }
 0x2ba   : > { %v13612_v52 = vor.u32 %v17907_v60, %v13609_v49  ;;  %v13359_v60 = vld [vmem:[%s19135_s8 + $0x698] sm:$0xf]  ;;  %v13353_v19 = vld [vmem:[%s19135_s8 + $0x6b0] sm:$0xf0] }
 0x2bc   : > { %5116 = vmatpush.bf16.msrb.mxu3 %v13612_v52  ;;  %v17848_v52 = vld [vmem:[%s19135_s8 + $0x6b4] sm:$0xf0] }
 0x2bd   : > { %5007 = vmatpush.bf16.msrb.mxu1 %v13252_v2  ;;  %v17896_v2 = vld [vmem:[%s19135_s8 + $0x834] sm:$0xf0] }
 0x2be   : > { %v13552_v20 = vor.u32 %v17896_v2, %v13551_v54  ;;  %v17951_v54 = vld [vmem:[%s19151_s19 + $0x8ec] sm:$0xf0] }
 0x2bf   : > { %13658 = vmatmul.msk.bf16.vlgmr.msrb.gmra.mxu3 %vm1383_vm0, %v20236_v35 }
 0x2c0   : > { %5135 = vmatpush.bf16.msra.mxu3 %v13584_v62  ;;  %v13328_v62 = vor.u32 %v17840_v56, %v13327_v0  ;;  %v17935_v0 = vld [vmem:[%s19151_s19 + $0x86c] sm:$0xf0] }
 0x2c1   : > { %5008 = vmatpush.bf16.msrb.mxu1 %v13220_v51  ;;  %v13577_v51 = vld [vmem:[%s19135_s8 + $0x870] sm:$0xf0] }
 0x2c2   : > { %v13580_v12 = vor.u32 %v17899_v58, %v13577_v51  ;;  %5122 = vmatpush.bf16.msrb.mxu0 %v13328_v62  ;;  %v13377_v58 = vld [vmem:[%s19135_s8 + $0x6e8] sm:$0xf0]  ;;  %v17820_v62 = vld [vmem:[%s19135_s8 + $0x5dc] sm:$0xf] }
 0x2c4   : > { %5136 = vmatpush.bf16.msra.mxu3 %v13552_v20  ;;  %v17859_v20 = vld [vmem:[%s19135_s8 + $0x714] sm:$0xf] }
 0x2c5   : > { %5009 = vmatpush.bf16.msrb.mxu1 %v13188_v27  ;;  %v13537_v27 = vld [vmem:[%s19135_s8 + $0x828] sm:$0xf0] }
 0x2c6   : > { %v3659_v16 = vpop.f32.mrf.mxu1  ;;  %v3953_v15 = vpop.f32.mrf.mxu3 }
 0x2c7   : > { %v3660_v53 = vadd.f32 %v3659_v16, %v3647_v25  ;;  %v3954_v46 = vadd.f32 %v18724_v57, %v3953_v15  ;;  %v17890_v16 = vld [vmem:[%s19135_s8 + $0x80c] sm:$0xf]  ;;  %v17891_v15 = vld [vmem:[%s19135_s8 + $0x814] sm:$0xf]  ;;  %v17872_v25 = vld [vmem:[%s19135_s8 + $0x774] sm:$0xf0] }
 0x2c8   : > { %5137 = vmatpush.bf16.msra.mxu3 %v13520_v7  ;;  %v13540_v32 = vor.u32 %v17890_v16, %v13537_v27  ;;  %v13548_v21 = vor.u32 %v17891_v15, %v13545_v37  ;;  %v14032_v57 = vld [vmem:[%s19151_s19 + $0x8e0] sm:$0xf]  ;;  %v17832_v7 = vld [vmem:[%s19135_s8 + $0x634] sm:$0xf0]  ;;  %v13380_v16 = vor.u32 %v17850_v8, %v13377_v58  ;;  %v17842_v37 = vld [vmem:[%s19135_s8 + $0x68c] sm:$0xf] }
 0x2c9   : > { %5010 = vmatpush.bf16.msrb.mxu1 %v13156_v17  ;;  %v13455_v17 = vld [vmem:[%s19135_s8 + $0x758] sm:$0xf]  ;;  %v14033_v2 = vor.u32 %v17951_v54, %v14032_v57  ;;  %v13296_v51 = vor.u32 %v17832_v7, %v13295_v6  ;;  %v14000_v15 = vld [vmem:[%s19151_s19 + $0x8a0] sm:$0xf]  ;;  %v13265_v54 = vld [vmem:[%s19135_s8 + $0x5f8] sm:$0xf0] }
 0x2ca   : > { %v13225_v6 = vld [vmem:[%s19135_s8 + $0x5b0] sm:$0xf0]  ;;  %v17792_v8 = vld [vmem:[%s19135_s8 + $0x4f4] sm:$0xf0]  ;;  %v17812_v58 = vld [vmem:[%s19135_s8 + $0x59c] sm:$0xf] }
 0x2cb   : > { %v3672_v26 = vpop.f32.mrf.mxu2  ;;  %5123 = vmatpush.bf16.msrb.mxu0 %v13296_v51 }
 0x2cc   : > { %v3673_v24 = vadd.f32 %v3672_v26, %v3660_v53  ;;  %5138 = vmatpush.bf16.msra.mxu3 %v13488_v36  ;;  %v13456_v53 = vor.u32 %v17872_v25, %v13455_v17  ;;  %v13423_v26 = vld [vmem:[%s19135_s8 + $0x718] sm:$0xf]  ;;  %v13345_v17 = vld [vmem:[%s19135_s8 + $0x6a8] sm:$0xf0]  ;;  %v17835_v25 = vld [vmem:[%s19135_s8 + $0x654] sm:$0xf] }
 0x2cd   : > { %5011 = vmatpush.bf16.msrb.mxu1 %v13124_v23  ;;  %v13505_v23 = vld [vmem:[%s19135_s8 + $0x7e8] sm:$0xf0]  ;;  %v13424_v11 = vor.u32 %v17864_v29, %v13423_v26  ;;  %v13263_v36 = vld [vmem:[%s19135_s8 + $0x5d8] sm:$0xf]  ;;  %v13348_v63 = vor.u32 %v17842_v37, %v13345_v17 }
 0x2ce   : > { %v3661_v38 = vpop.f32.mrf.mxu1  ;;  %v3955_v55 = vpop.f32.mrf.mxu3  ;;  %v3679_v39 = vmax.f32 %v3673_v24, 0.0  ;;  %v17874_v24 = vld [vmem:[%s19135_s8 + $0x78c] sm:$0xf]  ;;  %v13103_v37 = vld [vmem:[%s19135_s8 + $0x498] sm:$0xf] }
 0x2cf   : > { %v17882_v38 = vld [vmem:[%s19135_s8 + $0x7cc] sm:$0xf]  ;;  %v17784_v17 = vld [vmem:[%s19135_s8 + $0x4b4] sm:$0xf0] }
 0x2d0   : > { %v3683_v45 = vpack.c.bf16 %v3679_v39, %v3679_v39  ;;  %5139 = vmatpush.bf16.msra.mxu3 %v13456_v53  ;;  %v13508_v55 = vor.u32 %v17882_v38, %v13505_v23  ;;  %v13476_v39 = vor.u32 %v17874_v24, %v13473_v30  ;;  %v13321_v38 = vld [vmem:[%s19135_s8 + $0x670] sm:$0xf0]  ;;  %v17836_v30 = vld [vmem:[%s19135_s8 + $0x65c] sm:$0xf] }
 0x2d1   : > { %5012 = vmatpush.bf16.msrb.mxu1 %v13092_v9  ;;  %v17875_v9 = vld [vmem:[%s19135_s8 + $0x794] sm:$0xf]  ;;  %v13324_v29 = vor.u32 %v17835_v25, %v13321_v38  ;;  %v13201_v25 = vld [vmem:[%s19135_s8 + $0x578] sm:$0xf0] }
 0x2d2   : > { %3991 = vmatmul.bf16.vlgmr.msra.gmra.mxu2 %v3683_v45  ;;  %v3966_v3 = vpop.f32.mrf.mxu0  ;;  %v17858_v45 = vld [vmem:[%s19135_s8 + $0x70c] sm:$0xf]  ;;  %v17843_v53 = vld [vmem:[%s19135_s8 + $0x694] sm:$0xf] }
 0x2d3   : > { %v3674_v59 = vpop.f32.mrf.mxu2  ;;  %4998 = vmatpush.bf16.msra.mxu2 %v13632_v41  ;;  %v20383_v4 = vadd.f32 %v3966_v3, %v3954_v46  ;;  %v17866_v41 = vld [vmem:[%s19135_s8 + $0x74c] sm:$0xf]  ;;  %v13417_v46 = vld [vmem:[%s19135_s8 + $0x730] sm:$0xf0]  ;;  %v13356_v26 = vor.u32 %v17843_v53, %v13353_v19 }
 0x2d4   : > { %5013 = vmatmul.bf16.vlgmr.msrb.gmra.mxu1 %v20194_v34  ;;  %5140 = vmatpush.bf16.msra.mxu3 %v13424_v11  ;;  %v13444_v49 = vor.u32 %v17866_v41, %v13441_v42  ;;  %v13409_v59 = vld [vmem:[%s19135_s8 + $0x728] sm:$0xf0]  ;;  %v13420_v5 = vor.u32 %v17859_v20, %v13417_v46  ;;  %v13329_v11 = vld [vmem:[%s19135_s8 + $0x678] sm:$0xf0]  ;;  %v13199_v41 = vld [vmem:[%s19135_s8 + $0x558] sm:$0xf]  ;;  %v13268_v20 = vor.u32 %v17820_v62, %v13265_v54 }
 0x2d5   : > { %5076 = vmatpush.bf16.msra.mxu1 %v13640_v40  ;;  %v13484_v40 = vor.u32 %v17875_v9, %v13481_v31  ;;  %v13412_v3 = vor.u32 %v17858_v45, %v13409_v59  ;;  %v13984_v9 = vld [vmem:[%s19151_s19 + $0x880] sm:$0xf]  ;;  %v17827_v31 = vld [vmem:[%s19135_s8 + $0x614] sm:$0xf]  ;;  %v17808_v42 = vld [vmem:[%s19135_s8 + $0x574] sm:$0xf0] }
 0x2d6   : > { %v13292_v45 = vor.u32 %v17827_v31, %v13289_v22  ;;  %v13167_v59 = vld [vmem:[%s19135_s8 + $0x518] sm:$0xf]  ;;  %v13952_v46 = vld [vmem:[%s19151_s19 + $0x840] sm:$0xf]  ;;  %v13161_v53 = vld [vmem:[%s19135_s8 + $0x530] sm:$0xf0] }
 0x2d7   : > { %4999 = vmatpush.bf16.msra.mxu2 %v13600_v61  ;;  %v13360_v61 = vor.u32 %v17848_v52, %v13359_v60  ;;  %v13297_v60 = vld [vmem:[%s19135_s8 + $0x638] sm:$0xf0]  ;;  %v13968_v52 = vld [vmem:[%s19151_s19 + $0x860] sm:$0xf]  ;;  %v17920_v62 = vld [vmem:[%s19135_s8 + $0x8f4] sm:$0xf0] }
 0x2d8   : > { %5141 = vmatpush.bf16.msra.mxu3 %v13392_v44  ;;  %v17828_v44 = vld [vmem:[%s19135_s8 + $0x61c] sm:$0xf]  ;;  %v13969_v56 = vor.u32 %v17935_v0, %v13968_v52  ;;  %v14512_v52 = vld [vmem:[%s19151_s19 + $0xca0] sm:$0xf]  ;;  %v18071_v0 = vld [vmem:[%s19151_s19 + $0xcac] sm:$0xf0] }
 0x2d9   : > { %5077 = vmatpush.bf16.msra.mxu1 %v13608_v50  ;;  %v13452_v50 = vor.u32 %v17867_v47, %v13449_v48  ;;  %v17819_v47 = vld [vmem:[%s19135_s8 + $0x5d4] sm:$0xf]  ;;  %v13200_v48 = vor.u32 %v17808_v42, %v13199_v41  ;;  %v14513_v54 = vor.u32 %v18071_v0, %v14512_v52  ;;  %v14034_v52 = vld [vmem:[%s19151_s19 + $0x8f0] sm:$0xf0] }
 0x2da   : > { %v3968_v43 = vpop.f32.mrf.mxu0  ;;  %v13129_v41 = vld [vmem:[%s19135_s8 + $0x4f0] sm:$0xf0] }
 0x2db   : > { %v17824_v43 = vld [vmem:[%s19135_s8 + $0x5f4] sm:$0xf0] }
 0x2dc   : > { %5142 = vmatpush.bf16.msra.mxu3 %v13360_v61  ;;  %v17800_v61 = vld [vmem:[%s19135_s8 + $0x534] sm:$0xf0] }
 0x2dd   : > { %5096 = vmatpush.bf16.msrb.mxu1 %v13580_v12  ;;  %v17851_v12 = vld [vmem:[%s19135_s8 + $0x6d4] sm:$0xf]  ;;  %v13168_v57 = vor.u32 %v17800_v61, %v13167_v59  ;;  %v13647_v61 = vld [vmem:[%s19135_s8 + $0x8d8] sm:$0xf] }
 0x2de   : > { %v13388_v27 = vor.u32 %v17851_v12, %v13385_v14  ;;  %v13936_v14 = vld [vmem:[%s19151_s19 + $0x820] sm:$0xf]  ;;  %v13097_v59 = vld [vmem:[%s19135_s8 + $0x4b0] sm:$0xf0] }
 0x2df   : > { %5143 = vmatmul.bf16.vlgmr.msra.gmra.mxu3 %v20233_v33 }
 0x2e0   : > { %6764 = vmatpush.bf16.msrb.mxu3 %v14033_v2 }
 0x2e1   : > { %5097 = vmatpush.bf16.msrb.mxu1 %v13548_v21  ;;  %v17943_v21 = vld [vmem:[%s19151_s19 + $0x8ac] sm:$0xf0] }
 0x2e2   : > { %4935 = vmatmul.bf16.vlgmr.msrb.gmra.mxu2 %v20194_v34  ;;  %v14001_v23 = vor.u32 %v17943_v21, %v14000_v15  ;;  %v17804_v21 = vld [vmem:[%s19135_s8 + $0x55c] sm:$0xf] }
 0x2e3   : > { %5018 = vmatpush.bf16.msrb.mxu2 %v13572_v13  ;;  %v14017_v13 = vor.u32 %v17947_v10, %v14016_v18  ;;  %v13135_v18 = vld [vmem:[%s19135_s8 + $0x4d8] sm:$0xf]  ;;  %v13233_v10 = vld [vmem:[%s19135_s8 + $0x5b8] sm:$0xf0]  ;;  %v13204_v19 = vor.u32 %v17804_v21, %v13201_v25  ;;  %v18063_v21 = vld [vmem:[%s19151_s19 + $0xc6c] sm:$0xf0] }
 0x2e4   : > { %13657 = vmatmul.msk.bf16.vlgmr.msra.gmra.mxu1 %vm1383_vm0, %v20236_v35  ;;  %v13136_v51 = vor.u32 %v17792_v8, %v13135_v18  ;;  %v13236_v12 = vor.u32 %v17812_v58, %v13233_v10  ;;  %v14496_v18 = vld [vmem:[%s19151_s19 + $0xc80] sm:$0xf]  ;;  %v18067_v8 = vld [vmem:[%s19151_s19 + $0xc8c] sm:$0xf0]  ;;  %v13648_v58 = vor.u32 %v17920_v62, %v13647_v61  ;;  %v13615_v10 = vld [vmem:[%s19135_s8 + $0x898] sm:$0xf] }
 0x2e5   : > { %5098 = vmatpush.bf16.msrb.mxu1 %v13516_v28  ;;  %6765 = vmatpush.bf16.msrb.mxu3 %v14017_v13  ;;  %v17816_v28 = vld [vmem:[%s19135_s8 + $0x5b4] sm:$0xf0] }
 0x2e7   : > { %5019 = vmatpush.bf16.msrb.mxu2 %v13540_v32  ;;  %v13264_v32 = vor.u32 %v17824_v43, %v13263_v36  ;;  %v13193_v36 = vld [vmem:[%s19135_s8 + $0x570] sm:$0xf0]  ;;  %v20483_v15 = vpop.f32.mrf.mxu3 }
 0x2e9   : > { %5099 = vmatpush.bf16.msrb.mxu1 %v13484_v40  ;;  %5124 = vmatpush.bf16.msrb.mxu0 %v13264_v32  ;;  %v17939_v40 = vld [vmem:[%s19151_s19 + $0x88c] sm:$0xf0]  ;;  %v13104_v32 = vor.u32 %v17784_v17, %v13103_v37 }
 0x2ea   : > { %6766 = vmatpush.bf16.msrb.mxu3 %v14001_v23  ;;  %v13985_v1 = vor.u32 %v17939_v40, %v13984_v9  ;;  %v17795_v23 = vld [vmem:[%s19135_s8 + $0x514] sm:$0xf]  ;;  %v13169_v9 = vld [vmem:[%s19135_s8 + $0x538] sm:$0xf0]  ;;  %v18075_v40 = vld [vmem:[%s19151_s19 + $0xccc] sm:$0xf0] }
 0x2eb   : > { %5020 = vmatpush.bf16.msrb.mxu2 %v13508_v55  ;;  %v13231_v55 = vld [vmem:[%s19135_s8 + $0x598] sm:$0xf]  ;;  %v13164_v31 = vor.u32 %v17795_v23, %v13161_v53 }
 0x2ec   : > { %v13232_v24 = vor.u32 %v17816_v28, %v13231_v55  ;;  %v14544_v55 = vld [vmem:[%s19151_s19 + $0xce0] sm:$0xf]  ;;  %v18079_v28 = vld [vmem:[%s19151_s19 + $0xcec] sm:$0xf0] }
 0x2ed   : > { %5100 = vmatpush.bf16.msrb.mxu1 %v13452_v50  ;;  %v13300_v50 = vor.u32 %v17828_v44, %v13297_v60 }
 0x2ee   : > { %5125 = vmatpush.bf16.msrb.mxu0 %v13232_v24  ;;  %6767 = vmatpush.bf16.msrb.mxu3 %v13985_v1  ;;  %v14545_v24 = vor.u32 %v18079_v28, %v14544_v55  ;;  %v17787_v1 = vld [vmem:[%s19135_s8 + $0x4d4] sm:$0xf]  ;;  %v14464_v55 = vld [vmem:[%s19151_s19 + $0xc40] sm:$0xf]  ;;  %v18059_v28 = vld [vmem:[%s19151_s19 + $0xc4c] sm:$0xf0] }
 0x2ef   : > { %5021 = vmatpush.bf16.msrb.mxu2 %v13476_v39  ;;  %v13332_v39 = vor.u32 %v17836_v30, %v13329_v11  ;;  %v20495_v30 = vpop.f32.mrf.mxu0  ;;  %v17796_v11 = vld [vmem:[%s19135_s8 + $0x51c] sm:$0xf]  ;;  %v4899_v44 = vpop.f32.mrf.mxu3  ;;  %v13132_v60 = vor.u32 %v17787_v1, %v13129_v41 }
 0x2f0   : > { %v13172_v22 = vor.u32 %v17796_v11, %v13169_v9  ;;  %v13521_v11 = vld [vmem:[%s19135_s8 + $0x7f8] sm:$0xf0]  ;;  %v14465_v9 = vor.u32 %v18059_v28, %v14464_v55  ;;  %v14128_v28 = vld [vmem:[%s19151_s19 + $0x9a0] sm:$0xf] }
 0x2f1   : > { %5101 = vmatpush.bf16.msrb.mxu1 %v13420_v5  ;;  %v17811_v5 = vld [vmem:[%s19135_s8 + $0x594] sm:$0xf]  ;;  %v17876_v41 = vld [vmem:[%s19135_s8 + $0x79c] sm:$0xf] }
 0x2f2   : > { %13655 = vmatmul.msk.bf16.vlgmr.msra.gmra.mxu2 %vm1383_vm0, %v20236_v35  ;;  %5126 = vmatpush.bf16.msrb.mxu0 %v13200_v48  ;;  %v13228_v13 = vor.u32 %v17811_v5, %v13225_v6  ;;  %v13649_v5 = vld [vmem:[%s19135_s8 + $0x8f8] sm:$0xf0] }
 0x2f3   : > { %5022 = vmatpush.bf16.msrb.mxu2 %v13444_v49  ;;  %v13257_v49 = vld [vmem:[%s19135_s8 + $0x5f0] sm:$0xf0]  ;;  %6768 = vmatpush.bf16.msrb.mxu3 %v13969_v56 }
 0x2f4   : > { %v13260_v2 = vor.u32 %v17819_v47, %v13257_v49  ;;  %v13137_v47 = vld [vmem:[%s19135_s8 + $0x4f8] sm:$0xf0]  ;;  %v17779_v49 = vld [vmem:[%s19135_s8 + $0x494] sm:$0xf] }
 0x2f5   : > { %5102 = vmatpush.bf16.msrb.mxu1 %v13388_v27  ;;  %v17803_v27 = vld [vmem:[%s19135_s8 + $0x554] sm:$0xf] }
 0x2f6   : > { %5127 = vmatpush.bf16.msrb.mxu0 %v13168_v57  ;;  %v13196_v38 = vor.u32 %v17803_v27, %v13193_v36  ;;  %v20516_v57 = vld [vmem:[%s19143_s27 + $0x8] sm:$0xff]  ;;  %v13585_v27 = vld [vmem:[%s19135_s8 + $0x878] sm:$0xf0] }
 0x2f7   : > { %5023 = vmatpush.bf16.msrb.mxu2 %v13412_v3  ;;  %v17931_v3 = vld [vmem:[%s19151_s19 + $0x84c] sm:$0xf0]  ;;  %v17908_v36 = vld [vmem:[%s19135_s8 + $0x89c] sm:$0xf] }
 0x2f8   : > { %v13953_v7 = vor.u32 %v17931_v3, %v13952_v46  ;;  %v4912_v46 = vpop.f32.mrf.mxu0  ;;  %v17916_v3 = vld [vmem:[%s19135_s8 + $0x8dc] sm:$0xf] }
 0x2f9   : > { %5103 = vmatpush.bf16.msrb.mxu1 %v13356_v26  ;;  %v17923_v26 = vld [vmem:[%s19151_s19 + $0x80c] sm:$0xf0] }
 0x2fa   : > { %6769 = vmatpush.bf16.msrb.mxu3 %v13953_v7  ;;  %5128 = vmatpush.bf16.msrb.mxu0 %v13136_v51  ;;  %v13652_v7 = vor.u32 %v17916_v3, %v13649_v5  ;;  %v4144_v51 = vperm.slane %v20516_v57, 0  ;;  %v17945_v5 = vld [vmem:[%s19151_s19 + $0x8c4] sm:$0xf] }
 0x2fb   : > { %5024 = vmatpush.bf16.msrb.mxu2 %v13380_v16  ;;  %v17927_v16 = vld [vmem:[%s19151_s19 + $0x82c] sm:$0xf0] }
 0x2fc   : > { %5104 = vmatmul.bf16.vlgmr.msrb.gmra.mxu1 %v20233_v33  ;;  %v13937_v43 = vor.u32 %v17927_v16, %v13936_v14  ;;  %v14497_v14 = vor.u32 %v18067_v8, %v14496_v18  ;;  %v20528_v16 = vpop.f32.mrf.mxu3  ;;  %v13425_v18 = vld [vmem:[%s19135_s8 + $0x738] sm:$0xf0] }
 0x2fd   : > { %5161 = vmatpush.bf16.msra.mxu1 %v13332_v39  ;;  %v14528_v39 = vld [vmem:[%s19151_s19 + $0xcc0] sm:$0xf] }
 0x2fe   : > { %6770 = vmatpush.bf16.msrb.mxu3 %v13937_v43  ;;  %5129 = vmatpush.bf16.msrb.mxu0 %v13104_v32  ;;  %v14529_v42 = vor.u32 %v18075_v40, %v14528_v39  ;;  %v13617_v43 = vld [vmem:[%s19135_s8 + $0x8b8] sm:$0xf0]  ;;  %v14480_v32 = vld [vmem:[%s19151_s19 + $0xc60] sm:$0xf] }
 0x2ff   : > { %5025 = vmatpush.bf16.msrb.mxu2 %v13348_v63  ;;  %v13920_v63 = vld [vmem:[%s19151_s19 + $0x800] sm:$0xf]  ;;  %v13620_v17 = vor.u32 %v17908_v36, %v13617_v43  ;;  %v14481_v53 = vor.u32 %v18063_v21, %v14480_v32  ;;  %v17852_v36 = vld [vmem:[%s19135_s8 + $0x6dc] sm:$0xf]  ;;  %v17979_v32 = vld [vmem:[%s19151_s19 + $0x9cc] sm:$0xf0] }
 0x300   : > { %v13393_v43 = vld [vmem:[%s19135_s8 + $0x6f8] sm:$0xf0] }
 0x301   : > { %5162 = vmatpush.bf16.msra.mxu1 %v13300_v50  ;;  %5130 = vmatmul.bf16.vlgmr.msrb.gmra.mxu0 %v20194_v34 }
 0x302   : > { %5026 = vmatmul.bf16.vlgmr.msrb.gmra.mxu2 %v20233_v33  ;;  %5193 = vmatpush.bf16.msra.mxu0 %v13652_v7  ;;  %v17860_v7 = vld [vmem:[%s19135_s8 + $0x71c] sm:$0xf] }
 0x303   : > { %5083 = vmatpush.bf16.msra.mxu2 %v13324_v29  ;;  %v13921_v29 = vor.u32 %v17923_v26, %v13920_v63  ;;  %v13553_v63 = vld [vmem:[%s19135_s8 + $0x838] sm:$0xf0] }
 0x305   : > { %5163 = vmatpush.bf16.msra.mxu1 %v13268_v20  ;;  %6771 = vmatpush.bf16.msrb.mxu3 %v13921_v29  ;;  %v13105_v20 = vld [vmem:[%s19135_s8 + $0x4b8] sm:$0xf0] }
 0x306   : > { %5194 = vmatpush.bf16.msra.mxu0 %v13620_v17  ;;  %v14144_v17 = vld [vmem:[%s19151_s19 + $0x9c0] sm:$0xf] }
 0x307   : > { %5084 = vmatpush.bf16.msra.mxu2 %v13292_v45  ;;  %v17788_v45 = vld [vmem:[%s19135_s8 + $0x4dc] sm:$0xf] }
 0x308   : > { %v13140_v50 = vor.u32 %v17788_v45, %v13137_v47 }
 0x309   : > { %5164 = vmatpush.bf16.msra.mxu1 %v13236_v12  ;;  %6816 = vmatpush.bf16.msra.mxu3 %v14545_v24  ;;  %v17900_v12 = vld [vmem:[%s19135_s8 + $0x85c] sm:$0xf] }
 0x30a   : > { %v13588_v23 = vor.u32 %v17900_v12, %v13585_v27  ;;  %v17884_v24 = vld [vmem:[%s19135_s8 + $0x7dc] sm:$0xf]  ;;  %v17941_v12 = vld [vmem:[%s19151_s19 + $0x8a4] sm:$0xf]  ;;  %v13428_v27 = vor.u32 %v17860_v7, %v13425_v18 }
 0x30b   : > { %5085 = vmatpush.bf16.msra.mxu2 %v13260_v2  ;;  %v17780_v2 = vld [vmem:[%s19135_s8 + $0x49c] sm:$0xf]  ;;  %v13524_v1 = vor.u32 %v17884_v24, %v13521_v11  ;;  %v17933_v24 = vld [vmem:[%s19151_s19 + $0x864] sm:$0xf]  ;;  %v13970_v11 = vld [vmem:[%s19151_s19 + $0x870] sm:$0xf0] }
 0x30c   : > { %v13108_v6 = vor.u32 %v17780_v2, %v13105_v20  ;;  %v4975_v26 = vpop.f32.mrf.mxu0  ;;  %v13457_v2 = vld [vmem:[%s19135_s8 + $0x778] sm:$0xf0]  ;;  %v17921_v18 = vld [vmem:[%s19151_s19 + $0x804] sm:$0xf] }
 0x30d   : > { %5165 = vmatpush.bf16.msra.mxu1 %v13204_v19  ;;  %6817 = vmatpush.bf16.msra.mxu3 %v14529_v42  ;;  %v17892_v19 = vld [vmem:[%s19135_s8 + $0x81c] sm:$0xf] }
 0x30e   : > { %v13556_v29 = vor.u32 %v17892_v19, %v13553_v63  ;;  %v13489_v42 = vld [vmem:[%s19135_s8 + $0x7b8] sm:$0xf0] }
 0x30f   : > { %5086 = vmatpush.bf16.msra.mxu2 %v13228_v13  ;;  %v17912_v13 = vld [vmem:[%s19135_s8 + $0x8b4] sm:$0xf0]  ;;  %v17844_v19 = vld [vmem:[%s19135_s8 + $0x69c] sm:$0xf] }
 0x310   : > { %v13616_v25 = vor.u32 %v17912_v13, %v13615_v10  ;;  %v17983_v10 = vld [vmem:[%s19151_s19 + $0x9ec] sm:$0xf0]  ;;  %v13361_v63 = vld [vmem:[%s19135_s8 + $0x6b8] sm:$0xf0] }
 0x311   : > { %v3979_v48 = vpop.f32.mrf.mxu1  ;;  %5166 = vmatpush.bf16.msra.mxu1 %v13172_v22  ;;  %6818 = vmatpush.bf16.msra.mxu3 %v14513_v54  ;;  %v4146_v22 = vperm.slane %v20516_v57, 2  ;;  %v17868_v54 = vld [vmem:[%s19135_s8 + $0x75c] sm:$0xf] }
 0x312   : > { %v20510_v56 = vadd.f32 %v3979_v48, %v20383_v4  ;;  %v13100_v4 = vor.u32 %v17779_v49, %v13097_v59  ;;  %13660 = vmatmul.msk.bf16.vlgmr.msra.gmra.mxu0 %vm1383_vm0, %v20236_v35  ;;  %v18051_v49 = vld [vmem:[%s19151_s19 + $0xc0c] sm:$0xf0]  ;;  %v13492_v59 = vor.u32 %v17876_v41, %v13489_v42  ;;  %v17929_v42 = vld [vmem:[%s19151_s19 + $0x844] sm:$0xf] }
 0x313   : > { %5087 = vmatpush.bf16.msra.mxu2 %v13196_v38  ;;  %v4898_v38 = vadd.f32 %v20483_v15, %v4144_v51  ;;  %v4976_v47 = vadd.f32 %v4975_v26, %v4146_v22  ;;  %v14160_v51 = vld [vmem:[%s19151_s19 + $0x9e0] sm:$0xf] }
 0x314   : > { %v4977_v48 = vpop.f32.mrf.mxu0  ;;  %v14161_v13 = vor.u32 %v17983_v10, %v14160_v51  ;;  %v14112_v22 = vld [vmem:[%s19151_s19 + $0x980] sm:$0xf]  ;;  %v17959_v10 = vld [vmem:[%s19151_s19 + $0x92c] sm:$0xf0] }
 0x315   : > { %5167 = vmatpush.bf16.msra.mxu1 %v13140_v50  ;;  %6819 = vmatpush.bf16.msra.mxu3 %v14497_v14  ;;  %v4911_v15 = vadd.f32 %v20495_v30, %v4898_v38  ;;  %v18055_v30 = vld [vmem:[%s19151_s19 + $0xc2c] sm:$0xf0]  ;;  %v17949_v50 = vld [vmem:[%s19151_s19 + $0x8e4] sm:$0xf]  ;;  %v14002_v14 = vld [vmem:[%s19151_s19 + $0x8b0] sm:$0xf0] }
 0x316   : > { %v14037_v20 = vor.u32 %v17949_v50, %v14034_v52  ;;  %6777 = vmatpush.bf16.msrb.mxu0 %v14161_v13  ;;  %v17937_v38 = vld [vmem:[%s19151_s19 + $0x884] sm:$0xf]  ;;  %v14096_v48 = vld [vmem:[%s19151_s19 + $0x960] sm:$0xf] }
 0x317   : > { %5088 = vmatpush.bf16.msra.mxu2 %v13164_v31  ;;  %v4964_v31 = vpop.f32.mrf.mxu3  ;;  %v14064_v51 = vld [vmem:[%s19151_s19 + $0x920] sm:$0xf] }
 0x318   : > { %v13973_v31 = vor.u32 %v17933_v24, %v13970_v11  ;;  %v14240_v13 = vld [vmem:[%s19151_s19 + $0xa80] sm:$0xf] }
 0x319   : > { %v3981_v37 = vpop.f32.mrf.mxu1  ;;  %5168 = vmatpush.bf16.msra.mxu1 %v13108_v6  ;;  %6820 = vmatpush.bf16.msra.mxu3 %v14481_v53  ;;  %v13460_v6 = vor.u32 %v17868_v54, %v13457_v2  ;;  %v13396_v53 = vor.u32 %v17852_v36, %v13393_v43  ;;  %v13938_v54 = vld [vmem:[%s19151_s19 + $0x830] sm:$0xf0]  ;;  %v14048_v43 = vld [vmem:[%s19151_s19 + $0x900] sm:$0xf] }
 0x31a   : > { %v14005_v37 = vor.u32 %v17941_v12, %v14002_v14  ;;  %v14065_v14 = vor.u32 %v17959_v10, %v14064_v51  ;;  %v14400_v11 = vld [vmem:[%s19151_s19 + $0xbc0] sm:$0xf]  ;;  %v18031_v10 = vld [vmem:[%s19151_s19 + $0xb6c] sm:$0xf0] }
 0x31b   : > { %5089 = vmatpush.bf16.msra.mxu2 %v13132_v60  ;;  %v14432_v60 = vld [vmem:[%s19151_s19 + $0xc00] sm:$0xf] }
 0x31c   : > { %5169 = vmatmul.bf16.vlgmr.msra.gmra.mxu1 %v20194_v34  ;;  %v14433_v61 = vor.u32 %v18051_v49, %v14432_v60  ;;  %v20569_v8 = vpop.f32.mrf.mxu0  ;;  %v17967_v60 = vld [vmem:[%s19151_s19 + $0x96c] sm:$0xf0]  ;;  %v14272_v49 = vld [vmem:[%s19151_s19 + $0xac0] sm:$0xf] }
 0x31d   : > { %6821 = vmatpush.bf16.msra.mxu3 %v14465_v9  ;;  %v13364_v9 = vor.u32 %v17844_v19, %v13361_v63  ;;  %v14097_v52 = vor.u32 %v17967_v60, %v14096_v48  ;;  %v14208_v63 = vld [vmem:[%s19151_s19 + $0xa40] sm:$0xf]  ;;  %v4148_v48 = vperm.slane %v20516_v57, 4 }
 0x31e   : > { %v14352_v51 = vld [vmem:[%s19151_s19 + $0xb60] sm:$0xf] }
 0x31f   : > { %5090 = vmatpush.bf16.msra.mxu2 %v13100_v4  ;;  %v4988_v62 = vpop.f32.mrf.mxu3  ;;  %v14018_v4 = vld [vmem:[%s19151_s19 + $0x8d0] sm:$0xf0] }
 0x320   : > { %v20561_v46 = vadd.f32 %v4988_v62, %v4976_v47  ;;  %v17925_v62 = vld [vmem:[%s19151_s19 + $0x824] sm:$0xf] }
 0x321   : > { %v4923_v39 = vpop.f32.mrf.mxu1  ;;  %v13941_v2 = vor.u32 %v17925_v62, %v13938_v54  ;;  %v18103_v62 = vld [vmem:[%s19151_s19 + $0xdac] sm:$0xf0] }
 0x322   : > { %5091 = vmatmul.bf16.vlgmr.msra.gmra.mxu2 %v20194_v34  ;;  %v14448_v34 = vld [vmem:[%s19151_s19 + $0xc20] sm:$0xf]  ;;  %v4924_v40 = vadd.f32 %v4923_v39, %v4911_v15  ;;  %v17975_v15 = vld [vmem:[%s19151_s19 + $0x9ac] sm:$0xf0] }
 0x323   : > { %5154 = vmatpush.bf16.msrb.mxu2 %v13648_v58  ;;  %v14449_v44 = vor.u32 %v18055_v30, %v14448_v34  ;;  %v14021_v58 = vor.u32 %v17945_v5, %v14018_v4  ;;  %v17971_v34 = vld [vmem:[%s19151_s19 + $0x98c] sm:$0xf0]  ;;  %v14288_v30 = vld [vmem:[%s19151_s19 + $0xae0] sm:$0xf] }
 0x324   : > { %v5200_v45 = vmax.f32 %v4924_v40, 0.0  ;;  %v5042_v26 = vpop.f32.mrf.mxu0  ;;  %v14113_v40 = vor.u32 %v17971_v34, %v14112_v22  ;;  %v14256_v5 = vld [vmem:[%s19151_s19 + $0xaa0] sm:$0xf]  ;;  %v17991_v34 = vld [vmem:[%s19151_s19 + $0xa2c] sm:$0xf0] }
 0x325   : > { %6822 = vmatpush.bf16.msra.mxu3 %v14449_v44  ;;  %v13954_v44 = vld [vmem:[%s19151_s19 + $0x850] sm:$0xf0]  ;;  %v17995_v26 = vld [vmem:[%s19151_s19 + $0xa4c] sm:$0xf0]  ;;  %v14192_v22 = vld [vmem:[%s19151_s19 + $0xa20] sm:$0xf] }
 0x326   : > { %v20556_v0 = vpack.c.bf16 %v5200_v45, %v5200_v45  ;;  %v13957_v47 = vor.u32 %v17929_v42, %v13954_v44  ;;  %v14384_v42 = vld [vmem:[%s19151_s19 + $0xba0] sm:$0xf]  ;;  %v18039_v44 = vld [vmem:[%s19151_s19 + $0xbac] sm:$0xf0] }
 0x327   : > { %5155 = vmatpush.bf16.msrb.mxu2 %v13616_v25  ;;  %v14145_v25 = vor.u32 %v17979_v32, %v14144_v17  ;;  %v14224_v17 = vld [vmem:[%s19151_s19 + $0xa60] sm:$0xf]  ;;  %v14385_v60 = vor.u32 %v18039_v44, %v14384_v42 }
 0x328   : > { %6772 = vmatmul.bf16.vlgmr.msrb.gmra.mxu3 %v20556_v0  ;;  %v14576_v44 = vld [vmem:[%s19151_s19 + $0xd20] sm:$0xf] }
 0x329   : > { %v4925_v3 = vpop.f32.mrf.mxu1  ;;  %6823 = vmatpush.bf16.msra.mxu3 %v14433_v61  ;;  %6778 = vmatpush.bf16.msrb.mxu0 %v14145_v25  ;;  %v17999_v25 = vld [vmem:[%s19151_s19 + $0xa6c] sm:$0xf0] }
 0x32a   : > { %v17963_v3 = vld [vmem:[%s19151_s19 + $0x94c] sm:$0xf0] }
 0x32b   : > { %5174 = vmatpush.bf16.msra.mxu2 %v13588_v23  ;;  %v13986_v23 = vld [vmem:[%s19151_s19 + $0x890] sm:$0xf0] }
 0x32c   : > { %v13989_v55 = vor.u32 %v17937_v38, %v13986_v23  ;;  %v14225_v38 = vor.u32 %v17999_v25, %v14224_v17  ;;  %v14416_v23 = vld [vmem:[%s19151_s19 + $0xbe0] sm:$0xf] }
 0x32d   : > { %6868 = vmatpush.bf16.msrb.mxu3 %v14037_v20  ;;  %v14080_v20 = vld [vmem:[%s19151_s19 + $0x940] sm:$0xf] }
 0x32e   : > { %v14081_v4 = vor.u32 %v17963_v3, %v14080_v20  ;;  %v18035_v20 = vld [vmem:[%s19151_s19 + $0xb8c] sm:$0xf0]  ;;  %v14336_v17 = vld [vmem:[%s19151_s19 + $0xb40] sm:$0xf] }
 0x32f   : > { %5175 = vmatpush.bf16.msra.mxu2 %v13556_v29  ;;  %v14129_v29 = vor.u32 %v17975_v15, %v14128_v28  ;;  %v14672_v28 = vld [vmem:[%s19151_s19 + $0xde0] sm:$0xf]  ;;  %v18111_v15 = vld [vmem:[%s19151_s19 + $0xdec] sm:$0xf0] }
 0x330   : > { %v14673_v24 = vor.u32 %v18111_v15, %v14672_v28 }
 0x331   : > { %6869 = vmatpush.bf16.msrb.mxu3 %v14021_v58  ;;  %v20579_v21 = vpop.f32.mrf.mxu1  ;;  %6779 = vmatpush.bf16.msrb.mxu0 %v14129_v29  ;;  %v13922_v58 = vld [vmem:[%s19151_s19 + $0x810] sm:$0xf0] }
 0x332   : > { %13659 = vmatmul.msk.bf16.vlgmr.msrb.gmra.mxu2 %vm1383_vm0, %v20236_v35  ;;  %v4990_v35 = vpop.f32.mrf.mxu3 }
 0x333   : > { %5176 = vmatpush.bf16.msra.mxu2 %v13524_v1  ;;  %v18015_v1 = vld [vmem:[%s19151_s19 + $0xaec] sm:$0xf0] }
 0x334   : > { %v14289_v41 = vor.u32 %v18015_v1, %v14288_v30  ;;  %v20600_v50 = vpop.f32.mrf.mxu0  ;;  %v14193_v30 = vor.u32 %v17991_v34, %v14192_v22 }
 0x335   : > { %6870 = vmatpush.bf16.msrb.mxu3 %v14005_v37  ;;  %6780 = vmatpush.bf16.msrb.mxu0 %v14113_v40  ;;  %v17955_v37 = vld [vmem:[%s19151_s19 + $0x90c] sm:$0xf0] }
 0x336   : > { %6790 = vmatpush.bf16.msrb.mxu1 %v14289_v41  ;;  %v14049_v32 = vor.u32 %v17955_v37, %v14048_v43  ;;  %v18107_v40 = vld [vmem:[%s19151_s19 + $0xdcc] sm:$0xf0] }
 0x337   : > { %5177 = vmatpush.bf16.msra.mxu2 %v13492_v59  ;;  %v18011_v59 = vld [vmem:[%s19151_s19 + $0xacc] sm:$0xf0] }
 0x338   : > { %v14273_v61 = vor.u32 %v18011_v59, %v14272_v49  ;;  %v14176_v49 = vld [vmem:[%s19151_s19 + $0xa00] sm:$0xf]  ;;  %v18139_v37 = vld [vmem:[%s19151_s19 + $0xecc] sm:$0xf0] }
 0x339   : > { %6871 = vmatpush.bf16.msrb.mxu3 %v13989_v55  ;;  %v4951_v39 = vpop.f32.mrf.mxu1  ;;  %6781 = vmatpush.bf16.msrb.mxu0 %v14097_v52  ;;  %v14209_v55 = vor.u32 %v17995_v26, %v14208_v63  ;;  %v17987_v52 = vld [vmem:[%s19151_s19 + $0xa0c] sm:$0xf0]  ;;  %v14592_v26 = vld [vmem:[%s19151_s19 + $0xd40] sm:$0xf] }
 0x33a   : > { %v20595_v45 = vpop.f32.mrf.mxu3  ;;  %6791 = vmatpush.bf16.msrb.mxu1 %v14273_v61  ;;  %v14656_v39 = vld [vmem:[%s19151_s19 + $0xdc0] sm:$0xf]  ;;  %v14177_v59 = vor.u32 %v17987_v52, %v14176_v49 }
 0x33b   : > { %5178 = vmatpush.bf16.msra.mxu2 %v13460_v6  ;;  %v18007_v6 = vld [vmem:[%s19151_s19 + $0xaac] sm:$0xf0]  ;;  %v14657_v41 = vor.u32 %v18107_v40, %v14656_v39  ;;  %v14640_v61 = vld [vmem:[%s19151_s19 + $0xda0] sm:$0xf]  ;;  %v5054_v3 = vadd.f32 %v20595_v45, %v4148_v48  ;;  %v14530_v39 = vld [vmem:[%s19151_s19 + $0xcd0] sm:$0xf0] }
 0x33c   : > { %v14257_v7 = vor.u32 %v18007_v6, %v14256_v5  ;;  %v5068_v36 = vpop.f32.mrf.mxu0  ;;  %v18099_v6 = vld [vmem:[%s19151_s19 + $0xd8c] sm:$0xf0] }
 0x33d   : > { %6872 = vmatpush.bf16.msrb.mxu3 %v13973_v31  ;;  %6782 = vmatpush.bf16.msrb.mxu0 %v14081_v4  ;;  %v14624_v4 = vld [vmem:[%s19151_s19 + $0xd80] sm:$0xf]  ;;  %v5067_v45 = vadd.f32 %v20600_v50, %v5054_v3  ;;  %v4145_v50 = vperm.slane %v20516_v57, 1  ;;  %v18087_v48 = vld [vmem:[%s19151_s19 + $0xd2c] sm:$0xf0] }
 0x33e   : > { %6792 = vmatpush.bf16.msrb.mxu1 %v14257_v7  ;;  %v14800_v7 = vld [vmem:[%s19151_s19 + $0xee0] sm:$0xf]  ;;  %v14577_v52 = vor.u32 %v18087_v48, %v14576_v44  ;;  %v14450_v44 = vld [vmem:[%s19151_s19 + $0xc30] sm:$0xf0] }
 0x33f   : > { %5179 = vmatpush.bf16.msra.mxu2 %v13428_v27  ;;  %v18003_v27 = vld [vmem:[%s19151_s19 + $0xa8c] sm:$0xf0]  ;;  %v14784_v36 = vld [vmem:[%s19151_s19 + $0xec0] sm:$0xf] }
 0x340   : > { %v14241_v35 = vor.u32 %v18003_v27, %v14240_v13  ;;  %v18095_v27 = vld [vmem:[%s19151_s19 + $0xd6c] sm:$0xf0]  ;;  %v14688_v48 = vld [vmem:[%s19151_s19 + $0xe00] sm:$0xf] }
 0x341   : > { %6873 = vmatpush.bf16.msrb.mxu3 %v13957_v47  ;;  %6783 = vmatpush.bf16.msrb.mxu0 %v14065_v14  ;;  %v14608_v14 = vld [vmem:[%s19151_s19 + $0xd60] sm:$0xf] }
 0x342   : > { %v5055_v12 = vpop.f32.mrf.mxu3  ;;  %6793 = vmatpush.bf16.msrb.mxu1 %v14241_v35  ;;  %v14609_v43 = vor.u32 %v18095_v27, %v14608_v14  ;;  %v14162_v14 = vld [vmem:[%s19151_s19 + $0x9f0] sm:$0xf0] }
 0x343   : > { %5180 = vmatpush.bf16.msra.mxu2 %v13396_v53  ;;  %v18047_v53 = vld [vmem:[%s19151_s19 + $0xbec] sm:$0xf0]  ;;  %v14353_v12 = vor.u32 %v18031_v10, %v14352_v51  ;;  %v17981_v51 = vld [vmem:[%s19151_s19 + $0x9e4] sm:$0xf] }
 0x344   : > { %v14417_v19 = vor.u32 %v18047_v53, %v14416_v23  ;;  %v14546_v23 = vld [vmem:[%s19151_s19 + $0xcf0] sm:$0xf0]  ;;  %v14785_v53 = vor.u32 %v18139_v37, %v14784_v36  ;;  %v14165_v27 = vor.u32 %v17981_v51, %v14162_v14  ;;  %v14720_v36 = vld [vmem:[%s19151_s19 + $0xe40] sm:$0xf]  ;;  %v18049_v51 = vld [vmem:[%s19151_s19 + $0xc04] sm:$0xf] }
 0x345   : > { %6874 = vmatpush.bf16.msrb.mxu3 %v13941_v2  ;;  %6784 = vmatpush.bf16.msrb.mxu0 %v14049_v32  ;;  %v14368_v2 = vld [vmem:[%s19151_s19 + $0xb80] sm:$0xf]  ;;  %v18027_v32 = vld [vmem:[%s19151_s19 + $0xb4c] sm:$0xf0]  ;;  %v14274_v14 = vld [vmem:[%s19151_s19 + $0xad0] sm:$0xf0] }
 0x346   : > { %6794 = vmatpush.bf16.msrb.mxu1 %v14225_v38  ;;  %v14369_v5 = vor.u32 %v18035_v20, %v14368_v2  ;;  %v18077_v38 = vld [vmem:[%s19151_s19 + $0xce4] sm:$0xf]  ;;  %v14514_v2 = vld [vmem:[%s19151_s19 + $0xcb0] sm:$0xf0] }
 0x347   : > { %5181 = vmatpush.bf16.msra.mxu2 %v13364_v9  ;;  %v18043_v9 = vld [vmem:[%s19151_s19 + $0xbcc] sm:$0xf0]  ;;  %v14549_v15 = vor.u32 %v18077_v38, %v14546_v23  ;;  %v18061_v38 = vld [vmem:[%s19151_s19 + $0xc64] sm:$0xf]  ;;  %v14482_v23 = vld [vmem:[%s19151_s19 + $0xc70] sm:$0xf0] }
 0x348   : > { %v14401_v31 = vor.u32 %v18043_v9, %v14400_v11  ;;  %v14768_v11 = vld [vmem:[%s19151_s19 + $0xea0] sm:$0xf]  ;;  %v18135_v9 = vld [vmem:[%s19151_s19 + $0xeac] sm:$0xf0] }
 0x349   : > { %6829 = vmatpush.bf16.msra.mxu0 %v14673_v24  ;;  %v14769_v40 = vor.u32 %v18135_v9, %v14768_v11  ;;  %v18171_v11 = vld [vmem:[%s19151_s19 + $0xfcc] sm:$0xf0]  ;;  %v17973_v9 = vld [vmem:[%s19151_s19 + $0x9a4] sm:$0xf] }
 0x34a   : > { %5182 = vmatmul.bf16.vlgmr.msra.gmra.mxu2 %v20233_v33  ;;  %v13925_v33 = vor.u32 %v17921_v18, %v13922_v58  ;;  %6795 = vmatpush.bf16.msrb.mxu1 %v14209_v55  ;;  %v14625_v58 = vor.u32 %v18099_v6, %v14624_v4  ;;  %v18091_v55 = vld [vmem:[%s19151_s19 + $0xd4c] sm:$0xf0]  ;;  %v14560_v4 = vld [vmem:[%s19151_s19 + $0xd00] sm:$0xf] }
 0x34b   : > { %6803 = vmatpush.bf16.msrb.mxu2 %v14417_v19  ;;  %v14337_v19 = vor.u32 %v18027_v32, %v14336_v17  ;;  %v14593_v24 = vor.u32 %v18091_v55, %v14592_v26  ;;  %v18083_v6 = vld [vmem:[%s19151_s19 + $0xd0c] sm:$0xf0]  ;;  %v14912_v55 = vld [vmem:[%s19151_s19 + $0xfc0] sm:$0xf] }
 0x34c   : > { %6875 = vmatpush.bf16.msrb.mxu3 %v13925_v33  ;;  %v18143_v33 = vld [vmem:[%s19151_s19 + $0xeec] sm:$0xf0] }
 0x34d   : > { %6830 = vmatpush.bf16.msra.mxu0 %v14657_v41  ;;  %v14801_v13 = vor.u32 %v18143_v33, %v14800_v7  ;;  %v18127_v33 = vld [vmem:[%s19151_s19 + $0xe6c] sm:$0xf0] }
 0x34e   : > { %6796 = vmatpush.bf16.msrb.mxu1 %v14193_v30  ;;  %v18073_v30 = vld [vmem:[%s19151_s19 + $0xcc4] sm:$0xf]  ;;  %v18175_v32 = vld [vmem:[%s19151_s19 + $0xfec] sm:$0xf0] }
 0x34f   : > { %6804 = vmatpush.bf16.msrb.mxu2 %v14401_v31  ;;  %v14320_v31 = vld [vmem:[%s19151_s19 + $0xb20] sm:$0xf]  ;;  %v14533_v49 = vor.u32 %v18073_v30, %v14530_v39  ;;  %v18119_v26 = vld [vmem:[%s19151_s19 + $0xe2c] sm:$0xf0]  ;;  %v18057_v30 = vld [vmem:[%s19151_s19 + $0xc44] sm:$0xf] }
 0x350   : > { %v14466_v39 = vld [vmem:[%s19151_s19 + $0xc50] sm:$0xf0] }
 0x351   : > { %v20626_v29 = vpop.f32.mrf.mxu1 }
 0x352   : > { %6797 = vmatpush.bf16.msrb.mxu1 %v14177_v59  ;;  %v18131_v59 = vld [vmem:[%s19151_s19 + $0xe8c] sm:$0xf0] }
 0x353   : > { %6805 = vmatpush.bf16.msrb.mxu2 %v14385_v60  ;;  %v14752_v60 = vld [vmem:[%s19151_s19 + $0xe80] sm:$0xf] }
 0x354   : > { %v14753_v20 = vor.u32 %v18131_v59, %v14752_v60  ;;  %v18115_v60 = vld [vmem:[%s19151_s19 + $0xe0c] sm:$0xf0] }
 0x355   : > { %v3992_v1 = vpop.f32.mrf.mxu2  ;;  %v18167_v59 = vld [vmem:[%s19151_s19 + $0xfac] sm:$0xf0] }
 0x356   : > { %v20637_v47 = vadd.f32 %v3992_v1, %v20510_v56  ;;  %v14641_v56 = vor.u32 %v18103_v62, %v14640_v61  ;;  %6842 = vmatpush.bf16.msra.mxu1 %v14801_v13  ;;  %v18023_v1 = vld [vmem:[%s19151_s19 + $0xb2c] sm:$0xf0]  ;;  %v14304_v61 = vld [vmem:[%s19151_s19 + $0xb00] sm:$0xf]  ;;  %v14498_v13 = vld [vmem:[%s19151_s19 + $0xc90] sm:$0xf0] }
 0x357   : > { %6806 = vmatpush.bf16.msrb.mxu2 %v14369_v5  ;;  %v14321_v41 = vor.u32 %v18023_v1, %v14320_v31  ;;  %v18019_v62 = vld [vmem:[%s19151_s19 + $0xb0c] sm:$0xf0]  ;;  %v14130_v31 = vld [vmem:[%s19151_s19 + $0x9b0] sm:$0xf0] }
 0x358   : > { %6831 = vmatpush.bf16.msra.mxu0 %v14641_v56  ;;  %v18069_v56 = vld [vmem:[%s19151_s19 + $0xca4] sm:$0xf]  ;;  %v14305_v3 = vor.u32 %v18019_v62, %v14304_v61  ;;  %v14133_v1 = vor.u32 %v17973_v9, %v14130_v31  ;;  %v14066_v31 = vld [vmem:[%s19151_s19 + $0x930] sm:$0xf0] }
 0x359   : > { %v5016_v54 = vpop.f32.mrf.mxu1  ;;  %v17969_v61 = vld [vmem:[%s19151_s19 + $0x984] sm:$0xf] }
 0x35a   : > { %6843 = vmatpush.bf16.msra.mxu1 %v14785_v53  ;;  %v17957_v9 = vld [vmem:[%s19151_s19 + $0x924] sm:$0xf] }
 0x35b   : > { %6807 = vmatpush.bf16.msrb.mxu2 %v14353_v12 }
 0x35c   : > { %6832 = vmatpush.bf16.msra.mxu0 %v14625_v58  ;;  %v14736_v58 = vld [vmem:[%s19151_s19 + $0xe60] sm:$0xf] }
 0x35d   : > { %v3994_v18 = vpop.f32.mrf.mxu2  ;;  %v14737_v12 = vor.u32 %v18127_v33, %v14736_v58  ;;  %v14098_v58 = vld [vmem:[%s19151_s19 + $0x970] sm:$0xf0]  ;;  %v18009_v33 = vld [vmem:[%s19151_s19 + $0xac4] sm:$0xf] }
 0x35e   : > { %6844 = vmatpush.bf16.msra.mxu1 %v14769_v40  ;;  %v14517_v18 = vor.u32 %v18069_v56, %v14514_v2  ;;  %v14913_v40 = vor.u32 %v18171_v11, %v14912_v55  ;;  %v18013_v56 = vld [vmem:[%s19151_s19 + $0xae4] sm:$0xf]  ;;  %v14290_v2 = vld [vmem:[%s19151_s19 + $0xaf0] sm:$0xf0] }
 0x35f   : > { %6808 = vmatpush.bf16.msrb.mxu2 %v14337_v19 }
 0x360   : > { %6833 = vmatpush.bf16.msra.mxu0 %v14609_v43  ;;  %v14928_v43 = vld [vmem:[%s19151_s19 + $0xfe0] sm:$0xf] }
 0x361   : > { %v5079_v35 = vpop.f32.mrf.mxu1  ;;  %v14929_v53 = vor.u32 %v18175_v32, %v14928_v43  ;;  %v14864_v43 = vld [vmem:[%s19151_s19 + $0xf60] sm:$0xf]  ;;  %v17961_v32 = vld [vmem:[%s19151_s19 + $0x944] sm:$0xf] }
 0x362   : > { %v5080_v25 = vadd.f32 %v5079_v35, %v5067_v45  ;;  %6845 = vmatpush.bf16.msra.mxu1 %v14753_v20  ;;  %v18065_v45 = vld [vmem:[%s19151_s19 + $0xc84] sm:$0xf]  ;;  %v18123_v35 = vld [vmem:[%s19151_s19 + $0xe4c] sm:$0xf0] }
 0x363   : > { %6809 = vmatpush.bf16.msrb.mxu2 %v14321_v41  ;;  %v14501_v37 = vor.u32 %v18065_v45, %v14498_v13  ;;  %v14721_v17 = vor.u32 %v18123_v35, %v14720_v36  ;;  %v14434_v45 = vld [vmem:[%s19151_s19 + $0xc10] sm:$0xf0]  ;;  %v20734_v13 = vpop.f32.mrf.mxu3  ;;  %v17952_v36 = vld [vmem:[%s19151_s19 + $0x8f4] sm:$0xf0]  ;;  %v14277_v35 = vor.u32 %v18009_v33, %v14274_v14 }
 0x364   : > { %v5204_v63 = vmax.f32 %v5080_v25, 0.0  ;;  %6834 = vmatpush.bf16.msra.mxu0 %v14593_v24  ;;  %v17977_v25 = vld [vmem:[%s19151_s19 + $0x9c4] sm:$0xf] }
 0x365   : > { %v4936_v28 = vpop.f32.mrf.mxu2 }
 0x366   : > { %v20668_v22 = vpack.c.bf16 %v5204_v63, %v5204_v63  ;;  %v4937_v34 = vadd.f32 %v4936_v28, %v4145_v50  ;;  %6846 = vmatpush.bf16.msra.mxu1 %v14737_v12  ;;  %v14146_v50 = vld [vmem:[%s19151_s19 + $0x9d0] sm:$0xf0]  ;;  %v14704_v63 = vld [vmem:[%s19151_s19 + $0xe20] sm:$0xf] }
 0x367   : > { %6810 = vmatpush.bf16.msrb.mxu2 %v14305_v3  ;;  %v14149_v19 = vor.u32 %v17977_v25, %v14146_v50  ;;  %v14705_v24 = vor.u32 %v18119_v26, %v14704_v63  ;;  %v14293_v3 = vor.u32 %v18013_v56, %v14290_v2  ;;  %v14082_v25 = vld [vmem:[%s19151_s19 + $0x950] sm:$0xf0]  ;;  %v14024_v63 = vld [vmem:[%s19151_s19 + $0x8c8] sm:$0xf]  ;;  %v17948_v26 = vld [vmem:[%s19151_s19 + $0x8d4] sm:$0xf0] }
 0x368   : > { %v4950_v42 = vadd.f32 %v20579_v21, %v4937_v34  ;;  %6824 = vmatmul.bf16.vlgmr.msra.gmra.mxu3 %v20668_v22  ;;  %6835 = vmatpush.bf16.msra.mxu0 %v14577_v52  ;;  %v14896_v52 = vld [vmem:[%s19151_s19 + $0xfa0] sm:$0xf]  ;;  %v17997_v56 = vld [vmem:[%s19151_s19 + $0xa64] sm:$0xf]  ;;  %v14226_v2 = vld [vmem:[%s19151_s19 + $0xa70] sm:$0xf0] }
 0x369   : > { %6920 = vmatpush.bf16.msra.mxu3 %v14549_v15  ;;  %v5081_v54 = vpop.f32.mrf.mxu1  ;;  %v14485_v15 = vor.u32 %v18061_v38, %v14482_v23 }
 0x36a   : > { %v4963_v21 = vadd.f32 %v20528_v16, %v4950_v42  ;;  %v14561_v16 = vor.u32 %v18083_v6, %v14560_v4  ;;  %6847 = vmatpush.bf16.msra.mxu1 %v14721_v17  ;;  %v18053_v42 = vld [vmem:[%s19151_s19 + $0xc24] sm:$0xf]  ;;  %v14897_v54 = vor.u32 %v18167_v59, %v14896_v52  ;;  %v14880_v4 = vld [vmem:[%s19151_s19 + $0xf80] sm:$0xf]  ;;  %v18163_v6 = vld [vmem:[%s19151_s19 + $0xf8c] sm:$0xf0]  ;;  %v14437_v17 = vor.u32 %v18049_v51, %v14434_v45 }
 0x36b   : > { %6855 = vmatpush.bf16.msra.mxu2 %v14929_v53  ;;  %v18005_v53 = vld [vmem:[%s19151_s19 + $0xaa4] sm:$0xf]  ;;  %v18151_v52 = vld [vmem:[%s19151_s19 + $0xf2c] sm:$0xf0]  ;;  %v13976_v51 = vld [vmem:[%s19151_s19 + $0x868] sm:$0xf] }
 0x36c   : > { %v5201_v5 = vmax.f32 %v4963_v21, 0.0  ;;  %6836 = vmatpush.bf16.msra.mxu0 %v14561_v16  ;;  %v14114_v21 = vld [vmem:[%s19151_s19 + $0x990] sm:$0xf0]  ;;  %v17965_v16 = vld [vmem:[%s19151_s19 + $0x964] sm:$0xf] }
 0x36d   : > { %6921 = vmatpush.bf16.msra.mxu3 %v14533_v49  ;;  %v4938_v7 = vpop.f32.mrf.mxu2  ;;  %v14689_v49 = vor.u32 %v18115_v60, %v14688_v48  ;;  %v14117_v20 = vor.u32 %v17969_v61, %v14114_v21  ;;  %v14101_v12 = vor.u32 %v17965_v16, %v14098_v58  ;;  %v14069_v48 = vor.u32 %v17957_v9, %v14066_v31  ;;  %v17953_v59 = vld [vmem:[%s19151_s19 + $0x904] sm:$0xf]  ;;  %v14050_v61 = vld [vmem:[%s19151_s19 + $0x910] sm:$0xf0]  ;;  %v14816_v16 = vld [vmem:[%s19151_s19 + $0xf00] sm:$0xf] }
 0x36e   : > { %v20689_v10 = vpack.c.bf16 %v5201_v5, %v5201_v5  ;;  %6848 = vmatpush.bf16.msra.mxu1 %v14705_v24  ;;  %v4147_v5 = vperm.slane %v20516_v57, 3  ;;  %v14881_v57 = vor.u32 %v18163_v6, %v14880_v4  ;;  %v18155_v24 = vld [vmem:[%s19151_s19 + $0xf4c] sm:$0xf0]  ;;  %v17936_v45 = vld [vmem:[%s19151_s19 + $0x874] sm:$0xf0] }
 0x36f   : > { %6856 = vmatpush.bf16.msra.mxu2 %v14913_v40  ;;  %v5120_v40 = vpop.f32.mrf.mxu3  ;;  %v18147_v58 = vld [vmem:[%s19151_s19 + $0xf0c] sm:$0xf0]  ;;  %v17928_v9 = vld [vmem:[%s19151_s19 + $0x834] sm:$0xf0] }
 0x370   : > { %6785 = vmatmul.bf16.vlgmr.msrb.gmra.mxu0 %v20689_v10  ;;  %v5015_v50 = vadd.f32 %v20626_v29, %v4147_v5  ;;  %v14848_v29 = vld [vmem:[%s19151_s19 + $0xf40] sm:$0xf]  ;;  %v14053_v5 = vor.u32 %v17953_v59, %v14050_v61  ;;  %v14817_v14 = vor.u32 %v18147_v58, %v14816_v16  ;;  %v18029_v61 = vld [vmem:[%s19151_s19 + $0xb64] sm:$0xf] }
 0x371   : > { %6922 = vmatpush.bf16.msra.mxu3 %v14517_v18  ;;  %6881 = vmatpush.bf16.msrb.mxu0 %v14165_v27  ;;  %v14453_v18 = vor.u32 %v18053_v42, %v14450_v44  ;;  %v14040_v27 = vld [vmem:[%s19151_s19 + $0x8e8] sm:$0xf]  ;;  %v17944_v44 = vld [vmem:[%s19151_s19 + $0x8b4] sm:$0xf0] }
 0x372   : > { %6849 = vmatpush.bf16.msra.mxu1 %v14689_v49  ;;  %v14041_v38 = vor.u32 %v17952_v36, %v14040_v27  ;;  %v14008_v42 = vld [vmem:[%s19151_s19 + $0x8a8] sm:$0xf]  ;;  %v14832_v49 = vld [vmem:[%s19151_s19 + $0xf20] sm:$0xf]  ;;  %v14210_v36 = vld [vmem:[%s19151_s19 + $0xa50] sm:$0xf0] }
 0x373   : > { %6857 = vmatpush.bf16.msra.mxu2 %v14897_v54  ;;  %v14009_v21 = vor.u32 %v17944_v44, %v14008_v42  ;;  %v14370_v42 = vld [vmem:[%s19151_s19 + $0xb90] sm:$0xf0]  ;;  %v13928_v44 = vld [vmem:[%s19151_s19 + $0x808] sm:$0xf] }
 0x375   : > { %6923 = vmatpush.bf16.msra.mxu3 %v14501_v37  ;;  %v5001_v28 = vpop.f32.mrf.mxu2  ;;  %6882 = vmatpush.bf16.msrb.mxu0 %v14149_v19  ;;  %v18159_v37 = vld [vmem:[%s19151_s19 + $0xf6c] sm:$0xf0]  ;;  %v14258_v19 = vld [vmem:[%s19151_s19 + $0xab0] sm:$0xf0] }
 0x376   : > { %v5002_v34 = vadd.f32 %v5001_v28, %v20561_v46  ;;  %v14469_v46 = vor.u32 %v18057_v30, %v14466_v39  ;;  %v14865_v23 = vor.u32 %v18159_v37, %v14864_v43  ;;  %v14085_v28 = vor.u32 %v17961_v32, %v14082_v25  ;;  %v14418_v43 = vld [vmem:[%s19151_s19 + $0xbf0] sm:$0xf0]  ;;  %v17989_v25 = vld [vmem:[%s19151_s19 + $0xa24] sm:$0xf] }
 0x377   : > { %6858 = vmatpush.bf16.msra.mxu2 %v14881_v57  ;;  %v14025_v30 = vor.u32 %v17948_v26, %v14024_v63  ;;  %v14849_v39 = vor.u32 %v18155_v24, %v14848_v29  ;;  %v17993_v57 = vld [vmem:[%s19151_s19 + $0xa44] sm:$0xf]  ;;  %v20778_v27 = vpop.f32.mrf.mxu3  ;;  %v13977_v32 = vor.u32 %v17936_v45, %v13976_v51  ;;  %v14178_v29 = vld [vmem:[%s19151_s19 + $0xa10] sm:$0xf0]  ;;  %v18072_v51 = vld [vmem:[%s19151_s19 + $0xcb4] sm:$0xf0] }
 0x378   : > { %v5202_v41 = vmax.f32 %v5002_v34, 0.0  ;;  %6876 = vmatmul.bf16.vlgmr.msrb.gmra.mxu3 %v20556_v0  ;;  %v14213_v37 = vor.u32 %v17993_v57, %v14210_v36  ;;  %v18037_v24 = vld [vmem:[%s19151_s19 + $0xba4] sm:$0xf] }
 0x379   : > { %6924 = vmatpush.bf16.msra.mxu3 %v14485_v15  ;;  %6883 = vmatpush.bf16.msrb.mxu0 %v14133_v1  ;;  %v20748_v55 = vpop.f32.mrf.mxu1  ;;  %v14261_v15 = vor.u32 %v18005_v53, %v14258_v19  ;;  %v18001_v1 = vld [vmem:[%s19151_s19 + $0xa84] sm:$0xf]  ;;  %v17932_v53 = vld [vmem:[%s19151_s19 + $0x854] sm:$0xf0]  ;;  %v14402_v19 = vld [vmem:[%s19151_s19 + $0xbd0] sm:$0xf0] }
 0x37a   : > { %v20720_v62 = vpack.c.bf16 %v5202_v41, %v5202_v41  ;;  %v14242_v41 = vld [vmem:[%s19151_s19 + $0xa90] sm:$0xf0]  ;;  %v18021_v36 = vld [vmem:[%s19151_s19 + $0xb24] sm:$0xf] }
 0x37b   : > { %6859 = vmatpush.bf16.msra.mxu2 %v14865_v23  ;;  %v14245_v60 = vor.u32 %v18001_v1, %v14242_v41  ;;  %v13960_v23 = vld [vmem:[%s19151_s19 + $0x848] sm:$0xf]  ;;  %v18033_v41 = vld [vmem:[%s19151_s19 + $0xb84] sm:$0xf] }
 0x37c   : > { %6798 = vmatmul.bf16.vlgmr.msrb.gmra.mxu1 %v20720_v62 }
 0x37d   : > { %6925 = vmatpush.bf16.msra.mxu3 %v14469_v46  ;;  %v5003_v7 = vpop.f32.mrf.mxu2  ;;  %6884 = vmatpush.bf16.msrb.mxu0 %v14117_v20  ;;  %v13992_v20 = vld [vmem:[%s19151_s19 + $0x888] sm:$0xf] }
 0x37e   : > { %6894 = vmatpush.bf16.msrb.mxu1 %v14293_v3  ;;  %v17940_v3 = vld [vmem:[%s19151_s19 + $0x894] sm:$0xf0]  ;;  %v14229_v7 = vor.u32 %v17997_v56, %v14226_v2 }
 0x37f   : > { %6860 = vmatpush.bf16.msra.mxu2 %v14849_v39  ;;  %v13993_v33 = vor.u32 %v17940_v3, %v13992_v20  ;;  %v14536_v20 = vld [vmem:[%s19151_s19 + $0xcc8] sm:$0xf]  ;;  %v18076_v3 = vld [vmem:[%s19151_s19 + $0xcd4] sm:$0xf0] }
 0x380   : > { %v14537_v58 = vor.u32 %v18076_v3, %v14536_v20 }
 0x381   : > { %6926 = vmatpush.bf16.msra.mxu3 %v14453_v18  ;;  %6885 = vmatpush.bf16.msrb.mxu0 %v14101_v12  ;;  %v5107_v4 = vpop.f32.mrf.mxu1  ;;  %v20776_v12 = vpop.f32.mrf.mxu0 }
 0x382   : > { %6895 = vmatpush.bf16.msrb.mxu1 %v14277_v35  ;;  %v18045_v35 = vld [vmem:[%s19151_s19 + $0xbe4] sm:$0xf] }
 0x385   : > { %6927 = vmatpush.bf16.msra.mxu3 %v14437_v17  ;;  %v5027_v11 = vpop.f32.mrf.mxu2  ;;  %6886 = vmatpush.bf16.msrb.mxu0 %v14085_v28  ;;  %v14421_v17 = vor.u32 %v18045_v35, %v14418_v43  ;;  %v13961_v28 = vor.u32 %v17932_v53, %v13960_v23  ;;  %v14322_v35 = vld [vmem:[%s19151_s19 + $0xb30] sm:$0xf0] }
 0x386   : > { %v5028_v34 = vadd.f32 %v5027_v11, %v5015_v50  ;;  %6896 = vmatpush.bf16.msrb.mxu1 %v14261_v15  ;;  %v14194_v50 = vld [vmem:[%s19151_s19 + $0xa30] sm:$0xf0]  ;;  %v17985_v15 = vld [vmem:[%s19151_s19 + $0xa04] sm:$0xf]  ;;  %v13944_v11 = vld [vmem:[%s19151_s19 + $0x828] sm:$0xf]  ;;  %v14325_v23 = vor.u32 %v18021_v36, %v14322_v35 }
 0x387   : > { %v14197_v63 = vor.u32 %v17989_v25, %v14194_v50  ;;  %v14181_v39 = vor.u32 %v17985_v15, %v14178_v29  ;;  %v13945_v1 = vor.u32 %v17928_v9, %v13944_v11  ;;  %v14504_v50 = vld [vmem:[%s19151_s19 + $0xc88] sm:$0xf]  ;;  %v14658_v11 = vld [vmem:[%s19151_s19 + $0xdd0] sm:$0xf0] }
 0x388   : > { %v5041_v46 = vadd.f32 %v20569_v8, %v5028_v34  ;;  %6928 = vmatmul.bf16.vlgmr.msra.gmra.mxu3 %v20668_v22  ;;  %v14833_v8 = vor.u32 %v18151_v52, %v14832_v49  ;;  %v14386_v34 = vld [vmem:[%s19151_s19 + $0xbb0] sm:$0xf0]  ;;  %v14373_v52 = vor.u32 %v18033_v41, %v14370_v42  ;;  %v14488_v9 = vld [vmem:[%s19151_s19 + $0xc68] sm:$0xf]  ;;  %v18060_v42 = vld [vmem:[%s19151_s19 + $0xc54] sm:$0xf0] }
 0x389   : > { %6972 = vmatpush.bf16.msrb.mxu3 %v14041_v38  ;;  %6887 = vmatpush.bf16.msrb.mxu0 %v14069_v48  ;;  %v18041_v38 = vld [vmem:[%s19151_s19 + $0xbc4] sm:$0xf]  ;;  %v5133_v31 = vpop.f32.mrf.mxu0  ;;  %v14389_v40 = vor.u32 %v18037_v24, %v14386_v34  ;;  %v17924_v48 = vld [vmem:[%s19151_s19 + $0x814] sm:$0xf0]  ;;  %v14472_v41 = vld [vmem:[%s19151_s19 + $0xc48] sm:$0xf] }
 0x38a   : > { %v5203_v54 = vmax.f32 %v5041_v46, 0.0  ;;  %6897 = vmatpush.bf16.msrb.mxu1 %v14245_v60  ;;  %6861 = vmatpush.bf16.msra.mxu2 %v14833_v8  ;;  %v14405_v26 = vor.u32 %v18041_v38, %v14402_v19  ;;  %v14552_v60 = vld [vmem:[%s19151_s19 + $0xce8] sm:$0xf]  ;;  %v18080_v46 = vld [vmem:[%s19151_s19 + $0xcf4] sm:$0xf0]  ;;  %v13929_v59 = vor.u32 %v17924_v48, %v13928_v44 }
 0x38b   : > { %v14553_v2 = vor.u32 %v18080_v46, %v14552_v60  ;;  %v18068_v38 = vld [vmem:[%s19151_s19 + $0xc94] sm:$0xf0]  ;;  %v18105_v24 = vld [vmem:[%s19151_s19 + $0xdc4] sm:$0xf] }
 0x38c   : > { %v20768_v6 = vpack.c.bf16 %v5203_v54, %v5203_v54  ;;  %v14354_v54 = vld [vmem:[%s19151_s19 + $0xb70] sm:$0xf0]  ;;  %v14505_v29 = vor.u32 %v18068_v38, %v14504_v50  ;;  %v18064_v31 = vld [vmem:[%s19151_s19 + $0xc74] sm:$0xf0]  ;;  %v18097_v60 = vld [vmem:[%s19151_s19 + $0xd84] sm:$0xf] }
 0x38d   : > { %6973 = vmatpush.bf16.msrb.mxu3 %v14025_v30  ;;  %v5029_v18 = vpop.f32.mrf.mxu2  ;;  %6888 = vmatpush.bf16.msrb.mxu0 %v14053_v5  ;;  %v5146_v30 = vpop.f32.mrf.mxu3  ;;  %v14357_v5 = vor.u32 %v18029_v61, %v14354_v54  ;;  %v14802_v61 = vld [vmem:[%s19151_s19 + $0xef0] sm:$0xf0]  ;;  %v14456_v54 = vld [vmem:[%s19151_s19 + $0xc28] sm:$0xf] }
 0x38e   : > { %6811 = vmatmul.bf16.vlgmr.msrb.gmra.mxu2 %v20768_v6  ;;  %6898 = vmatpush.bf16.msrb.mxu1 %v14229_v7  ;;  %v18025_v7 = vld [vmem:[%s19151_s19 + $0xb44] sm:$0xf]  ;;  %v14338_v18 = vld [vmem:[%s19151_s19 + $0xb50] sm:$0xf0]  ;;  %v14661_v30 = vor.u32 %v18105_v24, %v14658_v11  ;;  %v17942_v11 = vld [vmem:[%s19151_s19 + $0x8ac] sm:$0xf] }
 0x38f   : > { %6862 = vmatpush.bf16.msra.mxu2 %v14817_v14  ;;  %v14341_v57 = vor.u32 %v18025_v7, %v14338_v18  ;;  %v14610_v18 = vld [vmem:[%s19151_s19 + $0xd70] sm:$0xf0] }
 0x391   : > { %6974 = vmatpush.bf16.msrb.mxu3 %v14009_v21  ;;  %v20806_v21 = vld [vmem:[%s19143_s27 + $0x8] sm:$0xff]  ;;  %v20811_v8 = vpop.f32.mrf.mxu0 }
 0x392   : > { %6899 = vmatpush.bf16.msrb.mxu1 %v14213_v37  ;;  %v4149_v56 = vperm.slane %v20806_v21, 5  ;;  %v4150_v25 = vperm.slane %v20806_v21, 6 }
 0x393   : > { %6907 = vmatpush.bf16.msrb.mxu2 %v14421_v17  ;;  %v18109_v17 = vld [vmem:[%s19151_s19 + $0xde4] sm:$0xf] }
 0x394   : > { %v5132_v15 = vadd.f32 %v20776_v12, %v4150_v25  ;;  %v14489_v12 = vor.u32 %v18064_v31, %v14488_v9  ;;  %v14770_v25 = vld [vmem:[%s19151_s19 + $0xeb0] sm:$0xf0]  ;;  %v14010_v9 = vld [vmem:[%s19151_s19 + $0x8b8] sm:$0xf0] }
 0x395   : > { %6975 = vmatpush.bf16.msrb.mxu3 %v13993_v33  ;;  %v14520_v33 = vld [vmem:[%s19151_s19 + $0xca8] sm:$0xf] }
 0x396   : > { %6900 = vmatpush.bf16.msrb.mxu1 %v14197_v63  ;;  %v14521_v37 = vor.u32 %v18072_v51, %v14520_v33  ;;  %v14440_v33 = vld [vmem:[%s19151_s19 + $0xc08] sm:$0xf]  ;;  %v18052_v51 = vld [vmem:[%s19151_s19 + $0xc14] sm:$0xf0] }
 0x397   : > { %6908 = vmatpush.bf16.msrb.mxu2 %v14405_v26  ;;  %v18017_v26 = vld [vmem:[%s19151_s19 + $0xb04] sm:$0xf] }
 0x399   : > { %6976 = vmatpush.bf16.msrb.mxu3 %v13977_v32  ;;  %v20801_v49 = vpop.f32.mrf.mxu1  ;;  %v14674_v32 = vld [vmem:[%s19151_s19 + $0xdf0] sm:$0xf0] }
 0x39a   : > { %6901 = vmatpush.bf16.msrb.mxu1 %v14181_v39  ;;  %v14677_v63 = vor.u32 %v18109_v17, %v14674_v32  ;;  %v5145_v39 = vadd.f32 %v20778_v27, %v5132_v15  ;;  %v14626_v27 = vld [vmem:[%s19151_s19 + $0xd90] sm:$0xf0]  ;;  %v18133_v32 = vld [vmem:[%s19151_s19 + $0xea4] sm:$0xf] }
 0x39b   : > { %6909 = vmatpush.bf16.msrb.mxu2 %v14389_v40  ;;  %v18101_v40 = vld [vmem:[%s19151_s19 + $0xda4] sm:$0xf]  ;;  %v14629_v20 = vor.u32 %v18097_v60, %v14626_v27  ;;  %v14594_v17 = vld [vmem:[%s19151_s19 + $0xd50] sm:$0xf0]  ;;  %v17938_v60 = vld [vmem:[%s19151_s19 + $0x88c] sm:$0xf] }
 0x39c   : > { %v18129_v15 = vld [vmem:[%s19151_s19 + $0xe84] sm:$0xf] }
 0x39d   : > { %6977 = vmatpush.bf16.msrb.mxu3 %v13961_v28 }
 0x39f   : > { %6910 = vmatpush.bf16.msrb.mxu2 %v14373_v52  ;;  %v14473_v52 = vor.u32 %v18060_v42, %v14472_v41  ;;  %v14013_v41 = vor.u32 %v17942_v11, %v14010_v9  ;;  %v14168_v42 = vld [vmem:[%s19151_s19 + $0x9e8] sm:$0xf]  ;;  %v18016_v11 = vld [vmem:[%s19151_s19 + $0xaf4] sm:$0xf0]  ;;  %v17926_v9 = vld [vmem:[%s19151_s19 + $0x82c] sm:$0xf] }
 0x3a1   : > { %6978 = vmatpush.bf16.msrb.mxu3 %v13945_v1  ;;  %v5172_v45 = vpop.f32.mrf.mxu1  ;;  %v14642_v1 = vld [vmem:[%s19151_s19 + $0xdb0] sm:$0xf0] }
 0x3a2   : > { %v14645_v48 = vor.u32 %v18101_v40, %v14642_v1  ;;  %v17950_v45 = vld [vmem:[%s19151_s19 + $0x8ec] sm:$0xf]  ;;  %v14738_v40 = vld [vmem:[%s19151_s19 + $0xe70] sm:$0xf0] }
 0x3a3   : > { %6911 = vmatpush.bf16.msrb.mxu2 %v14357_v5  ;;  %v18093_v5 = vld [vmem:[%s19151_s19 + $0xd64] sm:$0xf] }
 0x3a4   : > { %v14613_v36 = vor.u32 %v18093_v5, %v14610_v18  ;;  %v14152_v5 = vld [vmem:[%s19151_s19 + $0x9c8] sm:$0xf] }
 0x3a5   : > { %v5092_v4 = vpop.f32.mrf.mxu2  ;;  %6979 = vmatpush.bf16.msrb.mxu3 %v13929_v59  ;;  %v18141_v59 = vld [vmem:[%s19151_s19 + $0xee4] sm:$0xf] }
 0x3a6   : > { %v5093_v16 = vadd.f32 %v5092_v4, %v4149_v56  ;;  %v18056_v56 = vld [vmem:[%s19151_s19 + $0xc34] sm:$0xf0]  ;;  %v14805_v3 = vor.u32 %v18141_v59, %v14802_v61  ;;  %v18121_v59 = vld [vmem:[%s19151_s19 + $0xe44] sm:$0xf] }
 0x3a7   : > { %6912 = vmatpush.bf16.msrb.mxu2 %v14341_v57  ;;  %v14457_v7 = vor.u32 %v18056_v56, %v14456_v54  ;;  %v14042_v57 = vld [vmem:[%s19151_s19 + $0x8f8] sm:$0xf0]  ;;  %v14722_v56 = vld [vmem:[%s19151_s19 + $0xe50] sm:$0xf0] }
 0x3a8   : > { %v5106_v14 = vadd.f32 %v20748_v55, %v5093_v16  ;;  %6980 = vmatmul.bf16.vlgmr.msrb.gmra.mxu3 %v20556_v0  ;;  %v5198_v55 = vpop.f32.mrf.mxu0  ;;  %v18137_v16 = vld [vmem:[%s19151_s19 + $0xec4] sm:$0xf]  ;;  %v14045_v38 = vor.u32 %v17950_v45, %v14042_v57 }
 0x3a9   : > { %7024 = vmatpush.bf16.msra.mxu3 %v14553_v2  ;;  %v4151_v55 = vperm.slane %v20806_v21, 7 }
 0x3aa   : > { %v5119_v43 = vadd.f32 %v20734_v13, %v5106_v14  ;;  %v14306_v13 = vld [vmem:[%s19151_s19 + $0xb10] sm:$0xf0] }
 0x3ab   : > { %6913 = vmatpush.bf16.msrb.mxu2 %v14325_v23  ;;  %v14309_v34 = vor.u32 %v18017_v26, %v14306_v13  ;;  %v20863_v50 = vpop.f32.mrf.mxu3  ;;  %v17946_v23 = vld [vmem:[%s19151_s19 + $0x8cc] sm:$0xf]  ;;  %v18085_v26 = vld [vmem:[%s19151_s19 + $0xd24] sm:$0xf]  ;;  %v14578_v13 = vld [vmem:[%s19151_s19 + $0xd30] sm:$0xf0]  ;;  %v5171_v24 = vadd.f32 %v20801_v49, %v4151_v55 }
 0x3ac   : > { %v5205_v53 = vmax.f32 %v5119_v43, 0.0  ;;  %v18089_v43 = vld [vmem:[%s19151_s19 + $0xd44] sm:$0xf]  ;;  %v14581_v31 = vor.u32 %v18085_v26, %v14578_v13  ;;  %v14898_v13 = vld [vmem:[%s19151_s19 + $0xfb0] sm:$0xf0] }
 0x3ad   : > { %7025 = vmatpush.bf16.msra.mxu3 %v14537_v58  ;;  %v5094_v19 = vpop.f32.mrf.mxu2  ;;  %v14786_v58 = vld [vmem:[%s19151_s19 + $0xed0] sm:$0xf0]  ;;  %v18165_v26 = vld [vmem:[%s19151_s19 + $0xfa4] sm:$0xf] }
 0x3ae   : > { %v20829_v28 = vpack.c.bf16 %v5205_v53, %v5205_v53  ;;  %v14789_v35 = vor.u32 %v18137_v16, %v14786_v58  ;;  %v14026_v53 = vld [vmem:[%s19151_s19 + $0x8d8] sm:$0xf0]  ;;  %v14597_v19 = vor.u32 %v18089_v43, %v14594_v17  ;;  %v17934_v16 = vld [vmem:[%s19151_s19 + $0x86c] sm:$0xf]  ;;  %v14136_v17 = vld [vmem:[%s19151_s19 + $0x9a8] sm:$0xf] }
 0x3af   : > { %6914 = vmatpush.bf16.msrb.mxu2 %v14309_v34  ;;  %v14029_v21 = vor.u32 %v17946_v23, %v14026_v53  ;;  %v13978_v58 = vld [vmem:[%s19151_s19 + $0x878] sm:$0xf0]  ;;  %v18113_v53 = vld [vmem:[%s19151_s19 + $0xe04] sm:$0xf] }
 0x3b0   : > { %6837 = vmatmul.bf16.vlgmr.msra.gmra.mxu0 %v20829_v28 }
 0x3b1   : > { %7026 = vmatpush.bf16.msra.mxu3 %v14521_v37  ;;  %6933 = vmatpush.bf16.msra.mxu0 %v14677_v63  ;;  %v14441_v37 = vor.u32 %v18052_v51, %v14440_v33  ;;  %v14773_v63 = vor.u32 %v18133_v32, %v14770_v25  ;;  %v18117_v51 = vld [vmem:[%s19151_s19 + $0xe24] sm:$0xf]  ;;  %v17976_v32 = vld [vmem:[%s19151_s19 + $0x9b4] sm:$0xf0]  ;;  %v17930_v25 = vld [vmem:[%s19151_s19 + $0x84c] sm:$0xf] }
 0x3b3   : > { %v6775_v1 = vpop.f32.mrf.mxu3 }
 0x3b4   : > { %v14882_v1 = vld [vmem:[%s19151_s19 + $0xf90] sm:$0xf0] }
 0x3b5   : > { %7027 = vmatpush.bf16.msra.mxu3 %v14505_v29  ;;  %6934 = vmatpush.bf16.msra.mxu0 %v14661_v30  ;;  %v5157_v44 = vpop.f32.mrf.mxu2  ;;  %v14754_v29 = vld [vmem:[%s19151_s19 + $0xe90] sm:$0xf0]  ;;  %v18081_v30 = vld [vmem:[%s19151_s19 + $0xd04] sm:$0xf] }
 0x3b6   : > { %v5158_v46 = vadd.f32 %v5157_v44, %v5145_v39  ;;  %v14757_v34 = vor.u32 %v18129_v15, %v14754_v29  ;;  %v14562_v39 = vld [vmem:[%s19151_s19 + $0xd10] sm:$0xf0]  ;;  %v17984_v44 = vld [vmem:[%s19151_s19 + $0x9f4] sm:$0xf0]  ;;  %v14120_v15 = vld [vmem:[%s19151_s19 + $0x988] sm:$0xf] }
 0x3b7   : > { %v14169_v54 = vor.u32 %v17984_v44, %v14168_v42  ;;  %v17968_v42 = vld [vmem:[%s19151_s19 + $0x974] sm:$0xf0]  ;;  %v14280_v44 = vld [vmem:[%s19151_s19 + $0xac8] sm:$0xf] }
 0x3b8   : > { %v5206_v2 = vmax.f32 %v5158_v46, 0.0  ;;  %v13994_v46 = vld [vmem:[%s19151_s19 + $0x898] sm:$0xf0] }
 0x3b9   : > { %7028 = vmatpush.bf16.msra.mxu3 %v14489_v12  ;;  %6935 = vmatpush.bf16.msra.mxu0 %v14645_v48  ;;  %v18125_v12 = vld [vmem:[%s19151_s19 + $0xe64] sm:$0xf] }
 0x3ba   : > { %v20849_v4 = vpack.c.bf16 %v5206_v2, %v5206_v2  ;;  %v14741_v27 = vor.u32 %v18125_v12, %v14738_v40  ;;  %v18173_v2 = vld [vmem:[%s19151_s19 + $0xfe4] sm:$0xf] }
 0x3bb   : > { %v18161_v40 = vld [vmem:[%s19151_s19 + $0xf84] sm:$0xf] }
 0x3bc   : > { %6850 = vmatmul.bf16.vlgmr.msra.gmra.mxu1 %v20849_v4 }
 0x3bd   : > { %7029 = vmatpush.bf16.msra.mxu3 %v14473_v52  ;;  %6936 = vmatpush.bf16.msra.mxu0 %v14629_v20  ;;  %v5159_v14 = vpop.f32.mrf.mxu2  ;;  %v14565_v52 = vor.u32 %v18081_v30, %v14562_v39  ;;  %v14930_v20 = vld [vmem:[%s19151_s19 + $0xff0] sm:$0xf0]  ;;  %v14901_v30 = vor.u32 %v18165_v26, %v14898_v13  ;;  %v14056_v26 = vld [vmem:[%s19151_s19 + $0x908] sm:$0xf]  ;;  %v17956_v13 = vld [vmem:[%s19151_s19 + $0x914] sm:$0xf0] }
 0x3be   : > { %6946 = vmatpush.bf16.msra.mxu1 %v14805_v3  ;;  %v13997_v3 = vor.u32 %v17938_v60, %v13994_v46  ;;  %v14933_v33 = vor.u32 %v18173_v2, %v14930_v20  ;;  %v14706_v14 = vld [vmem:[%s19151_s19 + $0xe30] sm:$0xf0]  ;;  %v17922_v60 = vld [vmem:[%s19151_s19 + $0x80c] sm:$0xf]  ;;  %v13930_v46 = vld [vmem:[%s19151_s19 + $0x818] sm:$0xf0] }
 0x3bf   : > { %v14709_v55 = vor.u32 %v18117_v51, %v14706_v14  ;;  %v14866_v2 = vld [vmem:[%s19151_s19 + $0xf70] sm:$0xf0]  ;;  %v14088_v20 = vld [vmem:[%s19151_s19 + $0x948] sm:$0xf]  ;;  %v18153_v14 = vld [vmem:[%s19151_s19 + $0xf44] sm:$0xf] }
 0x3c0   : > { %6889 = vmatmul.bf16.vlgmr.msrb.gmra.mxu0 %v20689_v10 }
 0x3c1   : > { %7030 = vmatpush.bf16.msra.mxu3 %v14457_v7  ;;  %6937 = vmatpush.bf16.msra.mxu0 %v14613_v36  ;;  %v17980_v7 = vld [vmem:[%s19151_s19 + $0x9d4] sm:$0xf0]  ;;  %v18169_v36 = vld [vmem:[%s19151_s19 + $0xfc4] sm:$0xf] }
 0x3c2   : > { %6947 = vmatpush.bf16.msra.mxu1 %v14789_v35  ;;  %v14153_v57 = vor.u32 %v17980_v7, %v14152_v5  ;;  %v14914_v35 = vld [vmem:[%s19151_s19 + $0xfd0] sm:$0xf0]  ;;  %v17964_v5 = vld [vmem:[%s19151_s19 + $0x954] sm:$0xf0]  ;;  %v14264_v7 = vld [vmem:[%s19151_s19 + $0xaa8] sm:$0xf] }
 0x3c3   : > { %v14917_v23 = vor.u32 %v18169_v36, %v14914_v35  ;;  %v14089_v51 = vor.u32 %v17964_v5, %v14088_v20  ;;  %v14850_v36 = vld [vmem:[%s19151_s19 + $0xf50] sm:$0xf0]  ;;  %v14072_v35 = vld [vmem:[%s19151_s19 + $0x928] sm:$0xf] }
 0x3c4   : > { %v14408_v5 = vld [vmem:[%s19151_s19 + $0xbc8] sm:$0xf] }
 0x3c5   : > { %7031 = vmatpush.bf16.msra.mxu3 %v14441_v37  ;;  %6938 = vmatpush.bf16.msra.mxu0 %v14597_v19  ;;  %v13981_v37 = vor.u32 %v17934_v16, %v13978_v58  ;;  %v14690_v19 = vld [vmem:[%s19151_s19 + $0xe10] sm:$0xf0] }
 0x3c6   : > { %6948 = vmatpush.bf16.msra.mxu1 %v14773_v63  ;;  %v14137_v63 = vor.u32 %v17976_v32, %v14136_v17  ;;  %v18004_v17 = vld [vmem:[%s19151_s19 + $0xa94] sm:$0xf0] }
 0x3c8   : > { %7032 = vmatmul.bf16.vlgmr.msra.gmra.mxu3 %v20668_v22 }
 0x3c9   : > { %7076 = vmatpush.bf16.msrb.mxu3 %v14045_v38  ;;  %6939 = vmatpush.bf16.msra.mxu0 %v14581_v31  ;;  %v13962_v38 = vld [vmem:[%s19151_s19 + $0x858] sm:$0xf0] }
 0x3ca   : > { %6949 = vmatpush.bf16.msra.mxu1 %v14757_v34  ;;  %v13965_v29 = vor.u32 %v17930_v25, %v13962_v38  ;;  %v13946_v31 = vld [vmem:[%s19151_s19 + $0x838] sm:$0xf0]  ;;  %v14693_v34 = vor.u32 %v18113_v53, %v14690_v19  ;;  %v14853_v25 = vor.u32 %v18153_v14, %v14850_v36  ;;  %v18070_v38 = vld [vmem:[%s19151_s19 + $0xcac] sm:$0xf]  ;;  %v18149_v19 = vld [vmem:[%s19151_s19 + $0xf24] sm:$0xf] }
 0x3cc   : > { %6902 = vmatmul.bf16.vlgmr.msrb.gmra.mxu1 %v20720_v62 }
 0x3cd   : > { %v5183_v49 = vpop.f32.mrf.mxu2  ;;  %7077 = vmatpush.bf16.msrb.mxu3 %v14029_v21  ;;  %6940 = vmatpush.bf16.msra.mxu0 %v14565_v52  ;;  %v17972_v21 = vld [vmem:[%s19151_s19 + $0x994] sm:$0xf0]  ;;  %v14885_v52 = vor.u32 %v18161_v40, %v14882_v1  ;;  %v14818_v40 = vld [vmem:[%s19151_s19 + $0xf10] sm:$0xf0]  ;;  %v14216_v1 = vld [vmem:[%s19151_s19 + $0xa48] sm:$0xf] }
 0x3ce   : > { %v5184_v48 = vadd.f32 %v5183_v49, %v5171_v24  ;;  %6950 = vmatpush.bf16.msra.mxu1 %v14741_v27  ;;  %v14296_v24 = vld [vmem:[%s19151_s19 + $0xae8] sm:$0xf]  ;;  %v14121_v39 = vor.u32 %v17972_v21, %v14120_v15  ;;  %v18078_v27 = vld [vmem:[%s19151_s19 + $0xcec] sm:$0xf] }
 0x3cf   : > { %v14297_v12 = vor.u32 %v18016_v11, %v14296_v24  ;;  %v14104_v49 = vld [vmem:[%s19151_s19 + $0x968] sm:$0xf]  ;;  %v18112_v11 = vld [vmem:[%s19151_s19 + $0xdf4] sm:$0xf0] }
 0x3d0   : > { %v5197_v61 = vadd.f32 %v20811_v8, %v5184_v48  ;;  %v14725_v8 = vor.u32 %v18121_v59, %v14722_v56  ;;  %6941 = vmatmul.bf16.vlgmr.msra.gmra.mxu0 %v20829_v28  ;;  %v18012_v48 = vld [vmem:[%s19151_s19 + $0xad4] sm:$0xf0]  ;;  %v14554_v59 = vld [vmem:[%s19151_s19 + $0xcf8] sm:$0xf0]  ;;  %v18157_v56 = vld [vmem:[%s19151_s19 + $0xf64] sm:$0xf] }
 0x3d1   : > { %7078 = vmatpush.bf16.msrb.mxu3 %v14013_v41  ;;  %6985 = vmatpush.bf16.msrb.mxu0 %v14169_v54  ;;  %v13949_v41 = vor.u32 %v17926_v9, %v13946_v31  ;;  %v14281_v54 = vor.u32 %v18012_v48, %v14280_v44  ;;  %v14557_v16 = vor.u32 %v18078_v27, %v14554_v59  ;;  %v14232_v15 = vld [vmem:[%s19151_s19 + $0xa68] sm:$0xf]  ;;  %v20955_v9 = vld [vmem:[%s19153_s21 + $0x4] sm:$0xf]  ;;  %v18048_v44 = vld [vmem:[%s19151_s19 + $0xbf4] sm:$0xf0] }
 0x3d2   : > { %v5207_v18 = vmax.f32 %v5197_v61, 0.0  ;;  %6951 = vmatpush.bf16.msra.mxu1 %v14725_v8  ;;  %v14105_v61 = vor.u32 %v17968_v42, %v14104_v49  ;;  %v14869_v58 = vor.u32 %v18157_v56, %v14866_v2  ;;  %v18074_v8 = vld [vmem:[%s19151_s19 + $0xccc] sm:$0xf]  ;;  %v14680_v24 = vld [vmem:[%s19151_s19 + $0xde8] sm:$0xf] }
 0x3d3   : > { %v14681_v49 = vor.u32 %v18112_v11, %v14680_v24  ;;  %v14424_v42 = vld [vmem:[%s19151_s19 + $0xbe8] sm:$0xf]  ;;  %v18062_v59 = vld [vmem:[%s19151_s19 + $0xc6c] sm:$0xf]  ;;  %v18036_v11 = vld [vmem:[%s19151_s19 + $0xb94] sm:$0xf0] }
 0x3d4   : > { %v20896_v45 = vpack.c.bf16 %v5207_v18, %v5207_v18  ;;  %v18008_v18 = vld [vmem:[%s19151_s19 + $0xab4] sm:$0xf0]  ;;  %v14425_v56 = vor.u32 %v18048_v44, %v14424_v42  ;;  %v14200_v2 = vld [vmem:[%s19151_s19 + $0xa28] sm:$0xf] }
 0x3d5   : > { %v5185_v43 = vpop.f32.mrf.mxu2  ;;  %7079 = vmatpush.bf16.msrb.mxu3 %v13997_v3  ;;  %6986 = vmatpush.bf16.msrb.mxu0 %v14153_v57  ;;  %v13933_v3 = vor.u32 %v17922_v60, %v13930_v46  ;;  %v14265_v57 = vor.u32 %v18008_v18, %v14264_v7  ;;  %v14664_v60 = vld [vmem:[%s19151_s19 + $0xdc8] sm:$0xf]  ;;  %v18108_v46 = vld [vmem:[%s19151_s19 + $0xdd4] sm:$0xf0] }
 0x3d6   : > { %6863 = vmatmul.bf16.vlgmr.msra.gmra.mxu2 %v20896_v45  ;;  %6952 = vmatpush.bf16.msra.mxu1 %v14709_v55  ;;  %v17960_v43 = vld [vmem:[%s19151_s19 + $0x934] sm:$0xf0]  ;;  %v14522_v55 = vld [vmem:[%s19151_s19 + $0xcb8] sm:$0xf0]  ;;  %v14665_v20 = vor.u32 %v18108_v46, %v14664_v60  ;;  %v14376_v24 = vld [vmem:[%s19151_s19 + $0xb88] sm:$0xf] }
 0x3d7   : > { %6959 = vmatpush.bf16.msra.mxu2 %v14933_v33  ;;  %v14538_v33 = vld [vmem:[%s19151_s19 + $0xcd8] sm:$0xf0]  ;;  %v14525_v21 = vor.u32 %v18070_v38, %v14522_v55  ;;  %v18044_v7 = vld [vmem:[%s19151_s19 + $0xbd4] sm:$0xf0]  ;;  %v14360_v44 = vld [vmem:[%s19151_s19 + $0xb68] sm:$0xf] }
 0x3d8   : > { %v14541_v32 = vor.u32 %v18074_v8, %v14538_v33  ;;  %v18058_v33 = vld [vmem:[%s19151_s19 + $0xc4c] sm:$0xf]  ;;  %v14409_v36 = vor.u32 %v18044_v7, %v14408_v5  ;;  %v18100_v55 = vld [vmem:[%s19151_s19 + $0xd94] sm:$0xf0]  ;;  %v14600_v60 = vld [vmem:[%s19151_s19 + $0xd48] sm:$0xf] }
 0x3d9   : > { %7080 = vmatpush.bf16.msrb.mxu3 %v13981_v37  ;;  %6987 = vmatpush.bf16.msrb.mxu0 %v14137_v63  ;;  %v14248_v37 = vld [vmem:[%s19151_s19 + $0xa88] sm:$0xf]  ;;  %v14834_v63 = vld [vmem:[%s19151_s19 + $0xf30] sm:$0xf0] }
 0x3da   : > { %6953 = vmatpush.bf16.msra.mxu1 %v14693_v34  ;;  %v14249_v53 = vor.u32 %v18004_v17, %v14248_v37  ;;  %v14837_v31 = vor.u32 %v18149_v19, %v14834_v63  ;;  %v18066_v34 = vld [vmem:[%s19151_s19 + $0xc8c] sm:$0xf]  ;;  %v14392_v37 = vld [vmem:[%s19151_s19 + $0xba8] sm:$0xf]  ;;  %v18040_v17 = vld [vmem:[%s19151_s19 + $0xbb4] sm:$0xf0] }
 0x3db   : > { %6960 = vmatpush.bf16.msra.mxu2 %v14917_v23  ;;  %v14073_v23 = vor.u32 %v17960_v43, %v14072_v35  ;;  %v14184_v35 = vld [vmem:[%s19151_s19 + $0xa08] sm:$0xf]  ;;  %v17988_v43 = vld [vmem:[%s19151_s19 + $0xa14] sm:$0xf0]  ;;  %v18054_v63 = vld [vmem:[%s19151_s19 + $0xc2c] sm:$0xf] }
 0x3dc   : > { %v14584_v5 = vld [vmem:[%s19151_s19 + $0xd28] sm:$0xf] }
 0x3dd   : > { %7081 = vmatpush.bf16.msrb.mxu3 %v13965_v29  ;;  %6988 = vmatpush.bf16.msrb.mxu0 %v14121_v39  ;;  %v18000_v29 = vld [vmem:[%s19151_s19 + $0xa74] sm:$0xf0] }
 0x3de   : > { %6998 = vmatpush.bf16.msrb.mxu1 %v14297_v12  ;;  %v14233_v39 = vor.u32 %v18000_v29, %v14232_v15  ;;  %v18145_v12 = vld [vmem:[%s19151_s19 + $0xf04] sm:$0xf]  ;;  %v14393_v15 = vor.u32 %v18040_v17, %v14392_v37  ;;  %v18084_v37 = vld [vmem:[%s19151_s19 + $0xd14] sm:$0xf0]  ;;  %v14744_v17 = vld [vmem:[%s19151_s19 + $0xe68] sm:$0xf] }
 0x3df   : > { %6961 = vmatpush.bf16.msra.mxu2 %v14901_v30  ;;  %6954 = vmatmul.bf16.vlgmr.msra.gmra.mxu1 %v20849_v4  ;;  %v14057_v30 = vor.u32 %v17956_v13, %v14056_v26  ;;  %v14821_v27 = vor.u32 %v18145_v12, %v14818_v40  ;;  %v14458_v26 = vld [vmem:[%s19151_s19 + $0xc38] sm:$0xf0]  ;;  %v14185_v13 = vor.u32 %v17988_v43, %v14184_v35  ;;  %v18050_v12 = vld [vmem:[%s19151_s19 + $0xc0c] sm:$0xf]  ;;  %v14328_v35 = vld [vmem:[%s19151_s19 + $0xb28] sm:$0xf] }
 0x3e0   : > { %v14442_v40 = vld [vmem:[%s19151_s19 + $0xc18] sm:$0xf0]  ;;  %v18024_v43 = vld [vmem:[%s19151_s19 + $0xb34] sm:$0xf0] }
 0x3e1   : > { %7082 = vmatpush.bf16.msrb.mxu3 %v13949_v41  ;;  %6989 = vmatpush.bf16.msrb.mxu0 %v14105_v61  ;;  %v17996_v41 = vld [vmem:[%s19151_s19 + $0xa54] sm:$0xf0]  ;;  %v14490_v61 = vld [vmem:[%s19151_s19 + $0xc78] sm:$0xf0] }
 0x3e2   : > { %6999 = vmatpush.bf16.msrb.mxu1 %v14281_v54  ;;  %v14217_v54 = vor.u32 %v17996_v41, %v14216_v1  ;;  %v14493_v18 = vor.u32 %v18062_v59, %v14490_v61  ;;  %v14776_v59 = vld [vmem:[%s19151_s19 + $0xea8] sm:$0xf]  ;;  %v18136_v61 = vld [vmem:[%s19151_s19 + $0xeb4] sm:$0xf0] }
 0x3e3   : > { %6962 = vmatpush.bf16.msra.mxu2 %v14885_v52  ;;  %v5476_v52 = vperm.slane %v20955_v9, 0 }
 0x3e5   : > { %7083 = vmatpush.bf16.msrb.mxu3 %v13933_v3  ;;  %6990 = vmatpush.bf16.msrb.mxu0 %v14089_v51  ;;  %v17992_v3 = vld [vmem:[%s19151_s19 + $0xa34] sm:$0xf0]  ;;  %v6774_v8 = vadd.f32 %v20863_v50, %v5476_v52  ;;  %v14474_v51 = vld [vmem:[%s19151_s19 + $0xc58] sm:$0xf0]  ;;  %v14445_v52 = vor.u32 %v18050_v12, %v14442_v40 }
 0x3e6   : > { %6915 = vmatmul.bf16.vlgmr.msrb.gmra.mxu2 %v20768_v6  ;;  %7000 = vmatpush.bf16.msrb.mxu1 %v14265_v57  ;;  %v14201_v14 = vor.u32 %v17992_v3, %v14200_v2  ;;  %v14477_v38 = vor.u32 %v18058_v33, %v14474_v51  ;;  %v14777_v2 = vor.u32 %v18136_v61, %v14776_v59  ;;  %v18028_v3 = vld [vmem:[%s19151_s19 + $0xb54] sm:$0xf0]  ;;  %v17970_v61 = vld [vmem:[%s19151_s19 + $0x98c] sm:$0xf] }
 0x3e7   : > { %6963 = vmatpush.bf16.msra.mxu2 %v14869_v58  ;;  %v18104_v58 = vld [vmem:[%s19151_s19 + $0xdb4] sm:$0xf0] }
 0x3e8   : > { %7084 = vmatmul.bf16.vlgmr.msrb.gmra.mxu3 %v20556_v0  ;;  %v14506_v0 = vld [vmem:[%s19151_s19 + $0xc98] sm:$0xf0]  ;;  %v18120_v40 = vld [vmem:[%s19151_s19 + $0xe34] sm:$0xf0] }
 0x3e9   : > { %7128 = vmatpush.bf16.msra.mxu3 %v14557_v16  ;;  %6991 = vmatpush.bf16.msrb.mxu0 %v14073_v23  ;;  %v14509_v48 = vor.u32 %v18066_v34, %v14506_v0  ;;  %v14648_v16 = vld [vmem:[%s19151_s19 + $0xda8] sm:$0xf]  ;;  %v14461_v34 = vor.u32 %v18054_v63, %v14458_v26  ;;  %v18096_v0 = vld [vmem:[%s19151_s19 + $0xd74] sm:$0xf0] }
 0x3ea   : > { %7001 = vmatpush.bf16.msrb.mxu1 %v14249_v53  ;;  %v14649_v50 = vor.u32 %v18104_v58, %v14648_v16  ;;  %v14808_v23 = vld [vmem:[%s19151_s19 + $0xee8] sm:$0xf]  ;;  %v18144_v53 = vld [vmem:[%s19151_s19 + $0xef4] sm:$0xf0] }
 0x3eb   : > { %6964 = vmatpush.bf16.msra.mxu2 %v14853_v25  ;;  %v20980_v57 = vpop.f32.mrf.mxu3  ;;  %v14760_v16 = vld [vmem:[%s19151_s19 + $0xe88] sm:$0xf]  ;;  %v18132_v58 = vld [vmem:[%s19151_s19 + $0xe94] sm:$0xf0] }
 0x3ec   : > { %v18020_v63 = vld [vmem:[%s19151_s19 + $0xb14] sm:$0xf0] }
 0x3ed   : > { %7129 = vmatpush.bf16.msra.mxu3 %v14541_v32  ;;  %6992 = vmatpush.bf16.msrb.mxu0 %v14057_v30  ;;  %v14632_v32 = vld [vmem:[%s19151_s19 + $0xd88] sm:$0xf]  ;;  %v6786_v25 = vpop.f32.mrf.mxu0  ;;  %v18168_v59 = vld [vmem:[%s19151_s19 + $0xfb4] sm:$0xf0] }
 0x3ee   : > { %7002 = vmatpush.bf16.msrb.mxu1 %v14233_v39  ;;  %v6787_v19 = vadd.f32 %v6786_v25, %v6774_v8  ;;  %v14633_v29 = vor.u32 %v18100_v55, %v14632_v32  ;;  %v14792_v30 = vld [vmem:[%s19151_s19 + $0xec8] sm:$0xf]  ;;  %v18140_v39 = vld [vmem:[%s19151_s19 + $0xed4] sm:$0xf0]  ;;  %v17982_v25 = vld [vmem:[%s19151_s19 + $0x9ec] sm:$0xf]  ;;  %v14329_v55 = vor.u32 %v18024_v43, %v14328_v35 }
 0x3ef   : > { %6965 = vmatpush.bf16.msra.mxu2 %v14837_v31  ;;  %v14616_v31 = vld [vmem:[%s19151_s19 + $0xd68] sm:$0xf]  ;;  %v14793_v42 = vor.u32 %v18140_v39, %v14792_v30  ;;  %v18128_v32 = vld [vmem:[%s19151_s19 + $0xe74] sm:$0xf0]  ;;  %v14282_v35 = vld [vmem:[%s19151_s19 + $0xad8] sm:$0xf0] }
 0x3f0   : > { %6993 = vmatmul.bf16.vlgmr.msrb.gmra.mxu0 %v20689_v10  ;;  %v14617_v41 = vor.u32 %v18096_v0, %v14616_v31  ;;  %v14712_v39 = vld [vmem:[%s19151_s19 + $0xe28] sm:$0xf] }
 0x3f1   : > { %7130 = vmatpush.bf16.msra.mxu3 %v14525_v21  ;;  %7037 = vmatpush.bf16.msra.mxu0 %v14681_v49  ;;  %v14809_v21 = vor.u32 %v18144_v53, %v14808_v23  ;;  %v14377_v49 = vor.u32 %v18036_v11, %v14376_v24  ;;  %v14745_v53 = vor.u32 %v18128_v32, %v14744_v17  ;;  %v17978_v24 = vld [vmem:[%s19151_s19 + $0x9cc] sm:$0xf]  ;;  %v14154_v11 = vld [vmem:[%s19151_s19 + $0x9d8] sm:$0xf0]  ;;  %v14872_v32 = vld [vmem:[%s19151_s19 + $0xf68] sm:$0xf] }
 0x3f2   : > { %7003 = vmatpush.bf16.msrb.mxu1 %v14217_v54  ;;  %v14157_v12 = vor.u32 %v17978_v24, %v14154_v11  ;;  %v14074_v24 = vld [vmem:[%s19151_s19 + $0x938] sm:$0xf0]  ;;  %v18002_v11 = vld [vmem:[%s19151_s19 + $0xa8c] sm:$0xf] }
 0x3f3   : > { %6966 = vmatpush.bf16.msra.mxu2 %v14821_v27  ;;  %v6827_v1 = vpop.f32.mrf.mxu3  ;;  %v18092_v27 = vld [vmem:[%s19151_s19 + $0xd54] sm:$0xf0] }
 0x3f4   : > { %v14920_v1 = vld [vmem:[%s19151_s19 + $0xfc8] sm:$0xf] }
 0x3f5   : > { %7131 = vmatpush.bf16.msra.mxu3 %v14509_v48  ;;  %7038 = vmatpush.bf16.msra.mxu0 %v14665_v20  ;;  %v18032_v48 = vld [vmem:[%s19151_s19 + $0xb74] sm:$0xf0]  ;;  %v6788_v46 = vpop.f32.mrf.mxu0  ;;  %v14344_v20 = vld [vmem:[%s19151_s19 + $0xb48] sm:$0xf] }
 0x3f6   : > { %6967 = vmatmul.bf16.vlgmr.msra.gmra.mxu2 %v20896_v45  ;;  %7004 = vmatpush.bf16.msrb.mxu1 %v14201_v14  ;;  %v14361_v54 = vor.u32 %v18032_v48, %v14360_v44  ;;  %v14345_v51 = vor.u32 %v18028_v3, %v14344_v20  ;;  %v14713_v44 = vor.u32 %v18120_v40, %v14712_v39  ;;  %v18116_v46 = vld [vmem:[%s19151_s19 + $0xe14] sm:$0xf0] }
 0x3f7   : > { %7011 = vmatpush.bf16.msrb.mxu2 %v14425_v56  ;;  %v14601_v56 = vor.u32 %v18092_v27, %v14600_v60  ;;  %v14696_v60 = vld [vmem:[%s19151_s19 + $0xe08] sm:$0xf]  ;;  %v18152_v40 = vld [vmem:[%s19151_s19 + $0xf34] sm:$0xf0] }
 0x3f8   : > { %v14904_v27 = vld [vmem:[%s19151_s19 + $0xfa8] sm:$0xf]  ;;  %v14697_v3 = vor.u32 %v18116_v46, %v14696_v60  ;;  %v18183_v60 = vld [vmem:[%s20042_s14 + $0x130] sm:$0xff] }
 0x3f9   : > { %7132 = vmatpush.bf16.msra.mxu3 %v14493_v18  ;;  %7039 = vmatpush.bf16.msra.mxu0 %v14649_v50  ;;  %v6799_v7 = vpop.f32.mrf.mxu1  ;;  %v18088_v18 = vld [vmem:[%s19151_s19 + $0xd34] sm:$0xf0]  ;;  %v14568_v50 = vld [vmem:[%s19151_s19 + $0xd08] sm:$0xf] }
 0x3fa   : > { %7005 = vmatpush.bf16.msrb.mxu1 %v14185_v13  ;;  %v21014_v8 = vadd.f32 %v6799_v7, %v6787_v19  ;;  %v14585_v14 = vor.u32 %v18088_v18, %v14584_v5  ;;  %v14569_v23 = vor.u32 %v18084_v37, %v14568_v50  ;;  %v14312_v19 = vld [vmem:[%s19151_s19 + $0xb08] sm:$0xf]  ;;  %v14905_v5 = vor.u32 %v18168_v59, %v14904_v27 }
 0x3fb   : > { %7012 = vmatpush.bf16.msrb.mxu2 %v14409_v36  ;;  %v21016_v33 = vpop.f32.mrf.mxu3  ;;  %v14761_v36 = vor.u32 %v18132_v58, %v14760_v16  ;;  %v14888_v16 = vld [vmem:[%s19151_s19 + $0xf88] sm:$0xf]  ;;  %v18164_v58 = vld [vmem:[%s19151_s19 + $0xf94] sm:$0xf0] }
 0x3fc   : > { %v14889_v43 = vor.u32 %v18164_v58, %v14888_v16  ;;  %v14824_v59 = vld [vmem:[%s19151_s19 + $0xf08] sm:$0xf]  ;;  %v18182_v16 = vld [vmem:[%s20042_s14 + $0x128] sm:$0xff] }
 0x3fd   : > { %7133 = vmatpush.bf16.msra.mxu3 %v14477_v38  ;;  %7040 = vmatpush.bf16.msra.mxu0 %v14633_v29  ;;  %v14170_v38 = vld [vmem:[%s19151_s19 + $0x9f8] sm:$0xf0]  ;;  %v14936_v29 = vld [vmem:[%s19151_s19 + $0xfe8] sm:$0xf] }
 0x3fe   : > { %7050 = vmatpush.bf16.msra.mxu1 %v14809_v21  ;;  %v14173_v13 = vor.u32 %v17982_v25, %v14170_v38  ;;  %v18176_v21 = vld [vmem:[%s19151_s19 + $0xff4] sm:$0xf0]  ;;  %v17962_v38 = vld [vmem:[%s19151_s19 + $0x94c] sm:$0xf] }
 0x3ff   : > { %7013 = vmatpush.bf16.msrb.mxu2 %v14393_v15  ;;  %7006 = vmatmul.bf16.vlgmr.msrb.gmra.mxu1 %v20720_v62  ;;  %v18124_v15 = vld [vmem:[%s19151_s19 + $0xe54] sm:$0xf0]  ;;  %v14937_v30 = vor.u32 %v18176_v21, %v14936_v29  ;;  %v17958_v21 = vld [vmem:[%s19151_s19 + $0x92c] sm:$0xf] }
 0x400   : > { %v18160_v25 = vld [vmem:[%s19151_s19 + $0xf74] sm:$0xf0] }
 0x401   : > { %7134 = vmatpush.bf16.msra.mxu3 %v14461_v34  ;;  %7041 = vmatpush.bf16.msra.mxu0 %v14617_v41  ;;  %v6801_v26 = vpop.f32.mrf.mxu1  ;;  %v14313_v34 = vor.u32 %v18020_v63, %v14312_v19  ;;  %v17974_v41 = vld [vmem:[%s19151_s19 + $0x9ac] sm:$0xf]  ;;  %v14266_v19 = vld [vmem:[%s19151_s19 + $0xab8] sm:$0xf0]  ;;  %v18156_v29 = vld [vmem:[%s19151_s19 + $0xf54] sm:$0xf0] }
 0x402   : > { %7051 = vmatpush.bf16.msra.mxu1 %v14793_v42  ;;  %v14138_v42 = vld [vmem:[%s19151_s19 + $0x9b8] sm:$0xf0] }
 0x403   : > { %7014 = vmatpush.bf16.msrb.mxu2 %v14377_v49  ;;  %v6879_v31 = vpop.f32.mrf.mxu3  ;;  %v18172_v49 = vld [vmem:[%s19151_s19 + $0xfd4] sm:$0xf0] }
 0x404   : > { %v14921_v48 = vor.u32 %v18172_v49, %v14920_v1  ;;  %v14250_v31 = vld [vmem:[%s19151_s19 + $0xa98] sm:$0xf0]  ;;  %v17954_v1 = vld [vmem:[%s19151_s19 + $0x90c] sm:$0xf] }
 0x405   : > { %7135 = vmatpush.bf16.msra.mxu3 %v14445_v52  ;;  %7042 = vmatpush.bf16.msra.mxu0 %v14601_v56  ;;  %v14141_v52 = vor.u32 %v17974_v41, %v14138_v42  ;;  %v18014_v56 = vld [vmem:[%s19151_s19 + $0xaec] sm:$0xf]  ;;  %v14253_v39 = vor.u32 %v18002_v11, %v14250_v31  ;;  %v14058_v49 = vld [vmem:[%s19151_s19 + $0x918] sm:$0xf0] }
 0x406   : > { %7052 = vmatpush.bf16.msra.mxu1 %v14777_v2  ;;  %v14298_v2 = vld [vmem:[%s19151_s19 + $0xaf8] sm:$0xf0]  ;;  %v17998_v41 = vld [vmem:[%s19151_s19 + $0xa6c] sm:$0xf] }
 0x407   : > { %7015 = vmatpush.bf16.msrb.mxu2 %v14361_v54  ;;  %v14122_v54 = vld [vmem:[%s19151_s19 + $0x998] sm:$0xf0]  ;;  %v14301_v18 = vor.u32 %v18014_v56, %v14298_v2  ;;  %v18034_v31 = vld [vmem:[%s19151_s19 + $0xb8c] sm:$0xf] }
 0x408   : > { %7136 = vmatmul.bf16.vlgmr.msra.gmra.mxu3 %v20668_v22  ;;  %v14728_v22 = vld [vmem:[%s19151_s19 + $0xe48] sm:$0xf]  ;;  %v14125_v7 = vor.u32 %v17970_v61, %v14122_v54  ;;  %v14234_v42 = vld [vmem:[%s19151_s19 + $0xa78] sm:$0xf0]  ;;  %v18148_v61 = vld [vmem:[%s19151_s19 + $0xf14] sm:$0xf0] }
 0x409   : > { %7043 = vmatpush.bf16.msra.mxu0 %v14585_v14  ;;  %v14729_v0 = vor.u32 %v18124_v15, %v14728_v22  ;;  %v14106_v14 = vld [vmem:[%s19151_s19 + $0x978] sm:$0xf0]  ;;  %v14873_v22 = vor.u32 %v18160_v25, %v14872_v32  ;;  %v14856_v15 = vld [vmem:[%s19151_s19 + $0xf48] sm:$0xf]  ;;  %v14237_v27 = vor.u32 %v17998_v41, %v14234_v42  ;;  %v17994_v54 = vld [vmem:[%s19151_s19 + $0xa4c] sm:$0xf]  ;;  %v14825_v58 = vor.u32 %v18148_v61, %v14824_v59 }
 0x40a   : > { %7053 = vmatpush.bf16.msra.mxu1 %v14761_v36  ;;  %v18010_v36 = vld [vmem:[%s19151_s19 + $0xacc] sm:$0xf]  ;;  %v14218_v2 = vld [vmem:[%s19151_s19 + $0xa58] sm:$0xf0]  ;;  %v18178_v61 = vld [vmem:[%s20042_s14 + $0x108] sm:$0xff] }
 0x40b   : > { %7016 = vmatpush.bf16.msrb.mxu2 %v14345_v51  ;;  %v21051_v20 = vpop.f32.mrf.mxu3  ;;  %v17966_v51 = vld [vmem:[%s19151_s19 + $0x96c] sm:$0xf]  ;;  %v14285_v17 = vor.u32 %v18010_v36, %v14282_v35  ;;  %v14650_v32 = vld [vmem:[%s19151_s19 + $0xdb8] sm:$0xf0] }
 0x40c   : > { %v14109_v37 = vor.u32 %v17966_v51, %v14106_v14  ;;  %v14221_v51 = vor.u32 %v17994_v54, %v14218_v2  ;;  %v17990_v36 = vld [vmem:[%s19151_s19 + $0xa2c] sm:$0xf]  ;;  %v14778_v59 = vld [vmem:[%s19151_s19 + $0xeb8] sm:$0xf0] }
 0x40d   : > { %7044 = vmatpush.bf16.msra.mxu0 %v14569_v23  ;;  %v14090_v23 = vld [vmem:[%s19151_s19 + $0x958] sm:$0xf0]  ;;  %v18181_v25 = vld [vmem:[%s20042_s14 + $0x120] sm:$0xff] }
 0x40e   : > { %7054 = vmatpush.bf16.msra.mxu1 %v14745_v53  ;;  %v18006_v53 = vld [vmem:[%s19151_s19 + $0xaac] sm:$0xf] }
 0x40f   : > { %7017 = vmatpush.bf16.msrb.mxu2 %v14329_v55  ;;  %v18030_v42 = vld [vmem:[%s19151_s19 + $0xb6c] sm:$0xf] }
 0x410   : > { %7045 = vmatmul.bf16.vlgmr.msra.gmra.mxu0 %v20829_v28  ;;  %v18026_v2 = vld [vmem:[%s19151_s19 + $0xb4c] sm:$0xf] }
 0x411   : > { %7089 = vmatpush.bf16.msrb.mxu0 %v14173_v13  ;;  %v6812_v50 = vpop.f32.mrf.mxu2  ;;  %v14093_v13 = vor.u32 %v17962_v38, %v14090_v23  ;;  %v17986_v23 = vld [vmem:[%s19151_s19 + $0xa0c] sm:$0xf] }
 0x412   : > { %7055 = vmatpush.bf16.msra.mxu1 %v14729_v0  ;;  %v6813_v55 = vadd.f32 %v6812_v50, %v21014_v8  ;;  %v14269_v8 = vor.u32 %v18006_v53, %v14266_v19  ;;  %v18042_v50 = vld [vmem:[%s19151_s19 + $0xbcc] sm:$0xf]  ;;  %v14186_v53 = vld [vmem:[%s19151_s19 + $0xa18] sm:$0xf0] }
 0x413   : > { %7018 = vmatpush.bf16.msrb.mxu2 %v14313_v34  ;;  %v6931_v63 = vpop.f32.mrf.mxu3  ;;  %v18184_v34 = vld [vmem:[%s20042_s14 + $0x138] sm:$0xff]  ;;  %v18038_v19 = vld [vmem:[%s19151_s19 + $0xbac] sm:$0xf] }
 0x414   : > { %v21068_v26 = vadd.f32 %v20980_v57, %v6813_v55  ;;  %v14857_v57 = vor.u32 %v18156_v29, %v14856_v15  ;;  %7450 = vmatpush.bf16.msrb.mxu3 %v18184_v34  ;;  %v14810_v15 = vld [vmem:[%s19151_s19 + $0xef8] sm:$0xf0]  ;;  %v18180_v29 = vld [vmem:[%s20042_s14 + $0x118] sm:$0xff] }
 0x415   : > { %7090 = vmatpush.bf16.msrb.mxu0 %v14157_v12  ;;  %v14840_v12 = vld [vmem:[%s19151_s19 + $0xf28] sm:$0xf] }
 0x416   : > { %7019 = vmatmul.bf16.vlgmr.msrb.gmra.mxu2 %v20768_v6  ;;  %7056 = vmatpush.bf16.msra.mxu1 %v14713_v44  ;;  %v18110_v44 = vld [vmem:[%s19151_s19 + $0xdec] sm:$0xf]  ;;  %v14841_v46 = vor.u32 %v18152_v40, %v14840_v12  ;;  %v14618_v12 = vld [vmem:[%s19151_s19 + $0xd78] sm:$0xf0] }
 0x417   : > { %7063 = vmatpush.bf16.msra.mxu2 %v14937_v30  ;;  %v14077_v30 = vor.u32 %v17958_v21, %v14074_v24  ;;  %v14189_v24 = vor.u32 %v17986_v23, %v14186_v53  ;;  %v18138_v40 = vld [vmem:[%s19151_s19 + $0xecc] sm:$0xf] }
 0x418   : > { %7451 = vmatpush.bf16.msrb.mxu3 %v18183_v60  ;;  %v14362_v60 = vld [vmem:[%s19151_s19 + $0xb78] sm:$0xf0]  ;;  %v18018_v53 = vld [vmem:[%s19151_s19 + $0xb0c] sm:$0xf] }
 0x419   : > { %7091 = vmatpush.bf16.msrb.mxu0 %v14141_v52  ;;  %v6814_v0 = vpop.f32.mrf.mxu2  ;;  %v14061_v52 = vor.u32 %v17954_v1, %v14058_v49  ;;  %v14794_v1 = vld [vmem:[%s19151_s19 + $0xed8] sm:$0xf0] }
 0x41a   : > { %7057 = vmatpush.bf16.msra.mxu1 %v14697_v3  ;;  %v18046_v3 = vld [vmem:[%s19151_s19 + $0xbec] sm:$0xf]  ;;  %v18179_v49 = vld [vmem:[%s20042_s14 + $0x110] sm:$0xff] }
 0x41b   : > { %7064 = vmatpush.bf16.msra.mxu2 %v14921_v48  ;;  %v14682_v48 = vld [vmem:[%s19151_s19 + $0xdf8] sm:$0xf0] }
 0x41c   : > { %v14685_v56 = vor.u32 %v18110_v44, %v14682_v48  ;;  %7452 = vmatpush.bf16.msrb.mxu3 %v18182_v16  ;;  %v14797_v48 = vor.u32 %v18138_v40, %v14794_v1  ;;  %v18086_v16 = vld [vmem:[%s19151_s19 + $0xd2c] sm:$0xf]  ;;  %v14922_v40 = vld [vmem:[%s19151_s19 + $0xfd8] sm:$0xf0] }
 0x41d   : > { %7092 = vmatpush.bf16.msrb.mxu0 %v14125_v7  ;;  %7058 = vmatmul.bf16.vlgmr.msra.gmra.mxu1 %v20849_v4  ;;  %v18106_v7 = vld [vmem:[%s19151_s19 + $0xdcc] sm:$0xf]  ;;  %v18191_v1 = vld [vmem:[%s20042_s14 + $0x170] sm:$0xff] }
 0x41e   : > { %7102 = vmatpush.bf16.msrb.mxu1 %v14301_v18  ;;  %v14666_v18 = vld [vmem:[%s19151_s19 + $0xdd8] sm:$0xf0] }
 0x41f   : > { %7065 = vmatpush.bf16.msra.mxu2 %v14905_v5  ;;  %v14426_v5 = vld [vmem:[%s19151_s19 + $0xbf8] sm:$0xf0]  ;;  %v14669_v35 = vor.u32 %v18106_v7, %v14666_v18 }
 0x420   : > { %v14429_v14 = vor.u32 %v18046_v3, %v14426_v5  ;;  %7453 = vmatpush.bf16.msrb.mxu3 %v18181_v25  ;;  %v14346_v18 = vld [vmem:[%s19151_s19 + $0xb58] sm:$0xf0] }
 0x421   : > { %7093 = vmatpush.bf16.msrb.mxu0 %v14109_v37  ;;  %v14410_v37 = vld [vmem:[%s19151_s19 + $0xbd8] sm:$0xf0] }
 0x422   : > { %7103 = vmatpush.bf16.msrb.mxu1 %v14285_v17  ;;  %v18102_v17 = vld [vmem:[%s19151_s19 + $0xdac] sm:$0xf]  ;;  %v14413_v55 = vor.u32 %v18042_v50, %v14410_v37  ;;  %v14570_v25 = vld [vmem:[%s19151_s19 + $0xd18] sm:$0xf0] }
 0x423   : > { %7066 = vmatpush.bf16.msra.mxu2 %v14889_v43  ;;  %v14202_v43 = vld [vmem:[%s19151_s19 + $0xa38] sm:$0xf0]  ;;  %v14653_v63 = vor.u32 %v18102_v17, %v14650_v32  ;;  %v18022_v37 = vld [vmem:[%s19151_s19 + $0xb2c] sm:$0xf] }
 0x424   : > { %v14205_v38 = vor.u32 %v17990_v36, %v14202_v43  ;;  %7454 = vmatpush.bf16.msrb.mxu3 %v18180_v29  ;;  %v14349_v36 = vor.u32 %v18026_v2, %v14346_v18  ;;  %v14330_v17 = vld [vmem:[%s19151_s19 + $0xb38] sm:$0xf0]  ;;  %v18082_v32 = vld [vmem:[%s19151_s19 + $0xd0c] sm:$0xf]  ;;  %v18188_v18 = vld [vmem:[%s20042_s14 + $0x158] sm:$0xff] }
 0x425   : > { %7094 = vmatpush.bf16.msrb.mxu0 %v14093_v13  ;;  %v18098_v13 = vld [vmem:[%s19151_s19 + $0xd8c] sm:$0xf]  ;;  %v14333_v23 = vor.u32 %v18022_v37, %v14330_v17  ;;  %v14938_v29 = vld [vmem:[%s19151_s19 + $0xff8] sm:$0xf0] }
 0x426   : > { %7104 = vmatpush.bf16.msrb.mxu1 %v14269_v8  ;;  %v14634_v8 = vld [vmem:[%s19151_s19 + $0xd98] sm:$0xf0]  ;;  %v18189_v2 = vld [vmem:[%s20042_s14 + $0x160] sm:$0xff] }
 0x427   : > { %7067 = vmatpush.bf16.msra.mxu2 %v14873_v22  ;;  %v14394_v22 = vld [vmem:[%s19151_s19 + $0xbb8] sm:$0xf0] }
 0x428   : > { %v14397_v11 = vor.u32 %v18038_v19, %v14394_v22  ;;  %7455 = vmatpush.bf16.msrb.mxu3 %v18179_v49 }
 0x429   : > { %7095 = vmatpush.bf16.msrb.mxu0 %v14077_v30  ;;  %v14378_v30 = vld [vmem:[%s19151_s19 + $0xb98] sm:$0xf0] }
 0x42a   : > { %7105 = vmatpush.bf16.msrb.mxu1 %v14253_v39  ;;  %v18094_v39 = vld [vmem:[%s19151_s19 + $0xd6c] sm:$0xf]  ;;  %v14381_v41 = vor.u32 %v18034_v31, %v14378_v30 }
 0x42b   : > { %7068 = vmatpush.bf16.msra.mxu2 %v14857_v57  ;;  %v21113_v21 = vpop.f32.mrf.mxu3  ;;  %v14637_v57 = vor.u32 %v18098_v13, %v14634_v8  ;;  %v14621_v44 = vor.u32 %v18094_v39, %v14618_v12  ;;  %v14314_v13 = vld [vmem:[%s19151_s19 + $0xb18] sm:$0xf0]  ;;  %v18122_v8 = vld [vmem:[%s19151_s19 + $0xe4c] sm:$0xf] }
 0x42c   : > { %7456 = vmatpush.bf16.msrb.mxu3 %v18178_v61  ;;  %v18118_v30 = vld [vmem:[%s19151_s19 + $0xe2c] sm:$0xf]  ;;  %v14714_v39 = vld [vmem:[%s19151_s19 + $0xe38] sm:$0xf0] }
 0x42d   : > { %7096 = vmatpush.bf16.msrb.mxu0 %v14061_v52  ;;  %v21116_v34 = vpop.f32.mrf.mxu0  ;;  %v14602_v52 = vld [vmem:[%s19151_s19 + $0xd58] sm:$0xf0]  ;;  %v18170_v12 = vld [vmem:[%s19151_s19 + $0xfcc] sm:$0xf] }
 0x42e   : > { %7106 = vmatpush.bf16.msrb.mxu1 %v14237_v27  ;;  %v18134_v27 = vld [vmem:[%s19151_s19 + $0xeac] sm:$0xf] }
 0x42f   : > { %7069 = vmatpush.bf16.msra.mxu2 %v14841_v46  ;;  %v18090_v46 = vld [vmem:[%s19151_s19 + $0xd4c] sm:$0xf]  ;;  %v14781_v7 = vor.u32 %v18134_v27, %v14778_v59 }
 0x430   : > { %7097 = vmatmul.bf16.vlgmr.msrb.gmra.mxu0 %v20689_v10  ;;  %v18142_v10 = vld [vmem:[%s19151_s19 + $0xeec] sm:$0xf]  ;;  %v14605_v5 = vor.u32 %v18090_v46, %v14602_v52  ;;  %v14906_v46 = vld [vmem:[%s19151_s19 + $0xfb8] sm:$0xf0]  ;;  %v18190_v52 = vld [vmem:[%s20042_s14 + $0x168] sm:$0xff] }
 0x431   : > { %7141 = vmatpush.bf16.msra.mxu0 %v14685_v56  ;;  %v14813_v0 = vor.u32 %v18142_v10, %v14810_v15  ;;  %v14365_v56 = vor.u32 %v18030_v42, %v14362_v60  ;;  %v14730_v10 = vld [vmem:[%s19151_s19 + $0xe58] sm:$0xf0]  ;;  %v18174_v15 = vld [vmem:[%s19151_s19 + $0xfec] sm:$0xf]  ;;  %v14925_v42 = vor.u32 %v18170_v12, %v14922_v40  ;;  %v18200_v40 = vld [vmem:[%s20042_s14 + $0x1b8] sm:$0xff] }
 0x432   : > { %7107 = vmatpush.bf16.msrb.mxu1 %v14221_v51  ;;  %v18130_v51 = vld [vmem:[%s19151_s19 + $0xe8c] sm:$0xf] }
 0x433   : > { %7070 = vmatpush.bf16.msra.mxu2 %v14825_v58  ;;  %v6983_v54 = vpop.f32.mrf.mxu3  ;;  %v14586_v58 = vld [vmem:[%s19151_s19 + $0xd38] sm:$0xf0]  ;;  %v18166_v60 = vld [vmem:[%s19151_s19 + $0xfac] sm:$0xf] }
 0x434   : > { %v14589_v43 = vor.u32 %v18086_v16, %v14586_v58  ;;  %v14909_v61 = vor.u32 %v18166_v60, %v14906_v46  ;;  %v18162_v54 = vld [vmem:[%s19151_s19 + $0xf8c] sm:$0xf]  ;;  %v6839_v16 = vadd.f32 %v21116_v34, %v21068_v26 }
 0x435   : > { %7142 = vmatpush.bf16.msra.mxu0 %v14669_v35  ;;  %v6840_v3 = vpop.f32.mrf.mxu0 }
 0x436   : > { %7071 = vmatmul.bf16.vlgmr.msra.gmra.mxu2 %v20896_v45  ;;  %7108 = vmatpush.bf16.msrb.mxu1 %v14205_v38  ;;  %v18126_v38 = vld [vmem:[%s19151_s19 + $0xe6c] sm:$0xf] }
 0x437   : > { %7115 = vmatpush.bf16.msrb.mxu2 %v14429_v14  ;;  %v18177_v14 = vld [vmem:[%s20042_s14 + $0x100] sm:$0xff] }
 0x438   : > { %7457 = vmatpush.bf16.msrb.mxu3 %v18177_v14 }
 0x439   : > { %7143 = vmatpush.bf16.msra.mxu0 %v14653_v63  ;;  %v21139_v35 = vpop.f32.mrf.mxu1  ;;  %v14573_v63 = vor.u32 %v18082_v32, %v14570_v25  ;;  %v18150_v32 = vld [vmem:[%s19151_s19 + $0xf2c] sm:$0xf]  ;;  %v14842_v25 = vld [vmem:[%s19151_s19 + $0xf38] sm:$0xf0] }
 0x43a   : > { %7109 = vmatpush.bf16.msrb.mxu1 %v14189_v24  ;;  %v18192_v24 = vld [vmem:[%s20042_s14 + $0x178] sm:$0xff]  ;;  %v6852_v14 = vadd.f32 %v21139_v35, %v6839_v16 }
 0x43b   : > { %7116 = vmatpush.bf16.msrb.mxu2 %v14413_v55  ;;  %v14746_v55 = vld [vmem:[%s19151_s19 + $0xe78] sm:$0xf0] }
 0x43c   : > { %v14749_v22 = vor.u32 %v18126_v38, %v14746_v55  ;;  %v18186_v38 = vld [vmem:[%s20042_s14 + $0x148] sm:$0xff] }
 0x43d   : > { %7144 = vmatpush.bf16.msra.mxu0 %v14637_v57  ;;  %7110 = vmatmul.bf16.vlgmr.msrb.gmra.mxu1 %v20720_v62  ;;  %v14762_v62 = vld [vmem:[%s19151_s19 + $0xe98] sm:$0xf0]  ;;  %v21148_v19 = vpop.f32.mrf.mxu0  ;;  %v14733_v57 = vor.u32 %v18122_v8, %v14730_v10  ;;  %v5477_v8 = vperm.slane %v20955_v9, 1 }
 0x43e   : > { %7154 = vmatpush.bf16.msra.mxu1 %v14813_v0  ;;  %v14765_v50 = vor.u32 %v18130_v51, %v14762_v62  ;;  %v14941_v0 = vor.u32 %v18174_v15, %v14938_v29 }
 0x43f   : > { %7117 = vmatpush.bf16.msrb.mxu2 %v14397_v11  ;;  %v14317_v11 = vor.u32 %v18018_v53, %v14314_v13  ;;  %v18146_v53 = vld [vmem:[%s19151_s19 + $0xf0c] sm:$0xf]  ;;  %v6878_v15 = vadd.f32 %v21016_v33, %v5477_v8 }
 0x441   : > { %7145 = vmatpush.bf16.msra.mxu0 %v14621_v44  ;;  %v6853_v31 = vpop.f32.mrf.mxu1  ;;  %v18114_v44 = vld [vmem:[%s19151_s19 + $0xe0c] sm:$0xf] }
 0x442   : > { %7155 = vmatpush.bf16.msra.mxu1 %v14797_v48  ;;  %v14698_v48 = vld [vmem:[%s19151_s19 + $0xe18] sm:$0xf0] }
 0x443   : > { %7118 = vmatpush.bf16.msrb.mxu2 %v14381_v41  ;;  %v14717_v41 = vor.u32 %v18118_v30, %v14714_v39  ;;  %v14701_v59 = vor.u32 %v18114_v44, %v14698_v48  ;;  %v18269_v44 = vld [vmem:[%s19135_s8 + $0xadc] sm:$0xf0] }
 0x445   : > { %7146 = vmatpush.bf16.msra.mxu0 %v14605_v5  ;;  %v6892_v49 = vpop.f32.mrf.mxu0  ;;  %v18158_v5 = vld [vmem:[%s19151_s19 + $0xf6c] sm:$0xf] }
 0x446   : > { %7156 = vmatpush.bf16.msra.mxu1 %v14781_v7  ;;  %v14874_v7 = vld [vmem:[%s19151_s19 + $0xf78] sm:$0xf0] }
 0x447   : > { %7119 = vmatpush.bf16.msrb.mxu2 %v14365_v56  ;;  %v14890_v56 = vld [vmem:[%s19151_s19 + $0xf98] sm:$0xf0]  ;;  %v14877_v62 = vor.u32 %v18158_v5, %v14874_v7  ;;  %v15762_v5 = vld [vmem:[%s19135_s8 + $0xcc0] sm:$0xf] }
 0x448   : > { %v18333_v7 = vld [vmem:[%s19135_s8 + $0xcdc] sm:$0xf0] }
 0x449   : > { %7147 = vmatpush.bf16.msra.mxu0 %v14589_v43  ;;  %v14858_v43 = vld [vmem:[%s19151_s19 + $0xf58] sm:$0xf0] }
 0x44a   : > { %7157 = vmatpush.bf16.msra.mxu1 %v14765_v50  ;;  %v18187_v50 = vld [vmem:[%s20042_s14 + $0x150] sm:$0xff] }
 0x44b   : > { %7120 = vmatpush.bf16.msrb.mxu2 %v14349_v36  ;;  %v21168_v27 = vpop.f32.mrf.mxu3  ;;  %v18154_v36 = vld [vmem:[%s19151_s19 + $0xf4c] sm:$0xf] }
 0x44c   : > { %v14861_v26 = vor.u32 %v18154_v36, %v14858_v43  ;;  %v18325_v43 = vld [vmem:[%s19135_s8 + $0xc9c] sm:$0xf0] }
 0x44d   : > { %7148 = vmatpush.bf16.msra.mxu0 %v14573_v63  ;;  %v6942_v3 = vpop.f32.mrf.mxu0  ;;  %v14826_v63 = vld [vmem:[%s19151_s19 + $0xf18] sm:$0xf0] }
 0x44e   : > { %7158 = vmatpush.bf16.msra.mxu1 %v14749_v22  ;;  %v18185_v22 = vld [vmem:[%s20042_s14 + $0x140] sm:$0xff]  ;;  %v14829_v10 = vor.u32 %v18146_v53, %v14826_v63  ;;  %v18229_v53 = vld [vmem:[%s19135_s8 + $0x99c] sm:$0xf0] }
 0x44f   : > { %7121 = vmatpush.bf16.msrb.mxu2 %v14333_v23  ;;  %v14845_v23 = vor.u32 %v18150_v32, %v14842_v25  ;;  %v18317_v25 = vld [vmem:[%s19135_s8 + $0xc5c] sm:$0xf0] }
 0x450   : > { %7149 = vmatmul.bf16.vlgmr.msra.gmra.mxu0 %v20829_v28  ;;  %v6903_v28 = vpop.f32.mrf.mxu1  ;;  %v15666_v63 = vld [vmem:[%s19135_s8 + $0xc00] sm:$0xf] }
 0x451   : > { %7463 = vmatpush.bf16.msrb.mxu0 %v18192_v24  ;;  %v6891_v24 = vadd.f32 %v21148_v19, %v6878_v15  ;;  %v18193_v15 = vld [vmem:[%s20042_s14 + $0x180] sm:$0xff] }
 0x452   : > { %7159 = vmatpush.bf16.msra.mxu1 %v14733_v57 }
 0x453   : > { %7122 = vmatpush.bf16.msrb.mxu2 %v14317_v11  ;;  %v7035_v58 = vpop.f32.mrf.mxu3  ;;  %v6904_v31 = vadd.f32 %v6903_v28, %v6891_v24  ;;  %v15474_v28 = vld [vmem:[%s19135_s8 + $0xa80] sm:$0xf] }
 0x454   : > { %v18196_v58 = vld [vmem:[%s20042_s14 + $0x198] sm:$0xff]  ;;  %v18349_v24 = vld [vmem:[%s19135_s8 + $0xd5c] sm:$0xf0] }
 0x455   : > { %7464 = vmatpush.bf16.msrb.mxu0 %v18191_v1 }
 0x456   : > { %7123 = vmatmul.bf16.vlgmr.msrb.gmra.mxu2 %v20768_v6  ;;  %7160 = vmatpush.bf16.msra.mxu1 %v14717_v41  ;;  %v14893_v6 = vor.u32 %v18162_v54, %v14890_v56  ;;  %v18199_v41 = vld [vmem:[%s20042_s14 + $0x1b0] sm:$0xff]  ;;  %v18197_v56 = vld [vmem:[%s20042_s14 + $0x1a0] sm:$0xff] }
 0x457   : > { %7167 = vmatpush.bf16.msra.mxu2 %v14941_v0 }
 0x458   : > { %v6905_v51 = vpop.f32.mrf.mxu1 }
 0x459   : > { %7465 = vmatpush.bf16.msrb.mxu0 %v18190_v52  ;;  %v6864_v37 = vpop.f32.mrf.mxu2  ;;  %v18198_v52 = vld [vmem:[%s20042_s14 + $0x1a8] sm:$0xff] }
 0x45a   : > { %7161 = vmatpush.bf16.msra.mxu1 %v14701_v59  ;;  %v6865_v17 = vadd.f32 %v6864_v37, %v6852_v14  ;;  %v18261_v59 = vld [vmem:[%s19135_s8 + $0xa9c] sm:$0xf0] }
 0x45b   : > { %7168 = vmatpush.bf16.msra.mxu2 %v14925_v42  ;;  %v15506_v42 = vld [vmem:[%s19135_s8 + $0xac0] sm:$0xf] }
 0x45c   : > { %v7180_v34 = vmax.f32 %v6865_v17, 0.0  ;;  %v15507_v60 = vor.u32 %v18269_v44, %v15506_v42  ;;  %v15410_v51 = vld [vmem:[%s19135_s8 + $0xa00] sm:$0xf]  ;;  %v18195_v17 = vld [vmem:[%s20042_s14 + $0x190] sm:$0xff] }
 0x45d   : > { %7466 = vmatpush.bf16.msrb.mxu0 %v18189_v2  ;;  %7162 = vmatmul.bf16.vlgmr.msra.gmra.mxu1 %v20849_v4  ;;  %v6944_v4 = vpop.f32.mrf.mxu0  ;;  %v15442_v2 = vld [vmem:[%s19135_s8 + $0xa40] sm:$0xf] }
 0x45e   : > { %v7184_v55 = vpack.c.bf16 %v7180_v34, %v7180_v34  ;;  %7476 = vmatpush.bf16.msrb.mxu1 %v18200_v40  ;;  %8394 = vmatpush.bf16.msra.mxu3 %v15507_v60  ;;  %v15730_v14 = vld [vmem:[%s19135_s8 + $0xc80] sm:$0xf] }
 0x45f   : > { %7169 = vmatpush.bf16.msra.mxu2 %v14909_v61  ;;  %v15475_v61 = vor.u32 %v18261_v59, %v15474_v28  ;;  %v15731_v37 = vor.u32 %v18325_v43, %v15730_v14  ;;  %v15378_v4 = vld [vmem:[%s19135_s8 + $0x9c0] sm:$0xf]  ;;  %v18345_v28 = vld [vmem:[%s19135_s8 + $0xd44] sm:$0xf] }
 0x460   : > { %v6955_v35 = vpop.f32.mrf.mxu1  ;;  %7458 = vmatmul.bf16.vlgmr.msrb.gmra.mxu3 %v7184_v55  ;;  %v15698_v34 = vld [vmem:[%s19135_s8 + $0xc40] sm:$0xf]  ;;  %v15828_v59 = vld [vmem:[%s19135_s8 + $0xd60] sm:$0xf0] }
 0x461   : > { %7467 = vmatpush.bf16.msrb.mxu0 %v18188_v18  ;;  %v6866_v13 = vpop.f32.mrf.mxu2  ;;  %v15763_v18 = vor.u32 %v18333_v7, %v15762_v5  ;;  %v18213_v42 = vld [vmem:[%s19135_s8 + $0x91c] sm:$0xf0]  ;;  %v18337_v5 = vld [vmem:[%s19135_s8 + $0xd04] sm:$0xf] }
 0x462   : > { %7477 = vmatpush.bf16.msrb.mxu1 %v18199_v41  ;;  %8395 = vmatpush.bf16.msra.mxu3 %v15475_v61  ;;  %v18309_v13 = vld [vmem:[%s19135_s8 + $0xc1c] sm:$0xf0]  ;;  %v15831_v61 = vor.u32 %v18345_v28, %v15828_v59  ;;  %v15796_v7 = vld [vmem:[%s19135_s8 + $0xd20] sm:$0xf0]  ;;  %v15610_v28 = vld [vmem:[%s19135_s8 + $0xb88] sm:$0xf] }
 0x463   : > { %7170 = vmatpush.bf16.msra.mxu2 %v14893_v6  ;;  %v15282_v41 = vld [vmem:[%s19135_s8 + $0x900] sm:$0xf]  ;;  %v18294_v59 = vld [vmem:[%s19135_s8 + $0xba4] sm:$0xf0] }
 0x464   : > { %v15602_v44 = vld [vmem:[%s19135_s8 + $0xb80] sm:$0xf] }
 0x465   : > { %7468 = vmatpush.bf16.msrb.mxu0 %v18187_v50  ;;  %v18293_v60 = vld [vmem:[%s19135_s8 + $0xb9c] sm:$0xf0] }
 0x466   : > { %7478 = vmatpush.bf16.msrb.mxu1 %v18198_v52  ;;  %v15603_v52 = vor.u32 %v18293_v60, %v15602_v44  ;;  %v18277_v43 = vld [vmem:[%s19135_s8 + $0xb1c] sm:$0xf0]  ;;  %v15386_v44 = vld [vmem:[%s19135_s8 + $0x9c8] sm:$0xf] }
 0x467   : > { %7171 = vmatpush.bf16.msra.mxu2 %v14877_v62  ;;  %v18245_v62 = vld [vmem:[%s19135_s8 + $0xa1c] sm:$0xf0] }
 0x468   : > { %v6957_v29 = vpop.f32.mrf.mxu1  ;;  %v15411_v36 = vor.u32 %v18245_v62, %v15410_v51  ;;  %v18334_v51 = vld [vmem:[%s19135_s8 + $0xce4] sm:$0xf0]  ;;  %v21258_v62 = vld [vmem:[#allocation1] sm:$0xff] }
 0x469   : > { %7469 = vmatpush.bf16.msrb.mxu0 %v18186_v38  ;;  %v6916_v11 = vpop.f32.mrf.mxu2  ;;  %v18194_v38 = vld [vmem:[%s20042_s14 + $0x188] sm:$0xff] }
 0x46a   : > { %v6917_v57 = vadd.f32 %v6916_v11, %v6904_v31  ;;  %7479 = vmatpush.bf16.msrb.mxu1 %v18197_v56  ;;  %v15826_v29 = vld [vmem:[%s19135_s8 + $0xd40] sm:$0xf] }
 0x46b   : > { %7172 = vmatpush.bf16.msra.mxu2 %v14861_v26  ;;  %v21193_v0 = vpop.f32.mrf.mxu3  ;;  %v18237_v26 = vld [vmem:[%s19135_s8 + $0x9dc] sm:$0xf0]  ;;  %v15827_v11 = vor.u32 %v18349_v24, %v15826_v29  ;;  %v18207_v29 = vld [vmem:[%s20042_s14 + $0x1f0] sm:$0xff] }
 0x46c   : > { %v6930_v9 = vadd.f32 %v21051_v20, %v6917_v57  ;;  %v15379_v32 = vor.u32 %v18237_v26, %v15378_v4  ;;  %v15314_v31 = vld [vmem:[%s19135_s8 + $0x940] sm:$0xf]  ;;  %v15514_v26 = vld [vmem:[%s19135_s8 + $0xac8] sm:$0xf] }
 0x46d   : > { %7470 = vmatpush.bf16.msrb.mxu0 %v18185_v22  ;;  %v21196_v30 = vpop.f32.mrf.mxu0  ;;  %v18221_v57 = vld [vmem:[%s19135_s8 + $0x95c] sm:$0xf0]  ;;  %v15450_v24 = vld [vmem:[%s19135_s8 + $0xa48] sm:$0xf] }
 0x46e   : > { %v6943_v12 = vadd.f32 %v6942_v3, %v6930_v9  ;;  %v18253_v3 = vld [vmem:[%s19135_s8 + $0xa5c] sm:$0xf0]  ;;  %7480 = vmatpush.bf16.msrb.mxu1 %v18196_v58  ;;  %v15770_v58 = vld [vmem:[%s19135_s8 + $0xcc8] sm:$0xf] }
 0x46f   : > { %7173 = vmatpush.bf16.msra.mxu2 %v14845_v23  ;;  %v15443_v6 = vor.u32 %v18253_v3, %v15442_v2  ;;  %v15346_v23 = vld [vmem:[%s19135_s8 + $0x980] sm:$0xf]  ;;  %v15771_v14 = vor.u32 %v18334_v51, %v15770_v58  ;;  %v21305_v51 = vld [vmem:[#allocation1 + $0x12] sm:$0xff] }
 0x470   : > { %v6956_v1 = vadd.f32 %v6955_v35, %v6943_v12  ;;  %v15699_v35 = vor.u32 %v18317_v25, %v15698_v34  ;;  %v15347_v22 = vor.u32 %v18229_v53, %v15346_v23  ;;  %v15634_v9 = vld [vmem:[%s19135_s8 + $0xbc0] sm:$0xf]  ;;  %v18270_v34 = vld [vmem:[%s19135_s8 + $0xae4] sm:$0xf0]  ;;  %v18208_v23 = vld [vmem:[%s20042_s14 + $0x1f8] sm:$0xff] }
 0x471   : > { %v6918_v39 = vpop.f32.mrf.mxu2  ;;  %8407 = vmatpush.bf16.msra.mxu0 %v15763_v18  ;;  %8396 = vmatpush.bf16.msra.mxu3 %v15443_v6  ;;  %v15570_v2 = vld [vmem:[%s19135_s8 + $0xb40] sm:$0xf]  ;;  %v15515_v25 = vor.u32 %v18270_v34, %v15514_v26  ;;  %v15732_v26 = vld [vmem:[%s19135_s8 + $0xca0] sm:$0xf0] }
 0x472   : > { %7481 = vmatpush.bf16.msrb.mxu1 %v18195_v17  ;;  %v15315_v39 = vor.u32 %v18221_v57, %v15314_v31  ;;  %v18285_v3 = vld [vmem:[%s19135_s8 + $0xb5c] sm:$0xf0] }
 0x473   : > { %7174 = vmatpush.bf16.msra.mxu2 %v14829_v10  ;;  %v7087_v33 = vpop.f32.mrf.mxu3  ;;  %v15667_v10 = vor.u32 %v18309_v13, %v15666_v63  ;;  %v15571_v6 = vor.u32 %v18285_v3, %v15570_v2  ;;  %v15482_v63 = vld [vmem:[%s19135_s8 + $0xa88] sm:$0xf]  ;;  %v15611_v2 = vor.u32 %v18294_v59, %v15610_v28  ;;  %v15458_v59 = vld [vmem:[%s19135_s8 + $0xa50] sm:$0xf] }
 0x474   : > { %v18301_v33 = vld [vmem:[%s19135_s8 + $0xbdc] sm:$0xf0] }
 0x475   : > { %v6996_v19 = vpop.f32.mrf.mxu0  ;;  %8397 = vmatpush.bf16.msra.mxu3 %v15411_v36  ;;  %8408 = vmatpush.bf16.msra.mxu0 %v15731_v37  ;;  %v15635_v40 = vor.u32 %v18301_v33, %v15634_v9  ;;  %v15538_v36 = vld [vmem:[%s19135_s8 + $0xb00] sm:$0xf]  ;;  %v15674_v9 = vld [vmem:[%s19135_s8 + $0xc08] sm:$0xf] }
 0x476   : > { %7175 = vmatmul.bf16.vlgmr.msra.gmra.mxu2 %v20896_v45  ;;  %7482 = vmatpush.bf16.msrb.mxu1 %v18194_v38  ;;  %v15539_v17 = vor.u32 %v18277_v43, %v15538_v36  ;;  %v15738_v38 = vld [vmem:[%s19135_s8 + $0xc88] sm:$0xf] }
 0x477   : > { %7489 = vmatpush.bf16.msrb.mxu2 %v18208_v23  ;;  %v15578_v43 = vld [vmem:[%s19135_s8 + $0xb48] sm:$0xf] }
 0x478   : > { %v15546_v23 = vld [vmem:[%s19135_s8 + $0xb08] sm:$0xf] }
 0x479   : > { %v6968_v49 = vpop.f32.mrf.mxu2  ;;  %8398 = vmatpush.bf16.msra.mxu3 %v15379_v32  ;;  %8409 = vmatpush.bf16.msra.mxu0 %v15699_v35  ;;  %v18326_v35 = vld [vmem:[%s19135_s8 + $0xca4] sm:$0xf0] }
 0x47a   : > { %v6969_v45 = vadd.f32 %v6968_v49, %v6956_v1  ;;  %7483 = vmatpush.bf16.msrb.mxu1 %v18193_v15  ;;  %v15794_v1 = vld [vmem:[%s19135_s8 + $0xd00] sm:$0xf] }
 0x47b   : > { %v18341_v49 = vld [vmem:[%s19135_s8 + $0xd1c] sm:$0xf0]  ;;  %7490 = vmatpush.bf16.msrb.mxu2 %v18207_v29 }
 0x47c   : > { %v7181_v20 = vmax.f32 %v6969_v45, 0.0  ;;  %v21202_v48 = vpop.f32.mrf.mxu1  ;;  %v15795_v45 = vor.u32 %v18341_v49, %v15794_v1  ;;  %v15642_v49 = vld [vmem:[%s19135_s8 + $0xbc8] sm:$0xf] }
 0x47d   : > { %8399 = vmatpush.bf16.msra.mxu3 %v15347_v22  ;;  %8410 = vmatpush.bf16.msra.mxu0 %v15667_v10  ;;  %v18262_v22 = vld [vmem:[%s19135_s8 + $0xaa4] sm:$0xf0] }
 0x47e   : > { %v7185_v46 = vpack.c.bf16 %v7181_v20, %v7181_v20  ;;  %8426 = vmatpush.bf16.msra.mxu1 %v15827_v11  ;;  %v15283_v20 = vor.u32 %v18213_v42, %v15282_v41  ;;  %v15483_v13 = vor.u32 %v18262_v22, %v15482_v63  ;;  %v18318_v10 = vld [vmem:[%s19135_s8 + $0xc64] sm:$0xf0]  ;;  %v18205_v42 = vld [vmem:[%s20042_s14 + $0x1e0] sm:$0xff] }
 0x480   : > { %7471 = vmatmul.bf16.vlgmr.msrb.gmra.mxu0 %v7185_v46 }
 0x481   : > { %v6970_v54 = vpop.f32.mrf.mxu2  ;;  %8400 = vmatpush.bf16.msra.mxu3 %v15315_v39  ;;  %8411 = vmatpush.bf16.msra.mxu0 %v15635_v40  ;;  %v18310_v39 = vld [vmem:[%s19135_s8 + $0xc24] sm:$0xf0] }
 0x482   : > { %8427 = vmatpush.bf16.msra.mxu1 %v15795_v45  ;;  %v21249_v54 = vld [vmem:[%s19153_s21 + $0x4] sm:$0xf]  ;;  %v15675_v33 = vor.u32 %v18310_v39, %v15674_v9  ;;  %v15418_v40 = vld [vmem:[%s19135_s8 + $0xa08] sm:$0xf]  ;;  %v18305_v9 = vld [vmem:[%s19135_s8 + $0xc04] sm:$0xf] }
 0x483   : > { %v5478_v56 = vperm.slane %v21249_v54, 2  ;;  %v18302_v45 = vld [vmem:[%s19135_s8 + $0xbe4] sm:$0xf0]  ;;  %v18346_v39 = vld [vmem:[%s19135_s8 + $0xd4c] sm:$0xf] }
 0x484   : > { %v7009_v16 = vpop.f32.mrf.mxu1  ;;  %v15643_v41 = vor.u32 %v18302_v45, %v15642_v49  ;;  %v18201_v49 = vld [vmem:[%s20042_s14 + $0x1c0] sm:$0xff] }
 0x485   : > { %8401 = vmatpush.bf16.msra.mxu3 %v15283_v20  ;;  %8412 = vmatpush.bf16.msra.mxu0 %v15603_v52  ;;  %v15799_v16 = vor.u32 %v18337_v5, %v15796_v7  ;;  %v6982_v37 = vadd.f32 %v21113_v21, %v5478_v56  ;;  %v15739_v21 = vor.u32 %v18326_v35, %v15738_v38  ;;  %v18238_v20 = vld [vmem:[%s19135_s8 + $0x9e4] sm:$0xf0]  ;;  %v18329_v56 = vld [vmem:[%s19135_s8 + $0xcc4] sm:$0xf] }
 0x486   : > { %v21297_v5 = vld [vmem:[#allocation1 + $0x9] sm:$0xff] }
 0x487   : > { %v6995_v32 = vadd.f32 %v21196_v30, %v6982_v37  ;;  %v15354_v7 = vld [vmem:[%s19135_s8 + $0x988] sm:$0xf]  ;;  %v18313_v35 = vld [vmem:[%s19135_s8 + $0xc44] sm:$0xf] }
 0x488   : > { %8402 = vmatmul.bf16.vlgmr.msra.gmra.mxu3 %v21258_v62  ;;  %v18286_v37 = vld [vmem:[%s19135_s8 + $0xb64] sm:$0xf0] }
 0x489   : > { %8465 = vmatpush.bf16.msrb.mxu3 %v15831_v61  ;;  %8413 = vmatpush.bf16.msra.mxu0 %v15571_v6  ;;  %v7008_v53 = vadd.f32 %v21202_v48, %v6995_v32  ;;  %v18254_v48 = vld [vmem:[%s19135_s8 + $0xa64] sm:$0xf0]  ;;  %v15764_v6 = vld [vmem:[%s19135_s8 + $0xce0] sm:$0xf0]  ;;  %v15579_v34 = vor.u32 %v18286_v37, %v15578_v43 }
 0x48a   : > { %v15451_v57 = vor.u32 %v18254_v48, %v15450_v24  ;;  %v15767_v36 = vor.u32 %v18329_v56, %v15764_v6  ;;  %v18203_v32 = vld [vmem:[%s20042_s14 + $0x1d0] sm:$0xff]  ;;  %v15778_v56 = vld [vmem:[%s19135_s8 + $0xcd0] sm:$0xf] }
 0x48b   : > { %v21217_v50 = vpop.f32.mrf.mxu3  ;;  %v18222_v38 = vld [vmem:[%s19135_s8 + $0x964] sm:$0xf0]  ;;  %v18335_v6 = vld [vmem:[%s19135_s8 + $0xcec] sm:$0xf0] }
 0x48c   : > { %v15290_v24 = vld [vmem:[%s19135_s8 + $0x908] sm:$0xf] }
 0x48d   : > { %v21225_v55 = vpop.f32.mrf.mxu0  ;;  %8466 = vmatpush.bf16.msrb.mxu3 %v15799_v16  ;;  %8414 = vmatpush.bf16.msra.mxu0 %v15539_v17  ;;  %v18214_v48 = vld [vmem:[%s19135_s8 + $0x924] sm:$0xf0] }
 0x490   : > { %8415 = vmatmul.bf16.vlgmr.msra.gmra.mxu0 %v21297_v5 }
 0x491   : > { %8485 = vmatpush.bf16.msra.mxu3 %v15771_v14  ;;  %8472 = vmatpush.bf16.msrb.mxu0 %v15515_v25  ;;  %v15322_v25 = vld [vmem:[%s19135_s8 + $0x948] sm:$0xf] }
 0x493   : > { %v7139_v8 = vpop.f32.mrf.mxu3 }
 0x494   : > { %v15706_v8 = vld [vmem:[%s19135_s8 + $0xc48] sm:$0xf] }
 0x495   : > { %v7048_v12 = vpop.f32.mrf.mxu0  ;;  %8486 = vmatpush.bf16.msra.mxu3 %v15739_v21  ;;  %v15707_v15 = vor.u32 %v18318_v10, %v15706_v8  ;;  %8473 = vmatpush.bf16.msrb.mxu0 %v15483_v13  ;;  %v15323_v21 = vor.u32 %v18222_v38, %v15322_v25  ;;  %v15522_v8 = vld [vmem:[%s19135_s8 + $0xad0] sm:$0xf]  ;;  %v18249_v25 = vld [vmem:[%s19135_s8 + $0xa44] sm:$0xf] }
 0x496   : > { %v18206_v12 = vld [vmem:[%s20042_s14 + $0x1e8] sm:$0xff]  ;;  %v18271_v10 = vld [vmem:[%s19135_s8 + $0xaec] sm:$0xf0] }
 0x497   : > { %7491 = vmatpush.bf16.msrb.mxu2 %v18206_v12  ;;  %v15523_v29 = vor.u32 %v18271_v10, %v15522_v8  ;;  %v15444_v38 = vld [vmem:[%s19135_s8 + $0xa60] sm:$0xf0]  ;;  %v18319_v10 = vld [vmem:[%s19135_s8 + $0xc6c] sm:$0xf0] }
 0x498   : > { %15857 = vmatmul.msk.bf16.vlgmr.msrb.gmra.mxu3 %vm1383_vm0, %v21305_v51 }
 0x499   : > { %v7020_v19 = vpop.f32.mrf.mxu2  ;;  %8487 = vmatpush.bf16.msra.mxu3 %v15707_v15  ;;  %8474 = vmatpush.bf16.msrb.mxu0 %v15451_v57  ;;  %v18202_v15 = vld [vmem:[%s20042_s14 + $0x1c8] sm:$0xff] }
 0x49a   : > { %v21244_v46 = vpop.f32.mrf.mxu1  ;;  %v7021_v30 = vadd.f32 %v7020_v19, %v7008_v53  ;;  %v18246_v19 = vld [vmem:[%s19135_s8 + $0xa24] sm:$0xf0] }
 0x49b   : > { %7492 = vmatpush.bf16.msrb.mxu2 %v18205_v42  ;;  %v18278_v53 = vld [vmem:[%s19135_s8 + $0xb24] sm:$0xf0]  ;;  %v15508_v42 = vld [vmem:[%s19135_s8 + $0xae0] sm:$0xf0] }
 0x49c   : > { %v7034_v11 = vadd.f32 %v21168_v27, %v7021_v30  ;;  %v15419_v27 = vor.u32 %v18246_v19, %v15418_v40  ;;  %v15700_v30 = vld [vmem:[%s19135_s8 + $0xc60] sm:$0xf0]  ;;  %v15547_v13 = vor.u32 %v18278_v53, %v15546_v23 }
 0x49d   : > { %8488 = vmatpush.bf16.msra.mxu3 %v15675_v33  ;;  %v15836_v33 = vld [vmem:[%s19135_s8 + $0xd68] sm:$0xf0]  ;;  %v15703_v12 = vor.u32 %v18313_v35, %v15700_v30  ;;  %v15668_v40 = vld [vmem:[%s19135_s8 + $0xc20] sm:$0xf0]  ;;  %v18239_v30 = vld [vmem:[%s19135_s8 + $0x9ec] sm:$0xf0] }
 0x49e   : > { %v7047_v1 = vadd.f32 %v21225_v55, %v7034_v11  ;;  %8475 = vmatpush.bf16.msrb.mxu0 %v15419_v27  ;;  %v15387_v55 = vor.u32 %v18238_v20, %v15386_v44  ;;  %v15291_v11 = vor.u32 %v18214_v48, %v15290_v24  ;;  %v15839_v19 = vor.u32 %v18346_v39, %v15836_v33  ;;  %v18263_v27 = vld [vmem:[%s19135_s8 + $0xaac] sm:$0xf0]  ;;  %v18297_v20 = vld [vmem:[%s19135_s8 + $0xbc4] sm:$0xf] }
 0x49f   : > { %v18281_v23 = vld [vmem:[%s19135_s8 + $0xb44] sm:$0xf]  ;;  %v15362_v33 = vld [vmem:[%s19135_s8 + $0x990] sm:$0xf] }
 0x4a0   : > { %v7060_v60 = vadd.f32 %v21244_v46, %v7047_v1  ;;  %v18204_v46 = vld [vmem:[%s20042_s14 + $0x1d8] sm:$0xff]  ;;  %v15572_v53 = vld [vmem:[%s19135_s8 + $0xb60] sm:$0xf0] }
 0x4a1   : > { %v7022_v18 = vpop.f32.mrf.mxu2  ;;  %8489 = vmatpush.bf16.msra.mxu3 %v15643_v41  ;;  %7493 = vmatpush.bf16.msrb.mxu2 %v18204_v46  ;;  %v15490_v1 = vld [vmem:[%s19135_s8 + $0xa90] sm:$0xf]  ;;  %v18265_v41 = vld [vmem:[%s19135_s8 + $0xac4] sm:$0xf]  ;;  %v15575_v39 = vor.u32 %v18281_v23, %v15572_v53 }
 0x4a2   : > { %v7061_v4 = vpop.f32.mrf.mxu1  ;;  %8476 = vmatpush.bf16.msrb.mxu0 %v15387_v55  ;;  %v18230_v18 = vld [vmem:[%s19135_s8 + $0x9a4] sm:$0xf0]  ;;  %v15491_v45 = vor.u32 %v18263_v27, %v15490_v1  ;;  %v15511_v44 = vor.u32 %v18265_v41, %v15508_v42  ;;  %v15671_v55 = vor.u32 %v18305_v9, %v15668_v40  ;;  %v18257_v46 = vld [vmem:[%s19135_s8 + $0xa84] sm:$0xf]  ;;  %v15682_v40 = vld [vmem:[%s19135_s8 + $0xc10] sm:$0xf] }
 0x4a3   : > { %v15355_v14 = vor.u32 %v18230_v18, %v15354_v7  ;;  %v18321_v4 = vld [vmem:[%s19135_s8 + $0xc84] sm:$0xf]  ;;  %v15779_v7 = vor.u32 %v18335_v6, %v15778_v56  ;;  %v18311_v27 = vld [vmem:[%s19135_s8 + $0xc2c] sm:$0xf0]  ;;  %v18266_v41 = vld [vmem:[%s19135_s8 + $0xacc] sm:$0xf] }
 0x4a4   : > { %v15735_v22 = vor.u32 %v18321_v4, %v15732_v26  ;;  %v15476_v18 = vld [vmem:[%s19135_s8 + $0xaa0] sm:$0xf0]  ;;  %v18247_v4 = vld [vmem:[%s19135_s8 + $0xa2c] sm:$0xf0]  ;;  %v15516_v42 = vld [vmem:[%s19135_s8 + $0xae8] sm:$0xf0] }
 0x4a5   : > { %8490 = vmatpush.bf16.msra.mxu3 %v15611_v2  ;;  %7494 = vmatpush.bf16.msrb.mxu2 %v18203_v32  ;;  %v15636_v2 = vld [vmem:[%s19135_s8 + $0xbe0] sm:$0xf0]  ;;  %v15746_v26 = vld [vmem:[%s19135_s8 + $0xc90] sm:$0xf] }
 0x4a6   : > { %8477 = vmatpush.bf16.msrb.mxu0 %v15355_v14  ;;  %v15604_v14 = vld [vmem:[%s19135_s8 + $0xba0] sm:$0xf0]  ;;  %v15639_v37 = vor.u32 %v18297_v20, %v15636_v2  ;;  %v18327_v32 = vld [vmem:[%s19135_s8 + $0xcac] sm:$0xf0] }
 0x4a7   : > { %v15747_v35 = vor.u32 %v18327_v32, %v15746_v26  ;;  %v18303_v2 = vld [vmem:[%s19135_s8 + $0xbec] sm:$0xf0]  ;;  %v15348_v6 = vld [vmem:[%s19135_s8 + $0x9a0] sm:$0xf0] }
 0x4a8   : > { %v15586_v53 = vld [vmem:[%s19135_s8 + $0xb50] sm:$0xf] }
 0x4a9   : > { %8491 = vmatpush.bf16.msra.mxu3 %v15579_v34  ;;  %7495 = vmatpush.bf16.msrb.mxu2 %v18202_v15  ;;  %v18241_v15 = vld [vmem:[%s19135_s8 + $0xa04] sm:$0xf] }
 0x4aa   : > { %8478 = vmatpush.bf16.msrb.mxu0 %v15323_v21  ;;  %v15447_v21 = vor.u32 %v18249_v25, %v15444_v38  ;;  %v18295_v25 = vld [vmem:[%s19135_s8 + $0xbac] sm:$0xf0]  ;;  %v18217_v38 = vld [vmem:[%s19135_s8 + $0x944] sm:$0xf] }
 0x4ad   : > { %v21279_v31 = vpop.f32.mrf.mxu0  ;;  %8492 = vmatpush.bf16.msra.mxu3 %v15547_v13  ;;  %7496 = vmatpush.bf16.msrb.mxu2 %v18201_v49  ;;  %v15714_v13 = vld [vmem:[%s19135_s8 + $0xc50] sm:$0xf]  ;;  %v18233_v49 = vld [vmem:[%s19135_s8 + $0x9c4] sm:$0xf] }
 0x4ae   : > { %8479 = vmatpush.bf16.msrb.mxu0 %v15291_v11  ;;  %v15715_v24 = vor.u32 %v18319_v10, %v15714_v13  ;;  %v18273_v11 = vld [vmem:[%s19135_s8 + $0xb04] sm:$0xf] }
 0x4b0   : > { %8493 = vmatmul.bf16.vlgmr.msra.gmra.mxu3 %v21297_v5 }
 0x4b1   : > { %8550 = vmatpush.bf16.msrb.mxu3 %v15523_v29  ;;  %8433 = vmatpush.bf16.msra.mxu2 %v15511_v44  ;;  %v15412_v29 = vld [vmem:[%s19135_s8 + $0xa20] sm:$0xf0]  ;;  %v15683_v44 = vor.u32 %v18311_v27, %v15682_v40  ;;  %v15388_v40 = vld [vmem:[%s19135_s8 + $0x9e8] sm:$0xf0] }
 0x4b2   : > { %8543 = vmatpush.bf16.msra.mxu0 %v15839_v19  ;;  %v15415_v48 = vor.u32 %v18241_v15, %v15412_v29  ;;  %v18209_v15 = vld [vmem:[%s19135_s8 + $0x904] sm:$0xf] }
 0x4b3   : > { %8480 = vmatmul.bf16.vlgmr.msrb.gmra.mxu0 %v21258_v62  ;;  %v15284_v29 = vld [vmem:[%s19135_s8 + $0x920] sm:$0xf0] }
 0x4b5   : > { %v7100_v52 = vpop.f32.mrf.mxu0  ;;  %8551 = vmatpush.bf16.msrb.mxu3 %v15491_v45  ;;  %v15380_v45 = vld [vmem:[%s19135_s8 + $0x9e0] sm:$0xf0] }
 0x4b6   : > { %v15804_v52 = vld [vmem:[%s19135_s8 + $0xd28] sm:$0xf0]  ;;  %v15383_v20 = vor.u32 %v18233_v49, %v15380_v45 }
 0x4b7   : > { %v18226_v49 = vld [vmem:[%s19135_s8 + $0x98c] sm:$0xf] }
 0x4b8   : > { %v15356_v45 = vld [vmem:[%s19135_s8 + $0x9a8] sm:$0xf0] }
 0x4b9   : > { %v7072_v61 = vpop.f32.mrf.mxu2 }
 0x4ba   : > { %v7073_v3 = vadd.f32 %v7072_v61, %v7060_v60  ;;  %v21303_v58 = vpop.f32.mrf.mxu1  ;;  %v18338_v60 = vld [vmem:[%s19135_s8 + $0xd0c] sm:$0xf]  ;;  %v18255_v61 = vld [vmem:[%s19135_s8 + $0xa6c] sm:$0xf0] }
 0x4bb   : > { %v15807_v28 = vor.u32 %v18338_v60, %v15804_v52 }
 0x4bc   : > { %v7182_v16 = vmax.f32 %v7073_v3, 0.0  ;;  %v15459_v3 = vor.u32 %v18255_v61, %v15458_v59  ;;  %v15650_v59 = vld [vmem:[%s19135_s8 + $0xbd0] sm:$0xf]  ;;  %v15519_v61 = vor.u32 %v18266_v41, %v15516_v42  ;;  %v15359_v41 = vor.u32 %v18226_v49, %v15356_v45  ;;  %v18218_v42 = vld [vmem:[%s19135_s8 + $0x94c] sm:$0xf] }
 0x4bd   : > { %8544 = vmatpush.bf16.msra.mxu0 %v15807_v28  ;;  %v18223_v28 = vld [vmem:[%s19135_s8 + $0x96c] sm:$0xf0]  ;;  %v15748_v49 = vld [vmem:[%s19135_s8 + $0xcb0] sm:$0xf0]  ;;  %v15658_v45 = vld [vmem:[%s19135_s8 + $0xbd8] sm:$0xf] }
 0x4be   : > { %v7186_v17 = vpack.c.bf16 %v7182_v16, %v7182_v16  ;;  %v18289_v16 = vld [vmem:[%s19135_s8 + $0xb84] sm:$0xf]  ;;  %8552 = vmatpush.bf16.msrb.mxu3 %v15459_v3 }
 0x4bf   : > { %v18225_v3 = vld [vmem:[%s19135_s8 + $0x984] sm:$0xf] }
 0x4c0   : > { %7484 = vmatmul.bf16.vlgmr.msrb.gmra.mxu1 %v7186_v17  ;;  %v15426_v17 = vld [vmem:[%s19135_s8 + $0xa10] sm:$0xf] }
 0x4c1   : > { %8446 = vmatpush.bf16.msrb.mxu1 %v15767_v36  ;;  %v7074_v63 = vpop.f32.mrf.mxu2  ;;  %v15479_v36 = vor.u32 %v18257_v46, %v15476_v18  ;;  %8563 = vmatpush.bf16.msrb.mxu0 %v15779_v7  ;;  %v15427_v34 = vor.u32 %v18247_v4, %v15426_v17  ;;  %v18258_v46 = vld [vmem:[%s19135_s8 + $0xa8c] sm:$0xf]  ;;  %v15651_v18 = vor.u32 %v18303_v2, %v15650_v59  ;;  %v18215_v17 = vld [vmem:[%s19135_s8 + $0x92c] sm:$0xf0] }
 0x4c2   : > { %v7113_v57 = vpop.f32.mrf.mxu1  ;;  %v15607_v63 = vor.u32 %v18289_v16, %v15604_v14  ;;  %v15484_v7 = vld [vmem:[%s19135_s8 + $0xaa8] sm:$0xf0]  ;;  %v15351_v16 = vor.u32 %v18225_v3, %v15348_v6  ;;  %v5479_v14 = vperm.slane %v21249_v54, 3  ;;  %v15618_v4 = vld [vmem:[%s19135_s8 + $0xb90] sm:$0xf] }
 0x4c3   : > { %8434 = vmatpush.bf16.msra.mxu2 %v15479_v36  ;;  %8553 = vmatpush.bf16.msrb.mxu3 %v15427_v34  ;;  %v15540_v57 = vld [vmem:[%s19135_s8 + $0xb20] sm:$0xf0]  ;;  %v18250_v36 = vld [vmem:[%s19135_s8 + $0xa4c] sm:$0xf]  ;;  %v15487_v34 = vor.u32 %v18258_v46, %v15484_v7  ;;  %v15619_v54 = vor.u32 %v18295_v25, %v15618_v4  ;;  %v15842_v2 = vld [vmem:[%s19135_s8 + $0xd50] sm:$0xf] }
 0x4c4   : > { %v15543_v52 = vor.u32 %v18273_v11, %v15540_v57  ;;  %15859 = vmatmul.msk.bf16.vlgmr.msra.gmra.mxu0 %vm1383_vm0, %v21305_v51  ;;  %v15554_v57 = vld [vmem:[%s19135_s8 + $0xb10] sm:$0xf]  ;;  %v15292_v59 = vld [vmem:[%s19135_s8 + $0x928] sm:$0xf0]  ;;  %v18347_v6 = vld [vmem:[%s19135_s8 + $0xd54] sm:$0xf] }
 0x4c5   : > { %8447 = vmatpush.bf16.msrb.mxu1 %v15735_v22  ;;  %8564 = vmatpush.bf16.msrb.mxu0 %v15747_v35  ;;  %v15394_v22 = vld [vmem:[%s19135_s8 + $0x9d0] sm:$0xf]  ;;  %v15316_v35 = vld [vmem:[%s19135_s8 + $0x960] sm:$0xf0]  ;;  %v15844_v46 = vld [vmem:[%s19135_s8 + $0xd70] sm:$0xf0] }
 0x4c6   : > { %v15395_v8 = vor.u32 %v18239_v30, %v15394_v22  ;;  %v15319_v23 = vor.u32 %v18217_v38, %v15316_v35  ;;  %v7086_v22 = vadd.f32 %v21193_v0, %v5479_v14  ;;  %v15287_v0 = vor.u32 %v18209_v15, %v15284_v29  ;;  %v18351_v3 = vld [vmem:[%s19135_s8 + $0xd6c] sm:$0xf0]  ;;  %v15786_v38 = vld [vmem:[%s19135_s8 + $0xcd8] sm:$0xf] }
 0x4c7   : > { %8435 = vmatpush.bf16.msra.mxu2 %v15447_v21  ;;  %v15452_v21 = vld [vmem:[%s19135_s8 + $0xa68] sm:$0xf0]  ;;  %v15843_v14 = vor.u32 %v18351_v3, %v15842_v2  ;;  %v15810_v4 = vld [vmem:[%s19135_s8 + $0xd10] sm:$0xf]  ;;  %v18336_v35 = vld [vmem:[%s19135_s8 + $0xcf4] sm:$0xf0] }
 0x4c8   : > { %8554 = vmatpush.bf16.msrb.mxu3 %v15395_v8  ;;  %v7099_v8 = vadd.f32 %v21279_v31, %v7086_v22  ;;  %v15455_v10 = vor.u32 %v18250_v36, %v15452_v21  ;;  %v15802_v36 = vld [vmem:[%s19135_s8 + $0xd08] sm:$0xf]  ;;  %v15754_v22 = vld [vmem:[%s19135_s8 + $0xc98] sm:$0xf]  ;;  %v15676_v2 = vld [vmem:[%s19135_s8 + $0xc28] sm:$0xf0] }
 0x4c9   : > { %8448 = vmatpush.bf16.msrb.mxu1 %v15703_v12  ;;  %8565 = vmatpush.bf16.msrb.mxu0 %v15715_v24  ;;  %v18231_v12 = vld [vmem:[%s19135_s8 + $0x9ac] sm:$0xf0]  ;;  %v18242_v24 = vld [vmem:[%s19135_s8 + $0xa0c] sm:$0xf]  ;;  %v18320_v15 = vld [vmem:[%s19135_s8 + $0xc74] sm:$0xf0] }
 0x4ca   : > { %v15363_v1 = vor.u32 %v18231_v12, %v15362_v33  ;;  %v7112_v11 = vadd.f32 %v21303_v58, %v7099_v8  ;;  %v18234_v12 = vld [vmem:[%s19135_s8 + $0x9cc] sm:$0xf] }
 0x4cb   : > { %8436 = vmatpush.bf16.msra.mxu2 %v15415_v48  ;;  %v15420_v48 = vld [vmem:[%s19135_s8 + $0xa28] sm:$0xf0]  ;;  %v15391_v27 = vor.u32 %v18234_v12, %v15388_v40  ;;  %v18312_v12 = vld [vmem:[%s19135_s8 + $0xc34] sm:$0xf0] }
 0x4cc   : > { %8555 = vmatpush.bf16.msrb.mxu3 %v15363_v1  ;;  %v15423_v33 = vor.u32 %v18242_v24, %v15420_v48  ;;  %v18322_v40 = vld [vmem:[%s19135_s8 + $0xc8c] sm:$0xf] }
 0x4cd   : > { %8449 = vmatpush.bf16.msrb.mxu1 %v15671_v55  ;;  %v21347_v43 = vpop.f32.mrf.mxu0  ;;  %8566 = vmatpush.bf16.msrb.mxu0 %v15683_v44  ;;  %v15330_v55 = vld [vmem:[%s19135_s8 + $0x950] sm:$0xf] }
 0x4ce   : > { %v15331_v56 = vor.u32 %v18223_v28, %v15330_v55  ;;  %v18210_v28 = vld [vmem:[%s19135_s8 + $0x90c] sm:$0xf] }
 0x4cf   : > { %8437 = vmatpush.bf16.msra.mxu2 %v15383_v20 }
 0x4d0   : > { %15856 = vmatmul.msk.bf16.vlgmr.msra.gmra.mxu1 %vm1383_vm0, %v21305_v51  ;;  %8556 = vmatpush.bf16.msrb.mxu3 %v15331_v56  ;;  %v18350_v56 = vld [vmem:[%s19135_s8 + $0xd64] sm:$0xf0] }
 0x4d1   : > { %8450 = vmatpush.bf16.msrb.mxu1 %v15639_v37  ;;  %8567 = vmatpush.bf16.msrb.mxu0 %v15651_v18  ;;  %v15298_v37 = vld [vmem:[%s19135_s8 + $0x910] sm:$0xf]  ;;  %v15847_v18 = vor.u32 %v18347_v6, %v15844_v46  ;;  %v18307_v6 = vld [vmem:[%s19135_s8 + $0xc14] sm:$0xf] }
 0x4d2   : > { %v15299_v32 = vor.u32 %v18215_v17, %v15298_v37  ;;  %v18342_v17 = vld [vmem:[%s19135_s8 + $0xd24] sm:$0xf0]  ;;  %v15684_v46 = vld [vmem:[%s19135_s8 + $0xc30] sm:$0xf0] }
 0x4d3   : > { %8438 = vmatpush.bf16.msra.mxu2 %v15351_v16 }
 0x4d4   : > { %8557 = vmatpush.bf16.msrb.mxu3 %v15299_v32  ;;  %v15812_v32 = vld [vmem:[%s19135_s8 + $0xd30] sm:$0xf0] }
 0x4d5   : > { %8451 = vmatpush.bf16.msrb.mxu1 %v15607_v63  ;;  %v7152_v9 = vpop.f32.mrf.mxu0  ;;  %v18287_v63 = vld [vmem:[%s19135_s8 + $0xb6c] sm:$0xf0]  ;;  %8568 = vmatpush.bf16.msrb.mxu0 %v15619_v54  ;;  %v15803_v54 = vor.u32 %v18342_v17, %v15802_v36  ;;  %v15644_v36 = vld [vmem:[%s19135_s8 + $0xbe8] sm:$0xf0] }
 0x4d6   : > { %v15587_v13 = vor.u32 %v18287_v63, %v15586_v53  ;;  %v18279_v9 = vld [vmem:[%s19135_s8 + $0xb2c] sm:$0xf0]  ;;  %v15787_v53 = vor.u32 %v18336_v35, %v15786_v38  ;;  %v18725_v63 = vld [vmem:[%s20127_s22 + $0x1] ss:$0 sm:$0xff]  ;;  %v18280_v38 = vld [vmem:[%s19135_s8 + $0xb34] sm:$0xf0] }
 0x4d7   : > { %8439 = vmatpush.bf16.msra.mxu2 %v15319_v23  ;;  %8558 = vmatmul.bf16.vlgmr.msrb.gmra.mxu3 %v21258_v62  ;;  %v15555_v31 = vor.u32 %v18279_v9, %v15554_v57  ;;  %v18331_v57 = vld [vmem:[%s19135_s8 + $0xcd4] sm:$0xf]  ;;  %v18290_v17 = vld [vmem:[%s19135_s8 + $0xb8c] sm:$0xf]  ;;  %v15530_v35 = vld [vmem:[%s19135_s8 + $0xad8] sm:$0xf] }
 0x4d8   : > { %8621 = vmatpush.bf16.msra.mxu3 %v15847_v18  ;;  %v15780_v9 = vld [vmem:[%s19135_s8 + $0xcf0] sm:$0xf0]  ;;  %v15687_v18 = vor.u32 %v18307_v6, %v15684_v46 }
 0x4d9   : > { %v21371_v19 = vpop.f32.mrf.mxu2  ;;  %8452 = vmatpush.bf16.msrb.mxu1 %v15575_v39  ;;  %8569 = vmatpush.bf16.msrb.mxu0 %v15587_v13  ;;  %v18259_v6 = vld [vmem:[%s19135_s8 + $0xa94] sm:$0xf] }
 0x4da   : > { %v21378_v60 = vpop.f32.mrf.mxu1  ;;  %v7125_v39 = vadd.f32 %v21371_v19, %v7112_v11  ;;  %v15772_v11 = vld [vmem:[%s19135_s8 + $0xce8] sm:$0xf0]  ;;  %v15492_v46 = vld [vmem:[%s19135_s8 + $0xab0] sm:$0xf0] }
 0x4db   : > { %8440 = vmatpush.bf16.msra.mxu2 %v15287_v0  ;;  %v18330_v0 = vld [vmem:[%s19135_s8 + $0xccc] sm:$0xf] }
 0x4dc   : > { %v7138_v58 = vadd.f32 %v21217_v50, %v7125_v39  ;;  %v15324_v50 = vld [vmem:[%s19135_s8 + $0x968] sm:$0xf0]  ;;  %v15775_v39 = vor.u32 %v18330_v0, %v15772_v11  ;;  %v16219_v0 = vld [vmem:[%s19151_s19 + $0x10c0] sm:$0xf] }
 0x4dd   : > { %8453 = vmatpush.bf16.msrb.mxu1 %v15543_v52  ;;  %8570 = vmatpush.bf16.msrb.mxu0 %v15555_v31  ;;  %v15327_v52 = vor.u32 %v18218_v42, %v15324_v50  ;;  %v15690_v31 = vld [vmem:[%s19135_s8 + $0xc18] sm:$0xf]  ;;  %v18282_v11 = vld [vmem:[%s19135_s8 + $0xb4c] sm:$0xf] }
 0x4de   : > { %v7151_v19 = vadd.f32 %v21347_v43, %v7138_v58  ;;  %v15691_v58 = vor.u32 %v18312_v12, %v15690_v31  ;;  %v18304_v50 = vld [vmem:[%s19135_s8 + $0xbf4] sm:$0xf0] }
 0x4e0   : > { %8454 = vmatmul.bf16.vlgmr.msrb.gmra.mxu1 %v21297_v5  ;;  %8571 = vmatmul.bf16.vlgmr.msrb.gmra.mxu0 %v21297_v5  ;;  %v7164_v20 = vadd.f32 %v21378_v60, %v7151_v19  ;;  %v15295_v60 = vor.u32 %v18210_v28, %v15292_v59  ;;  %v15626_v28 = vld [vmem:[%s19135_s8 + $0xb98] sm:$0xf] }
 0x4e1   : > { %8511 = vmatpush.bf16.msra.mxu1 %v15519_v61  ;;  %v7126_v26 = vpop.f32.mrf.mxu2  ;;  %v15834_v61 = vld [vmem:[%s19135_s8 + $0xd48] sm:$0xf] }
 0x4e2   : > { %v7165_v30 = vpop.f32.mrf.mxu1  ;;  %v15835_v16 = vor.u32 %v18350_v56, %v15834_v61  ;;  %v18343_v26 = vld [vmem:[%s19135_s8 + $0xd2c] sm:$0xf0]  ;;  %v18306_v56 = vld [vmem:[%s19135_s8 + $0xc0c] sm:$0xf] }
 0x4e3   : > { %v21415_v1 = vpop.f32.mrf.mxu3  ;;  %v15811_v23 = vor.u32 %v18343_v26, %v15810_v4  ;;  %v18328_v30 = vld [vmem:[%s19135_s8 + $0xcb4] sm:$0xf0]  ;;  %v18299_v4 = vld [vmem:[%s19135_s8 + $0xbd4] sm:$0xf] }
 0x4e4   : > { %v15755_v13 = vor.u32 %v18328_v30, %v15754_v22  ;;  %v7460_v8 = vadd.f32 %v18725_v63, %v21415_v1  ;;  %v15740_v1 = vld [vmem:[%s19135_s8 + $0xca8] sm:$0xf0]  ;;  %v15652_v26 = vld [vmem:[%s19135_s8 + $0xbf0] sm:$0xf0]  ;;  %v16235_v63 = vld [vmem:[%s19151_s19 + $0x10e0] sm:$0xf] }
 0x4e5   : > { %8512 = vmatpush.bf16.msra.mxu1 %v15487_v34  ;;  %v18339_v34 = vld [vmem:[%s19135_s8 + $0xd14] sm:$0xf]  ;;  %v18383_v22 = vld [vmem:[%s19151_s19 + $0x10ec] sm:$0xf0] }
 0x4e6   : > { %v15815_v25 = vor.u32 %v18339_v34, %v15812_v32  ;;  %v15562_v34 = vld [vmem:[%s19135_s8 + $0xb18] sm:$0xf]  ;;  %v16236_v30 = vor.u32 %v18383_v22, %v16235_v63 }
 0x4e8   : > { %8622 = vmatpush.bf16.msra.mxu3 %v15815_v25  ;;  %v15655_v25 = vor.u32 %v18299_v4, %v15652_v26  ;;  %v15500_v26 = vld [vmem:[%s19135_s8 + $0xab8] sm:$0xf0] }
 0x4e9   : > { %8513 = vmatpush.bf16.msra.mxu1 %v15455_v10  ;;  %v15722_v10 = vld [vmem:[%s19135_s8 + $0xc58] sm:$0xf] }
 0x4ea   : > { %v15723_v24 = vor.u32 %v18320_v15, %v15722_v10 }
 0x4eb   : > { %v7461_v44 = vpop.f32.mrf.mxu3  ;;  %15861 = vmatmul.msk.bf16.vlgmr.msra.gmra.mxu3 %vm1383_vm0, %v21305_v51 }
 0x4ec   : > { %8641 = vmatpush.bf16.msrb.mxu3 %v15787_v53  ;;  %v18314_v44 = vld [vmem:[%s19135_s8 + $0xc4c] sm:$0xf] }
 0x4ed   : > { %8514 = vmatpush.bf16.msra.mxu1 %v15423_v33  ;;  %v15783_v33 = vor.u32 %v18331_v57, %v15780_v9  ;;  %v15580_v57 = vld [vmem:[%s19135_s8 + $0xb68] sm:$0xf0]  ;;  %v18379_v9 = vld [vmem:[%s19151_s19 + $0x10cc] sm:$0xf0] }
 0x4ee   : > { %v16220_v31 = vor.u32 %v18379_v9, %v16219_v0  ;;  %v15583_v12 = vor.u32 %v18282_v11, %v15580_v57  ;;  %v18244_v0 = vld [vmem:[%s19135_s8 + $0xa1c] sm:$0xf] }
 0x4ef   : > { %v15436_v11 = vld [vmem:[%s19135_s8 + $0xa38] sm:$0xf0] }
 0x4f0   : > { %8642 = vmatpush.bf16.msrb.mxu3 %v15755_v13  ;;  %v18291_v13 = vld [vmem:[%s19135_s8 + $0xb94] sm:$0xf]  ;;  %v15439_v9 = vor.u32 %v18244_v0, %v15436_v11  ;;  %v15818_v0 = vld [vmem:[%s19135_s8 + $0xd18] sm:$0xf] }
 0x4f1   : > { %8515 = vmatpush.bf16.msra.mxu1 %v15391_v27  ;;  %v18323_v27 = vld [vmem:[%s19135_s8 + $0xc94] sm:$0xf]  ;;  %v18344_v11 = vld [vmem:[%s19135_s8 + $0xd34] sm:$0xf0] }
 0x4f2   : > { %v15751_v42 = vor.u32 %v18323_v27, %v15748_v49  ;;  %v16203_v27 = vld [vmem:[%s19151_s19 + $0x10a0] sm:$0xf]  ;;  %v18274_v49 = vld [vmem:[%s19135_s8 + $0xb0c] sm:$0xf] }
 0x4f4   : > { %8643 = vmatpush.bf16.msrb.mxu3 %v15723_v24  ;;  %v18264_v24 = vld [vmem:[%s19135_s8 + $0xab4] sm:$0xf0] }
 0x4f5   : > { %8516 = vmatpush.bf16.msra.mxu1 %v15359_v41  ;;  %v15743_v41 = vor.u32 %v18322_v40, %v15740_v1  ;;  %v15466_v1 = vld [vmem:[%s19135_s8 + $0xa58] sm:$0xf] }
 0x4f8   : > { %8644 = vmatpush.bf16.msrb.mxu3 %v15691_v58  ;;  %v18256_v58 = vld [vmem:[%s19135_s8 + $0xa74] sm:$0xf0] }
 0x4f9   : > { %v7176_v55 = vpop.f32.mrf.mxu2  ;;  %8517 = vmatpush.bf16.msra.mxu1 %v15327_v52  ;;  %v15659_v52 = vor.u32 %v18304_v50, %v15658_v45  ;;  %v15548_v45 = vld [vmem:[%s19135_s8 + $0xb28] sm:$0xf0]  ;;  %v15524_v50 = vld [vmem:[%s19135_s8 + $0xaf0] sm:$0xf0] }
 0x4fa   : > { %v7177_v43 = vadd.f32 %v7176_v55, %v7164_v20  ;;  %v15708_v20 = vld [vmem:[%s19135_s8 + $0xc68] sm:$0xf0]  ;;  %v15716_v55 = vld [vmem:[%s19135_s8 + $0xc70] sm:$0xf0] }
 0x4fb   : > { %v15711_v59 = vor.u32 %v18314_v44, %v15708_v20  ;;  %v18275_v20 = vld [vmem:[%s19135_s8 + $0xb14] sm:$0xf] }
 0x4fc   : > { %v7183_v7 = vmax.f32 %v7177_v43, 0.0  ;;  %8645 = vmatpush.bf16.msrb.mxu3 %v15659_v52  ;;  %v18296_v43 = vld [vmem:[%s19135_s8 + $0xbb4] sm:$0xf0]  ;;  %v15556_v52 = vld [vmem:[%s19135_s8 + $0xb30] sm:$0xf0] }
 0x4fd   : > { %8518 = vmatpush.bf16.msra.mxu1 %v15295_v60  ;;  %v7472_v29 = vpop.f32.mrf.mxu0  ;;  %v15627_v3 = vor.u32 %v18296_v43, %v15626_v28  ;;  %v15679_v60 = vor.u32 %v18306_v56, %v15676_v2  ;;  %v15434_v28 = vld [vmem:[%s19135_s8 + $0xa18] sm:$0xf]  ;;  %v18268_v56 = vld [vmem:[%s19135_s8 + $0xadc] sm:$0xf] }
 0x4fe   : > { %v7187_v37 = vpack.c.bf16 %v7183_v7, %v7183_v7  ;;  %v21450_v48 = vadd.f32 %v7472_v29, %v7460_v8  ;;  %v15594_v7 = vld [vmem:[%s19135_s8 + $0xb58] sm:$0xf]  ;;  %v15620_v8 = vld [vmem:[%s19135_s8 + $0xbb0] sm:$0xf0]  ;;  %v15532_v2 = vld [vmem:[%s19135_s8 + $0xaf8] sm:$0xf0] }
 0x4ff   : > { %v15623_v15 = vor.u32 %v18291_v13, %v15620_v8  ;;  %v15498_v29 = vld [vmem:[%s19135_s8 + $0xa98] sm:$0xf]  ;;  %v16155_v13 = vld [vmem:[%s19151_s19 + $0x1040] sm:$0xf]  ;;  %v18363_v8 = vld [vmem:[%s19151_s19 + $0x104c] sm:$0xf0] }
 0x500   : > { %7497 = vmatmul.bf16.vlgmr.msrb.gmra.mxu2 %v7187_v37  ;;  %8519 = vmatmul.bf16.vlgmr.msra.gmra.mxu1 %v21258_v62 }
 0x501   : > { %v7178_v21 = vpop.f32.mrf.mxu2  ;;  %8504 = vmatpush.bf16.msrb.mxu2 %v15835_v16  ;;  %8582 = vmatpush.bf16.msrb.mxu1 %v15843_v14  ;;  %v18288_v16 = vld [vmem:[%s19135_s8 + $0xb74] sm:$0xf0]  ;;  %v18298_v14 = vld [vmem:[%s19135_s8 + $0xbcc] sm:$0xf] }
 0x502   : > { %8646 = vmatpush.bf16.msrb.mxu3 %v15627_v3  ;;  %v15595_v37 = vor.u32 %v18288_v16, %v15594_v7  ;;  %v15647_v32 = vor.u32 %v18298_v14, %v15644_v36  ;;  %v18272_v21 = vld [vmem:[%s19135_s8 + $0xaf4] sm:$0xf0]  ;;  %v16187_v3 = vld [vmem:[%s19151_s19 + $0x1080] sm:$0xf]  ;;  %v15535_v7 = vor.u32 %v18268_v56, %v15532_v2  ;;  %v18260_v36 = vld [vmem:[%s19135_s8 + $0xa9c] sm:$0xf] }
 0x503   : > { %v15531_v53 = vor.u32 %v18272_v21, %v15530_v35  ;;  %v15402_v16 = vld [vmem:[%s19135_s8 + $0x9d8] sm:$0xf] }
 0x504   : > { %v18240_v14 = vld [vmem:[%s19135_s8 + $0x9f4] sm:$0xf0] }
 0x505   : > { %8505 = vmatpush.bf16.msrb.mxu2 %v15803_v54  ;;  %8583 = vmatpush.bf16.msrb.mxu1 %v15811_v23  ;;  %v7474_v19 = vpop.f32.mrf.mxu0  ;;  %v15612_v54 = vld [vmem:[%s19135_s8 + $0xba8] sm:$0xf0]  ;;  %v15563_v23 = vor.u32 %v18280_v38, %v15562_v34  ;;  %v15403_v4 = vor.u32 %v18240_v14, %v15402_v16  ;;  %v15460_v34 = vld [vmem:[%s19135_s8 + $0xa70] sm:$0xf0]  ;;  %v18367_v38 = vld [vmem:[%s19151_s19 + $0x106c] sm:$0xf0] }
 0x506   : > { %8647 = vmatpush.bf16.msrb.mxu3 %v15595_v37  ;;  %v15615_v10 = vor.u32 %v18290_v17, %v15612_v54  ;;  %8628 = vmatpush.bf16.msra.mxu0 %v15531_v53  ;;  %v15467_v19 = vor.u32 %v18256_v58, %v15466_v1  ;;  %v15495_v37 = vor.u32 %v18259_v6, %v15492_v46  ;;  %v18251_v17 = vld [vmem:[%s19135_s8 + $0xa54] sm:$0xf]  ;;  %v15370_v21 = vld [vmem:[%s19135_s8 + $0x998] sm:$0xf]  ;;  %v15468_v53 = vld [vmem:[%s19135_s8 + $0xa78] sm:$0xf0] }
 0x507   : > { %v18232_v54 = vld [vmem:[%s19135_s8 + $0x9b4] sm:$0xf0]  ;;  %v15463_v63 = vor.u32 %v18251_v17, %v15460_v34  ;;  %v16731_v6 = vld [vmem:[%s19151_s19 + $0x14c0] sm:$0xf]  ;;  %v18507_v46 = vld [vmem:[%s19151_s19 + $0x14cc] sm:$0xf0] }
 0x508   : > { %v15371_v22 = vor.u32 %v18232_v54, %v15370_v21  ;;  %v15306_v58 = vld [vmem:[%s19135_s8 + $0x918] sm:$0xf]  ;;  %v18220_v14 = vld [vmem:[%s19135_s8 + $0x95c] sm:$0xf]  ;;  %v18503_v34 = vld [vmem:[%s19151_s19 + $0x14ac] sm:$0xf0] }
 0x509   : > { %8602 = vmatpush.bf16.msra.mxu1 %v15783_v33  ;;  %v15588_v33 = vld [vmem:[%s19135_s8 + $0xb70] sm:$0xf0]  ;;  %v18352_v21 = vld [vmem:[%s19135_s8 + $0xd74] sm:$0xf0] }
 0x50a   : > { %8648 = vmatpush.bf16.msrb.mxu3 %v15563_v23  ;;  %v18252_v23 = vld [vmem:[%s19135_s8 + $0xa5c] sm:$0xf] }
 0x50b   : > { %v21548_v1 = vpop.f32.mrf.mxu3 }
 0x50d   : > { %8603 = vmatpush.bf16.msra.mxu1 %v15751_v42  ;;  %8649 = vmatmul.bf16.vlgmr.msrb.gmra.mxu3 %v21297_v5  ;;  %v18267_v42 = vld [vmem:[%s19135_s8 + $0xad4] sm:$0xf]  ;;  %v21562_v2 = vpop.f32.mrf.mxu0 }
 0x50e   : > { %10270 = vmatpush.bf16.msra.mxu3 %v16236_v30  ;;  %v15471_v30 = vor.u32 %v18252_v23, %v15468_v53  ;;  %v18212_v23 = vld [vmem:[%s19135_s8 + $0x91c] sm:$0xf] }
 0x50f   : > { %v15308_v53 = vld [vmem:[%s19135_s8 + $0x938] sm:$0xf0] }
 0x510   : > { %8441 = vmatmul.bf16.vlgmr.msra.gmra.mxu2 %v21258_v62  ;;  %15860 = vmatmul.msk.bf16.vlgmr.msrb.gmra.mxu1 %vm1383_vm0, %v21305_v51  ;;  %v18315_v62 = vld [vmem:[%s19135_s8 + $0xc54] sm:$0xf] }
 0x511   : > { %8524 = vmatpush.bf16.msra.mxu2 %v15775_v39  ;;  %v15719_v61 = vor.u32 %v18315_v62, %v15716_v55  ;;  %v18283_v39 = vld [vmem:[%s19135_s8 + $0xb54] sm:$0xf]  ;;  %v15551_v62 = vor.u32 %v18274_v49, %v15548_v45  ;;  %v15559_v55 = vor.u32 %v18275_v20, %v15556_v52  ;;  %v18236_v49 = vld [vmem:[%s19135_s8 + $0x9dc] sm:$0xf]  ;;  %v16123_v20 = vld [vmem:[%s19151_s19 + $0x1000] sm:$0xf] }
 0x512   : > { %v15591_v40 = vor.u32 %v18283_v39, %v15588_v33  ;;  %10271 = vmatpush.bf16.msra.mxu3 %v16220_v31  ;;  %v16139_v31 = vld [vmem:[%s19151_s19 + $0x1020] sm:$0xf]  ;;  %v18359_v39 = vld [vmem:[%s19151_s19 + $0x102c] sm:$0xf0]  ;;  %v18235_v33 = vld [vmem:[%s19135_s8 + $0x9d4] sm:$0xf] }
 0x513   : > { %8604 = vmatpush.bf16.msra.mxu1 %v15719_v61  ;;  %v15527_v61 = vor.u32 %v18267_v42, %v15524_v50  ;;  %v15404_v45 = vld [vmem:[%s19135_s8 + $0x9f8] sm:$0xf0]  ;;  %v15364_v42 = vld [vmem:[%s19135_s8 + $0x9b0] sm:$0xf0]  ;;  %v18355_v52 = vld [vmem:[%s19151_s19 + $0x100c] sm:$0xf0]  ;;  %v8405_v16 = vpop.f32.mrf.mxu3 }
 0x515   : > { %8525 = vmatpush.bf16.msra.mxu2 %v15743_v41  ;;  %v18375_v41 = vld [vmem:[%s19151_s19 + $0x10ac] sm:$0xf0] }
 0x516   : > { %v16204_v44 = vor.u32 %v18375_v41, %v16203_v27  ;;  %v18216_v27 = vld [vmem:[%s19135_s8 + $0x934] sm:$0xf0]  ;;  %v18227_v41 = vld [vmem:[%s19135_s8 + $0x994] sm:$0xf] }
 0x517   : > { %8605 = vmatpush.bf16.msra.mxu1 %v15687_v18  ;;  %v15307_v50 = vor.u32 %v18216_v27, %v15306_v58  ;;  %v15367_v56 = vor.u32 %v18227_v41, %v15364_v42  ;;  %v16683_v58 = vld [vmem:[%s19151_s19 + $0x1460] sm:$0xf]  ;;  %v18495_v27 = vld [vmem:[%s19151_s19 + $0x146c] sm:$0xf0] }
 0x518   : > { %10272 = vmatpush.bf16.msra.mxu3 %v16204_v44  ;;  %v15407_v44 = vor.u32 %v18236_v49, %v15404_v45  ;;  %v15819_v45 = vor.u32 %v18344_v11, %v15818_v0  ;;  %v16684_v42 = vor.u32 %v18495_v27, %v16683_v58  ;;  %v16363_v0 = vld [vmem:[%s19151_s19 + $0x11e0] sm:$0xf]  ;;  %v18415_v11 = vld [vmem:[%s19151_s19 + $0x11ec] sm:$0xf0]  ;;  %v15596_v58 = vld [vmem:[%s19135_s8 + $0xb78] sm:$0xf0] }
 0x519   : > { %8526 = vmatpush.bf16.msra.mxu2 %v15711_v59  ;;  %v18248_v59 = vld [vmem:[%s19135_s8 + $0xa34] sm:$0xf0] }
 0x51a   : > { %v15435_v43 = vor.u32 %v18248_v59, %v15434_v28  ;;  %v16124_v28 = vor.u32 %v18355_v52, %v16123_v20  ;;  %v16667_v52 = vld [vmem:[%s19151_s19 + $0x1440] sm:$0xf] }
 0x51b   : > { %8606 = vmatpush.bf16.msra.mxu1 %v15655_v25  ;;  %v16171_v25 = vld [vmem:[%s19151_s19 + $0x1060] sm:$0xf] }
 0x51c   : > { %v16172_v35 = vor.u32 %v18367_v38, %v16171_v25  ;;  %v18211_v25 = vld [vmem:[%s19135_s8 + $0x914] sm:$0xf] }
 0x51d   : > { %8527 = vmatpush.bf16.msra.mxu2 %v15679_v60  ;;  %v18371_v60 = vld [vmem:[%s19151_s19 + $0x108c] sm:$0xf0]  ;;  %v15300_v38 = vld [vmem:[%s19135_s8 + $0x930] sm:$0xf0] }
 0x51e   : > { %v16188_v18 = vor.u32 %v18371_v60, %v16187_v3  ;;  %v15332_v60 = vld [vmem:[%s19135_s8 + $0x970] sm:$0xf0] }
 0x51f   : > { %8607 = vmatpush.bf16.msra.mxu1 %v15623_v15  ;;  %v16156_v15 = vor.u32 %v18363_v8, %v16155_v13  ;;  %v15852_v13 = vld [vmem:[%s19135_s8 + $0xd78] sm:$0xf0]  ;;  %v15303_v8 = vor.u32 %v18211_v25, %v15300_v38  ;;  %v16237_v25 = vld [vmem:[%s19151_s19 + $0x10f0] sm:$0xf0] }
 0x520   : > { %15858 = vmatmul.msk.bf16.vlgmr.msrb.gmra.mxu2 %vm1383_vm0, %v21305_v51  ;;  %v15499_v51 = vor.u32 %v18264_v24, %v15498_v29  ;;  %10273 = vmatpush.bf16.msra.mxu3 %v16188_v18  ;;  %v15338_v29 = vld [vmem:[%s19135_s8 + $0x958] sm:$0xf]  ;;  %v16732_v18 = vor.u32 %v18507_v46, %v16731_v6  ;;  %v16651_v6 = vld [vmem:[%s19151_s19 + $0x1420] sm:$0xf]  ;;  %v18487_v46 = vld [vmem:[%s19151_s19 + $0x142c] sm:$0xf0] }
 0x521   : > { %8528 = vmatpush.bf16.msra.mxu2 %v15647_v32  ;;  %v15503_v32 = vor.u32 %v18260_v36, %v15500_v26  ;;  %v18224_v24 = vld [vmem:[%s19135_s8 + $0x974] sm:$0xf0]  ;;  %v15340_v36 = vld [vmem:[%s19135_s8 + $0x978] sm:$0xf0]  ;;  %v16715_v26 = vld [vmem:[%s19151_s19 + $0x14a0] sm:$0xf]  ;;  %v16652_v16 = vor.u32 %v18487_v46, %v16651_v6 }
 0x522   : > { %8629 = vmatpush.bf16.msra.mxu0 %v15499_v51  ;;  %v15339_v51 = vor.u32 %v18224_v24, %v15338_v29  ;;  %v15343_v17 = vor.u32 %v18220_v14, %v15340_v36  ;;  %v16716_v54 = vor.u32 %v18503_v34, %v16715_v26  ;;  %v18499_v29 = vld [vmem:[%s19151_s19 + $0x148c] sm:$0xf0]  ;;  %v15692_v14 = vld [vmem:[%s19135_s8 + $0xc38] sm:$0xf0]  ;;  %v18381_v34 = vld [vmem:[%s19151_s19 + $0x10e4] sm:$0xf] }
 0x523   : > { %8608 = vmatpush.bf16.msra.mxu1 %v15591_v40  ;;  %v16140_v40 = vor.u32 %v18359_v39, %v16139_v31  ;;  %v21591_v31 = vpop.f32.mrf.mxu3  ;;  %v15788_v39 = vld [vmem:[%s19135_s8 + $0xcf8] sm:$0xf0]  ;;  %v16315_v6 = vld [vmem:[%s19151_s19 + $0x1180] sm:$0xf]  ;;  %v18403_v46 = vld [vmem:[%s19151_s19 + $0x118c] sm:$0xf0] }
 0x524   : > { %10274 = vmatpush.bf16.msra.mxu3 %v16172_v35  ;;  %v15850_v35 = vld [vmem:[%s19135_s8 + $0xd58] sm:$0xf] }
 0x525   : > { %8529 = vmatpush.bf16.msra.mxu2 %v15615_v10  ;;  %v15428_v10 = vld [vmem:[%s19135_s8 + $0xa30] sm:$0xf0]  ;;  %v15851_v24 = vor.u32 %v18352_v21, %v15850_v35 }
 0x526   : > { %8630 = vmatpush.bf16.msra.mxu0 %v15467_v19 }
 0x527   : > { %8609 = vmatpush.bf16.msra.mxu1 %v15559_v55  ;;  %v18511_v55 = vld [vmem:[%s19151_s19 + $0x14ec] sm:$0xf0] }
 0x528   : > { %10275 = vmatpush.bf16.msra.mxu3 %v16156_v15  ;;  %v16699_v15 = vld [vmem:[%s19151_s19 + $0x1480] sm:$0xf] }
 0x529   : > { %8530 = vmatpush.bf16.msra.mxu2 %v15583_v12  ;;  %v15396_v12 = vld [vmem:[%s19135_s8 + $0x9f0] sm:$0xf0] }
 0x52a   : > { %8631 = vmatpush.bf16.msra.mxu0 %v15435_v43  ;;  %8610 = vmatmul.bf16.vlgmr.msra.gmra.mxu1 %v21297_v5  ;;  %v15399_v19 = vor.u32 %v18235_v33, %v15396_v12  ;;  %v15372_v43 = vld [vmem:[%s19135_s8 + $0x9b8] sm:$0xf0] }
 0x52b   : > { %8667 = vmatpush.bf16.msrb.mxu1 %v15535_v7  ;;  %v18219_v7 = vld [vmem:[%s19135_s8 + $0x954] sm:$0xf]  ;;  %v18340_v33 = vld [vmem:[%s19135_s8 + $0xd1c] sm:$0xf] }
 0x52c   : > { %10276 = vmatpush.bf16.msra.mxu3 %v16140_v40  ;;  %v15820_v12 = vld [vmem:[%s19135_s8 + $0xd38] sm:$0xf0] }
 0x52d   : > { %8531 = vmatpush.bf16.msra.mxu2 %v15551_v62  ;;  %v16747_v62 = vld [vmem:[%s19151_s19 + $0x14e0] sm:$0xf]  ;;  %v15823_v40 = vor.u32 %v18340_v33, %v15820_v12  ;;  %v18284_v12 = vld [vmem:[%s19135_s8 + $0xb5c] sm:$0xf] }
 0x52e   : > { %8632 = vmatpush.bf16.msra.mxu0 %v15403_v4  ;;  %v16748_v59 = vor.u32 %v18511_v55, %v16747_v62  ;;  %v15335_v4 = vor.u32 %v18219_v7, %v15332_v60  ;;  %v18491_v62 = vld [vmem:[%s19151_s19 + $0x144c] sm:$0xf0] }
 0x52f   : > { %8668 = vmatpush.bf16.msrb.mxu1 %v15503_v32 }
 0x530   : > { %8532 = vmatmul.bf16.vlgmr.msra.gmra.mxu2 %v21297_v5  ;;  %v18243_v5 = vld [vmem:[%s19135_s8 + $0xa14] sm:$0xf]  ;;  %10277 = vmatpush.bf16.msra.mxu3 %v16124_v28  ;;  %v18316_v28 = vld [vmem:[%s19135_s8 + $0xc5c] sm:$0xf] }
 0x531   : > { %8589 = vmatpush.bf16.msrb.mxu2 %v15527_v61  ;;  %v15431_v57 = vor.u32 %v18243_v5, %v15428_v10  ;;  %v18228_v61 = vld [vmem:[%s19135_s8 + $0x99c] sm:$0xf]  ;;  %v8418_v5 = vpop.f32.mrf.mxu0 }
 0x532   : > { %8633 = vmatpush.bf16.msra.mxu0 %v15371_v22  ;;  %v15375_v3 = vor.u32 %v18228_v61, %v15372_v43  ;;  %v15311_v22 = vor.u32 %v18212_v23, %v15308_v53  ;;  %v16668_v61 = vor.u32 %v18491_v62, %v16667_v52  ;;  %v8470_v43 = vpop.f32.mrf.mxu3  ;;  %v18300_v23 = vld [vmem:[%s19135_s8 + $0xbdc] sm:$0xf] }
 0x533   : > { %8669 = vmatpush.bf16.msrb.mxu1 %v15471_v30  ;;  %v18348_v30 = vld [vmem:[%s19135_s8 + $0xd5c] sm:$0xf]  ;;  %v16173_v43 = vld [vmem:[%s19151_s19 + $0x1070] sm:$0xf0] }
 0x534   : > { %10322 = vmatpush.bf16.msrb.mxu3 %v16748_v59  ;;  %v15855_v10 = vor.u32 %v18348_v30, %v15852_v13  ;;  %v15724_v59 = vld [vmem:[%s19135_s8 + $0xc78] sm:$0xf0]  ;;  %v18377_v13 = vld [vmem:[%s19151_s19 + $0x10c4] sm:$0xf] }
 0x535   : > { %8590 = vmatpush.bf16.msrb.mxu2 %v15495_v37  ;;  %v18730_v37 = vld [vmem:[#allocation1] sm:$0xff]  ;;  %v15727_v60 = vor.u32 %v18316_v28, %v15724_v59  ;;  %v18407_v28 = vld [vmem:[%s19151_s19 + $0x11ac] sm:$0xf0] }
 0x536   : > { %8634 = vmatpush.bf16.msra.mxu0 %v15339_v51  ;;  %v15660_v53 = vld [vmem:[%s19135_s8 + $0xbf8] sm:$0xf0] }
 0x537   : > { %8670 = vmatpush.bf16.msrb.mxu1 %v15439_v9  ;;  %v16700_v9 = vor.u32 %v18499_v29, %v16699_v15  ;;  %v18292_v15 = vld [vmem:[%s19135_s8 + $0xb9c] sm:$0xf] }
 0x538   : > { %10323 = vmatpush.bf16.msrb.mxu3 %v16732_v18  ;;  %v18308_v18 = vld [vmem:[%s19135_s8 + $0xc1c] sm:$0xf] }
 0x539   : > { %8591 = vmatpush.bf16.msrb.mxu2 %v15463_v63  ;;  %v21581_v63 = vld [vmem:[%s19143_s27 + $0x10] sm:$0xff]  ;;  %v8481_v20 = vpop.f32.mrf.mxu0  ;;  %v15695_v38 = vor.u32 %v18308_v18, %v15692_v14  ;;  %v15628_v29 = vld [vmem:[%s19135_s8 + $0xbb8] sm:$0xf0]  ;;  %v18447_v18 = vld [vmem:[%s19151_s19 + $0x12ec] sm:$0xf0] }
 0x53a   : > { %8635 = vmatpush.bf16.msra.mxu0 %v15307_v50  ;;  %v7650_v51 = vperm.slane %v21581_v63, 0  ;;  %v18324_v50 = vld [vmem:[%s19135_s8 + $0xc9c] sm:$0xf]  ;;  %v15631_v33 = vor.u32 %v18292_v15, %v15628_v29  ;;  %v18361_v14 = vld [vmem:[%s19151_s19 + $0x1044] sm:$0xf] }
 0x53b   : > { %8671 = vmatpush.bf16.msrb.mxu1 %v15407_v44  ;;  %v15756_v44 = vld [vmem:[%s19135_s8 + $0xcb8] sm:$0xf0]  ;;  %v18439_v29 = vld [vmem:[%s19151_s19 + $0x12ac] sm:$0xf0] }
 0x53c   : > { %10324 = vmatpush.bf16.msrb.mxu3 %v16716_v54  ;;  %v8404_v41 = vadd.f32 %v21548_v1, %v7650_v51  ;;  %v15759_v55 = vor.u32 %v18324_v50, %v15756_v44  ;;  %v8494_v54 = vpop.f32.mrf.mxu3  ;;  %v16364_v51 = vor.u32 %v18415_v11, %v16363_v0  ;;  %v16189_v50 = vld [vmem:[%s19151_s19 + $0x1090] sm:$0xf0]  ;;  %v15599_v44 = vor.u32 %v18284_v12, %v15596_v58  ;;  %v15564_v52 = vld [vmem:[%s19135_s8 + $0xb38] sm:$0xf0]  ;;  %v18353_v0 = vld [vmem:[%s19151_s19 + $0x1004] sm:$0xf] }
 0x53d   : > { %8592 = vmatpush.bf16.msrb.mxu2 %v15431_v57  ;;  %8636 = vmatmul.bf16.vlgmr.msra.gmra.mxu0 %v18730_v37  ;;  %v21572_v32 = vpop.f32.mrf.mxu1  ;;  %v18332_v57 = vld [vmem:[%s19135_s8 + $0xcdc] sm:$0xf]  ;;  %v16125_v11 = vld [vmem:[%s19151_s19 + $0x1010] sm:$0xf0]  ;;  %v18435_v58 = vld [vmem:[%s19151_s19 + $0x128c] sm:$0xf0] }
 0x53e   : > { %8699 = vmatpush.bf16.msrb.mxu0 %v15855_v10  ;;  %v8417_v1 = vadd.f32 %v21562_v2, %v8404_v41  ;;  %v15663_v10 = vor.u32 %v18300_v23, %v15660_v53  ;;  %v18357_v53 = vld [vmem:[%s19151_s19 + $0x1024] sm:$0xf] }
 0x53f   : > { %8672 = vmatpush.bf16.msrb.mxu1 %v15375_v3  ;;  %v18731_v3 = vld [vmem:[#allocation1 + $0x12] sm:$0xff] }
 0x540   : > { %10325 = vmatpush.bf16.msrb.mxu3 %v16700_v9  ;;  %v18373_v9 = vld [vmem:[%s19151_s19 + $0x10a4] sm:$0xf] }
 0x541   : > { %8593 = vmatpush.bf16.msrb.mxu2 %v15399_v19  ;;  %v15791_v19 = vor.u32 %v18332_v57, %v15788_v39  ;;  %v8483_v26 = vpop.f32.mrf.mxu0  ;;  %v16205_v39 = vld [vmem:[%s19151_s19 + $0x10b0] sm:$0xf0] }
 0x542   : > { %8700 = vmatpush.bf16.msrb.mxu0 %v15823_v40  ;;  %v16208_v27 = vor.u32 %v18373_v9, %v16205_v39  ;;  %v16475_v26 = vld [vmem:[%s19151_s19 + $0x12c0] sm:$0xf]  ;;  %v18391_v39 = vld [vmem:[%s19151_s19 + $0x112c] sm:$0xf0] }
 0x543   : > { %8673 = vmatpush.bf16.msrb.mxu1 %v15343_v17  ;;  %v18483_v17 = vld [vmem:[%s19151_s19 + $0x140c] sm:$0xf0]  ;;  %v16267_v9 = vld [vmem:[%s19151_s19 + $0x1120] sm:$0xf] }
 0x544   : > { %10326 = vmatpush.bf16.msrb.mxu3 %v16684_v42  ;;  %v8496_v40 = vpop.f32.mrf.mxu3  ;;  %v18369_v42 = vld [vmem:[%s19151_s19 + $0x1084] sm:$0xf] }
 0x545   : > { %8594 = vmatpush.bf16.msrb.mxu2 %v15367_v56  ;;  %v7487_v49 = vpop.f32.mrf.mxu1  ;;  %v7652_v56 = vperm.slane %v21581_v63, 2  ;;  %v16192_v62 = vor.u32 %v18369_v42, %v16189_v50  ;;  %v16268_v40 = vor.u32 %v18391_v39, %v16267_v9  ;;  %v16427_v42 = vld [vmem:[%s19151_s19 + $0x1260] sm:$0xf]  ;;  %v18575_v39 = vld [vmem:[%s19151_s19 + $0x16ec] sm:$0xf0] }
 0x546   : > { %10283 = vmatpush.bf16.msra.mxu0 %v16364_v51  ;;  %v16347_v49 = vld [vmem:[%s19151_s19 + $0x11c0] sm:$0xf]  ;;  %v16128_v51 = vor.u32 %v18353_v0, %v16125_v11  ;;  %v18531_v11 = vld [vmem:[%s19151_s19 + $0x158c] sm:$0xf0] }
 0x547   : > { %8674 = vmatpush.bf16.msrb.mxu1 %v15311_v22  ;;  %v8482_v36 = vadd.f32 %v8481_v20, %v7652_v56  ;;  %v16240_v22 = vor.u32 %v18381_v34, %v16237_v25  ;;  %v18276_v20 = vld [vmem:[%s19135_s8 + $0xb1c] sm:$0xf]  ;;  %v16827_v0 = vld [vmem:[%s19151_s19 + $0x1580] sm:$0xf]  ;;  %s22326_s8 = sld [smem:[#allocation19_spill]] }
 0x548   : > { %10327 = vmatpush.bf16.msrb.mxu3 %v16668_v61  ;;  %v18365_v61 = vld [vmem:[%s19151_s19 + $0x1064] sm:$0xf]  ;;  %v15567_v56 = vor.u32 %v18276_v20, %v15564_v52  ;;  %v16619_v52 = vld [vmem:[%s19151_s19 + $0x13e0] sm:$0xf]  ;;  %v16828_v9 = vor.u32 %v18531_v11, %v16827_v0  ;;  %v18515_v0 = vld [vmem:[%s19151_s19 + $0x150c] sm:$0xf0] }
 0x549   : > { %8595 = vmatpush.bf16.msrb.mxu2 %v15335_v4  ;;  %v21620_v30 = vadd.f32 %v8494_v54, %v8482_v36  ;;  %v21630_v57 = vpop.f32.mrf.mxu0  ;;  %v16157_v36 = vld [vmem:[%s19151_s19 + $0x1050] sm:$0xf0]  ;;  %v16939_v11 = vld [vmem:[%s19151_s19 + $0x1660] sm:$0xf] }
 0x54a   : > { %8675 = vmatmul.bf16.vlgmr.msrb.gmra.mxu1 %v18730_v37 }
 0x54c   : > { %10328 = vmatpush.bf16.msrb.mxu3 %v16652_v16 }
 0x54d   : > { %8596 = vmatpush.bf16.msrb.mxu2 %v15303_v8  ;;  %15863 = vmatmul.msk.bf16.vlgmr.msrb.gmra.mxu0 %vm1383_vm0, %v18731_v3  ;;  %v8429_v7 = vpop.f32.mrf.mxu1  ;;  %v16221_v8 = vld [vmem:[%s19151_s19 + $0x10d0] sm:$0xf0]  ;;  %s491_s12 = scalar_lea.vmem %s22326_s8, %s11195_s30 }
 0x54e   : > { %v8430_v2 = vadd.f32 %v8429_v7, %v8417_v1  ;;  %v16491_v7 = vld [vmem:[%s19151_s19 + $0x12e0] sm:$0xf] }
 0x54f   : > { %v16492_v16 = vor.u32 %v18447_v18, %v16491_v7  ;;  %v16395_v18 = vld [vmem:[%s19151_s19 + $0x1220] sm:$0xf] }
 0x550   : > { %8597 = vmatmul.bf16.vlgmr.msrb.gmra.mxu2 %v18730_v37  ;;  %v16635_v37 = vld [vmem:[%s19151_s19 + $0x1400] sm:$0xf]  ;;  %v8706_v4 = vmax.f32 %v8430_v2, 0.0 }
 0x551   : > { %8660 = vmatpush.bf16.msra.mxu2 %v15851_v24  ;;  %v16636_v21 = vor.u32 %v18483_v17, %v16635_v37  ;;  %v16224_v24 = vor.u32 %v18377_v13, %v16221_v8  ;;  %v8548_v59 = vpop.f32.mrf.mxu0  ;;  %10296 = vmatpush.bf16.msra.mxu1 %v16492_v16  ;;  %v16160_v37 = vor.u32 %v18361_v14, %v16157_v36  ;;  %v16299_v17 = vld [vmem:[%s19151_s19 + $0x1160] sm:$0xf] }
 0x552   : > { %v21616_v35 = vpack.c.bf16 %v8706_v4, %v8706_v4  ;;  %v18399_v4 = vld [vmem:[%s19151_s19 + $0x116c] sm:$0xf0]  ;;  %v16283_v8 = vld [vmem:[%s19151_s19 + $0x1140] sm:$0xf] }
 0x553   : > { %10329 = vmatpush.bf16.msrb.mxu3 %v16636_v21  ;;  %v16300_v25 = vor.u32 %v18399_v4, %v16299_v17  ;;  %v18732_v21 = vld [vmem:[#allocation1 + $0x9] sm:$0xff]  ;;  %v16859_v36 = vld [vmem:[%s19151_s19 + $0x15c0] sm:$0xf] }
 0x554   : > { %10278 = vmatmul.bf16.vlgmr.msra.gmra.mxu3 %v21616_v35  ;;  %v18427_v59 = vld [vmem:[%s19151_s19 + $0x124c] sm:$0xf0] }
 0x555   : > { %8661 = vmatpush.bf16.msra.mxu2 %v15819_v45  ;;  %v8431_v5 = vpop.f32.mrf.mxu1  ;;  %v18411_v45 = vld [vmem:[%s19151_s19 + $0x11cc] sm:$0xf0] }
 0x556   : > { %v18395_v5 = vld [vmem:[%s19151_s19 + $0x114c] sm:$0xf0] }
 0x557   : > { %10374 = vmatpush.bf16.msra.mxu3 %v16240_v22  ;;  %v16141_v22 = vld [vmem:[%s19151_s19 + $0x1030] sm:$0xf0]  ;;  %v16284_v15 = vor.u32 %v18395_v5, %v16283_v8  ;;  %v16571_v5 = vld [vmem:[%s19151_s19 + $0x1380] sm:$0xf] }
 0x558   : > { %v16144_v13 = vor.u32 %v18357_v53, %v16141_v22  ;;  %v16843_v53 = vld [vmem:[%s19151_s19 + $0x15a0] sm:$0xf]  ;;  %v18535_v22 = vld [vmem:[%s19151_s19 + $0x15ac] sm:$0xf0] }
 0x559   : > { %8680 = vmatpush.bf16.msrb.mxu2 %v15791_v19  ;;  %v16348_v19 = vor.u32 %v18411_v45, %v16347_v49  ;;  %v16251_v45 = vld [vmem:[%s19151_s19 + $0x1100] sm:$0xf]  ;;  %v16844_v8 = vor.u32 %v18535_v22, %v16843_v53  ;;  %v18563_v53 = vld [vmem:[%s19151_s19 + $0x168c] sm:$0xf0] }
 0x55a   : > { %v21657_v34 = vpop.f32.mrf.mxu3  ;;  %v18451_v22 = vld [vmem:[%s19151_s19 + $0x130c] sm:$0xf0] }
 0x55b   : > { %10375 = vmatpush.bf16.msra.mxu3 %v16224_v24  ;;  %10284 = vmatpush.bf16.msra.mxu0 %v16348_v19  ;;  %v18387_v19 = vld [vmem:[%s19151_s19 + $0x110c] sm:$0xf0] }
 0x55c   : > { %v16252_v50 = vor.u32 %v18387_v19, %v16251_v45  ;;  %v18527_v45 = vld [vmem:[%s19151_s19 + $0x156c] sm:$0xf0]  ;;  %v16987_v19 = vld [vmem:[%s19151_s19 + $0x16c0] sm:$0xf] }
 0x55d   : > { %8681 = vmatpush.bf16.msrb.mxu2 %v15759_v55  ;;  %v21638_v41 = vpop.f32.mrf.mxu1  ;;  %v16331_v55 = vld [vmem:[%s19151_s19 + $0x11a0] sm:$0xf]  ;;  %v21660_v54 = vpop.f32.mrf.mxu0 }
 0x55e   : > { %v16332_v1 = vor.u32 %v18407_v28, %v16331_v55  ;;  %v16411_v28 = vld [vmem:[%s19151_s19 + $0x1240] sm:$0xf] }
 0x55f   : > { %10376 = vmatpush.bf16.msra.mxu3 %v16208_v27 }
 0x560   : > { %15862 = vmatmul.msk.bf16.vlgmr.msra.gmra.mxu2 %vm1383_vm0, %v18731_v3  ;;  %10285 = vmatpush.bf16.msra.mxu0 %v16332_v1  ;;  %v16176_v3 = vor.u32 %v18365_v61, %v16173_v43  ;;  %v16412_v1 = vor.u32 %v18427_v59, %v16411_v28  ;;  %v16875_v61 = vld [vmem:[%s19151_s19 + $0x15e0] sm:$0xf]  ;;  %v18543_v43 = vld [vmem:[%s19151_s19 + $0x15ec] sm:$0xf0] }
 0x561   : > { %8682 = vmatpush.bf16.msrb.mxu2 %v15727_v60  ;;  %v16316_v60 = vor.u32 %v18403_v46, %v16315_v6  ;;  %v16603_v6 = vld [vmem:[%s19151_s19 + $0x13c0] sm:$0xf]  ;;  %v18475_v46 = vld [vmem:[%s19151_s19 + $0x13cc] sm:$0xf0] }
 0x562   : > { %v8561_v12 = vpop.f32.mrf.mxu3  ;;  %v16604_v7 = vor.u32 %v18475_v46, %v16603_v6 }
 0x563   : > { %10377 = vmatpush.bf16.msra.mxu3 %v16192_v62  ;;  %v18479_v62 = vld [vmem:[%s19151_s19 + $0x13ec] sm:$0xf0] }
 0x564   : > { %10286 = vmatpush.bf16.msra.mxu0 %v16316_v60  ;;  %v16620_v55 = vor.u32 %v18479_v62, %v16619_v52  ;;  %v7486_v60 = vadd.f32 %v21572_v32, %v21450_v48  ;;  %v7654_v48 = vperm.slane %v21581_v63, 4  ;;  %v18463_v12 = vld [vmem:[%s19151_s19 + $0x136c] sm:$0xf0]  ;;  %v18509_v62 = vld [vmem:[%s19151_s19 + $0x14e4] sm:$0xf] }
 0x565   : > { %8683 = vmatpush.bf16.msrb.mxu2 %v15695_v38  ;;  %v8457_v2 = vpop.f32.mrf.mxu1  ;;  %v18443_v38 = vld [vmem:[%s19151_s19 + $0x12cc] sm:$0xf0]  ;;  %v8574_v27 = vpop.f32.mrf.mxu0 }
 0x566   : > { %v16476_v23 = vor.u32 %v18443_v38, %v16475_v26  ;;  %v18423_v2 = vld [vmem:[%s19151_s19 + $0x122c] sm:$0xf0]  ;;  %v16587_v26 = vld [vmem:[%s19151_s19 + $0x13a0] sm:$0xf]  ;;  %v7651_v27 = vperm.slane %v21581_v63, 1 }
 0x567   : > { %10378 = vmatpush.bf16.msra.mxu3 %v16176_v3  ;;  %v16876_v3 = vor.u32 %v18543_v43, %v16875_v61  ;;  %v16396_v14 = vor.u32 %v18423_v2, %v16395_v18  ;;  %v16379_v38 = vld [vmem:[%s19151_s19 + $0x1200] sm:$0xf]  ;;  %v18459_v52 = vld [vmem:[%s19151_s19 + $0x134c] sm:$0xf0] }
 0x568   : > { %10287 = vmatpush.bf16.msra.mxu0 %v16300_v25  ;;  %10297 = vmatpush.bf16.msra.mxu1 %v16476_v23  ;;  %v18471_v25 = vld [vmem:[%s19151_s19 + $0x13ac] sm:$0xf0]  ;;  %v16795_v43 = vld [vmem:[%s19151_s19 + $0x1540] sm:$0xf] }
 0x569   : > { %8684 = vmatpush.bf16.msrb.mxu2 %v15663_v10  ;;  %v16459_v10 = vld [vmem:[%s19151_s19 + $0x12a0] sm:$0xf]  ;;  %v16588_v32 = vor.u32 %v18471_v25, %v16587_v26  ;;  %v18567_v18 = vld [vmem:[%s19151_s19 + $0x16ac] sm:$0xf0] }
 0x56a   : > { %v16460_v24 = vor.u32 %v18439_v29, %v16459_v10  ;;  %v18467_v10 = vld [vmem:[%s19151_s19 + $0x138c] sm:$0xf0]  ;;  %v16523_v2 = vld [vmem:[%s19151_s19 + $0x1320] sm:$0xf] }
 0x56b   : > { %10379 = vmatpush.bf16.msra.mxu3 %v16160_v37  ;;  %v18539_v37 = vld [vmem:[%s19151_s19 + $0x15cc] sm:$0xf0]  ;;  %v16572_v29 = vor.u32 %v18467_v10, %v16571_v5  ;;  %v16779_v25 = vld [vmem:[%s19151_s19 + $0x1520] sm:$0xf]  ;;  %v16717_v5 = vld [vmem:[%s19151_s19 + $0x14b0] sm:$0xf0] }
 0x56c   : > { %10288 = vmatpush.bf16.msra.mxu0 %v16284_v15  ;;  %10298 = vmatpush.bf16.msra.mxu1 %v16460_v24  ;;  %v16860_v4 = vor.u32 %v18539_v37, %v16859_v36  ;;  %v8560_v15 = vadd.f32 %v21657_v34, %v7654_v48  ;;  %v16733_v36 = vld [vmem:[%s19151_s19 + $0x14d0] sm:$0xf0]  ;;  %v18519_v48 = vld [vmem:[%s19151_s19 + $0x152c] sm:$0xf0] }
 0x56d   : > { %8685 = vmatpush.bf16.msrb.mxu2 %v15631_v33  ;;  %v16443_v33 = vld [vmem:[%s19151_s19 + $0x1280] sm:$0xf] }
 0x56e   : > { %v16444_v49 = vor.u32 %v18435_v58, %v16443_v33  ;;  %v16555_v33 = vld [vmem:[%s19151_s19 + $0x1360] sm:$0xf]  ;;  %v8573_v34 = vadd.f32 %v21660_v54, %v8560_v15 }
 0x56f   : > { %10380 = vmatpush.bf16.msra.mxu3 %v16144_v13  ;;  %v16556_v58 = vor.u32 %v18463_v12, %v16555_v33  ;;  %v18559_v33 = vld [vmem:[%s19151_s19 + $0x166c] sm:$0xf0]  ;;  %v18413_v12 = vld [vmem:[%s19151_s19 + $0x11e4] sm:$0xf] }
 0x570   : > { %10289 = vmatpush.bf16.msra.mxu0 %v16268_v40  ;;  %10299 = vmatpush.bf16.msra.mxu1 %v16444_v49  ;;  %v16811_v49 = vld [vmem:[%s19151_s19 + $0x1560] sm:$0xf] }
 0x571   : > { %8686 = vmatpush.bf16.msrb.mxu2 %v15599_v44  ;;  %v18431_v44 = vld [vmem:[%s19151_s19 + $0x126c] sm:$0xf0] }
 0x572   : > { %v16428_v20 = vor.u32 %v18431_v44, %v16427_v42  ;;  %v18571_v44 = vld [vmem:[%s19151_s19 + $0x16cc] sm:$0xf0] }
 0x573   : > { %10381 = vmatpush.bf16.msra.mxu3 %v16128_v51  ;;  %v17003_v51 = vld [vmem:[%s19151_s19 + $0x16e0] sm:$0xf]  ;;  %v16988_v28 = vor.u32 %v18571_v44, %v16987_v19  ;;  %v18555_v19 = vld [vmem:[%s19151_s19 + $0x164c] sm:$0xf0] }
 0x574   : > { %10290 = vmatpush.bf16.msra.mxu0 %v16252_v50  ;;  %10300 = vmatpush.bf16.msra.mxu1 %v16428_v20  ;;  %v17004_v40 = vor.u32 %v18575_v39, %v17003_v51  ;;  %v16812_v50 = vor.u32 %v18527_v45, %v16811_v49  ;;  %v16539_v20 = vld [vmem:[%s19151_s19 + $0x1340] sm:$0xf] }
 0x575   : > { %8687 = vmatpush.bf16.msrb.mxu2 %v15567_v56  ;;  %v16540_v59 = vor.u32 %v18459_v52, %v16539_v20  ;;  %v16923_v45 = vld [vmem:[%s19151_s19 + $0x1640] sm:$0xf]  ;;  %v18607_v20 = vld [vmem:[%s19151_s19 + $0x17ec] sm:$0xf0]  ;;  %v18409_v52 = vld [vmem:[%s19151_s19 + $0x11c4] sm:$0xf] }
 0x576   : > { %v16924_v44 = vor.u32 %v18555_v19, %v16923_v45  ;;  %v18384_v45 = vld [vmem:[%s19151_s19 + $0x10f4] sm:$0xf0] }
 0x578   : > { %8688 = vmatmul.bf16.vlgmr.msrb.gmra.mxu2 %v18732_v21  ;;  %10301 = vmatpush.bf16.msra.mxu1 %v16412_v1  ;;  %v18419_v21 = vld [vmem:[%s19151_s19 + $0x120c] sm:$0xf0] }
 0x579   : > { %10309 = vmatpush.bf16.msra.mxu2 %v16620_v55  ;;  %10335 = vmatpush.bf16.msrb.mxu0 %v16876_v3  ;;  %v16380_v23 = vor.u32 %v18419_v21, %v16379_v38  ;;  %v16749_v55 = vld [vmem:[%s19151_s19 + $0x14f0] sm:$0xf0]  ;;  %v18523_v3 = vld [vmem:[%s19151_s19 + $0x154c] sm:$0xf0] }
 0x57a   : > { %v16752_v46 = vor.u32 %v18509_v62, %v16749_v55  ;;  %v18493_v62 = vld [vmem:[%s19151_s19 + $0x1464] sm:$0xf]  ;;  %v16685_v55 = vld [vmem:[%s19151_s19 + $0x1470] sm:$0xf0] }
 0x57c   : > { %10302 = vmatpush.bf16.msra.mxu1 %v16396_v14  ;;  %v18505_v14 = vld [vmem:[%s19151_s19 + $0x14c4] sm:$0xf] }
 0x57d   : > { %v21684_v56 = vpop.f32.mrf.mxu1  ;;  %10310 = vmatpush.bf16.msra.mxu2 %v16604_v7  ;;  %10336 = vmatpush.bf16.msrb.mxu0 %v16860_v4  ;;  %v16796_v7 = vor.u32 %v18523_v3, %v16795_v43  ;;  %v16736_v21 = vor.u32 %v18505_v14, %v16733_v36  ;;  %v18551_v43 = vld [vmem:[%s19151_s19 + $0x162c] sm:$0xf0]  ;;  %v17115_v3 = vld [vmem:[%s19151_s19 + $0x17c0] sm:$0xf]  ;;  %v18489_v14 = vld [vmem:[%s19151_s19 + $0x1444] sm:$0xf] }
 0x57e   : > { %v16669_v36 = vld [vmem:[%s19151_s19 + $0x1450] sm:$0xf0] }
 0x580   : > { %10303 = vmatpush.bf16.msra.mxu1 %v16380_v23  ;;  %v16780_v23 = vor.u32 %v18519_v48, %v16779_v25  ;;  %v18547_v25 = vld [vmem:[%s19151_s19 + $0x160c] sm:$0xf0]  ;;  %v17099_v48 = vld [vmem:[%s19151_s19 + $0x17a0] sm:$0xf] }
 0x581   : > { %10311 = vmatpush.bf16.msra.mxu2 %v16588_v32  ;;  %10337 = vmatpush.bf16.msrb.mxu0 %v16844_v8  ;;  %v16955_v32 = vld [vmem:[%s19151_s19 + $0x1680] sm:$0xf]  ;;  %v18501_v8 = vld [vmem:[%s19151_s19 + $0x14a4] sm:$0xf] }
 0x582   : > { %v16956_v10 = vor.u32 %v18563_v53, %v16955_v32  ;;  %v18401_v53 = vld [vmem:[%s19151_s19 + $0x1184] sm:$0xf] }
 0x583   : > { %v7498_v16 = vpop.f32.mrf.mxu2 }
 0x584   : > { %v7499_v17 = vadd.f32 %v7498_v16, %v7486_v60  ;;  %10348 = vmatpush.bf16.msrb.mxu1 %v17004_v40  ;;  %v16971_v60 = vld [vmem:[%s19151_s19 + $0x16a0] sm:$0xf]  ;;  %v18497_v40 = vld [vmem:[%s19151_s19 + $0x1484] sm:$0xf] }
 0x585   : > { %v8522_v13 = vpop.f32.mrf.mxu1  ;;  %10312 = vmatpush.bf16.msra.mxu2 %v16572_v29  ;;  %10338 = vmatpush.bf16.msrb.mxu0 %v16828_v9  ;;  %v16972_v37 = vor.u32 %v18567_v18, %v16971_v60  ;;  %v16720_v9 = vor.u32 %v18501_v8, %v16717_v5  ;;  %v18603_v60 = vld [vmem:[%s19151_s19 + $0x17cc] sm:$0xf0]  ;;  %v18405_v18 = vld [vmem:[%s19151_s19 + $0x11a4] sm:$0xf] }
 0x586   : > { %11009 = vrot.lane.b32.xlu0 %v7499_v17, %s18938_s18  ;;  %v18455_v17 = vld [vmem:[%s19151_s19 + $0x132c] sm:$0xf0]  ;;  %v18445_v5 = vld [vmem:[%s19151_s19 + $0x12e4] sm:$0xf] }
 0x587   : > { %v16524_v26 = vor.u32 %v18455_v17, %v16523_v2  ;;  %v16333_v2 = vld [vmem:[%s19151_s19 + $0x11b0] sm:$0xf0] }
 0x588   : > { %10349 = vmatpush.bf16.msrb.mxu1 %v16988_v28  ;;  %v16336_v17 = vor.u32 %v18405_v18, %v16333_v2  ;;  %v18389_v2 = vld [vmem:[%s19151_s19 + $0x1124] sm:$0xf] }
 0x589   : > { %10313 = vmatpush.bf16.msra.mxu2 %v16556_v58  ;;  %10339 = vmatpush.bf16.msrb.mxu0 %v16812_v50  ;;  %v16701_v58 = vld [vmem:[%s19151_s19 + $0x1490] sm:$0xf0] }
 0x58a   : > { %v16704_v50 = vor.u32 %v18497_v40, %v16701_v58  ;;  %v16637_v40 = vld [vmem:[%s19151_s19 + $0x1410] sm:$0xf0] }
 0x58b   : > { %v7500_v24 = vpop.f32.mrf.mxu2 }
 0x58c   : > { %10350 = vmatpush.bf16.msrb.mxu1 %v16972_v37  ;;  %v16763_v24 = vld [vmem:[%s19151_s19 + $0x1500] sm:$0xf]  ;;  %v17116_v37 = vor.u32 %v18603_v60, %v17115_v3 }
 0x58d   : > { %v8585_v42 = vpop.f32.mrf.mxu1  ;;  %10314 = vmatpush.bf16.msra.mxu2 %v16540_v59  ;;  %10340 = vmatpush.bf16.msrb.mxu0 %v16796_v7  ;;  %v16764_v39 = vor.u32 %v18515_v0, %v16763_v24  ;;  %v17083_v24 = vld [vmem:[%s19151_s19 + $0x1780] sm:$0xf]  ;;  %v18595_v0 = vld [vmem:[%s19151_s19 + $0x178c] sm:$0xf0] }
 0x58e   : > { %v8586_v54 = vadd.f32 %v8585_v42, %v8573_v34  ;;  %v16365_v34 = vld [vmem:[%s19151_s19 + $0x11f0] sm:$0xf0]  ;;  %v17131_v42 = vld [vmem:[%s19151_s19 + $0x17e0] sm:$0xf] }
 0x58f   : > { %v16368_v49 = vor.u32 %v18413_v12, %v16365_v34  ;;  %v17132_v28 = vor.u32 %v18607_v20, %v17131_v42  ;;  %v18441_v12 = vld [vmem:[%s19151_s19 + $0x12c4] sm:$0xf]  ;;  %v17067_v42 = vld [vmem:[%s19151_s19 + $0x1760] sm:$0xf] }
 0x590   : > { %v8710_v1 = vmax.f32 %v8586_v54, 0.0  ;;  %10351 = vmatpush.bf16.msrb.mxu1 %v16956_v10  ;;  %v16349_v54 = vld [vmem:[%s19151_s19 + $0x11d0] sm:$0xf0]  ;;  %v18481_v34 = vld [vmem:[%s19151_s19 + $0x1404] sm:$0xf] }
 0x591   : > { %10315 = vmatpush.bf16.msra.mxu2 %v16524_v26  ;;  %10341 = vmatpush.bf16.msrb.mxu0 %v16780_v23  ;;  %v16352_v59 = vor.u32 %v18409_v52, %v16349_v54  ;;  %v16891_v26 = vld [vmem:[%s19151_s19 + $0x1600] sm:$0xf]  ;;  %v18599_v23 = vld [vmem:[%s19151_s19 + $0x17ac] sm:$0xf0]  ;;  %v16493_v10 = vld [vmem:[%s19151_s19 + $0x12f0] sm:$0xf0]  ;;  %v16640_v20 = vor.u32 %v18481_v34, %v16637_v40 }
 0x592   : > { %v21725_v16 = vpack.c.bf16 %v8710_v1, %v8710_v1  ;;  %v18393_v54 = vld [vmem:[%s19151_s19 + $0x1144] sm:$0xf]  ;;  %v16413_v40 = vld [vmem:[%s19151_s19 + $0x1250] sm:$0xf0] }
 0x593   : > { %v8442_v61 = vpop.f32.mrf.mxu2 }
 0x594   : > { %v8443_v6 = vadd.f32 %v8442_v61, %v7651_v27  ;;  %10330 = vmatmul.bf16.vlgmr.msrb.gmra.mxu3 %v21725_v16  ;;  %v16940_v27 = vor.u32 %v18559_v33, %v16939_v11  ;;  %v16907_v61 = vld [vmem:[%s19151_s19 + $0x1620] sm:$0xf]  ;;  %v16301_v33 = vld [vmem:[%s19151_s19 + $0x1170] sm:$0xf0] }
 0x595   : > { %10426 = vmatpush.bf16.msrb.mxu3 %v16752_v46  ;;  %v8587_v13 = vpop.f32.mrf.mxu1  ;;  %10342 = vmatpush.bf16.msrb.mxu0 %v16764_v39  ;;  %v16688_v46 = vor.u32 %v18493_v62, %v16685_v55  ;;  %v16908_v7 = vor.u32 %v18551_v43, %v16907_v61  ;;  %v18397_v39 = vld [vmem:[%s19151_s19 + $0x1164] sm:$0xf]  ;;  %v16285_v62 = vld [vmem:[%s19151_s19 + $0x1150] sm:$0xf0]  ;;  %v16227_v61 = vld [vmem:[%s19151_s19 + $0x10c8] sm:$0xf] }
 0x596   : > { %v8456_v4 = vadd.f32 %v21638_v41, %v8443_v6  ;;  %v16507_v41 = vld [vmem:[%s19151_s19 + $0x1300] sm:$0xf]  ;;  %10352 = vmatpush.bf16.msrb.mxu1 %v16940_v27  ;;  %v17100_v13 = vor.u32 %v18599_v23, %v17099_v48  ;;  %v16304_v58 = vor.u32 %v18397_v39, %v16301_v33  ;;  %v16477_v27 = vld [vmem:[%s19151_s19 + $0x12d0] sm:$0xf0]  ;;  %v18380_v43 = vld [vmem:[%s19151_s19 + $0x10d4] sm:$0xf0] }
 0x597   : > { %v16480_v19 = vor.u32 %v18441_v12, %v16477_v27  ;;  %v18376_v48 = vld [vmem:[%s19151_s19 + $0x10b4] sm:$0xf0]  ;;  %v18583_v23 = vld [vmem:[%s19151_s19 + $0x172c] sm:$0xf0]  ;;  %v18425_v12 = vld [vmem:[%s19151_s19 + $0x1244] sm:$0xf] }
 0x598   : > { %v8469_v38 = vadd.f32 %v21591_v31, %v8456_v4  ;;  %v16508_v31 = vor.u32 %v18451_v22, %v16507_v41  ;;  %v16317_v41 = vld [vmem:[%s19151_s19 + $0x1190] sm:$0xf0]  ;;  %v18579_v39 = vld [vmem:[%s19151_s19 + $0x170c] sm:$0xf0] }
 0x599   : > { %10427 = vmatpush.bf16.msrb.mxu3 %v16736_v21  ;;  %v16892_v21 = vor.u32 %v18547_v25, %v16891_v26  ;;  %v16653_v22 = vld [vmem:[%s19151_s19 + $0x1430] sm:$0xf0]  ;;  %v16320_v8 = vor.u32 %v18401_v53, %v16317_v41  ;;  %v16211_v25 = vld [vmem:[%s19151_s19 + $0x10a8] sm:$0xf] }
 0x59a   : > { %v8707_v15 = vmax.f32 %v8469_v38, 0.0  ;;  %10316 = vmatpush.bf16.msra.mxu2 %v16508_v31  ;;  %10353 = vmatpush.bf16.msrb.mxu1 %v16924_v44  ;;  %v16672_v38 = vor.u32 %v18489_v14, %v16669_v36  ;;  %v16496_v31 = vor.u32 %v18445_v5, %v16493_v10  ;;  %v16269_v14 = vld [vmem:[%s19151_s19 + $0x1130] sm:$0xf0]  ;;  %v16228_v36 = vor.u32 %v18380_v43, %v16227_v61  ;;  %v18417_v43 = vld [vmem:[%s19151_s19 + $0x1204] sm:$0xf] }
 0x59b   : > { %v8444_v29 = vpop.f32.mrf.mxu2  ;;  %v16429_v5 = vld [vmem:[%s19151_s19 + $0x1270] sm:$0xf0] }
 0x59c   : > { %v21744_v51 = vpack.c.bf16 %v8707_v15, %v8707_v15  ;;  %v7653_v15 = vperm.slane %v21581_v63, 3  ;;  %v21791_v63 = vpop.f32.mrf.mxu3  ;;  %v16621_v27 = vld [vmem:[%s19151_s19 + $0x13f0] sm:$0xf0] }
 0x59d   : > { %10428 = vmatpush.bf16.msrb.mxu3 %v16720_v9  ;;  %v17084_v9 = vor.u32 %v18595_v0, %v17083_v24 }
 0x59e   : > { %10291 = vmatmul.bf16.vlgmr.msra.gmra.mxu0 %v21744_v51  ;;  %10361 = vmatpush.bf16.msrb.mxu2 %v17132_v28  ;;  %v8521_v44 = vadd.f32 %v21684_v56, %v7653_v15  ;;  %v16288_v28 = vor.u32 %v18393_v54, %v16285_v62  ;;  %v18372_v15 = vld [vmem:[%s19151_s19 + $0x1094] sm:$0xf0]  ;;  %v18473_v54 = vld [vmem:[%s19151_s19 + $0x13c4] sm:$0xf] }
 0x59f   : > { %10387 = vmatpush.bf16.msra.mxu0 %v16368_v49  ;;  %10354 = vmatpush.bf16.msrb.mxu1 %v16908_v7  ;;  %v16243_v49 = vld [vmem:[%s19151_s19 + $0x10e8] sm:$0xf]  ;;  %v18587_v7 = vld [vmem:[%s19151_s19 + $0x174c] sm:$0xf0] }
 0x5a0   : > { %v16244_v55 = vor.u32 %v18384_v45, %v16243_v49  ;;  %v16179_v49 = vld [vmem:[%s19151_s19 + $0x1068] sm:$0xf]  ;;  %v18368_v45 = vld [vmem:[%s19151_s19 + $0x1074] sm:$0xf0] }
 0x5a1   : > { %10429 = vmatpush.bf16.msrb.mxu3 %v16704_v50  ;;  %v18591_v50 = vld [vmem:[%s19151_s19 + $0x176c] sm:$0xf0]  ;;  %v16180_v62 = vor.u32 %v18368_v45, %v16179_v49  ;;  %v16525_v49 = vld [vmem:[%s19151_s19 + $0x1330] sm:$0xf0] }
 0x5a2   : > { %10362 = vmatpush.bf16.msrb.mxu2 %v17116_v37  ;;  %v17068_v52 = vor.u32 %v18591_v50, %v17067_v42  ;;  %v16416_v50 = vor.u32 %v18425_v12, %v16413_v40  ;;  %v16723_v40 = vld [vmem:[%s19151_s19 + $0x14a8] sm:$0xf] }
 0x5a3   : > { %v8507_v1 = vpop.f32.mrf.mxu2  ;;  %10388 = vmatpush.bf16.msra.mxu0 %v16352_v59  ;;  %10355 = vmatpush.bf16.msrb.mxu1 %v16892_v21  ;;  %v18437_v59 = vld [vmem:[%s19151_s19 + $0x12a4] sm:$0xf]  ;;  %v17035_v21 = vld [vmem:[%s19151_s19 + $0x1720] sm:$0xf] }
 0x5a4   : > { %v8508_v6 = vadd.f32 %v8507_v1, %v21620_v30  ;;  %10382 = vmatmul.bf16.vlgmr.msra.gmra.mxu3 %v21616_v35  ;;  %v18485_v30 = vld [vmem:[%s19151_s19 + $0x1424] sm:$0xf]  ;;  %v16461_v1 = vld [vmem:[%s19151_s19 + $0x12b0] sm:$0xf0]  ;;  %v8626_v37 = vpop.f32.mrf.mxu3  ;;  %v17036_v41 = vor.u32 %v18583_v23, %v17035_v21  ;;  %v16755_v21 = vld [vmem:[%s19151_s19 + $0x14e8] sm:$0xf] }
 0x5a5   : > { %10430 = vmatpush.bf16.msrb.mxu3 %v16688_v46  ;;  %v16656_v11 = vor.u32 %v18485_v30, %v16653_v22  ;;  %v16464_v56 = vor.u32 %v18437_v59, %v16461_v1  ;;  %v17051_v46 = vld [vmem:[%s19151_s19 + $0x1740] sm:$0xf]  ;;  %v16445_v30 = vld [vmem:[%s19151_s19 + $0x1290] sm:$0xf0]  ;;  %v18385_v22 = vld [vmem:[%s19151_s19 + $0x1104] sm:$0xf] }
 0x5a6   : > { %v8708_v4 = vmax.f32 %v8508_v6, 0.0  ;;  %10363 = vmatpush.bf16.msrb.mxu2 %v17100_v13  ;;  %v17052_v18 = vor.u32 %v18587_v7, %v17051_v46  ;;  %v16253_v13 = vld [vmem:[%s19151_s19 + $0x1110] sm:$0xf0]  ;;  %v18364_v59 = vld [vmem:[%s19151_s19 + $0x1054] sm:$0xf0] }
 0x5a7   : > { %10389 = vmatpush.bf16.msra.mxu0 %v16336_v17  ;;  %v21805_v3 = vpop.f32.mrf.mxu1  ;;  %v16272_v17 = vor.u32 %v18389_v2, %v16269_v14  ;;  %v16589_v7 = vld [vmem:[%s19151_s19 + $0x13b0] sm:$0xf0]  ;;  %v18512_v23 = vld [vmem:[%s19151_s19 + $0x14f4] sm:$0xf0] }
 0x5a8   : > { %v21774_v32 = vpack.c.bf16 %v8708_v4, %v8708_v4  ;;  %v18433_v4 = vld [vmem:[%s19151_s19 + $0x1284] sm:$0xf] }
 0x5a9   : > { %10431 = vmatpush.bf16.msrb.mxu3 %v16672_v38  ;;  %v16448_v38 = vor.u32 %v18433_v4, %v16445_v30  ;;  %v16573_v4 = vld [vmem:[%s19151_s19 + $0x1390] sm:$0xf0] }
 0x5aa   : > { %10304 = vmatmul.bf16.vlgmr.msra.gmra.mxu1 %v21774_v32  ;;  %10364 = vmatpush.bf16.msrb.mxu2 %v17084_v9  ;;  %v17019_v9 = vld [vmem:[%s19151_s19 + $0x1700] sm:$0xf] }
 0x5ab   : > { %v8509_v29 = vpop.f32.mrf.mxu2  ;;  %10390 = vmatpush.bf16.msra.mxu0 %v16320_v8  ;;  %10400 = vmatpush.bf16.msra.mxu1 %v16496_v31  ;;  %v18429_v8 = vld [vmem:[%s19151_s19 + $0x1264] sm:$0xf]  ;;  %v16195_v31 = vld [vmem:[%s19151_s19 + $0x1088] sm:$0xf]  ;;  %v17020_v33 = vor.u32 %v18579_v39, %v17019_v9 }
 0x5ac   : > { %v16256_v29 = vor.u32 %v18385_v22, %v16253_v13  ;;  %v16432_v24 = vor.u32 %v18429_v8, %v16429_v5  ;;  %v16196_v34 = vor.u32 %v18372_v15, %v16195_v31  ;;  %v21838_v42 = vpop.f32.mrf.mxu3  ;;  %v21863_v22 = vld [vmem:[%s19143_s27 + $0x10] sm:$0xff]  ;;  %v16756_v5 = vor.u32 %v18512_v23, %v16755_v21  ;;  %v16739_v15 = vld [vmem:[%s19151_s19 + $0x14c8] sm:$0xf]  ;;  %v16829_v23 = vld [vmem:[%s19151_s19 + $0x1590] sm:$0xf0] }
 0x5ad   : > { %10432 = vmatpush.bf16.msrb.mxu3 %v16656_v11 }
 0x5ae   : > { %10365 = vmatpush.bf16.msrb.mxu2 %v17068_v52  ;;  %v16397_v52 = vld [vmem:[%s19151_s19 + $0x1230] sm:$0xf0] }
 0x5af   : > { %10391 = vmatpush.bf16.msra.mxu0 %v16304_v58  ;;  %10401 = vmatpush.bf16.msra.mxu1 %v16480_v19  ;;  %v8613_v0 = vpop.f32.mrf.mxu1  ;;  %v18477_v58 = vld [vmem:[%s19151_s19 + $0x13e4] sm:$0xf] }
 0x5b0   : > { %v18457_v0 = vld [vmem:[%s19151_s19 + $0x1344] sm:$0xf] }
 0x5b1   : > { %10433 = vmatpush.bf16.msrb.mxu3 %v16640_v20  ;;  %v18421_v20 = vld [vmem:[%s19151_s19 + $0x1224] sm:$0xf] }
 0x5b2   : > { %10366 = vmatpush.bf16.msrb.mxu2 %v17052_v18  ;;  %v16400_v1 = vor.u32 %v18421_v20, %v16397_v52  ;;  %v18360_v18 = vld [vmem:[%s19151_s19 + $0x1034] sm:$0xf0]  ;;  %v7656_v20 = vperm.slane %v21863_v22, 6 }
 0x5b3   : > { %v8533_v6 = vpop.f32.mrf.mxu2  ;;  %10392 = vmatpush.bf16.msra.mxu0 %v16288_v28  ;;  %10402 = vmatpush.bf16.msra.mxu1 %v16464_v56  ;;  %v16163_v28 = vld [vmem:[%s19151_s19 + $0x1048] sm:$0xf]  ;;  %v16381_v56 = vld [vmem:[%s19151_s19 + $0x1210] sm:$0xf0] }
 0x5b4   : > { %v8534_v60 = vadd.f32 %v8533_v6, %v8521_v44  ;;  %10434 = vmatmul.bf16.vlgmr.msrb.gmra.mxu3 %v21725_v16  ;;  %v16624_v44 = vor.u32 %v18477_v58, %v16621_v27  ;;  %v18469_v6 = vld [vmem:[%s19151_s19 + $0x13a4] sm:$0xf]  ;;  %v16164_v46 = vor.u32 %v18364_v59, %v16163_v28  ;;  %v16384_v14 = vor.u32 %v18417_v43, %v16381_v56  ;;  %v8652_v37 = vpop.f32.mrf.mxu3  ;;  %v18504_v58 = vld [vmem:[%s19151_s19 + $0x14b4] sm:$0xf0] }
 0x5b5   : > { %10478 = vmatpush.bf16.msra.mxu3 %v16244_v55  ;;  %v16605_v55 = vld [vmem:[%s19151_s19 + $0x13d0] sm:$0xf0]  ;;  %v18453_v27 = vld [vmem:[%s19151_s19 + $0x1324] sm:$0xf]  ;;  %v16724_v52 = vor.u32 %v18504_v58, %v16723_v40  ;;  %v18500_v28 = vld [vmem:[%s19151_s19 + $0x1494] sm:$0xf0] }
 0x5b6   : > { %v8547_v26 = vadd.f32 %v21630_v57, %v8534_v60  ;;  %v16212_v57 = vor.u32 %v18376_v48, %v16211_v25  ;;  %10367 = vmatpush.bf16.msrb.mxu2 %v17036_v41  ;;  %v16608_v61 = vor.u32 %v18473_v54, %v16605_v55  ;;  %v16147_v60 = vld [vmem:[%s19151_s19 + $0x1028] sm:$0xf]  ;;  %v16557_v41 = vld [vmem:[%s19151_s19 + $0x1370] sm:$0xf0] }
 0x5b7   : > { %10393 = vmatpush.bf16.msra.mxu0 %v16272_v17  ;;  %10403 = vmatpush.bf16.msra.mxu1 %v16448_v38  ;;  %v18465_v17 = vld [vmem:[%s19151_s19 + $0x1384] sm:$0xf]  ;;  %v16148_v30 = vor.u32 %v18360_v18, %v16147_v60  ;;  %v16131_v48 = vld [vmem:[%s19151_s19 + $0x1008] sm:$0xf]  ;;  %v18356_v38 = vld [vmem:[%s19151_s19 + $0x1014] sm:$0xf0] }
 0x5b8   : > { %v8709_v53 = vmax.f32 %v8547_v26, 0.0  ;;  %v16576_v25 = vor.u32 %v18465_v17, %v16573_v4  ;;  %v16132_v13 = vor.u32 %v18356_v38, %v16131_v48  ;;  %v16707_v55 = vld [vmem:[%s19151_s19 + $0x1488] sm:$0xf]  ;;  %v16845_v37 = vld [vmem:[%s19151_s19 + $0x15b0] sm:$0xf0] }
 0x5b9   : > { %10479 = vmatpush.bf16.msra.mxu3 %v16228_v36  ;;  %v16592_v36 = vor.u32 %v18469_v6, %v16589_v7  ;;  %v18537_v6 = vld [vmem:[%s19151_s19 + $0x15c4] sm:$0xf]  ;;  %v16708_v60 = vor.u32 %v18500_v28, %v16707_v55  ;;  %v16691_v18 = vld [vmem:[%s19151_s19 + $0x1468] sm:$0xf] }
 0x5ba   : > { %v21823_v10 = vpack.c.bf16 %v8709_v53, %v8709_v53  ;;  %v21836_v19 = vpop.f32.mrf.mxu0  ;;  %10368 = vmatpush.bf16.msrb.mxu2 %v17020_v33  ;;  %v18461_v53 = vld [vmem:[%s19151_s19 + $0x1364] sm:$0xf]  ;;  %v16675_v4 = vld [vmem:[%s19151_s19 + $0x1448] sm:$0xf] }
 0x5bb   : > { %v8535_v11 = vpop.f32.mrf.mxu2  ;;  %10394 = vmatpush.bf16.msra.mxu0 %v16256_v29  ;;  %10404 = vmatpush.bf16.msra.mxu1 %v16432_v24  ;;  %v16560_v8 = vor.u32 %v18461_v53, %v16557_v41  ;;  %v18508_v29 = vld [vmem:[%s19151_s19 + $0x14d4] sm:$0xf0]  ;;  %v8638_v56 = vadd.f32 %v21836_v19, %v7656_v20  ;;  %v18529_v38 = vld [vmem:[%s19151_s19 + $0x1584] sm:$0xf]  ;;  %v16973_v20 = vld [vmem:[%s19151_s19 + $0x16b0] sm:$0xf0] }
 0x5bc   : > { %10317 = vmatmul.bf16.vlgmr.msra.gmra.mxu2 %v21823_v10  ;;  %v16541_v11 = vld [vmem:[%s19151_s19 + $0x1350] sm:$0xf0]  ;;  %v16740_v12 = vor.u32 %v18508_v29, %v16739_v15  ;;  %v18573_v53 = vld [vmem:[%s19151_s19 + $0x16e4] sm:$0xf] }
 0x5bd   : > { %10480 = vmatpush.bf16.msra.mxu3 %v16212_v57  ;;  %v7655_v57 = vperm.slane %v21863_v22, 5  ;;  %v16544_v33 = vor.u32 %v18457_v0, %v16541_v11  ;;  %v8651_v19 = vadd.f32 %v21838_v42, %v8638_v56  ;;  %v17005_v42 = vld [vmem:[%s19151_s19 + $0x16f0] sm:$0xf0]  ;;  %v18525_v29 = vld [vmem:[%s19151_s19 + $0x1564] sm:$0xf] }
 0x5be   : > { %10413 = vmatpush.bf16.msra.mxu2 %v16624_v44  ;;  %v16877_v44 = vld [vmem:[%s19151_s19 + $0x15f0] sm:$0xf0]  ;;  %v17008_v15 = vor.u32 %v18573_v53, %v17005_v42  ;;  %v18569_v11 = vld [vmem:[%s19151_s19 + $0x16c4] sm:$0xf]  ;;  %v16197_v53 = vld [vmem:[%s19151_s19 + $0x1098] sm:$0xf0] }
 0x5bf   : > { %10405 = vmatpush.bf16.msra.mxu1 %v16416_v50  ;;  %v18541_v50 = vld [vmem:[%s19151_s19 + $0x15e4] sm:$0xf]  ;;  %v16813_v0 = vld [vmem:[%s19151_s19 + $0x1570] sm:$0xf0] }
 0x5c0   : > { %v16816_v40 = vor.u32 %v18525_v29, %v16813_v0  ;;  %v18561_v56 = vld [vmem:[%s19151_s19 + $0x1684] sm:$0xf]  ;;  %v18412_v29 = vld [vmem:[%s19151_s19 + $0x11d4] sm:$0xf0] }
 0x5c1   : > { %10481 = vmatpush.bf16.msra.mxu3 %v16196_v34 }
 0x5c2   : > { %10414 = vmatpush.bf16.msra.mxu2 %v16608_v61  ;;  %v8639_v2 = vpop.f32.mrf.mxu0  ;;  %v18449_v61 = vld [vmem:[%s19151_s19 + $0x1304] sm:$0xf] }
 0x5c3   : > { %10406 = vmatpush.bf16.msra.mxu1 %v16400_v1  ;;  %v16880_v1 = vor.u32 %v18541_v50, %v16877_v44  ;;  %v18496_v2 = vld [vmem:[%s19151_s19 + $0x1474] sm:$0xf0]  ;;  %v16797_v50 = vld [vmem:[%s19151_s19 + $0x1550] sm:$0xf0]  ;;  %v18565_v44 = vld [vmem:[%s19151_s19 + $0x16a4] sm:$0xf] }
 0x5c4   : > { %v16692_v17 = vor.u32 %v18496_v2, %v16691_v18  ;;  %v16976_v28 = vor.u32 %v18565_v44, %v16973_v20  ;;  %v18374_v18 = vld [vmem:[%s19151_s19 + $0x10ac] sm:$0xf]  ;;  %v16213_v2 = vld [vmem:[%s19151_s19 + $0x10b8] sm:$0xf0]  ;;  %v18408_v44 = vld [vmem:[%s19151_s19 + $0x11b4] sm:$0xf0] }
 0x5c5   : > { %10482 = vmatpush.bf16.msra.mxu3 %v16180_v62 }
 0x5c6   : > { %10415 = vmatpush.bf16.msra.mxu2 %v16592_v36  ;;  %v18533_v36 = vld [vmem:[%s19151_s19 + $0x15a4] sm:$0xf] }
 0x5c7   : > { %v21854_v26 = vpop.f32.mrf.mxu1  ;;  %10407 = vmatpush.bf16.msra.mxu1 %v16384_v14  ;;  %v16848_v48 = vor.u32 %v18533_v36, %v16845_v37  ;;  %v18557_v36 = vld [vmem:[%s19151_s19 + $0x1664] sm:$0xf]  ;;  %v16941_v37 = vld [vmem:[%s19151_s19 + $0x1670] sm:$0xf0] }
 0x5c9   : > { %10483 = vmatpush.bf16.msra.mxu3 %v16164_v46  ;;  %v16861_v46 = vld [vmem:[%s19151_s19 + $0x15d0] sm:$0xf0] }
 0x5ca   : > { %10416 = vmatpush.bf16.msra.mxu2 %v16576_v25  ;;  %v21866_v31 = vpop.f32.mrf.mxu0  ;;  %v16864_v14 = vor.u32 %v18537_v6, %v16861_v46  ;;  %v16957_v6 = vld [vmem:[%s19151_s19 + $0x1690] sm:$0xf0] }
 0x5cd   : > { %10484 = vmatpush.bf16.msra.mxu3 %v16148_v30  ;;  %v18492_v30 = vld [vmem:[%s19151_s19 + $0x1454] sm:$0xf0] }
 0x5ce   : > { %10417 = vmatpush.bf16.msra.mxu2 %v16560_v8  ;;  %v16676_v41 = vor.u32 %v18492_v30, %v16675_v4  ;;  %v18488_v8 = vld [vmem:[%s19151_s19 + $0x1434] sm:$0xf0] }
 0x5cf   : > { %v8678_v39 = vpop.f32.mrf.mxu1  ;;  %v18416_v4 = vld [vmem:[%s19151_s19 + $0x11f4] sm:$0xf0] }
 0x5d1   : > { %10485 = vmatpush.bf16.msra.mxu3 %v16132_v13  ;;  %v16659_v13 = vld [vmem:[%s19151_s19 + $0x1428] sm:$0xf] }
 0x5d2   : > { %10418 = vmatpush.bf16.msra.mxu2 %v16544_v33  ;;  %v8704_v54 = vpop.f32.mrf.mxu0  ;;  %v16660_v39 = vor.u32 %v18488_v8, %v16659_v13  ;;  %v16643_v33 = vld [vmem:[%s19151_s19 + $0x1408] sm:$0xf]  ;;  %v16925_v13 = vld [vmem:[%s19151_s19 + $0x1650] sm:$0xf0]  ;;  %v18605_v8 = vld [vmem:[%s19151_s19 + $0x17e4] sm:$0xf] }
 0x5d3   : > { %v8598_v24 = vpop.f32.mrf.mxu2  ;;  %v7657_v54 = vperm.slane %v21863_v22, 7 }
 0x5d4   : > { %v8599_v9 = vadd.f32 %v8598_v24, %v7655_v57  ;;  %10486 = vmatmul.bf16.vlgmr.msra.gmra.mxu3 %v21616_v35 }
 0x5d5   : > { %10530 = vmatpush.bf16.msrb.mxu3 %v16756_v5  ;;  %v16832_v5 = vor.u32 %v18529_v38, %v16829_v23  ;;  %v8677_v22 = vadd.f32 %v21854_v26, %v7657_v54  ;;  %v16371_v26 = vld [vmem:[%s19151_s19 + $0x11e8] sm:$0xf]  ;;  %v18370_v23 = vld [vmem:[%s19151_s19 + $0x108c] sm:$0xf] }
 0x5d6   : > { %v8612_v34 = vadd.f32 %v21805_v3, %v8599_v9  ;;  %v16528_v3 = vor.u32 %v18453_v27, %v16525_v49  ;;  %v16989_v9 = vld [vmem:[%s19151_s19 + $0x16d0] sm:$0xf0]  ;;  %v18382_v27 = vld [vmem:[%s19151_s19 + $0x10ec] sm:$0xf]  ;;  %v16245_v49 = vld [vmem:[%s19151_s19 + $0x10f8] sm:$0xf0] }
 0x5d7   : > { %v16992_v58 = vor.u32 %v18569_v11, %v16989_v9  ;;  %v16200_v11 = vor.u32 %v18370_v23, %v16197_v53  ;;  %v18366_v9 = vld [vmem:[%s19151_s19 + $0x106c] sm:$0xf] }
 0x5d8   : > { %v8625_v45 = vadd.f32 %v21791_v63, %v8612_v34  ;;  %10419 = vmatpush.bf16.msra.mxu2 %v16528_v3  ;;  %v16509_v63 = vld [vmem:[%s19151_s19 + $0x1310] sm:$0xf0]  ;;  %v18362_v54 = vld [vmem:[%s19151_s19 + $0x104c] sm:$0xf] }
 0x5d9   : > { %10531 = vmatpush.bf16.msrb.mxu3 %v16740_v12  ;;  %v16512_v7 = vor.u32 %v18449_v61, %v16509_v63  ;;  %v18484_v12 = vld [vmem:[%s19151_s19 + $0x1414] sm:$0xf0]  ;;  %v18517_v61 = vld [vmem:[%s19151_s19 + $0x1524] sm:$0xf]  ;;  %v16781_v63 = vld [vmem:[%s19151_s19 + $0x1530] sm:$0xf0] }
 0x5da   : > { %v8711_v62 = vmax.f32 %v8625_v45, 0.0  ;;  %v18521_v45 = vld [vmem:[%s19151_s19 + $0x1544] sm:$0xf]  ;;  %v16644_v3 = vor.u32 %v18484_v12, %v16643_v33 }
 0x5db   : > { %v8600_v59 = vpop.f32.mrf.mxu2  ;;  %v16800_v55 = vor.u32 %v18521_v45, %v16797_v50  ;;  %v17117_v45 = vld [vmem:[%s19151_s19 + $0x17d0] sm:$0xf0]  ;;  %v16339_v50 = vld [vmem:[%s19151_s19 + $0x11a8] sm:$0xf] }
 0x5dc   : > { %v21886_v43 = vpack.c.bf16 %v8711_v62, %v8711_v62  ;;  %10420 = vmatpush.bf16.msra.mxu2 %v16512_v7  ;;  %v16248_v62 = vor.u32 %v18382_v27, %v16245_v49  ;;  %v18378_v59 = vld [vmem:[%s19151_s19 + $0x10cc] sm:$0xf]  ;;  %v16784_v7 = vor.u32 %v18517_v61, %v16781_v63  ;;  %v18601_v27 = vld [vmem:[%s19151_s19 + $0x17c4] sm:$0xf]  ;;  %v17101_v63 = vld [vmem:[%s19151_s19 + $0x17b0] sm:$0xf0] }
 0x5dd   : > { %10532 = vmatpush.bf16.msrb.mxu3 %v16724_v52  ;;  %v21920_v52 = vpop.f32.mrf.mxu3  ;;  %v18597_v61 = vld [vmem:[%s19151_s19 + $0x17a4] sm:$0xf] }
 0x5de   : > { %10343 = vmatmul.bf16.vlgmr.msrb.gmra.mxu0 %v21886_v43 }
 0x5df   : > { %10439 = vmatpush.bf16.msrb.mxu0 %v16880_v1  ;;  %v16229_v1 = vld [vmem:[%s19151_s19 + $0x10d8] sm:$0xf0] }
 0x5e0   : > { %v16232_v46 = vor.u32 %v18378_v59, %v16229_v1  ;;  %v18545_v59 = vld [vmem:[%s19151_s19 + $0x1604] sm:$0xf]  ;;  %v16893_v1 = vld [vmem:[%s19151_s19 + $0x1610] sm:$0xf0] }
 0x5e1   : > { %10533 = vmatpush.bf16.msrb.mxu3 %v16708_v60  ;;  %v16960_v60 = vor.u32 %v18561_v56, %v16957_v6  ;;  %v16323_v56 = vld [vmem:[%s19151_s19 + $0x1188] sm:$0xf]  ;;  %v18404_v6 = vld [vmem:[%s19151_s19 + $0x1194] sm:$0xf0] }
 0x5e3   : > { %10440 = vmatpush.bf16.msrb.mxu0 %v16864_v14  ;;  %v8663_v25 = vpop.f32.mrf.mxu2  ;;  %v18513_v14 = vld [vmem:[%s19151_s19 + $0x1504] sm:$0xf] }
 0x5e4   : > { %v8664_v21 = vadd.f32 %v8663_v25, %v8651_v19  ;;  %v16765_v19 = vld [vmem:[%s19151_s19 + $0x1510] sm:$0xf0] }
 0x5e5   : > { %10534 = vmatpush.bf16.msrb.mxu3 %v16692_v17  ;;  %v10281_v30 = vpop.f32.mrf.mxu3  ;;  %v16768_v38 = vor.u32 %v18513_v14, %v16765_v19  ;;  %v17104_v14 = vor.u32 %v18597_v61, %v17101_v63  ;;  %v16324_v19 = vor.u32 %v18404_v6, %v16323_v56  ;;  %v16259_v61 = vld [vmem:[%s19151_s19 + $0x1108] sm:$0xf]  ;;  %v18388_v63 = vld [vmem:[%s19151_s19 + $0x1114] sm:$0xf0] }
 0x5e6   : > { %v8712_v57 = vmax.f32 %v8664_v21, 0.0  ;;  %v16944_v21 = vor.u32 %v18557_v36, %v16941_v37  ;;  %v18593_v36 = vld [vmem:[%s19151_s19 + $0x1784] sm:$0xf]  ;;  %v16435_v56 = vld [vmem:[%s19151_s19 + $0x1268] sm:$0xf] }
 0x5e7   : > { %10441 = vmatpush.bf16.msrb.mxu0 %v16848_v48  ;;  %v16216_v48 = vor.u32 %v18374_v18, %v16213_v2  ;;  %v18358_v18 = vld [vmem:[%s19151_s19 + $0x102c] sm:$0xf]  ;;  %v16149_v2 = vld [vmem:[%s19151_s19 + $0x1038] sm:$0xf0]  ;;  %v18432_v6 = vld [vmem:[%s19151_s19 + $0x1274] sm:$0xf0] }
 0x5e8   : > { %v21906_v24 = vpack.c.bf16 %v8712_v57, %v8712_v57  ;;  %v18553_v57 = vld [vmem:[%s19151_s19 + $0x1644] sm:$0xf]  ;;  %v16152_v30 = vor.u32 %v18358_v18, %v16149_v2  ;;  %v16260_v18 = vor.u32 %v18388_v63, %v16259_v61  ;;  %v18498_v2 = vld [vmem:[%s19151_s19 + $0x148c] sm:$0xf]  ;;  %v16661_v61 = vld [vmem:[%s19151_s19 + $0x1438] sm:$0xf0] }
 0x5e9   : > { %10535 = vmatpush.bf16.msrb.mxu3 %v16676_v41  ;;  %v16372_v41 = vor.u32 %v18416_v4, %v16371_v26  ;;  %v16307_v26 = vld [vmem:[%s19151_s19 + $0x1168] sm:$0xf]  ;;  %v18400_v4 = vld [vmem:[%s19151_s19 + $0x1174] sm:$0xf0] }
 0x5ea   : > { %10356 = vmatmul.bf16.vlgmr.msrb.gmra.mxu1 %v21906_v24  ;;  %v16308_v53 = vor.u32 %v18400_v4, %v16307_v26  ;;  %v16419_v26 = vld [vmem:[%s19151_s19 + $0x1248] sm:$0xf]  ;;  %v18428_v4 = vld [vmem:[%s19151_s19 + $0x1254] sm:$0xf0] }
 0x5eb   : > { %10442 = vmatpush.bf16.msrb.mxu0 %v16832_v5  ;;  %10452 = vmatpush.bf16.msrb.mxu1 %v17008_v15  ;;  %v8665_v34 = vpop.f32.mrf.mxu2  ;;  %v17133_v5 = vld [vmem:[%s19151_s19 + $0x17f0] sm:$0xf0]  ;;  %v16355_v15 = vld [vmem:[%s19151_s19 + $0x11c8] sm:$0xf] }
 0x5ec   : > { %v17136_v12 = vor.u32 %v18605_v8, %v17133_v5  ;;  %v16356_v34 = vor.u32 %v18412_v29, %v16355_v15  ;;  %v17069_v8 = vld [vmem:[%s19151_s19 + $0x1770] sm:$0xf0]  ;;  %v16291_v5 = vld [vmem:[%s19151_s19 + $0x1148] sm:$0xf]  ;;  %v18396_v15 = vld [vmem:[%s19151_s19 + $0x1154] sm:$0xf0] }
 0x5ed   : > { %10536 = vmatpush.bf16.msrb.mxu3 %v16660_v39  ;;  %v16181_v39 = vld [vmem:[%s19151_s19 + $0x1078] sm:$0xf0] }
 0x5ee   : > { %10395 = vmatmul.bf16.vlgmr.msra.gmra.mxu0 %v21744_v51  ;;  %v16184_v20 = vor.u32 %v18366_v9, %v16181_v39  ;;  %v16292_v39 = vor.u32 %v18396_v15, %v16291_v5  ;;  %v18424_v15 = vld [vmem:[%s19151_s19 + $0x1234] sm:$0xf0] }
 0x5ef   : > { %10443 = vmatpush.bf16.msrb.mxu0 %v16816_v40  ;;  %10453 = vmatpush.bf16.msrb.mxu1 %v16992_v58  ;;  %v18549_v40 = vld [vmem:[%s19151_s19 + $0x1624] sm:$0xf]  ;;  %v16909_v58 = vld [vmem:[%s19151_s19 + $0x1630] sm:$0xf0] }
 0x5f1   : > { %10537 = vmatpush.bf16.msrb.mxu3 %v16644_v3  ;;  %v16912_v3 = vor.u32 %v18549_v40, %v16909_v58  ;;  %v16741_v40 = vld [vmem:[%s19151_s19 + $0x14d8] sm:$0xf0] }
 0x5f3   : > { %10444 = vmatpush.bf16.msrb.mxu0 %v16800_v55  ;;  %10454 = vmatpush.bf16.msrb.mxu1 %v16976_v28  ;;  %v17120_v55 = vor.u32 %v18601_v27, %v17117_v45  ;;  %v16340_v28 = vor.u32 %v18408_v44, %v16339_v50  ;;  %v17053_v27 = vld [vmem:[%s19151_s19 + $0x1750] sm:$0xf0]  ;;  %v18392_v45 = vld [vmem:[%s19151_s19 + $0x1134] sm:$0xf0]  ;;  %v16451_v50 = vld [vmem:[%s19151_s19 + $0x1288] sm:$0xf] }
 0x5f4   : > { %10538 = vmatmul.bf16.vlgmr.msrb.gmra.mxu3 %v21725_v16  ;;  %v18436_v44 = vld [vmem:[%s19151_s19 + $0x1294] sm:$0xf0] }
 0x5f5   : > { %10582 = vmatpush.bf16.msra.mxu3 %v16248_v62  ;;  %v16165_v62 = vld [vmem:[%s19151_s19 + $0x1058] sm:$0xf0] }
 0x5f7   : > { %10445 = vmatpush.bf16.msrb.mxu0 %v16784_v7  ;;  %10455 = vmatpush.bf16.msrb.mxu1 %v16960_v60  ;;  %v18448_v7 = vld [vmem:[%s19151_s19 + $0x12f4] sm:$0xf0]  ;;  %v16896_v60 = vor.u32 %v18545_v59, %v16893_v1  ;;  %v16725_v59 = vld [vmem:[%s19151_s19 + $0x14b8] sm:$0xf0]  ;;  %v16452_v1 = vor.u32 %v18436_v44, %v16451_v50  ;;  %v16595_v44 = vld [vmem:[%s19151_s19 + $0x13a8] sm:$0xf] }
 0x5f9   : > { %10583 = vmatpush.bf16.msra.mxu3 %v16232_v46  ;;  %v16499_v46 = vld [vmem:[%s19151_s19 + $0x12e8] sm:$0xf] }
 0x5fa   : > { %10408 = vmatmul.bf16.vlgmr.msra.gmra.mxu1 %v21774_v32  ;;  %v16500_v37 = vor.u32 %v18448_v7, %v16499_v46  ;;  %v18544_v46 = vld [vmem:[%s19151_s19 + $0x15f4] sm:$0xf0] }
 0x5fb   : > { %v8689_v17 = vpop.f32.mrf.mxu2  ;;  %10446 = vmatpush.bf16.msrb.mxu0 %v16768_v38  ;;  %10456 = vmatpush.bf16.msrb.mxu1 %v16944_v21  ;;  %v18354_v38 = vld [vmem:[%s19151_s19 + $0x100c] sm:$0xf]  ;;  %v16133_v21 = vld [vmem:[%s19151_s19 + $0x1018] sm:$0xf0] }
 0x5fc   : > { %v8690_v25 = vadd.f32 %v8689_v17, %v8677_v22  ;;  %v16168_v22 = vor.u32 %v18362_v54, %v16165_v62  ;;  %v17085_v17 = vld [vmem:[%s19151_s19 + $0x1790] sm:$0xf0]  ;;  %v16136_v29 = vor.u32 %v18354_v38, %v16133_v21  ;;  %v16867_v21 = vld [vmem:[%s19151_s19 + $0x15c8] sm:$0xf] }
 0x5fd   : > { %10584 = vmatpush.bf16.msra.mxu3 %v16216_v48  ;;  %v18444_v48 = vld [vmem:[%s19151_s19 + $0x12d4] sm:$0xf0]  ;;  %v17088_v23 = vor.u32 %v18593_v36, %v17085_v17  ;;  %v17021_v17 = vld [vmem:[%s19151_s19 + $0x1710] sm:$0xf0] }
 0x5fe   : > { %v8703_v42 = vadd.f32 %v21866_v31, %v8690_v25  ;;  %v16928_v31 = vor.u32 %v18553_v57, %v16925_v13  ;;  %10447 = vmatmul.bf16.vlgmr.msrb.gmra.mxu0 %v21886_v43  ;;  %v16483_v25 = vld [vmem:[%s19151_s19 + $0x12c8] sm:$0xf]  ;;  %v16757_v57 = vld [vmem:[%s19151_s19 + $0x14f8] sm:$0xf0] }
 0x5ff   : > { %10491 = vmatpush.bf16.msra.mxu0 %v16372_v41  ;;  %v18510_v41 = vld [vmem:[%s19151_s19 + $0x14ec] sm:$0xf]  ;;  %v16484_v13 = vor.u32 %v18444_v48, %v16483_v25  ;;  %v18480_v25 = vld [vmem:[%s19151_s19 + $0x13f4] sm:$0xf0] }
 0x600   : > { %v8713_v0 = vmax.f32 %v8703_v42, 0.0  ;;  %10457 = vmatpush.bf16.msrb.mxu1 %v16928_v31  ;;  %v18589_v42 = vld [vmem:[%s19151_s19 + $0x1764] sm:$0xf]  ;;  %v16760_v31 = vor.u32 %v18510_v41, %v16757_v57  ;;  %v16693_v41 = vld [vmem:[%s19151_s19 + $0x1478] sm:$0xf0]  ;;  %v16420_v57 = vor.u32 %v18428_v4, %v16419_v26 }
 0x601   : > { %10585 = vmatpush.bf16.msra.mxu3 %v16200_v11  ;;  %v18440_v11 = vld [vmem:[%s19151_s19 + $0x12b4] sm:$0xf0]  ;;  %v17072_v9 = vor.u32 %v18589_v42, %v17069_v8  ;;  %v18494_v42 = vld [vmem:[%s19151_s19 + $0x146c] sm:$0xf]  ;;  %v16403_v8 = vld [vmem:[%s19151_s19 + $0x1228] sm:$0xf] }
 0x602   : > { %v21952_v33 = vpack.c.bf16 %v8713_v0, %v8713_v0  ;;  %v16467_v0 = vld [vmem:[%s19151_s19 + $0x12a8] sm:$0xf] }
 0x603   : > { %v8691_v49 = vpop.f32.mrf.mxu2  ;;  %10492 = vmatpush.bf16.msra.mxu0 %v16356_v34  ;;  %v18506_v34 = vld [vmem:[%s19151_s19 + $0x14cc] sm:$0xf]  ;;  %v16468_v58 = vor.u32 %v18440_v11, %v16467_v0  ;;  %v18476_v0 = vld [vmem:[%s19151_s19 + $0x13d4] sm:$0xf0] }
 0x604   : > { %10369 = vmatmul.bf16.vlgmr.msrb.gmra.mxu2 %v21952_v33  ;;  %10458 = vmatpush.bf16.msrb.mxu1 %v16912_v3  ;;  %v16275_v49 = vld [vmem:[%s19151_s19 + $0x1128] sm:$0xf]  ;;  %v18581_v3 = vld [vmem:[%s19151_s19 + $0x1724] sm:$0xf] }
 0x605   : > { %10465 = vmatpush.bf16.msrb.mxu2 %v17136_v12  ;;  %10586 = vmatpush.bf16.msra.mxu3 %v16184_v20  ;;  %v18585_v12 = vld [vmem:[%s19151_s19 + $0x1744] sm:$0xf]  ;;  %v16744_v20 = vor.u32 %v18506_v34, %v16741_v40  ;;  %v16276_v62 = vor.u32 %v18392_v45, %v16275_v49  ;;  %v16677_v34 = vld [vmem:[%s19151_s19 + $0x1458] sm:$0xf0]  ;;  %v18420_v49 = vld [vmem:[%s19151_s19 + $0x1214] sm:$0xf0] }
 0x606   : > { %v17056_v54 = vor.u32 %v18585_v12, %v17053_v27  ;;  %v18490_v12 = vld [vmem:[%s19151_s19 + $0x144c] sm:$0xf]  ;;  %v16387_v27 = vld [vmem:[%s19151_s19 + $0x1208] sm:$0xf] }
 0x607   : > { %10493 = vmatpush.bf16.msra.mxu0 %v16340_v28  ;;  %v18502_v28 = vld [vmem:[%s19151_s19 + $0x14ac] sm:$0xf]  ;;  %v16388_v63 = vor.u32 %v18420_v49, %v16387_v27  ;;  %v16531_v27 = vld [vmem:[%s19151_s19 + $0x1328] sm:$0xf]  ;;  %v18456_v49 = vld [vmem:[%s19151_s19 + $0x1334] sm:$0xf0] }
 0x608   : > { %10459 = vmatpush.bf16.msrb.mxu1 %v16896_v60  ;;  %v16728_v7 = vor.u32 %v18502_v28, %v16725_v59  ;;  %v22012_v60 = vld [vmem:[%s19153_s21 + $0x8] sm:$0xf]  ;;  %v18576_v59 = vld [vmem:[%s19151_s19 + $0x16f4] sm:$0xf0] }
 0x609   : > { %10466 = vmatpush.bf16.msrb.mxu2 %v17120_v55  ;;  %10587 = vmatpush.bf16.msra.mxu3 %v16168_v22  ;;  %v17037_v55 = vld [vmem:[%s19151_s19 + $0x1730] sm:$0xf0]  ;;  %v16883_v22 = vld [vmem:[%s19151_s19 + $0x15e8] sm:$0xf]  ;;  %v8982_v48 = vperm.slane %v22012_v60, 0 }
 0x60a   : > { %v16884_v36 = vor.u32 %v18544_v46, %v16883_v22  ;;  %v17011_v28 = vld [vmem:[%s19151_s19 + $0x16e8] sm:$0xf] }
 0x60b   : > { %10494 = vmatpush.bf16.msra.mxu0 %v16324_v19  ;;  %10460 = vmatmul.bf16.vlgmr.msrb.gmra.mxu1 %v21906_v24  ;;  %v16436_v19 = vor.u32 %v18432_v6, %v16435_v56  ;;  %v10280_v11 = vadd.f32 %v21920_v52, %v8982_v48  ;;  %v17012_v22 = vor.u32 %v18576_v59, %v17011_v28  ;;  %v16579_v46 = vld [vmem:[%s19151_s19 + $0x1388] sm:$0xf] }
 0x60c   : > { %10504 = vmatpush.bf16.msra.mxu1 %v16500_v37  ;;  %v18577_v37 = vld [vmem:[%s19151_s19 + $0x1704] sm:$0xf]  ;;  %v16563_v48 = vld [vmem:[%s19151_s19 + $0x1368] sm:$0xf] }
 0x60d   : > { %10467 = vmatpush.bf16.msrb.mxu2 %v17104_v14  ;;  %10588 = vmatpush.bf16.msra.mxu3 %v16152_v30  ;;  %v16709_v14 = vld [vmem:[%s19151_s19 + $0x1498] sm:$0xf0]  ;;  %v16627_v30 = vld [vmem:[%s19151_s19 + $0x13e8] sm:$0xf] }
 0x60e   : > { %v16712_v38 = vor.u32 %v18498_v2, %v16709_v14  ;;  %v18528_v2 = vld [vmem:[%s19151_s19 + $0x1574] sm:$0xf0]  ;;  %v16995_v14 = vld [vmem:[%s19151_s19 + $0x16c8] sm:$0xf] }
 0x60f   : > { %10495 = vmatpush.bf16.msra.mxu0 %v16308_v53  ;;  %v17024_v53 = vor.u32 %v18577_v37, %v17021_v17  ;;  %v16645_v37 = vld [vmem:[%s19151_s19 + $0x1418] sm:$0xf0] }
 0x610   : > { %10505 = vmatpush.bf16.msra.mxu1 %v16484_v13  ;;  %v16628_v13 = vor.u32 %v18480_v25, %v16627_v30 }
 0x611   : > { %10468 = vmatpush.bf16.msrb.mxu2 %v17088_v23  ;;  %10589 = vmatpush.bf16.msra.mxu3 %v16136_v29  ;;  %v18540_v23 = vld [vmem:[%s19151_s19 + $0x15d4] sm:$0xf0]  ;;  %v16611_v29 = vld [vmem:[%s19151_s19 + $0x13c8] sm:$0xf] }
 0x612   : > { %v16868_v5 = vor.u32 %v18540_v23, %v16867_v21  ;;  %v16612_v52 = vor.u32 %v18476_v0, %v16611_v29  ;;  %v16803_v21 = vld [vmem:[%s19151_s19 + $0x1548] sm:$0xf]  ;;  %v18460_v29 = vld [vmem:[%s19151_s19 + $0x1354] sm:$0xf0] }
 0x613   : > { %10496 = vmatpush.bf16.msra.mxu0 %v16292_v39  ;;  %v18536_v39 = vld [vmem:[%s19151_s19 + $0x15b4] sm:$0xf0]  ;;  %v16787_v0 = vld [vmem:[%s19151_s19 + $0x1528] sm:$0xf] }
 0x614   : > { %10421 = vmatmul.bf16.vlgmr.msra.gmra.mxu2 %v21823_v10  ;;  %10506 = vmatpush.bf16.msra.mxu1 %v16468_v58  ;;  %v16404_v58 = vor.u32 %v18424_v15, %v16403_v8  ;;  %v16547_v15 = vld [vmem:[%s19151_s19 + $0x1348] sm:$0xf] }
 0x615   : > { %10634 = vmatpush.bf16.msrb.mxu3 %v16760_v31  ;;  %10469 = vmatpush.bf16.msrb.mxu2 %v17072_v9  ;;  %v16696_v31 = vor.u32 %v18494_v42, %v16693_v41  ;;  %v16851_v9 = vld [vmem:[%s19151_s19 + $0x15a8] sm:$0xf]  ;;  %v18568_v41 = vld [vmem:[%s19151_s19 + $0x16b4] sm:$0xf0] }
 0x616   : > { %10590 = vmatmul.bf16.vlgmr.msra.gmra.mxu3 %v21616_v35  ;;  %v17040_v35 = vor.u32 %v18581_v3, %v17037_v55  ;;  %v16852_v50 = vor.u32 %v18536_v39, %v16851_v9  ;;  %v16835_v3 = vld [vmem:[%s19151_s19 + $0x1588] sm:$0xf]  ;;  %v18532_v55 = vld [vmem:[%s19151_s19 + $0x1594] sm:$0xf0] }
 0x617   : > { %10497 = vmatpush.bf16.msra.mxu0 %v16276_v62  ;;  %v22037_v40 = vpop.f32.mrf.mxu3  ;;  %v16680_v62 = vor.u32 %v18490_v12, %v16677_v34  ;;  %v16836_v6 = vor.u32 %v18532_v55, %v16835_v3  ;;  %v16979_v42 = vld [vmem:[%s19151_s19 + $0x16a8] sm:$0xf]  ;;  %v18564_v39 = vld [vmem:[%s19151_s19 + $0x1694] sm:$0xf0]  ;;  %v16548_v34 = vor.u32 %v18460_v29, %v16547_v15  ;;  %v18414_v3 = vld [vmem:[%s19151_s19 + $0x11ec] sm:$0xf] }
 0x618   : > { %10507 = vmatpush.bf16.msra.mxu1 %v16452_v1  ;;  %v18486_v1 = vld [vmem:[%s19151_s19 + $0x142c] sm:$0xf]  ;;  %v16963_v9 = vld [vmem:[%s19151_s19 + $0x1688] sm:$0xf] }
 0x619   : > { %10635 = vmatpush.bf16.msrb.mxu3 %v16744_v20  ;;  %10470 = vmatpush.bf16.msrb.mxu2 %v17056_v54  ;;  %v18472_v20 = vld [vmem:[%s19151_s19 + $0x13b4] sm:$0xf0] }
 0x61a   : > { %v16596_v56 = vor.u32 %v18472_v20, %v16595_v44  ;;  %v16947_v44 = vld [vmem:[%s19151_s19 + $0x1668] sm:$0xf]  ;;  %v18560_v20 = vld [vmem:[%s19151_s19 + $0x1674] sm:$0xf0] }
 0x61b   : > { %10498 = vmatpush.bf16.msra.mxu0 %v16260_v18  ;;  %v10292_v45 = vpop.f32.mrf.mxu0  ;;  %v16664_v18 = vor.u32 %v18486_v1, %v16661_v61  ;;  %v16948_v59 = vor.u32 %v18560_v20, %v16947_v44  ;;  %v16515_v1 = vld [vmem:[%s19151_s19 + $0x1308] sm:$0xf] }
 0x61c   : > { %10508 = vmatpush.bf16.msra.mxu1 %v16436_v19  ;;  %v10293_v54 = vadd.f32 %v10292_v45, %v10280_v11  ;;  %v18572_v19 = vld [vmem:[%s19151_s19 + $0x16d4] sm:$0xf0]  ;;  %v16771_v45 = vld [vmem:[%s19151_s19 + $0x1508] sm:$0xf] }
 0x61d   : > { %10636 = vmatpush.bf16.msrb.mxu3 %v16728_v7  ;;  %10471 = vmatpush.bf16.msrb.mxu2 %v17040_v35  ;;  %v18468_v7 = vld [vmem:[%s19151_s19 + $0x1394] sm:$0xf0]  ;;  %v16819_v35 = vld [vmem:[%s19151_s19 + $0x1568] sm:$0xf]  ;;  %v16996_v25 = vor.u32 %v18572_v19, %v16995_v14 }
 0x61e   : > { %10499 = vmatmul.bf16.vlgmr.msra.gmra.mxu0 %v21744_v51  ;;  %v16580_v26 = vor.u32 %v18468_v7, %v16579_v46  ;;  %v16820_v30 = vor.u32 %v18528_v2, %v16819_v35  ;;  %v16931_v61 = vld [vmem:[%s19151_s19 + $0x1648] sm:$0xf]  ;;  %v18410_v46 = vld [vmem:[%s19151_s19 + $0x11cc] sm:$0xf]  ;;  %v16357_v7 = vld [vmem:[%s19151_s19 + $0x11d8] sm:$0xf0] }
 0x61f   : > { %10543 = vmatpush.bf16.msrb.mxu0 %v16884_v36  ;;  %v18482_v36 = vld [vmem:[%s19151_s19 + $0x140c] sm:$0xf]  ;;  %v10333_v17 = vpop.f32.mrf.mxu3  ;;  %v16915_v19 = vld [vmem:[%s19151_s19 + $0x1628] sm:$0xf] }
 0x620   : > { %10509 = vmatpush.bf16.msra.mxu1 %v16420_v57  ;;  %v16648_v23 = vor.u32 %v18482_v36, %v16645_v37  ;;  %v16360_v36 = vor.u32 %v18410_v46, %v16357_v7  ;;  %v18552_v37 = vld [vmem:[%s19151_s19 + $0x1634] sm:$0xf0]  ;;  %v17123_v17 = vld [vmem:[%s19151_s19 + $0x17c8] sm:$0xf]  ;;  %v16277_v46 = vld [vmem:[%s19151_s19 + $0x1138] sm:$0xf0] }
 0x621   : > { %10637 = vmatpush.bf16.msrb.mxu3 %v16712_v38  ;;  %10472 = vmatpush.bf16.msrb.mxu2 %v17024_v53  ;;  %v18464_v38 = vld [vmem:[%s19151_s19 + $0x1374] sm:$0xf0]  ;;  %v18434_v7 = vld [vmem:[%s19151_s19 + $0x128c] sm:$0xf] }
 0x622   : > { %v18524_v53 = vld [vmem:[%s19151_s19 + $0x1554] sm:$0xf0]  ;;  %v16564_v57 = vor.u32 %v18464_v38, %v16563_v48  ;;  %v16899_v38 = vld [vmem:[%s19151_s19 + $0x1608] sm:$0xf] }
 0x623   : > { %10544 = vmatpush.bf16.msrb.mxu0 %v16868_v5  ;;  %v10294_v4 = vpop.f32.mrf.mxu0  ;;  %v16804_v8 = vor.u32 %v18524_v53, %v16803_v21  ;;  %v16980_v5 = vor.u32 %v18568_v41, %v16979_v42  ;;  %v18548_v21 = vld [vmem:[%s19151_s19 + $0x1614] sm:$0xf0]  ;;  %v17107_v53 = vld [vmem:[%s19151_s19 + $0x17a8] sm:$0xf]  ;;  %v18402_v41 = vld [vmem:[%s19151_s19 + $0x118c] sm:$0xf] }
 0x624   : > { %10473 = vmatmul.bf16.vlgmr.msrb.gmra.mxu2 %v21952_v33  ;;  %10510 = vmatpush.bf16.msra.mxu1 %v16404_v58  ;;  %v18406_v4 = vld [vmem:[%s19151_s19 + $0x11ac] sm:$0xf]  ;;  %v18600_v42 = vld [vmem:[%s19151_s19 + $0x17b4] sm:$0xf0]  ;;  %v16900_v15 = vor.u32 %v18548_v21, %v16899_v38 }
 0x625   : > { %10517 = vmatpush.bf16.msra.mxu2 %v16628_v13  ;;  %10638 = vmatpush.bf16.msrb.mxu3 %v16696_v31  ;;  %v18520_v31 = vld [vmem:[%s19151_s19 + $0x1534] sm:$0xf0]  ;;  %v17108_v29 = vor.u32 %v18600_v42, %v17107_v53  ;;  %v17027_v42 = vld [vmem:[%s19151_s19 + $0x1708] sm:$0xf] }
 0x626   : > { %v16788_v58 = vor.u32 %v18520_v31, %v16787_v0  ;;  %v18615_v38 = vld [vmem:[%s20042_s14 + $0x230] sm:$0xff] }
 0x627   : > { %10545 = vmatpush.bf16.msrb.mxu0 %v16852_v50  ;;  %v10305_v13 = vpop.f32.mrf.mxu1  ;;  %v22073_v12 = vpop.f32.mrf.mxu3  ;;  %v18516_v50 = vld [vmem:[%s19151_s19 + $0x1514] sm:$0xf0] }
 0x628   : > { %10511 = vmatpush.bf16.msra.mxu1 %v16388_v63  ;;  %v22068_v11 = vadd.f32 %v10305_v13, %v10293_v54  ;;  %v16373_v54 = vld [vmem:[%s19151_s19 + $0x11f8] sm:$0xf0]  ;;  %v16772_v28 = vor.u32 %v18516_v50, %v16771_v45  ;;  %v18446_v13 = vld [vmem:[%s19151_s19 + $0x12ec] sm:$0xf] }
 0x629   : > { %10518 = vmatpush.bf16.msra.mxu2 %v16612_v52  ;;  %10639 = vmatpush.bf16.msrb.mxu3 %v16680_v62  ;;  %v16964_v52 = vor.u32 %v18564_v39, %v16963_v9  ;;  %v16532_v62 = vor.u32 %v18456_v49, %v16531_v27  ;;  %v16376_v63 = vor.u32 %v18414_v3, %v16373_v54  ;;  %v17091_v9 = vld [vmem:[%s19151_s19 + $0x1788] sm:$0xf]  ;;  %v18596_v39 = vld [vmem:[%s19151_s19 + $0x1794] sm:$0xf0]  ;;  %v16485_v27 = vld [vmem:[%s19151_s19 + $0x12d8] sm:$0xf0] }
 0x62a   : > { %v17092_v45 = vor.u32 %v18596_v39, %v17091_v9  ;;  %v17075_v3 = vld [vmem:[%s19151_s19 + $0x1768] sm:$0xf]  ;;  %v18592_v54 = vld [vmem:[%s19151_s19 + $0x1774] sm:$0xf0]  ;;  %v18614_v9 = vld [vmem:[%s20042_s14 + $0x228] sm:$0xff] }
 0x62b   : > { %10546 = vmatpush.bf16.msrb.mxu0 %v16836_v6  ;;  %10512 = vmatmul.bf16.vlgmr.msra.gmra.mxu1 %v21774_v32  ;;  %v17139_v6 = vld [vmem:[%s19151_s19 + $0x17e8] sm:$0xf] }
 0x62c   : > { %10556 = vmatpush.bf16.msrb.mxu1 %v17012_v22  ;;  %v18608_v22 = vld [vmem:[%s19151_s19 + $0x17f4] sm:$0xf0] }
 0x62d   : > { %10519 = vmatpush.bf16.msra.mxu2 %v16596_v56  ;;  %10640 = vmatpush.bf16.msrb.mxu3 %v16664_v18  ;;  %v18556_v56 = vld [vmem:[%s19151_s19 + $0x1654] sm:$0xf0]  ;;  %v17140_v14 = vor.u32 %v18608_v22, %v17139_v6  ;;  %v18390_v22 = vld [vmem:[%s19151_s19 + $0x112c] sm:$0xf] }
 0x62e   : > { %v16932_v2 = vor.u32 %v18556_v56, %v16931_v61  ;;  %v17059_v56 = vld [vmem:[%s19151_s19 + $0x1748] sm:$0xf]  ;;  %v18588_v6 = vld [vmem:[%s19151_s19 + $0x1754] sm:$0xf0] }
 0x62f   : > { %10547 = vmatpush.bf16.msrb.mxu0 %v16820_v30  ;;  %v10307_v55 = vpop.f32.mrf.mxu1  ;;  %v10385_v35 = vpop.f32.mrf.mxu3  ;;  %v16341_v30 = vld [vmem:[%s19151_s19 + $0x11b8] sm:$0xf0] }
 0x630   : > { %10557 = vmatpush.bf16.msrb.mxu1 %v16996_v25  ;;  %v16916_v25 = vor.u32 %v18552_v37, %v16915_v19  ;;  %v16293_v55 = vld [vmem:[%s19151_s19 + $0x1158] sm:$0xf0]  ;;  %v18584_v37 = vld [vmem:[%s19151_s19 + $0x1734] sm:$0xf0] }
 0x631   : > { %10520 = vmatpush.bf16.msra.mxu2 %v16580_v26  ;;  %10641 = vmatpush.bf16.msrb.mxu3 %v16648_v23  ;;  %v18604_v26 = vld [vmem:[%s19151_s19 + $0x17d4] sm:$0xf0]  ;;  %v16344_v23 = vor.u32 %v18406_v4, %v16341_v30  ;;  %v16453_v35 = vld [vmem:[%s19151_s19 + $0x1298] sm:$0xf0]  ;;  %v18430_v4 = vld [vmem:[%s19151_s19 + $0x126c] sm:$0xf] }
 0x632   : > { %v17124_v48 = vor.u32 %v18604_v26, %v17123_v17  ;;  %v16456_v19 = vor.u32 %v18434_v7, %v16453_v35  ;;  %v18386_v17 = vld [vmem:[%s19151_s19 + $0x110c] sm:$0xf]  ;;  %v16261_v26 = vld [vmem:[%s19151_s19 + $0x1118] sm:$0xf0] }
 0x633   : > { %10548 = vmatpush.bf16.msrb.mxu0 %v16804_v8  ;;  %v16501_v8 = vld [vmem:[%s19151_s19 + $0x12f8] sm:$0xf0] }
 0x634   : > { %10558 = vmatpush.bf16.msrb.mxu1 %v16980_v5  ;;  %10642 = vmatmul.bf16.vlgmr.msrb.gmra.mxu3 %v21725_v16  ;;  %v18452_v16 = vld [vmem:[%s19151_s19 + $0x1314] sm:$0xf0]  ;;  %v16504_v31 = vor.u32 %v18446_v13, %v16501_v8  ;;  %v16437_v30 = vld [vmem:[%s19151_s19 + $0x1278] sm:$0xf0] }
 0x635   : > { %10521 = vmatpush.bf16.msra.mxu2 %v16564_v57  ;;  %v16516_v18 = vor.u32 %v18452_v16, %v16515_v1  ;;  %v16325_v57 = vld [vmem:[%s19151_s19 + $0x1198] sm:$0xf0]  ;;  %v17076_v16 = vor.u32 %v18592_v54, %v17075_v3  ;;  %v16440_v53 = vor.u32 %v18430_v4, %v16437_v30  ;;  %v18613_v3 = vld [vmem:[%s20042_s14 + $0x220] sm:$0xff] }
 0x636   : > { %v16328_v0 = vor.u32 %v18402_v41, %v16325_v57  ;;  %v18580_v41 = vld [vmem:[%s19151_s19 + $0x1714] sm:$0xf0]  ;;  %v18426_v57 = vld [vmem:[%s19151_s19 + $0x124c] sm:$0xf]  ;;  %v16421_v8 = vld [vmem:[%s19151_s19 + $0x1258] sm:$0xf0] }
 0x637   : > { %10549 = vmatpush.bf16.msrb.mxu0 %v16788_v58  ;;  %v22108_v5 = vpop.f32.mrf.mxu3  ;;  %v16309_v58 = vld [vmem:[%s19151_s19 + $0x1178] sm:$0xf0]  ;;  %v17028_v39 = vor.u32 %v18580_v41, %v17027_v42  ;;  %v18462_v30 = vld [vmem:[%s19151_s19 + $0x136c] sm:$0xf]  ;;  %v18610_v41 = vld [vmem:[%s20042_s14 + $0x208] sm:$0xff] }
 0x638   : > { %10559 = vmatpush.bf16.msrb.mxu1 %v16964_v52  ;;  %v18442_v52 = vld [vmem:[%s19151_s19 + $0x12cc] sm:$0xf]  ;;  %v16981_v42 = vld [vmem:[%s19151_s19 + $0x16b8] sm:$0xf0] }
 0x639   : > { %10522 = vmatpush.bf16.msra.mxu2 %v16548_v34  ;;  %v18398_v34 = vld [vmem:[%s19151_s19 + $0x116c] sm:$0xf]  ;;  %v16488_v20 = vor.u32 %v18442_v52, %v16485_v27 }
 0x63a   : > { %v16312_v44 = vor.u32 %v18398_v34, %v16309_v58  ;;  %v16424_v34 = vor.u32 %v18426_v57, %v16421_v8  ;;  %v18422_v52 = vld [vmem:[%s19151_s19 + $0x122c] sm:$0xf] }
 0x63b   : > { %10550 = vmatpush.bf16.msrb.mxu0 %v16772_v28  ;;  %v18438_v28 = vld [vmem:[%s19151_s19 + $0x12ac] sm:$0xf] }
 0x63c   : > { %10560 = vmatpush.bf16.msrb.mxu1 %v16948_v59  ;;  %v16469_v59 = vld [vmem:[%s19151_s19 + $0x12b8] sm:$0xf0] }
 0x63d   : > { %10523 = vmatpush.bf16.msra.mxu2 %v16532_v62  ;;  %v18394_v62 = vld [vmem:[%s19151_s19 + $0x114c] sm:$0xf] }
 0x63e   : > { %10551 = vmatmul.bf16.vlgmr.msrb.gmra.mxu0 %v21886_v43  ;;  %v16296_v61 = vor.u32 %v18394_v62, %v16293_v55  ;;  %v18418_v55 = vld [vmem:[%s19151_s19 + $0x120c] sm:$0xf] }
 0x63f   : > { %10595 = vmatpush.bf16.msra.mxu0 %v16376_v63  ;;  %v10318_v49 = vpop.f32.mrf.mxu2  ;;  %v10437_v1 = vpop.f32.mrf.mxu3  ;;  %v16472_v63 = vor.u32 %v18438_v28, %v16469_v59  ;;  %v16389_v28 = vld [vmem:[%s19151_s19 + $0x1218] sm:$0xf0]  ;;  %v18470_v59 = vld [vmem:[%s19151_s19 + $0x13ac] sm:$0xf] }
 0x640   : > { %10561 = vmatpush.bf16.msrb.mxu1 %v16932_v2  ;;  %v10319_v50 = vadd.f32 %v10318_v49, %v22068_v11  ;;  %v17060_v2 = vor.u32 %v18588_v6, %v17059_v56  ;;  %v16405_v49 = vld [vmem:[%s19151_s19 + $0x1238] sm:$0xf0]  ;;  %v18574_v56 = vld [vmem:[%s19151_s19 + $0x16ec] sm:$0xf]  ;;  %v16392_v7 = vor.u32 %v18418_v55, %v16389_v28 }
 0x641   : > { %10524 = vmatpush.bf16.msra.mxu2 %v16516_v18  ;;  %v16408_v54 = vor.u32 %v18422_v52, %v16405_v49  ;;  %v17013_v6 = vld [vmem:[%s19151_s19 + $0x16f8] sm:$0xf0] }
 0x642   : > { %v22125_v11 = vadd.f32 %v22037_v40, %v10319_v50  ;;  %v18616_v40 = vld [vmem:[%s20042_s14 + $0x238] sm:$0xff]  ;;  %v16613_v50 = vld [vmem:[%s19151_s19 + $0x13d8] sm:$0xf0] }
 0x643   : > { %10596 = vmatpush.bf16.msra.mxu0 %v16360_v36  ;;  %v17043_v36 = vld [vmem:[%s19151_s19 + $0x1728] sm:$0xf]  ;;  %10956 = vmatpush.bf16.msra.mxu3 %v18616_v40  ;;  %v18466_v40 = vld [vmem:[%s19151_s19 + $0x138c] sm:$0xf] }
 0x644   : > { %10525 = vmatmul.bf16.vlgmr.msra.gmra.mxu2 %v21823_v10  ;;  %10562 = vmatpush.bf16.msrb.mxu1 %v16916_v25  ;;  %v18542_v25 = vld [vmem:[%s19151_s19 + $0x15ec] sm:$0xf]  ;;  %v17044_v21 = vor.u32 %v18584_v37, %v17043_v36  ;;  %v16821_v36 = vld [vmem:[%s19151_s19 + $0x1578] sm:$0xf0] }
 0x645   : > { %10569 = vmatpush.bf16.msrb.mxu2 %v17140_v14  ;;  %v16280_v14 = vor.u32 %v18390_v22, %v16277_v46  ;;  %v18570_v37 = vld [vmem:[%s19151_s19 + $0x16cc] sm:$0xf] }
 0x647   : > { %10597 = vmatpush.bf16.msra.mxu0 %v16344_v23  ;;  %v10320_v18 = vpop.f32.mrf.mxu2  ;;  %v16264_v23 = vor.u32 %v18386_v17, %v16261_v26  ;;  %10957 = vmatpush.bf16.msra.mxu3 %v18615_v38  ;;  %v16997_v17 = vld [vmem:[%s19151_s19 + $0x16d8] sm:$0xf0] }
 0x648   : > { %10563 = vmatpush.bf16.msrb.mxu1 %v16900_v15  ;;  %v18478_v15 = vld [vmem:[%s19151_s19 + $0x13ec] sm:$0xf]  ;;  %v18611_v26 = vld [vmem:[%s20042_s14 + $0x210] sm:$0xff] }
 0x649   : > { %10570 = vmatpush.bf16.msrb.mxu2 %v17124_v48  ;;  %v16885_v48 = vld [vmem:[%s19151_s19 + $0x15f8] sm:$0xf0] }
 0x64a   : > { %v16888_v13 = vor.u32 %v18542_v25, %v16885_v48  ;;  %v17000_v48 = vor.u32 %v18570_v37, %v16997_v17  ;;  %v16565_v38 = vld [vmem:[%s19151_s19 + $0x1378] sm:$0xf0] }
 0x64b   : > { %10598 = vmatpush.bf16.msra.mxu0 %v16328_v0  ;;  %10564 = vmatmul.bf16.vlgmr.msrb.gmra.mxu1 %v21906_v24  ;;  %v18538_v0 = vld [vmem:[%s19151_s19 + $0x15cc] sm:$0xf]  ;;  %v16568_v8 = vor.u32 %v18462_v30, %v16565_v38  ;;  %v17125_v37 = vld [vmem:[%s19151_s19 + $0x17d8] sm:$0xf0] }
 0x64c   : > { %10608 = vmatpush.bf16.msra.mxu1 %v16504_v31  ;;  %v16869_v31 = vld [vmem:[%s19151_s19 + $0x15d8] sm:$0xf0]  ;;  %10958 = vmatpush.bf16.msra.mxu3 %v18614_v9  ;;  %v18518_v9 = vld [vmem:[%s19151_s19 + $0x152c] sm:$0xf] }
 0x64d   : > { %10571 = vmatpush.bf16.msrb.mxu2 %v17108_v29  ;;  %v16629_v29 = vld [vmem:[%s19151_s19 + $0x13f8] sm:$0xf0]  ;;  %v16872_v27 = vor.u32 %v18538_v0, %v16869_v31  ;;  %v18598_v38 = vld [vmem:[%s19151_s19 + $0x17ac] sm:$0xf] }
 0x64e   : > { %v16632_v58 = vor.u32 %v18478_v15, %v16629_v29  ;;  %v18458_v15 = vld [vmem:[%s19151_s19 + $0x134c] sm:$0xf]  ;;  %v16549_v31 = vld [vmem:[%s19151_s19 + $0x1358] sm:$0xf0] }
 0x64f   : > { %10599 = vmatpush.bf16.msra.mxu0 %v16312_v44  ;;  %v18534_v44 = vld [vmem:[%s19151_s19 + $0x15ac] sm:$0xf]  ;;  %v18623_v17 = vld [vmem:[%s20042_s14 + $0x270] sm:$0xff] }
 0x650   : > { %10609 = vmatpush.bf16.msra.mxu1 %v16488_v20  ;;  %v16853_v20 = vld [vmem:[%s19151_s19 + $0x15b8] sm:$0xf0]  ;;  %10959 = vmatpush.bf16.msra.mxu3 %v18613_v3 }
 0x651   : > { %10572 = vmatpush.bf16.msrb.mxu2 %v17092_v45  ;;  %v18474_v45 = vld [vmem:[%s19151_s19 + $0x13cc] sm:$0xf]  ;;  %v16856_v1 = vor.u32 %v18534_v44, %v16853_v20  ;;  %v16533_v44 = vld [vmem:[%s19151_s19 + $0x1338] sm:$0xf0] }
 0x652   : > { %v16616_v62 = vor.u32 %v18474_v45, %v16613_v50  ;;  %v18454_v50 = vld [vmem:[%s19151_s19 + $0x132c] sm:$0xf]  ;;  %v16773_v3 = vld [vmem:[%s19151_s19 + $0x1518] sm:$0xf0] }
 0x653   : > { %10600 = vmatpush.bf16.msra.mxu0 %v16296_v61  ;;  %v18530_v61 = vld [vmem:[%s19151_s19 + $0x158c] sm:$0xf]  ;;  %v16536_v28 = vor.u32 %v18454_v50, %v16533_v44  ;;  %v18619_v50 = vld [vmem:[%s20042_s14 + $0x250] sm:$0xff] }
 0x654   : > { %10610 = vmatpush.bf16.msra.mxu1 %v16472_v63  ;;  %v18612_v63 = vld [vmem:[%s20042_s14 + $0x218] sm:$0xff]  ;;  %v18514_v20 = vld [vmem:[%s19151_s19 + $0x150c] sm:$0xf] }
 0x655   : > { %10573 = vmatpush.bf16.msrb.mxu2 %v17076_v16  ;;  %v16597_v16 = vld [vmem:[%s19151_s19 + $0x13b8] sm:$0xf0]  ;;  %10960 = vmatpush.bf16.msra.mxu3 %v18612_v63  ;;  %v18554_v63 = vld [vmem:[%s19151_s19 + $0x164c] sm:$0xf] }
 0x656   : > { %v16600_v35 = vor.u32 %v18470_v59, %v16597_v16  ;;  %v18450_v59 = vld [vmem:[%s19151_s19 + $0x130c] sm:$0xf] }
 0x657   : > { %10601 = vmatpush.bf16.msra.mxu0 %v16280_v14  ;;  %v22170_v22 = vpop.f32.mrf.mxu3  ;;  %v16581_v14 = vld [vmem:[%s19151_s19 + $0x1398] sm:$0xf0] }
 0x658   : > { %10611 = vmatpush.bf16.msra.mxu1 %v16456_v19  ;;  %v18526_v19 = vld [vmem:[%s19151_s19 + $0x156c] sm:$0xf]  ;;  %v16584_v4 = vor.u32 %v18466_v40, %v16581_v14 }
 0x659   : > { %10574 = vmatpush.bf16.msrb.mxu2 %v17060_v2  ;;  %v17016_v2 = vor.u32 %v18574_v56, %v17013_v6  ;;  %v16824_v25 = vor.u32 %v18526_v19, %v16821_v36  ;;  %10961 = vmatpush.bf16.msra.mxu3 %v18611_v26  ;;  %v18606_v56 = vld [vmem:[%s19151_s19 + $0x17ec] sm:$0xf]  ;;  %v17141_v6 = vld [vmem:[%s19151_s19 + $0x17f8] sm:$0xf0] }
 0x65a   : > { %v18550_v14 = vld [vmem:[%s19151_s19 + $0x162c] sm:$0xf]  ;;  %v16917_v19 = vld [vmem:[%s19151_s19 + $0x1638] sm:$0xf0] }
 0x65b   : > { %10602 = vmatpush.bf16.msra.mxu0 %v16264_v23  ;;  %v22172_v46 = vpop.f32.mrf.mxu0  ;;  %v16805_v23 = vld [vmem:[%s19151_s19 + $0x1558] sm:$0xf0]  ;;  %v18602_v36 = vld [vmem:[%s19151_s19 + $0x17cc] sm:$0xf] }
 0x65c   : > { %10612 = vmatpush.bf16.msra.mxu1 %v16440_v53  ;;  %v18566_v53 = vld [vmem:[%s19151_s19 + $0x16ac] sm:$0xf]  ;;  %v17128_v30 = vor.u32 %v18602_v36, %v17125_v37 }
 0x65d   : > { %10575 = vmatpush.bf16.msrb.mxu2 %v17044_v21  ;;  %v18522_v21 = vld [vmem:[%s19151_s19 + $0x154c] sm:$0xf]  ;;  %v16984_v0 = vor.u32 %v18566_v53, %v16981_v42  ;;  %10962 = vmatpush.bf16.msra.mxu3 %v18610_v41 }
 0x65e   : > { %10603 = vmatmul.bf16.vlgmr.msra.gmra.mxu0 %v21744_v51  ;;  %v16837_v51 = vld [vmem:[%s19151_s19 + $0x1598] sm:$0xf0]  ;;  %v16808_v29 = vor.u32 %v18522_v21, %v16805_v23  ;;  %v18622_v23 = vld [vmem:[%s20042_s14 + $0x268] sm:$0xff] }
 0x65f   : > { %10647 = vmatpush.bf16.msrb.mxu0 %v16888_v13  ;;  %v16840_v18 = vor.u32 %v18530_v61, %v16837_v51  ;;  %v10489_v57 = vpop.f32.mrf.mxu3  ;;  %v16517_v61 = vld [vmem:[%s19151_s19 + $0x1318] sm:$0xf0] }
 0x660   : > { %10613 = vmatpush.bf16.msra.mxu1 %v16424_v34  ;;  %v18562_v34 = vld [vmem:[%s19151_s19 + $0x168c] sm:$0xf]  ;;  %v16933_v51 = vld [vmem:[%s19151_s19 + $0x1658] sm:$0xf0]  ;;  %v16520_v40 = vor.u32 %v18450_v59, %v16517_v61 }
 0x661   : > { %10576 = vmatpush.bf16.msrb.mxu2 %v17028_v39  ;;  %v16789_v39 = vld [vmem:[%s19151_s19 + $0x1538] sm:$0xf0]  ;;  %v18594_v57 = vld [vmem:[%s19151_s19 + $0x178c] sm:$0xf] }
 0x662   : > { %v16792_v49 = vor.u32 %v18518_v9, %v16789_v39  ;;  %v17109_v21 = vld [vmem:[%s19151_s19 + $0x17b8] sm:$0xf0]  ;;  %v10345_v9 = vadd.f32 %v22172_v46, %v22125_v11  ;;  %v18617_v61 = vld [vmem:[%s20042_s14 + $0x240] sm:$0xff] }
 0x663   : > { %10648 = vmatpush.bf16.msrb.mxu0 %v16872_v27  ;;  %v10346_v13 = vpop.f32.mrf.mxu0  ;;  %v16552_v27 = vor.u32 %v18458_v15, %v16549_v31  ;;  %v17112_v41 = vor.u32 %v18598_v38, %v17109_v21  ;;  %v18620_v31 = vld [vmem:[%s20042_s14 + $0x258] sm:$0xff]  ;;  %v18630_v21 = vld [vmem:[%s20042_s14 + $0x2a8] sm:$0xff] }
 0x664   : > { %10577 = vmatmul.bf16.vlgmr.msrb.gmra.mxu2 %v21952_v33  ;;  %10614 = vmatpush.bf16.msra.mxu1 %v16408_v54  ;;  %v18558_v54 = vld [vmem:[%s19151_s19 + $0x166c] sm:$0xf]  ;;  %v17093_v13 = vld [vmem:[%s19151_s19 + $0x1798] sm:$0xf0] }
 0x665   : > { %10621 = vmatpush.bf16.msra.mxu2 %v16632_v58  ;;  %v18609_v58 = vld [vmem:[%s20042_s14 + $0x200] sm:$0xff] }
 0x666   : > { %10963 = vmatpush.bf16.msra.mxu3 %v18609_v58 }
 0x667   : > { %10649 = vmatpush.bf16.msrb.mxu0 %v16856_v1  ;;  %v22196_v52 = vpop.f32.mrf.mxu1  ;;  %v16776_v1 = vor.u32 %v18514_v20, %v16773_v3  ;;  %v18582_v20 = vld [vmem:[%s19151_s19 + $0x172c] sm:$0xf]  ;;  %v17045_v3 = vld [vmem:[%s19151_s19 + $0x1738] sm:$0xf0] }
 0x668   : > { %10615 = vmatpush.bf16.msra.mxu1 %v16392_v7  ;;  %v18624_v7 = vld [vmem:[%s20042_s14 + $0x278] sm:$0xff] }
 0x669   : > { %10622 = vmatpush.bf16.msra.mxu2 %v16616_v62  ;;  %v16949_v62 = vld [vmem:[%s19151_s19 + $0x1678] sm:$0xf0] }
 0x66a   : > { %v16952_v16 = vor.u32 %v18558_v54, %v16949_v62 }
 0x66b   : > { %10650 = vmatpush.bf16.msrb.mxu0 %v16840_v18  ;;  %10616 = vmatmul.bf16.vlgmr.msra.gmra.mxu1 %v21774_v32  ;;  %v16965_v32 = vld [vmem:[%s19151_s19 + $0x1698] sm:$0xf0]  ;;  %v22204_v55 = vpop.f32.mrf.mxu0  ;;  %v16936_v18 = vor.u32 %v18554_v63, %v16933_v51  ;;  %v8983_v63 = vperm.slane %v22012_v60, 1 }
 0x66c   : > { %10660 = vmatpush.bf16.msrb.mxu1 %v17016_v2  ;;  %v16968_v45 = vor.u32 %v18562_v34, %v16965_v32  ;;  %v17144_v2 = vor.u32 %v18606_v56, %v17141_v6  ;;  %v10358_v32 = vadd.f32 %v22196_v52, %v10345_v9  ;;  %v18618_v52 = vld [vmem:[%s20042_s14 + $0x248] sm:$0xff]  ;;  %v8984_v9 = vperm.slane %v22012_v60, 2 }
 0x66d   : > { %10623 = vmatpush.bf16.msra.mxu2 %v16600_v35  ;;  %v10384_v56 = vadd.f32 %v22073_v12, %v8983_v63  ;;  %v18634_v63 = vld [vmem:[%s20042_s14 + $0x2c8] sm:$0xff] }
 0x66f   : > { %10651 = vmatpush.bf16.msrb.mxu0 %v16824_v25  ;;  %v10359_v35 = vpop.f32.mrf.mxu1  ;;  %v18546_v25 = vld [vmem:[%s19151_s19 + $0x160c] sm:$0xf] }
 0x670   : > { %10661 = vmatpush.bf16.msrb.mxu1 %v17000_v48  ;;  %v16901_v48 = vld [vmem:[%s19151_s19 + $0x1618] sm:$0xf0] }
 0x671   : > { %10624 = vmatpush.bf16.msra.mxu2 %v16584_v4  ;;  %v16920_v4 = vor.u32 %v18550_v14, %v16917_v19  ;;  %v16904_v42 = vor.u32 %v18546_v25, %v16901_v48  ;;  %v18631_v48 = vld [vmem:[%s20042_s14 + $0x2b0] sm:$0xff] }
 0x673   : > { %10652 = vmatpush.bf16.msrb.mxu0 %v16808_v29  ;;  %v10398_v26 = vpop.f32.mrf.mxu0  ;;  %v17096_v29 = vor.u32 %v18594_v57, %v17093_v13  ;;  %v18627_v57 = vld [vmem:[%s20042_s14 + $0x290] sm:$0xff] }
 0x674   : > { %10662 = vmatpush.bf16.msrb.mxu1 %v16984_v0  ;;  %v17077_v0 = vld [vmem:[%s19151_s19 + $0x1778] sm:$0xf0] }
 0x675   : > { %10625 = vmatpush.bf16.msra.mxu2 %v16568_v8  ;;  %v18621_v8 = vld [vmem:[%s20042_s14 + $0x260] sm:$0xff] }
 0x677   : > { %10653 = vmatpush.bf16.msrb.mxu0 %v16792_v49  ;;  %v22225_v53 = vpop.f32.mrf.mxu3  ;;  %v18586_v49 = vld [vmem:[%s19151_s19 + $0x174c] sm:$0xf] }
 0x678   : > { %10663 = vmatpush.bf16.msrb.mxu1 %v16968_v45  ;;  %v17061_v45 = vld [vmem:[%s19151_s19 + $0x1758] sm:$0xf0] }
 0x679   : > { %10626 = vmatpush.bf16.msra.mxu2 %v16552_v27  ;;  %v17064_v46 = vor.u32 %v18586_v49, %v17061_v45 }
 0x67b   : > { %10654 = vmatpush.bf16.msrb.mxu0 %v16776_v1  ;;  %v10448_v15 = vpop.f32.mrf.mxu0  ;;  %v18578_v1 = vld [vmem:[%s19151_s19 + $0x170c] sm:$0xf] }
 0x67c   : > { %10664 = vmatpush.bf16.msrb.mxu1 %v16952_v16  ;;  %v17029_v16 = vld [vmem:[%s19151_s19 + $0x1718] sm:$0xf0] }
 0x67d   : > { %10627 = vmatpush.bf16.msra.mxu2 %v16536_v28  ;;  %v17048_v28 = vor.u32 %v18582_v20, %v17045_v3  ;;  %v17032_v51 = vor.u32 %v18578_v1, %v17029_v16  ;;  %v18640_v20 = vld [vmem:[%s20042_s14 + $0x2f8] sm:$0xff]  ;;  %v18635_v16 = vld [vmem:[%s20042_s14 + $0x2d0] sm:$0xff] }
 0x67e   : > { %10655 = vmatmul.bf16.vlgmr.msrb.gmra.mxu0 %v21886_v43  ;;  %v10409_v43 = vpop.f32.mrf.mxu1  ;;  %v18636_v1 = vld [vmem:[%s20042_s14 + $0x2d8] sm:$0xff] }
 0x67f   : > { %10969 = vmatpush.bf16.msra.mxu0 %v18624_v7  ;;  %v10541_v39 = vpop.f32.mrf.mxu3  ;;  %v10397_v7 = vadd.f32 %v22204_v55, %v10384_v56  ;;  %v18632_v55 = vld [vmem:[%s20042_s14 + $0x2b8] sm:$0xff]  ;;  %v18633_v56 = vld [vmem:[%s20042_s14 + $0x2c0] sm:$0xff] }
 0x680   : > { %10665 = vmatpush.bf16.msrb.mxu1 %v16936_v18 }
 0x681   : > { %10628 = vmatpush.bf16.msra.mxu2 %v16520_v40  ;;  %v10410_v40 = vadd.f32 %v10409_v43, %v10397_v7 }
 0x683   : > { %10970 = vmatpush.bf16.msra.mxu0 %v18623_v17 }
 0x684   : > { %10629 = vmatmul.bf16.vlgmr.msra.gmra.mxu2 %v21823_v10  ;;  %10666 = vmatpush.bf16.msrb.mxu1 %v16920_v4  ;;  %v18590_v10 = vld [vmem:[%s19151_s19 + $0x176c] sm:$0xf] }
 0x685   : > { %10673 = vmatpush.bf16.msrb.mxu2 %v17144_v2  ;;  %v17080_v58 = vor.u32 %v18590_v10, %v17077_v0  ;;  %v18625_v10 = vld [vmem:[%s20042_s14 + $0x280] sm:$0xff] }
 0x686   : > { %v10411_v34 = vpop.f32.mrf.mxu1 }
 0x687   : > { %10971 = vmatpush.bf16.msra.mxu0 %v18622_v23  ;;  %v10370_v27 = vpop.f32.mrf.mxu2  ;;  %v18629_v23 = vld [vmem:[%s20042_s14 + $0x2a0] sm:$0xff]  ;;  %v10488_v34 = vadd.f32 %v22170_v22, %v8984_v9 }
 0x688   : > { %10667 = vmatpush.bf16.msrb.mxu1 %v16904_v42  ;;  %v10371_v44 = vadd.f32 %v10370_v27, %v10358_v32 }
 0x689   : > { %10674 = vmatpush.bf16.msrb.mxu2 %v17128_v30 }
 0x68a   : > { %v10686_v11 = vmax.f32 %v10371_v44, 0.0 }
 0x68b   : > { %10972 = vmatpush.bf16.msra.mxu0 %v18621_v8  ;;  %10668 = vmatmul.bf16.vlgmr.msrb.gmra.mxu1 %v21906_v24  ;;  %v10450_v24 = vpop.f32.mrf.mxu0 }
 0x68c   : > { %v10690_v54 = vpack.c.bf16 %v10686_v11, %v10686_v11  ;;  %10982 = vmatpush.bf16.msra.mxu1 %v18632_v55 }
 0x68d   : > { %10675 = vmatpush.bf16.msrb.mxu2 %v17112_v41  ;;  %v18628_v41 = vld [vmem:[%s20042_s14 + $0x298] sm:$0xff] }
 0x68e   : > { %v10461_v62 = vpop.f32.mrf.mxu1  ;;  %10964 = vmatmul.bf16.vlgmr.msra.gmra.mxu3 %v10690_v54 }
 0x68f   : > { %10973 = vmatpush.bf16.msra.mxu0 %v18620_v31  ;;  %v10372_v59 = vpop.f32.mrf.mxu2 }
 0x690   : > { %10983 = vmatpush.bf16.msra.mxu1 %v18631_v48 }
 0x691   : > { %10676 = vmatpush.bf16.msrb.mxu2 %v17096_v29 }
 0x693   : > { %10974 = vmatpush.bf16.msra.mxu0 %v18619_v50 }
 0x694   : > { %10984 = vmatpush.bf16.msra.mxu1 %v18630_v21 }
 0x695   : > { %10677 = vmatpush.bf16.msrb.mxu2 %v17080_v58 }
 0x696   : > { %v10463_v6 = vpop.f32.mrf.mxu1 }
 0x697   : > { %10975 = vmatpush.bf16.msra.mxu0 %v18618_v52  ;;  %v10422_v35 = vpop.f32.mrf.mxu2  ;;  %v18639_v52 = vld [vmem:[%s20042_s14 + $0x2f0] sm:$0xff] }
 0x698   : > { %v10423_v2 = vadd.f32 %v10422_v35, %v10410_v40  ;;  %10985 = vmatpush.bf16.msra.mxu1 %v18629_v23  ;;  %v18734_v35 = vld [vmem:[%s19153_s21 + $0x8] sm:$0xf] }
 0x699   : > { %10678 = vmatpush.bf16.msrb.mxu2 %v17064_v46  ;;  %v22250_v18 = vpop.f32.mrf.mxu3  ;;  %v8985_v40 = vperm.slane %v18734_v35, 3 }
 0x69a   : > { %v10436_v19 = vadd.f32 %v22108_v5, %v10423_v2 }
 0x69b   : > { %10976 = vmatpush.bf16.msra.mxu0 %v18617_v61  ;;  %v10500_v14 = vpop.f32.mrf.mxu0 }
 0x69c   : > { %v10449_v12 = vadd.f32 %v10448_v15, %v10436_v19  ;;  %10986 = vmatpush.bf16.msra.mxu1 %v18628_v41  ;;  %v18626_v15 = vld [vmem:[%s20042_s14 + $0x288] sm:$0xff]  ;;  %v10501_v58 = vadd.f32 %v10500_v14, %v10488_v34  ;;  %v10592_v14 = vadd.f32 %v22250_v18, %v8985_v40  ;;  %v18726_v18 = vld [vmem:[%s20127_s22 + $0x2] ss:$0 sm:$0xff] }
 0x69d   : > { %10679 = vmatpush.bf16.msrb.mxu2 %v17048_v28  ;;  %v18637_v28 = vld [vmem:[%s20042_s14 + $0x2e0] sm:$0xff] }
 0x69e   : > { %v10462_v26 = vadd.f32 %v10461_v62, %v10449_v12  ;;  %v18638_v62 = vld [vmem:[%s20042_s14 + $0x2e8] sm:$0xff] }
 0x69f   : > { %v10424_v36 = vpop.f32.mrf.mxu2 }
 0x6a0   : > { %10987 = vmatpush.bf16.msra.mxu1 %v18627_v57 }
 0x6a1   : > { %10680 = vmatpush.bf16.msrb.mxu2 %v17032_v51  ;;  %v10593_v37 = vpop.f32.mrf.mxu3 }
 0x6a3   : > { %v10502_v17 = vpop.f32.mrf.mxu0 }
 0x6a4   : > { %10681 = vmatmul.bf16.vlgmr.msrb.gmra.mxu2 %v21952_v33  ;;  %10988 = vmatpush.bf16.msra.mxu1 %v18626_v15 }
 0x6a5   : > { %10995 = vmatpush.bf16.msra.mxu2 %v18640_v20 }
 0x6a7   : > { %v10474_v4 = vpop.f32.mrf.mxu2 }
 0x6a8   : > { %v10475_v30 = vadd.f32 %v10474_v4, %v10462_v26  ;;  %v10513_v25 = vpop.f32.mrf.mxu1  ;;  %10989 = vmatpush.bf16.msra.mxu1 %v18625_v10  ;;  %v11010_v10 = vpop.permute.xlu0 %11009 }
 0x6a9   : > { %v10514_v27 = vadd.f32 %v10513_v25, %v10501_v58  ;;  %10996 = vmatpush.bf16.msra.mxu2 %v18639_v52 }
 0x6aa   : > { %v10687_v33 = vmax.f32 %v10475_v30, 0.0 }
 0x6ac   : > { %v10691_v38 = vpack.c.bf16 %v10687_v33, %v10687_v33 }
 0x6ad   : > { %10997 = vmatpush.bf16.msra.mxu2 %v18638_v62 }
 0x6ae   : > { %10977 = vmatmul.bf16.vlgmr.msra.gmra.mxu0 %v10691_v38 }
 0x6af   : > { %v10476_v5 = vpop.f32.mrf.mxu2 }
 0x6b0   : > { %v10515_v43 = vpop.f32.mrf.mxu1 }
 0x6b1   : > { %10998 = vmatpush.bf16.msra.mxu2 %v18637_v28 }
 0x6b5   : > { %10999 = vmatpush.bf16.msra.mxu2 %v18636_v1 }
 0x6b7   : > { %v22257_v42 = vpop.f32.mrf.mxu3 }
 0x6b9   : > { %11000 = vmatpush.bf16.msra.mxu2 %v18635_v16 }
 0x6bb   : > { %v10552_v13 = vpop.f32.mrf.mxu0 }
 0x6bd   : > { %11001 = vmatpush.bf16.msra.mxu2 %v18634_v63 }
 0x6bf   : > { %v10645_v8 = vpop.f32.mrf.mxu3 }
 0x6c1   : > { %11002 = vmatpush.bf16.msra.mxu2 %v18633_v56 }
 0x6c3   : > { %v10554_v29 = vpop.f32.mrf.mxu0 }
 0x6c7   : > { %v10526_v0 = vpop.f32.mrf.mxu2 }
 0x6c8   : > { %v10565_v31 = vpop.f32.mrf.mxu1  ;;  %v10527_v49 = vadd.f32 %v10526_v0, %v10514_v27  ;;  %v11017_v0 = vsel %vm11016_vm1, %v20637_v47, %v11010_v10 }
 0x6ca   : > { %v10540_v45 = vadd.f32 %v22225_v53, %v10527_v49 }
 0x6cc   : > { %v10553_v44 = vadd.f32 %v10552_v13, %v10540_v45 }
 0x6ce   : > { %v10566_v11 = vadd.f32 %v10565_v31, %v10553_v44 }
 0x6cf   : > { %v10528_v39 = vpop.f32.mrf.mxu2 }
 0x6d0   : > { %v10567_v32 = vpop.f32.mrf.mxu1 }
 0x6db   : > { %v10604_v50 = vpop.f32.mrf.mxu0 }
 0x6dc   : > { %v10605_v36 = vadd.f32 %v10604_v50, %v10592_v14 }
 0x6e3   : > { %v10606_v24 = vpop.f32.mrf.mxu0 }
 0x6e7   : > { %v10578_v46 = vpop.f32.mrf.mxu2 }
 0x6e8   : > { %v10579_v60 = vadd.f32 %v10578_v46, %v10566_v11  ;;  %v10617_v3 = vpop.f32.mrf.mxu1 }
 0x6e9   : > { %v10618_v37 = vadd.f32 %v10617_v3, %v10605_v36 }
 0x6ea   : > { %v10688_v22 = vmax.f32 %v10579_v60, 0.0 }
 0x6ec   : > { %v10692_v54 = vpack.c.bf16 %v10688_v22, %v10688_v22 }
 0x6ee   : > { %10990 = vmatmul.bf16.vlgmr.msra.gmra.mxu1 %v10692_v54 }
 0x6ef   : > { %v10580_v53 = vpop.f32.mrf.mxu2 }
 0x6f0   : > { %v10619_v59 = vpop.f32.mrf.mxu1 }
 0x6fb   : > { %v10656_v61 = vpop.f32.mrf.mxu0 }
 0x703   : > { %v10658_v51 = vpop.f32.mrf.mxu0 }
 0x707   : > { %v10630_v6 = vpop.f32.mrf.mxu2 }
 0x708   : > { %v10669_v7 = vpop.f32.mrf.mxu1  ;;  %v10631_v12 = vadd.f32 %v10630_v6, %v10618_v37 }
 0x70a   : > { %v10644_v26 = vadd.f32 %v22257_v42, %v10631_v12 }
 0x70c   : > { %v10657_v4 = vadd.f32 %v10656_v61, %v10644_v26 }
 0x70e   : > { %v10670_v30 = vadd.f32 %v10669_v7, %v10657_v4 }
 0x70f   : > { %v10632_v2 = vpop.f32.mrf.mxu2 }
 0x710   : > { %v10671_v19 = vpop.f32.mrf.mxu1 }
 0x711   : > { %v10965_v17 = vpop.f32.mrf.mxu3 }
 0x712   : > { %v10966_v21 = vadd.f32 %v18726_v18, %v10965_v17 }
 0x719   : > { %v10967_v55 = vpop.f32.mrf.mxu3 }
 0x727   : > { %v10682_v33 = vpop.f32.mrf.mxu2 }
 0x728   : > { %v10683_v25 = vadd.f32 %v10682_v33, %v10670_v30 }
 0x72a   : > { %v10689_v48 = vmax.f32 %v10683_v25, 0.0 }
 0x72b   : > { %v10978_v23 = vpop.f32.mrf.mxu0 }
 0x72c   : > { %v10693_v38 = vpack.c.bf16 %v10689_v48, %v10689_v48  ;;  %v10979_v43 = vadd.f32 %v10978_v23, %v10966_v21 }
 0x72e   : > { %11003 = vmatmul.bf16.vlgmr.msra.gmra.mxu2 %v10693_v38 }
 0x72f   : > { %v10684_v5 = vpop.f32.mrf.mxu2 }
 0x733   : > { %v10980_v41 = vpop.f32.mrf.mxu0 }
 0x76b   : > { %v10991_v57 = vpop.f32.mrf.mxu1 }
 0x76c   : > { %v10992_v8 = vadd.f32 %v10991_v57, %v10979_v43 }
 0x773   : > { %v10993_v13 = vpop.f32.mrf.mxu1 }
 0x7b1   : > { %v11004_v42 = vpop.f32.mrf.mxu2 }
 0x7b2   : > { %v11005_v15 = vadd.f32 %v11004_v42, %v10992_v8 }
 0x7b4   : > { %11013 = vrot.lane.b32.xlu0 %v11005_v15, %s18939_s7 }
 0x7b9   : > { %v11006_v29 = vpop.f32.mrf.mxu2 }
 0x826   : > { %v11014_v31 = vpop.permute.xlu0 %11013 }
 0x827   : > { %v11018_v9 = vsel %vm1383_vm0, %v11017_v0, %v11014_v31 }
 0x828   : > { %11020 = vst.msk [vmem:[%s491_s12] sm:$0x3] %vm11019_vm2, %v11018_v9 }
 0x829 PF: > { %s22327_s27 = sld [smem:[#allocation14_spill]]  ;;  %s22330_s24 = smov %s18919_s25 }
 0x82a   : > { %s22328_s23 = sld [smem:[#allocation13_spill]] }
 0x82b   : > { %s22329_s26 = sld [smem:[#allocation15_spill]] }
 0x82f   : > { %p23_p10 = scmp.ge.s32.totalorder %s22327_s27, 4  }
 0x830   : > { %s22331_s25 = smov %s22328_s23 }
 0x831   :  { %25 = sbr.rel (!%p23_p10) target bundleno = 12 (0xc), region = 151 }
 0x836   :  { %11040 = vsyncpa [#allocation3], 1 }
 0x837   :  { %11042 = vsyncpa [#allocation3 + $0x1], 1 }
 0x838   :  { %11043 = vsyncpa [#allocation5], 1 }
 0x839   :  { %11045 = vsyncpa [#allocation5 + $0x1], 1 }
 0x83a   :  { %11046 = vsyncpa [#allocation8], 1 }
 0x83b   :  { %11048 = vsyncpa [#allocation8 + $0x1], 1 }

</bundles_post_ra>
